<compile_context>
chip_gen: v5e
topology: v5e:2x2
jax: 0.10.0
libtpu: 0.0.40
codegen_flags: <defaults>
</compile_context>

<pallas_src>
import functools

import jax
import jax.numpy as jnp
from jax import lax
from jax.experimental import pallas as pl
from jax.experimental.pallas import tpu as pltpu

LN_EPS = 1e-5
MXU_DTYPE = jnp.bfloat16            # matmul operand dtype; accumulation stays float32


# -----------------------------------------------------------------------------
# In-kernel helpers (traced inside the Pallas kernel body)
# -----------------------------------------------------------------------------
def _normalize(x):
    mu = jnp.mean(x, axis=-1, keepdims=True)
    xc = x - mu
    var = jnp.mean(xc * xc, axis=-1, keepdims=True)
    return xc * lax.rsqrt(var + LN_EPS)


def _gelu(x):
    # TODO(synk): erf-form GELU not guaranteed to lower in Mosaic; tanh approximation used.
    return jax.nn.gelu(x, approximate=True)


def _mm(a_f32, w_bf16):
    return jnp.dot(a_f32.astype(MXU_DTYPE), w_bf16, preferred_element_type=jnp.float32)


def _mh_attention(q3, k3, v3, *, heads, scale, rel_w=None):
    """Multi-head attention core. q3:[G,Nq,C], k3/v3:[G,Nk,C] (f32, already projected).
    Returns a list of per-head contexts [G, Nq, head_dim] (f32)."""
    G, Nq, C = q3.shape
    hd = C // heads
    ctxs = []
    for h in range(heads):
        sl = slice(h * hd, (h + 1) * hd)
        qh, kh, vh = q3[..., sl], k3[..., sl], v3[..., sl]
        logits = jnp.einsum("gqc,gkc->gqk", qh.astype(MXU_DTYPE), kh.astype(MXU_DTYPE),
                            preferred_element_type=jnp.float32)
        if rel_w is not None:
            # FullRelPos bias, computed in-kernel on the VPU:
            #   bias[g, q, k] = sum_c q[g, q, c] * rel_w[q, k, c]
            # Added BEFORE the scale, matching the reference: attn = (q.k^T + bias) * scale.
            logits = logits + jnp.sum(qh[:, :, None, :] * rel_w[None, :, :, :], axis=-1)
        logits = logits * scale
        logits = logits - jnp.max(logits, axis=-1, keepdims=True)
        p = jnp.exp(logits)
        p = p * pl.reciprocal(jnp.sum(p, axis=-1, keepdims=True), approx=True)
        ctxs.append(jnp.einsum("gqk,gkc->gqc", p.astype(MXU_DTYPE), vh.astype(MXU_DTYPE),
                               preferred_element_type=jnp.float32))
    return ctxs


def _proj_heads(ctxs, wp, bp):
    """Output projection as a sum of per-head row-block matmuls
    (equivalent to concat(heads) @ wp, without a lane-axis concatenate)."""
    G, Nq, hd = ctxs[0].shape
    acc = None
    for h, ctx in enumerate(ctxs):
        part = jnp.dot(ctx.reshape(G * Nq, hd).astype(MXU_DTYPE),
                       wp[h * hd:(h + 1) * hd, :], preferred_element_type=jnp.float32)
        acc = part if acc is None else acc + part
    return (acc + bp).reshape(G, Nq, wp.shape[1])


def _mlp_residual(x2d, w1, b1, w2, b2):
    # x + fc2(GELU(fc1(LN(x)))); the LN affine is folded into (w1, b1).
    h = _gelu(_mm(_normalize(x2d), w1) + b1)
    return x2d + _mm(h, w2) + b2


# -----------------------------------------------------------------------------
# The fused Decoder kernel (one grid step = one batch element)
# -----------------------------------------------------------------------------
def _decoder_kernel(x_ref, parts_ref, kpos_ref,
                    wq1_ref, bq1_ref, wk1_ref, bk1_ref, wv1_ref, bv1_ref, wp1_ref, bp1_ref,
                    w11_ref, b11_ref, w12_ref, b12_ref,
                    wqkv2_ref, bqkv2_ref, wp2_ref, bp2_ref,
                    w21_ref, b21_ref, w22_ref, b22_ref,
                    relw_ref, o_ref, *, heads, P, scale):
    x = x_ref[0]                        # [N1, C]   (N1 = P * patch_size**2)
    parts = parts_ref[0]                # [Np, C]
    kpos = kpos_ref[0]                  # [Np, C]   (part_kpos broadcast over heads)
    N1, C = x.shape
    kk = N1 // P

    # ---- attn1: cross-attention q = x, k = parts + kpos, v = parts (+ residual) ----
    q1 = _mm(_normalize(x), wq1_ref[...]) + bq1_ref[...]
    k1 = _mm(_normalize(parts + kpos), wk1_ref[...]) + bk1_ref[...]
    v1 = _mm(_normalize(parts), wv1_ref[...]) + bv1_ref[...]
    ctx1 = _mh_attention(q1[None], k1[None], v1[None], heads=heads, scale=scale)
    out = x + _proj_heads(ctx1, wp1_ref[...], bp1_ref[...])[0]

    # ---- ffn1 (pre-LN MLP) + residual ----
    out = _mlp_residual(out, w11_ref[...], b11_ref[...], w12_ref[...], b12_ref[...])

    # ---- attn2: local self-attention within each of the P groups, with rel-pos bias ----
    og = out.reshape(P, kk, C)
    qkv = _mm(_normalize(out), wqkv2_ref[...]) + bqkv2_ref[...]     # single [C, 3C] matmul
    q2 = qkv[:, :C].reshape(P, kk, C)
    k2 = qkv[:, C:2 * C].reshape(P, kk, C)
    v2 = qkv[:, 2 * C:].reshape(P, kk, C)
    ctx2 = _mh_attention(q2, k2, v2, heads=heads, scale=scale, rel_w=relw_ref[...])
    out2 = og + _proj_heads(ctx2, wp2_ref[...], bp2_ref[...])

    # ---- ffn2 + residual ----
    out2 = _mlp_residual(out2.reshape(N1, C), w21_ref[...], b21_ref[...],
                         w22_ref[...], b22_ref[...])
    o_ref[0] = out2.reshape(P, kk, C)


# -----------------------------------------------------------------------------
# Wrapper: parameter folding, rel-pos table construction, pallas_call plumbing
# -----------------------------------------------------------------------------
def _fold_ln_linear(ln, w, b=None):
    """LN(x) @ W + b  =  normalize(x) @ (g[:,None]*W)  +  (beta @ W + b)."""
    w32 = w.astype(jnp.float32)
    wf = (w32 * ln["g"][:, None]).astype(MXU_DTYPE)
    bf = ln["beta"] @ w32
    if b is not None:
        bf = bf + b.astype(jnp.float32)
    return wf, bf.reshape(1, -1).astype(jnp.float32)


def _build_rel_wr(emb_w, emb_h, h, w):
    """FullRelPos tables -> per-(query,key) channel table Wr[q, k, head_dim]:
         Wr[(x,y), (k1,k2), :hd/2] = emb_w[k2 - y + w - 1]
         Wr[(x,y), (k1,k2), hd/2:] = emb_h[k1 - x + h - 1]"""
    c2 = emb_w.shape[1]
    iw = jnp.arange(w)[None, :] - jnp.arange(w)[:, None] + (w - 1)   # [y, k2]
    ih = jnp.arange(h)[None, :] - jnp.arange(h)[:, None] + (h - 1)   # [x, k1]
    abs_w = emb_w.astype(jnp.float32)[iw]                            # [y, k2, c2]
    abs_h = emb_h.astype(jnp.float32)[ih]                            # [x, k1, c2]
    ww = jnp.broadcast_to(abs_w[None, :, None, :, :], (h, w, h, w, c2))
    hh = jnp.broadcast_to(abs_h[:, None, :, None, :], (h, w, h, w, c2))
    return jnp.concatenate([ww, hh], axis=-1).reshape(h * w, h * w, 2 * c2)


def _batched_spec(shape):
    nd = len(shape)
    return pl.BlockSpec((1,) + tuple(shape[1:]),
                        lambda b, _nd=nd: (b,) + (0,) * (_nd - 1))


def _bcast_spec(shape):
    nd = len(shape)
    return pl.BlockSpec(tuple(shape), lambda b, _nd=nd: (0,) * _nd)


def decoder_forward(params, x, parts, part_kpos, *, heads, patch_size, P):
    B, N1, C = x.shape
    Np = parts.shape[1]
    hd = C // heads
    kk = patch_size * patch_size
    assert N1 == P * kk and C % heads == 0 and hd % 2 == 0
    scale = float(hd) ** -0.5

    x = x.astype(jnp.float32)
    parts = parts.astype(jnp.float32)
    kposf = jnp.broadcast_to(part_kpos.astype(jnp.float32),
                             (B, Np, heads, hd)).reshape(B, Np, C)

    a1, a2, f1, f2 = params["attn1"], params["attn2"], params["ffn1"], params["ffn2"]

    wq1, bq1 = _fold_ln_linear(a1["ln_q"], a1["wq"])
    wk1, bk1 = _fold_ln_linear(a1["ln_k"], a1["wk"])
    wv1, bv1 = _fold_ln_linear(a1["ln_v"], a1["wv"])
    wp1 = a1["wp"].astype(MXU_DTYPE)
    bp1 = a1["bp"].reshape(1, C).astype(jnp.float32)

    w11, b11 = _fold_ln_linear(f1["ln"], f1["w1"], f1["b1"])
    w12 = f1["w2"].astype(MXU_DTYPE)
    b12 = f1["b2"].reshape(1, C).astype(jnp.float32)

    wq2, bq2 = _fold_ln_linear(a2["ln_q"], a2["wq"])
    wk2, bk2 = _fold_ln_linear(a2["ln_k"], a2["wk"])
    wv2, bv2 = _fold_ln_linear(a2["ln_v"], a2["wv"])
    wqkv2 = jnp.concatenate([wq2, wk2, wv2], axis=1)                 # [C, 3C] bf16
    bqkv2 = jnp.concatenate([bq2, bk2, bv2], axis=1)                 # [1, 3C] f32
    wp2 = a2["wp"].astype(MXU_DTYPE)
    bp2 = a2["bp"].reshape(1, C).astype(jnp.float32)

    w21, b21 = _fold_ln_linear(f2["ln"], f2["w1"], f2["b1"])
    w22 = f2["w2"].astype(MXU_DTYPE)
    b22 = f2["b2"].reshape(1, C).astype(jnp.float32)

    relw = _build_rel_wr(params["rel_emb_w"], params["rel_emb_h"], patch_size, patch_size)

    ops = [x, parts, kposf,
           wq1, bq1, wk1, bk1, wv1, bv1, wp1, bp1,
           w11, b11, w12, b12,
           wqkv2, bqkv2, wp2, bp2,
           w21, b21, w22, b22,
           relw]
    in_specs = ([_batched_spec(x.shape), _batched_spec(parts.shape), _batched_spec(kposf.shape)]
                + [_bcast_spec(o.shape) for o in ops[3:]])

    return pl.pallas_call(
        functools.partial(_decoder_kernel, heads=heads, P=P, scale=scale),
        out_shape=jax.ShapeDtypeStruct((B, P, kk, C), jnp.float32),
        grid=(B,),
        in_specs=in_specs,
        out_specs=pl.BlockSpec((1, P, kk, C), lambda b: (b, 0, 0, 0)),
        compiler_params=pltpu.CompilerParams(dimension_semantics=("parallel",)),
    )(*ops)


# -----------------------------------------------------------------------------
# Pure-JAX (XLA) reference, mirroring the PyTorch Decoder forward (inference)
# -----------------------------------------------------------------------------
def decoder_reference(params, x, parts, part_kpos, *, heads, patch_size, P):
    B, N1, C = x.shape
    hd = C // heads
    scale = float(hd) ** -0.5

    def ln(t, p):
        mu = jnp.mean(t, axis=-1, keepdims=True)
        var = jnp.mean((t - mu) ** 2, axis=-1, keepdims=True)
        return (t - mu) * lax.rsqrt(var + LN_EPS) * p["g"] + p["beta"]

    def lin(t, w, b=None):
        y = t @ w.astype(jnp.float32)
        return y if b is None else y + b

    def rel_pos(qh, logits):
        h = w = patch_size
        c2 = hd // 2
        iw = jnp.arange(w)[None, :] - jnp.arange(w)[:, None] + (w - 1)
        ih = jnp.arange(h)[None, :] - jnp.arange(h)[:, None] + (h - 1)
        abs_w = params["rel_emb_w"].astype(jnp.float32)[iw]
        abs_h = params["rel_emb_h"].astype(jnp.float32)[ih]
        Bq = qh.shape[0]
        qr = qh.reshape(Bq, h, w, heads, hd)
        lw = jnp.einsum("bxygc,ykc->bxygk", qr[..., :c2], abs_w)
        lh = jnp.einsum("bxygc,xkc->bxygk", qr[..., c2:], abs_h)
        lg = logits.reshape(Bq, h, w, heads, h, w)
        lg = lg + lw[:, :, :, :, None, :] + lh[:, :, :, :, :, None]
        return lg.reshape(Bq, h * w, heads, h * w)

    def attention(ap, q, k, v, kpos=None, use_rel=False):
        Bq, Nq, _ = q.shape
        Nk = k.shape[1]
        if kpos is not None:
            k = (k.reshape(Bq, Nk, heads, hd) + kpos).reshape(Bq, Nk, C)
        qp = lin(ln(q, ap["ln_q"]), ap["wq"])
        kp = lin(ln(k, ap["ln_k"]), ap["wk"])
        vp = lin(ln(v, ap["ln_v"]), ap["wv"])
        qh = qp.reshape(Bq, Nq, heads, hd)
        kh = kp.reshape(Bq, Nk, heads, hd)
        vh = vp.reshape(Bq, Nk, heads, hd)
        logits = jnp.einsum("bqgc,bkgc->bqgk", qh, kh)
        if use_rel:
            logits = rel_pos(qh, logits)
        logits = logits * scale
        p = jax.nn.softmax(logits, axis=-1)
        ctx = jnp.einsum("bqgk,bkgc->bqgc", p, vh).reshape(Bq, Nq, C)
        return lin(ctx, ap["wp"], ap["bp"].astype(jnp.float32))

    def mlp(mp, t):
        h = lin(ln(t, mp["ln"]), mp["w1"], mp["b1"].astype(jnp.float32))
        return lin(jax.nn.gelu(h, approximate=True), mp["w2"], mp["b2"].astype(jnp.float32))

    x = x.astype(jnp.float32)
    parts = parts.astype(jnp.float32)
    part_kpos = part_kpos.astype(jnp.float32)

    out = x + attention(params["attn1"], x, parts, parts, kpos=part_kpos)
    out = out + mlp(params["ffn1"], out)
    kk = N1 // P
    out = out.reshape(B * P, kk, C)
    out = out + attention(params["attn2"], out, out, out, use_rel=True)
    out = out + mlp(params["ffn2"], out)
    return out.reshape(B, P, kk, C)


# -----------------------------------------------------------------------------
# Deterministic parameter construction (synthetic; no checkpoint loading)
# -----------------------------------------------------------------------------
def build_params(key, dim, heads, patch_size, ffn_exp):
    hd = dim // heads
    hidden = dim * ffn_exp
    keys = iter(jax.random.split(key, 48))

    def wmat(shape, std=0.05):
        return (std * jax.random.normal(next(keys), shape, jnp.float32)).astype(MXU_DTYPE)

    def vec(n, std=0.02):
        return std * jax.random.normal(next(keys), (n,), jnp.float32)

    def ln(d):
        return {"g": 1.0 + 0.1 * jax.random.normal(next(keys), (d,), jnp.float32),
                "beta": 0.1 * jax.random.normal(next(keys), (d,), jnp.float32)}

    def attn(d):
        return {"ln_q": ln(d), "ln_k": ln(d), "ln_v": ln(d),
                "wq": wmat((d, d)), "wk": wmat((d, d)), "wv": wmat((d, d)),
                "wp": wmat((d, d)), "bp": vec(d)}

    def mlp(d, h):
        return {"ln": ln(d), "w1": wmat((d, h)), "b1": vec(h),
                "w2": wmat((h, d)), "b2": vec(d)}

    return {
        "attn1": attn(dim), "ffn1": mlp(dim, hidden),
        "attn2": attn(dim), "ffn2": mlp(dim, hidden),
        "rel_emb_w": jax.random.normal(next(keys), (2 * patch_size - 1, hd // 2), jnp.float32),
        "rel_emb_h": jax.random.normal(next(keys), (2 * patch_size - 1, hd // 2), jnp.float32),
    }


# -----------------------------------------------------------------------------
# Main
# -----------------------------------------------------------------------------
if __name__ == "__main__":
    DIM, HEADS, PATCH, FFN_EXP = 32, 2, 4, 3
    B, P, NPARTS = 2, 4, 8
    KK = PATCH * PATCH            # tokens per local group
    N1 = P * KK                   # total tokens per image

    root = jax.random.PRNGKey(0)
    k_par, k_x, k_pt, k_kp = jax.random.split(root, 4)
    params = build_params(k_par, DIM, HEADS, PATCH, FFN_EXP)
    x = jax.random.normal(k_x, (B, N1, DIM), jnp.float32)
    parts = jax.random.normal(k_pt, (B, NPARTS, DIM), jnp.float32)
    part_kpos = 0.5 * jax.random.normal(k_kp, (B, NPARTS, 1, DIM // HEADS), jnp.float32)

    fwd = jax.jit(functools.partial(decoder_forward, heads=HEADS, patch_size=PATCH, P=P))
    out = jax.block_until_ready(fwd(params, x, parts, part_kpos))
    assert out.shape == (B, P, KK, DIM), out.shape
    assert bool(jnp.all(jnp.isfinite(out)))

    ref = jax.jit(functools.partial(decoder_reference, heads=HEADS, patch_size=PATCH, P=P))(
        params, x, parts, part_kpos)
    err = float(jnp.max(jnp.abs(out - ref)))
    assert err < 3e-2, f"max|pallas - reference| = {err}"
    print("KERNEL_OK")
</pallas_src>

<mosaic_0001>
module attributes {stable_mosaic.version = 11 : i64} {
  func.func @_decoder_kernel(%arg0: i32, %arg1: memref<1x64x32xf32, #tpu.memory_space<vmem>>, %arg2: memref<1x8x32xf32, #tpu.memory_space<vmem>>, %arg3: memref<1x8x32xf32, #tpu.memory_space<vmem>>, %arg4: memref<32x32xbf16, #tpu.memory_space<vmem>>, %arg5: memref<1x32xf32, #tpu.memory_space<vmem>>, %arg6: memref<32x32xbf16, #tpu.memory_space<vmem>>, %arg7: memref<1x32xf32, #tpu.memory_space<vmem>>, %arg8: memref<32x32xbf16, #tpu.memory_space<vmem>>, %arg9: memref<1x32xf32, #tpu.memory_space<vmem>>, %arg10: memref<32x32xbf16, #tpu.memory_space<vmem>>, %arg11: memref<1x32xf32, #tpu.memory_space<vmem>>, %arg12: memref<32x96xbf16, #tpu.memory_space<vmem>>, %arg13: memref<1x96xf32, #tpu.memory_space<vmem>>, %arg14: memref<96x32xbf16, #tpu.memory_space<vmem>>, %arg15: memref<1x32xf32, #tpu.memory_space<vmem>>, %arg16: memref<32x96xbf16, #tpu.memory_space<vmem>>, %arg17: memref<1x96xf32, #tpu.memory_space<vmem>>, %arg18: memref<32x32xbf16, #tpu.memory_space<vmem>>, %arg19: memref<1x32xf32, #tpu.memory_space<vmem>>, %arg20: memref<32x96xbf16, #tpu.memory_space<vmem>>, %arg21: memref<1x96xf32, #tpu.memory_space<vmem>>, %arg22: memref<96x32xbf16, #tpu.memory_space<vmem>>, %arg23: memref<1x32xf32, #tpu.memory_space<vmem>>, %arg24: memref<16x16x16xf32, #tpu.memory_space<vmem>>, %arg25: memref<1x4x16x32xf32, #tpu.memory_space<vmem>>) attributes {dimension_semantics = [#tpu.dimension_semantics<parallel>], iteration_bounds = array<i64: 2>, scalar_prefetch = 0 : i64, scratch_operands = 0 : i64, tpu.core_type = #tpu.core_type<tc>, window_params = [{transform_indices = @transform_0, window_bounds = array<i64: 1, 64, 32>}, {transform_indices = @transform_1, window_bounds = array<i64: 1, 8, 32>}, {transform_indices = @transform_2, window_bounds = array<i64: 1, 8, 32>}, {pipeline_mode = #tpu.pipeline_mode<synchronous>, transform_indices = @transform_3, window_bounds = array<i64: 32, 32>}, {pipeline_mode = #tpu.pipeline_mode<synchronous>, transform_indices = @transform_4, window_bounds = array<i64: 1, 32>}, {pipeline_mode = #tpu.pipeline_mode<synchronous>, transform_indices = @transform_5, window_bounds = array<i64: 32, 32>}, {pipeline_mode = #tpu.pipeline_mode<synchronous>, transform_indices = @transform_6, window_bounds = array<i64: 1, 32>}, {pipeline_mode = #tpu.pipeline_mode<synchronous>, transform_indices = @transform_7, window_bounds = array<i64: 32, 32>}, {pipeline_mode = #tpu.pipeline_mode<synchronous>, transform_indices = @transform_8, window_bounds = array<i64: 1, 32>}, {pipeline_mode = #tpu.pipeline_mode<synchronous>, transform_indices = @transform_9, window_bounds = array<i64: 32, 32>}, {pipeline_mode = #tpu.pipeline_mode<synchronous>, transform_indices = @transform_10, window_bounds = array<i64: 1, 32>}, {pipeline_mode = #tpu.pipeline_mode<synchronous>, transform_indices = @transform_11, window_bounds = array<i64: 32, 96>}, {pipeline_mode = #tpu.pipeline_mode<synchronous>, transform_indices = @transform_12, window_bounds = array<i64: 1, 96>}, {pipeline_mode = #tpu.pipeline_mode<synchronous>, transform_indices = @transform_13, window_bounds = array<i64: 96, 32>}, {pipeline_mode = #tpu.pipeline_mode<synchronous>, transform_indices = @transform_14, window_bounds = array<i64: 1, 32>}, {pipeline_mode = #tpu.pipeline_mode<synchronous>, transform_indices = @transform_15, window_bounds = array<i64: 32, 96>}, {pipeline_mode = #tpu.pipeline_mode<synchronous>, transform_indices = @transform_16, window_bounds = array<i64: 1, 96>}, {pipeline_mode = #tpu.pipeline_mode<synchronous>, transform_indices = @transform_17, window_bounds = array<i64: 32, 32>}, {pipeline_mode = #tpu.pipeline_mode<synchronous>, transform_indices = @transform_18, window_bounds = array<i64: 1, 32>}, {pipeline_mode = #tpu.pipeline_mode<synchronous>, transform_indices = @transform_19, window_bounds = array<i64: 32, 96>}, {pipeline_mode = #tpu.pipeline_mode<synchronous>, transform_indices = @transform_20, window_bounds = array<i64: 1, 96>}, {pipeline_mode = #tpu.pipeline_mode<synchronous>, transform_indices = @transform_21, window_bounds = array<i64: 96, 32>}, {pipeline_mode = #tpu.pipeline_mode<synchronous>, transform_indices = @transform_22, window_bounds = array<i64: 1, 32>}, {pipeline_mode = #tpu.pipeline_mode<synchronous>, transform_indices = @transform_23, window_bounds = array<i64: 16, 16, 16>}, {transform_indices = @transform_24, window_bounds = array<i64: 1, 4, 16, 32>}]} {
    %c0 = arith.constant 0 : index
    %c0_0 = arith.constant 0 : index
    %c0_1 = arith.constant 0 : index
    %0 = vector.load %arg1[%c0, %c0_0, %c0_1] : memref<1x64x32xf32, #tpu.memory_space<vmem>>, vector<1x64x32xf32>
    %1 = vector.shape_cast %0 : vector<1x64x32xf32> to vector<64x32xf32>
    %c0_2 = arith.constant 0 : index
    %c0_3 = arith.constant 0 : index
    %c0_4 = arith.constant 0 : index
    %2 = vector.load %arg2[%c0_2, %c0_3, %c0_4] : memref<1x8x32xf32, #tpu.memory_space<vmem>>, vector<1x8x32xf32>
    %3 = vector.shape_cast %2 : vector<1x8x32xf32> to vector<8x32xf32>
    %c0_5 = arith.constant 0 : index
    %c0_6 = arith.constant 0 : index
    %c0_7 = arith.constant 0 : index
    %4 = vector.load %arg3[%c0_5, %c0_6, %c0_7] : memref<1x8x32xf32, #tpu.memory_space<vmem>>, vector<1x8x32xf32>
    %5 = vector.shape_cast %4 : vector<1x8x32xf32> to vector<8x32xf32>
    %cst = arith.constant dense<0.000000e+00> : vector<64xf32>
    %6 = vector.multi_reduction <add>, %1, %cst [1] : vector<64x32xf32> to vector<64xf32>
    %7 = vector.shape_cast %6 : vector<64xf32> to vector<64x1xf32>
    %cst_8 = arith.constant 3.200000e+01 : f32
    %8 = vector.broadcast %cst_8 : f32 to vector<64x1xf32>
    %9 = arith.divf %7, %8 : vector<64x1xf32>
    %10 = vector.broadcast %9 : vector<64x1xf32> to vector<64x32xf32>
    %11 = arith.subf %1, %10 : vector<64x32xf32>
    %12 = arith.mulf %11, %11 : vector<64x32xf32>
    %cst_9 = arith.constant dense<0.000000e+00> : vector<64xf32>
    %13 = vector.multi_reduction <add>, %12, %cst_9 [1] : vector<64x32xf32> to vector<64xf32>
    %14 = vector.shape_cast %13 : vector<64xf32> to vector<64x1xf32>
    %cst_10 = arith.constant 3.200000e+01 : f32
    %15 = vector.broadcast %cst_10 : f32 to vector<64x1xf32>
    %16 = arith.divf %14, %15 : vector<64x1xf32>
    %cst_11 = arith.constant 9.99999974E-6 : f32
    %17 = vector.broadcast %cst_11 : f32 to vector<64x1xf32>
    %18 = arith.addf %16, %17 : vector<64x1xf32>
    %19 = math.rsqrt %18 : vector<64x1xf32>
    %20 = vector.broadcast %19 : vector<64x1xf32> to vector<64x32xf32>
    %21 = arith.mulf %11, %20 : vector<64x32xf32>
    %c0_12 = arith.constant 0 : index
    %c0_13 = arith.constant 0 : index
    %22 = vector.load %arg4[%c0_12, %c0_13] : memref<32x32xbf16, #tpu.memory_space<vmem>>, vector<32x32xbf16>
    %23 = arith.truncf %21 : vector<64x32xf32> to vector<64x32xbf16>
    %cst_14 = arith.constant dense<0.000000e+00> : vector<64x32xf32>
    %24 = tpu.matmul %23, %22, %cst_14 {dimension_numbers = #tpu.dot_dimension_numbers<[1], [0], [0], [1], [0, 0, 1, 1], [], []>} : vector<64x32xbf16>, vector<32x32xbf16>, vector<64x32xf32> -> vector<64x32xf32>
    %c0_15 = arith.constant 0 : index
    %c0_16 = arith.constant 0 : index
    %25 = vector.load %arg5[%c0_15, %c0_16] : memref<1x32xf32, #tpu.memory_space<vmem>>, vector<1x32xf32>
    %26 = vector.broadcast %25 : vector<1x32xf32> to vector<64x32xf32>
    %27 = arith.addf %24, %26 : vector<64x32xf32>
    %28 = arith.addf %3, %5 : vector<8x32xf32>
    %cst_17 = arith.constant dense<0.000000e+00> : vector<8xf32>
    %29 = vector.multi_reduction <add>, %28, %cst_17 [1] : vector<8x32xf32> to vector<8xf32>
    %30 = vector.shape_cast %29 : vector<8xf32> to vector<8x1xf32>
    %cst_18 = arith.constant 3.200000e+01 : f32
    %31 = vector.broadcast %cst_18 : f32 to vector<8x1xf32>
    %32 = arith.divf %30, %31 : vector<8x1xf32>
    %33 = vector.broadcast %32 : vector<8x1xf32> to vector<8x32xf32>
    %34 = arith.subf %28, %33 : vector<8x32xf32>
    %35 = arith.mulf %34, %34 : vector<8x32xf32>
    %cst_19 = arith.constant dense<0.000000e+00> : vector<8xf32>
    %36 = vector.multi_reduction <add>, %35, %cst_19 [1] : vector<8x32xf32> to vector<8xf32>
    %37 = vector.shape_cast %36 : vector<8xf32> to vector<8x1xf32>
    %cst_20 = arith.constant 3.200000e+01 : f32
    %38 = vector.broadcast %cst_20 : f32 to vector<8x1xf32>
    %39 = arith.divf %37, %38 : vector<8x1xf32>
    %cst_21 = arith.constant 9.99999974E-6 : f32
    %40 = vector.broadcast %cst_21 : f32 to vector<8x1xf32>
    %41 = arith.addf %39, %40 : vector<8x1xf32>
    %42 = math.rsqrt %41 : vector<8x1xf32>
    %43 = vector.broadcast %42 : vector<8x1xf32> to vector<8x32xf32>
    %44 = arith.mulf %34, %43 : vector<8x32xf32>
    %c0_22 = arith.constant 0 : index
    %c0_23 = arith.constant 0 : index
    %45 = vector.load %arg6[%c0_22, %c0_23] : memref<32x32xbf16, #tpu.memory_space<vmem>>, vector<32x32xbf16>
    %46 = arith.truncf %44 : vector<8x32xf32> to vector<8x32xbf16>
    %cst_24 = arith.constant dense<0.000000e+00> : vector<8x32xf32>
    %47 = tpu.matmul %46, %45, %cst_24 {dimension_numbers = #tpu.dot_dimension_numbers<[1], [0], [0], [1], [0, 0, 1, 1], [], []>} : vector<8x32xbf16>, vector<32x32xbf16>, vector<8x32xf32> -> vector<8x32xf32>
    %c0_25 = arith.constant 0 : index
    %c0_26 = arith.constant 0 : index
    %48 = vector.load %arg7[%c0_25, %c0_26] : memref<1x32xf32, #tpu.memory_space<vmem>>, vector<1x32xf32>
    %49 = vector.broadcast %48 : vector<1x32xf32> to vector<8x32xf32>
    %50 = arith.addf %47, %49 : vector<8x32xf32>
    %cst_27 = arith.constant dense<0.000000e+00> : vector<8xf32>
    %51 = vector.multi_reduction <add>, %3, %cst_27 [1] : vector<8x32xf32> to vector<8xf32>
    %52 = vector.shape_cast %51 : vector<8xf32> to vector<8x1xf32>
    %cst_28 = arith.constant 3.200000e+01 : f32
    %53 = vector.broadcast %cst_28 : f32 to vector<8x1xf32>
    %54 = arith.divf %52, %53 : vector<8x1xf32>
    %55 = vector.broadcast %54 : vector<8x1xf32> to vector<8x32xf32>
    %56 = arith.subf %3, %55 : vector<8x32xf32>
    %57 = arith.mulf %56, %56 : vector<8x32xf32>
    %cst_29 = arith.constant dense<0.000000e+00> : vector<8xf32>
    %58 = vector.multi_reduction <add>, %57, %cst_29 [1] : vector<8x32xf32> to vector<8xf32>
    %59 = vector.shape_cast %58 : vector<8xf32> to vector<8x1xf32>
    %cst_30 = arith.constant 3.200000e+01 : f32
    %60 = vector.broadcast %cst_30 : f32 to vector<8x1xf32>
    %61 = arith.divf %59, %60 : vector<8x1xf32>
    %cst_31 = arith.constant 9.99999974E-6 : f32
    %62 = vector.broadcast %cst_31 : f32 to vector<8x1xf32>
    %63 = arith.addf %61, %62 : vector<8x1xf32>
    %64 = math.rsqrt %63 : vector<8x1xf32>
    %65 = vector.broadcast %64 : vector<8x1xf32> to vector<8x32xf32>
    %66 = arith.mulf %56, %65 : vector<8x32xf32>
    %c0_32 = arith.constant 0 : index
    %c0_33 = arith.constant 0 : index
    %67 = vector.load %arg8[%c0_32, %c0_33] : memref<32x32xbf16, #tpu.memory_space<vmem>>, vector<32x32xbf16>
    %68 = arith.truncf %66 : vector<8x32xf32> to vector<8x32xbf16>
    %cst_34 = arith.constant dense<0.000000e+00> : vector<8x32xf32>
    %69 = tpu.matmul %68, %67, %cst_34 {dimension_numbers = #tpu.dot_dimension_numbers<[1], [0], [0], [1], [0, 0, 1, 1], [], []>} : vector<8x32xbf16>, vector<32x32xbf16>, vector<8x32xf32> -> vector<8x32xf32>
    %c0_35 = arith.constant 0 : index
    %c0_36 = arith.constant 0 : index
    %70 = vector.load %arg9[%c0_35, %c0_36] : memref<1x32xf32, #tpu.memory_space<vmem>>, vector<1x32xf32>
    %71 = vector.broadcast %70 : vector<1x32xf32> to vector<8x32xf32>
    %72 = arith.addf %69, %71 : vector<8x32xf32>
    %73 = vector.shape_cast %27 : vector<64x32xf32> to vector<1x64x32xf32>
    %74 = vector.shape_cast %50 : vector<8x32xf32> to vector<1x8x32xf32>
    %75 = vector.shape_cast %72 : vector<8x32xf32> to vector<1x8x32xf32>
    %76 = vector.extract_strided_slice %73 {offsets = [0, 0, 0], sizes = [1, 64, 16], strides = [1, 1, 1]} : vector<1x64x32xf32> to vector<1x64x16xf32>
    %77 = vector.extract_strided_slice %74 {offsets = [0, 0, 0], sizes = [1, 8, 16], strides = [1, 1, 1]} : vector<1x8x32xf32> to vector<1x8x16xf32>
    %78 = vector.extract_strided_slice %75 {offsets = [0, 0, 0], sizes = [1, 8, 16], strides = [1, 1, 1]} : vector<1x8x32xf32> to vector<1x8x16xf32>
    %79 = arith.truncf %76 : vector<1x64x16xf32> to vector<1x64x16xbf16>
    %80 = arith.truncf %77 : vector<1x8x16xf32> to vector<1x8x16xbf16>
    "tpu.trace_start"() <{level = 10 : i32, message = "gqc,gkc->gqk"}> : () -> ()
    %cst_37 = arith.constant dense<0.000000e+00> : vector<1x64x8xf32>
    %81 = tpu.matmul %79, %80, %cst_37 {dimension_numbers = #tpu.dot_dimension_numbers<[2], [2], [1], [1], [0, 0, 0, 1, 1, 1], [0], [0]>} : vector<1x64x16xbf16>, vector<1x8x16xbf16>, vector<1x64x8xf32> -> vector<1x64x8xf32>
    "tpu.trace_stop"() : () -> ()
    %cst_38 = arith.constant 2.500000e-01 : f32
    %82 = vector.broadcast %cst_38 : f32 to vector<1x64x8xf32>
    %83 = arith.mulf %81, %82 : vector<1x64x8xf32>
    %cst_39 = arith.constant dense<0xFF800000> : vector<1x64xf32>
    %84 = vector.multi_reduction <maximumf>, %83, %cst_39 [2] : vector<1x64x8xf32> to vector<1x64xf32>
    %85 = vector.shape_cast %84 : vector<1x64xf32> to vector<1x64x1xf32>
    %86 = vector.broadcast %85 : vector<1x64x1xf32> to vector<1x64x8xf32>
    %87 = arith.subf %83, %86 : vector<1x64x8xf32>
    %88 = math.exp %87 : vector<1x64x8xf32>
    %cst_40 = arith.constant dense<0.000000e+00> : vector<1x64xf32>
    %89 = vector.multi_reduction <add>, %88, %cst_40 [2] : vector<1x64x8xf32> to vector<1x64xf32>
    %90 = vector.shape_cast %89 : vector<1x64xf32> to vector<1x64x1xf32>
    %91 = tpu.reciprocal %90 {approx = true} : vector<1x64x1xf32> -> vector<1x64x1xf32>
    %92 = vector.broadcast %91 : vector<1x64x1xf32> to vector<1x64x8xf32>
    %93 = arith.mulf %88, %92 : vector<1x64x8xf32>
    %94 = arith.truncf %93 : vector<1x64x8xf32> to vector<1x64x8xbf16>
    %95 = arith.truncf %78 : vector<1x8x16xf32> to vector<1x8x16xbf16>
    "tpu.trace_start"() <{level = 10 : i32, message = "gqk,gkc->gqc"}> : () -> ()
    %cst_41 = arith.constant dense<0.000000e+00> : vector<1x64x16xf32>
    %96 = tpu.matmul %94, %95, %cst_41 {dimension_numbers = #tpu.dot_dimension_numbers<[2], [1], [1], [2], [0, 0, 0, 1, 1, 2], [0], [0]>} : vector<1x64x8xbf16>, vector<1x8x16xbf16>, vector<1x64x16xf32> -> vector<1x64x16xf32>
    "tpu.trace_stop"() : () -> ()
    %97 = vector.extract_strided_slice %73 {offsets = [0, 0, 16], sizes = [1, 64, 16], strides = [1, 1, 1]} : vector<1x64x32xf32> to vector<1x64x16xf32>
    %98 = vector.extract_strided_slice %74 {offsets = [0, 0, 16], sizes = [1, 8, 16], strides = [1, 1, 1]} : vector<1x8x32xf32> to vector<1x8x16xf32>
    %99 = vector.extract_strided_slice %75 {offsets = [0, 0, 16], sizes = [1, 8, 16], strides = [1, 1, 1]} : vector<1x8x32xf32> to vector<1x8x16xf32>
    %100 = arith.truncf %97 : vector<1x64x16xf32> to vector<1x64x16xbf16>
    %101 = arith.truncf %98 : vector<1x8x16xf32> to vector<1x8x16xbf16>
    "tpu.trace_start"() <{level = 10 : i32, message = "gqc,gkc->gqk"}> : () -> ()
    %cst_42 = arith.constant dense<0.000000e+00> : vector<1x64x8xf32>
    %102 = tpu.matmul %100, %101, %cst_42 {dimension_numbers = #tpu.dot_dimension_numbers<[2], [2], [1], [1], [0, 0, 0, 1, 1, 1], [0], [0]>} : vector<1x64x16xbf16>, vector<1x8x16xbf16>, vector<1x64x8xf32> -> vector<1x64x8xf32>
    "tpu.trace_stop"() : () -> ()
    %cst_43 = arith.constant 2.500000e-01 : f32
    %103 = vector.broadcast %cst_43 : f32 to vector<1x64x8xf32>
    %104 = arith.mulf %102, %103 : vector<1x64x8xf32>
    %cst_44 = arith.constant dense<0xFF800000> : vector<1x64xf32>
    %105 = vector.multi_reduction <maximumf>, %104, %cst_44 [2] : vector<1x64x8xf32> to vector<1x64xf32>
    %106 = vector.shape_cast %105 : vector<1x64xf32> to vector<1x64x1xf32>
    %107 = vector.broadcast %106 : vector<1x64x1xf32> to vector<1x64x8xf32>
    %108 = arith.subf %104, %107 : vector<1x64x8xf32>
    %109 = math.exp %108 : vector<1x64x8xf32>
    %cst_45 = arith.constant dense<0.000000e+00> : vector<1x64xf32>
    %110 = vector.multi_reduction <add>, %109, %cst_45 [2] : vector<1x64x8xf32> to vector<1x64xf32>
    %111 = vector.shape_cast %110 : vector<1x64xf32> to vector<1x64x1xf32>
    %112 = tpu.reciprocal %111 {approx = true} : vector<1x64x1xf32> -> vector<1x64x1xf32>
    %113 = vector.broadcast %112 : vector<1x64x1xf32> to vector<1x64x8xf32>
    %114 = arith.mulf %109, %113 : vector<1x64x8xf32>
    %115 = arith.truncf %114 : vector<1x64x8xf32> to vector<1x64x8xbf16>
    %116 = arith.truncf %99 : vector<1x8x16xf32> to vector<1x8x16xbf16>
    "tpu.trace_start"() <{level = 10 : i32, message = "gqk,gkc->gqc"}> : () -> ()
    %cst_46 = arith.constant dense<0.000000e+00> : vector<1x64x16xf32>
    %117 = tpu.matmul %115, %116, %cst_46 {dimension_numbers = #tpu.dot_dimension_numbers<[2], [1], [1], [2], [0, 0, 0, 1, 1, 2], [0], [0]>} : vector<1x64x8xbf16>, vector<1x8x16xbf16>, vector<1x64x16xf32> -> vector<1x64x16xf32>
    "tpu.trace_stop"() : () -> ()
    %c0_47 = arith.constant 0 : index
    %c0_48 = arith.constant 0 : index
    %118 = vector.load %arg10[%c0_47, %c0_48] : memref<32x32xbf16, #tpu.memory_space<vmem>>, vector<32x32xbf16>
    %c0_49 = arith.constant 0 : index
    %c0_50 = arith.constant 0 : index
    %119 = vector.load %arg11[%c0_49, %c0_50] : memref<1x32xf32, #tpu.memory_space<vmem>>, vector<1x32xf32>
    %120 = vector.shape_cast %96 : vector<1x64x16xf32> to vector<64x16xf32>
    %121 = arith.truncf %120 : vector<64x16xf32> to vector<64x16xbf16>
    %122 = vector.extract_strided_slice %118 {offsets = [0, 0], sizes = [16, 32], strides = [1, 1]} : vector<32x32xbf16> to vector<16x32xbf16>
    %cst_51 = arith.constant dense<0.000000e+00> : vector<64x32xf32>
    %123 = tpu.matmul %121, %122, %cst_51 {dimension_numbers = #tpu.dot_dimension_numbers<[1], [0], [0], [1], [0, 0, 1, 1], [], []>} : vector<64x16xbf16>, vector<16x32xbf16>, vector<64x32xf32> -> vector<64x32xf32>
    %124 = vector.shape_cast %117 : vector<1x64x16xf32> to vector<64x16xf32>
    %125 = arith.truncf %124 : vector<64x16xf32> to vector<64x16xbf16>
    %126 = vector.extract_strided_slice %118 {offsets = [16, 0], sizes = [16, 32], strides = [1, 1]} : vector<32x32xbf16> to vector<16x32xbf16>
    %cst_52 = arith.constant dense<0.000000e+00> : vector<64x32xf32>
    %127 = tpu.matmul %125, %126, %cst_52 {dimension_numbers = #tpu.dot_dimension_numbers<[1], [0], [0], [1], [0, 0, 1, 1], [], []>} : vector<64x16xbf16>, vector<16x32xbf16>, vector<64x32xf32> -> vector<64x32xf32>
    %128 = arith.addf %123, %127 : vector<64x32xf32>
    %129 = vector.broadcast %119 : vector<1x32xf32> to vector<64x32xf32>
    %130 = arith.addf %128, %129 : vector<64x32xf32>
    %131 = vector.shape_cast %130 : vector<64x32xf32> to vector<1x64x32xf32>
    %132 = vector.shape_cast %131 : vector<1x64x32xf32> to vector<64x32xf32>
    %133 = arith.addf %1, %132 : vector<64x32xf32>
    %c0_53 = arith.constant 0 : index
    %c0_54 = arith.constant 0 : index
    %134 = vector.load %arg12[%c0_53, %c0_54] : memref<32x96xbf16, #tpu.memory_space<vmem>>, vector<32x96xbf16>
    %c0_55 = arith.constant 0 : index
    %c0_56 = arith.constant 0 : index
    %135 = vector.load %arg13[%c0_55, %c0_56] : memref<1x96xf32, #tpu.memory_space<vmem>>, vector<1x96xf32>
    %c0_57 = arith.constant 0 : index
    %c0_58 = arith.constant 0 : index
    %136 = vector.load %arg14[%c0_57, %c0_58] : memref<96x32xbf16, #tpu.memory_space<vmem>>, vector<96x32xbf16>
    %c0_59 = arith.constant 0 : index
    %c0_60 = arith.constant 0 : index
    %137 = vector.load %arg15[%c0_59, %c0_60] : memref<1x32xf32, #tpu.memory_space<vmem>>, vector<1x32xf32>
    %cst_61 = arith.constant dense<0.000000e+00> : vector<64xf32>
    %138 = vector.multi_reduction <add>, %133, %cst_61 [1] : vector<64x32xf32> to vector<64xf32>
    %139 = vector.shape_cast %138 : vector<64xf32> to vector<64x1xf32>
    %cst_62 = arith.constant 3.200000e+01 : f32
    %140 = vector.broadcast %cst_62 : f32 to vector<64x1xf32>
    %141 = arith.divf %139, %140 : vector<64x1xf32>
    %142 = vector.broadcast %141 : vector<64x1xf32> to vector<64x32xf32>
    %143 = arith.subf %133, %142 : vector<64x32xf32>
    %144 = arith.mulf %143, %143 : vector<64x32xf32>
    %cst_63 = arith.constant dense<0.000000e+00> : vector<64xf32>
    %145 = vector.multi_reduction <add>, %144, %cst_63 [1] : vector<64x32xf32> to vector<64xf32>
    %146 = vector.shape_cast %145 : vector<64xf32> to vector<64x1xf32>
    %cst_64 = arith.constant 3.200000e+01 : f32
    %147 = vector.broadcast %cst_64 : f32 to vector<64x1xf32>
    %148 = arith.divf %146, %147 : vector<64x1xf32>
    %cst_65 = arith.constant 9.99999974E-6 : f32
    %149 = vector.broadcast %cst_65 : f32 to vector<64x1xf32>
    %150 = arith.addf %148, %149 : vector<64x1xf32>
    %151 = math.rsqrt %150 : vector<64x1xf32>
    %152 = vector.broadcast %151 : vector<64x1xf32> to vector<64x32xf32>
    %153 = arith.mulf %143, %152 : vector<64x32xf32>
    %154 = arith.truncf %153 : vector<64x32xf32> to vector<64x32xbf16>
    %cst_66 = arith.constant dense<0.000000e+00> : vector<64x96xf32>
    %155 = tpu.matmul %154, %134, %cst_66 {dimension_numbers = #tpu.dot_dimension_numbers<[1], [0], [0], [1], [0, 0, 1, 1], [], []>} : vector<64x32xbf16>, vector<32x96xbf16>, vector<64x96xf32> -> vector<64x96xf32>
    %156 = vector.broadcast %135 : vector<1x96xf32> to vector<64x96xf32>
    %157 = arith.addf %155, %156 : vector<64x96xf32>
    %158 = arith.mulf %157, %157 : vector<64x96xf32>
    %159 = arith.mulf %157, %158 : vector<64x96xf32>
    %cst_67 = arith.constant 4.471500e-02 : f32
    %160 = vector.broadcast %cst_67 : f32 to vector<64x96xf32>
    %161 = arith.mulf %160, %159 : vector<64x96xf32>
    %162 = arith.addf %157, %161 : vector<64x96xf32>
    %cst_68 = arith.constant 0.797884583 : f32
    %163 = vector.broadcast %cst_68 : f32 to vector<64x96xf32>
    %164 = arith.mulf %163, %162 : vector<64x96xf32>
    %165 = math.tanh %164 : vector<64x96xf32>
    %cst_69 = arith.constant 1.000000e+00 : f32
    %166 = vector.broadcast %cst_69 : f32 to vector<64x96xf32>
    %167 = arith.addf %166, %165 : vector<64x96xf32>
    %cst_70 = arith.constant 5.000000e-01 : f32
    %168 = vector.broadcast %cst_70 : f32 to vector<64x96xf32>
    %169 = arith.mulf %168, %167 : vector<64x96xf32>
    %170 = arith.mulf %157, %169 : vector<64x96xf32>
    %171 = arith.truncf %170 : vector<64x96xf32> to vector<64x96xbf16>
    %cst_71 = arith.constant dense<0.000000e+00> : vector<64x32xf32>
    %172 = tpu.matmul %171, %136, %cst_71 {dimension_numbers = #tpu.dot_dimension_numbers<[1], [0], [0], [1], [0, 0, 1, 1], [], []>} : vector<64x96xbf16>, vector<96x32xbf16>, vector<64x32xf32> -> vector<64x32xf32>
    %173 = arith.addf %133, %172 : vector<64x32xf32>
    %174 = vector.broadcast %137 : vector<1x32xf32> to vector<64x32xf32>
    %175 = arith.addf %173, %174 : vector<64x32xf32>
    %176 = vector.shape_cast %175 : vector<64x32xf32> to vector<4x16x32xf32>
    %cst_72 = arith.constant dense<0.000000e+00> : vector<64xf32>
    %177 = vector.multi_reduction <add>, %175, %cst_72 [1] : vector<64x32xf32> to vector<64xf32>
    %178 = vector.shape_cast %177 : vector<64xf32> to vector<64x1xf32>
    %cst_73 = arith.constant 3.200000e+01 : f32
    %179 = vector.broadcast %cst_73 : f32 to vector<64x1xf32>
    %180 = arith.divf %178, %179 : vector<64x1xf32>
    %181 = vector.broadcast %180 : vector<64x1xf32> to vector<64x32xf32>
    %182 = arith.subf %175, %181 : vector<64x32xf32>
    %183 = arith.mulf %182, %182 : vector<64x32xf32>
    %cst_74 = arith.constant dense<0.000000e+00> : vector<64xf32>
    %184 = vector.multi_reduction <add>, %183, %cst_74 [1] : vector<64x32xf32> to vector<64xf32>
    %185 = vector.shape_cast %184 : vector<64xf32> to vector<64x1xf32>
    %cst_75 = arith.constant 3.200000e+01 : f32
    %186 = vector.broadcast %cst_75 : f32 to vector<64x1xf32>
    %187 = arith.divf %185, %186 : vector<64x1xf32>
    %cst_76 = arith.constant 9.99999974E-6 : f32
    %188 = vector.broadcast %cst_76 : f32 to vector<64x1xf32>
    %189 = arith.addf %187, %188 : vector<64x1xf32>
    %190 = math.rsqrt %189 : vector<64x1xf32>
    %191 = vector.broadcast %190 : vector<64x1xf32> to vector<64x32xf32>
    %192 = arith.mulf %182, %191 : vector<64x32xf32>
    %c0_77 = arith.constant 0 : index
    %c0_78 = arith.constant 0 : index
    %193 = vector.load %arg16[%c0_77, %c0_78] : memref<32x96xbf16, #tpu.memory_space<vmem>>, vector<32x96xbf16>
    %194 = arith.truncf %192 : vector<64x32xf32> to vector<64x32xbf16>
    %cst_79 = arith.constant dense<0.000000e+00> : vector<64x96xf32>
    %195 = tpu.matmul %194, %193, %cst_79 {dimension_numbers = #tpu.dot_dimension_numbers<[1], [0], [0], [1], [0, 0, 1, 1], [], []>} : vector<64x32xbf16>, vector<32x96xbf16>, vector<64x96xf32> -> vector<64x96xf32>
    %c0_80 = arith.constant 0 : index
    %c0_81 = arith.constant 0 : index
    %196 = vector.load %arg17[%c0_80, %c0_81] : memref<1x96xf32, #tpu.memory_space<vmem>>, vector<1x96xf32>
    %197 = vector.broadcast %196 : vector<1x96xf32> to vector<64x96xf32>
    %198 = arith.addf %195, %197 : vector<64x96xf32>
    %199 = vector.extract_strided_slice %198 {offsets = [0, 0], sizes = [64, 32], strides = [1, 1]} : vector<64x96xf32> to vector<64x32xf32>
    %200 = vector.shape_cast %199 : vector<64x32xf32> to vector<4x16x32xf32>
    %201 = vector.extract_strided_slice %198 {offsets = [0, 32], sizes = [64, 32], strides = [1, 1]} : vector<64x96xf32> to vector<64x32xf32>
    %202 = vector.shape_cast %201 : vector<64x32xf32> to vector<4x16x32xf32>
    %203 = vector.extract_strided_slice %198 {offsets = [0, 64], sizes = [64, 32], strides = [1, 1]} : vector<64x96xf32> to vector<64x32xf32>
    %204 = vector.shape_cast %203 : vector<64x32xf32> to vector<4x16x32xf32>
    %c0_82 = arith.constant 0 : index
    %c0_83 = arith.constant 0 : index
    %c0_84 = arith.constant 0 : index
    %205 = vector.load %arg24[%c0_82, %c0_83, %c0_84] : memref<16x16x16xf32, #tpu.memory_space<vmem>>, vector<16x16x16xf32>
    %206 = vector.extract_strided_slice %200 {offsets = [0, 0, 0], sizes = [4, 16, 16], strides = [1, 1, 1]} : vector<4x16x32xf32> to vector<4x16x16xf32>
    %207 = vector.extract_strided_slice %202 {offsets = [0, 0, 0], sizes = [4, 16, 16], strides = [1, 1, 1]} : vector<4x16x32xf32> to vector<4x16x16xf32>
    %208 = vector.extract_strided_slice %204 {offsets = [0, 0, 0], sizes = [4, 16, 16], strides = [1, 1, 1]} : vector<4x16x32xf32> to vector<4x16x16xf32>
    %209 = arith.truncf %206 : vector<4x16x16xf32> to vector<4x16x16xbf16>
    %210 = arith.truncf %207 : vector<4x16x16xf32> to vector<4x16x16xbf16>
    "tpu.trace_start"() <{level = 10 : i32, message = "gqc,gkc->gqk"}> : () -> ()
    %cst_85 = arith.constant dense<0.000000e+00> : vector<4x16x16xf32>
    %211 = tpu.matmul %209, %210, %cst_85 {dimension_numbers = #tpu.dot_dimension_numbers<[2], [2], [1], [1], [0, 0, 0, 1, 1, 1], [0], [0]>} : vector<4x16x16xbf16>, vector<4x16x16xbf16>, vector<4x16x16xf32> -> vector<4x16x16xf32>
    "tpu.trace_stop"() : () -> ()
    %212 = vector.shape_cast %206 : vector<4x16x16xf32> to vector<4x16x1x16xf32>
    %213 = vector.shape_cast %205 : vector<16x16x16xf32> to vector<1x16x16x16xf32>
    %214 = vector.broadcast %212 : vector<4x16x1x16xf32> to vector<4x16x16x16xf32>
    %215 = vector.broadcast %213 : vector<1x16x16x16xf32> to vector<4x16x16x16xf32>
    %216 = arith.mulf %214, %215 : vector<4x16x16x16xf32>
    %cst_86 = arith.constant dense<0.000000e+00> : vector<4x16x16xf32>
    %217 = vector.multi_reduction <add>, %216, %cst_86 [3] : vector<4x16x16x16xf32> to vector<4x16x16xf32>
    %218 = arith.addf %211, %217 : vector<4x16x16xf32>
    %cst_87 = arith.constant 2.500000e-01 : f32
    %219 = vector.broadcast %cst_87 : f32 to vector<4x16x16xf32>
    %220 = arith.mulf %218, %219 : vector<4x16x16xf32>
    %cst_88 = arith.constant dense<0xFF800000> : vector<4x16xf32>
    %221 = vector.multi_reduction <maximumf>, %220, %cst_88 [2] : vector<4x16x16xf32> to vector<4x16xf32>
    %222 = vector.shape_cast %221 : vector<4x16xf32> to vector<4x16x1xf32>
    %223 = vector.broadcast %222 : vector<4x16x1xf32> to vector<4x16x16xf32>
    %224 = arith.subf %220, %223 : vector<4x16x16xf32>
    %225 = math.exp %224 : vector<4x16x16xf32>
    %cst_89 = arith.constant dense<0.000000e+00> : vector<4x16xf32>
    %226 = vector.multi_reduction <add>, %225, %cst_89 [2] : vector<4x16x16xf32> to vector<4x16xf32>
    %227 = vector.shape_cast %226 : vector<4x16xf32> to vector<4x16x1xf32>
    %228 = tpu.reciprocal %227 {approx = true} : vector<4x16x1xf32> -> vector<4x16x1xf32>
    %229 = vector.broadcast %228 : vector<4x16x1xf32> to vector<4x16x16xf32>
    %230 = arith.mulf %225, %229 : vector<4x16x16xf32>
    %231 = arith.truncf %230 : vector<4x16x16xf32> to vector<4x16x16xbf16>
    %232 = arith.truncf %208 : vector<4x16x16xf32> to vector<4x16x16xbf16>
    "tpu.trace_start"() <{level = 10 : i32, message = "gqk,gkc->gqc"}> : () -> ()
    %cst_90 = arith.constant dense<0.000000e+00> : vector<4x16x16xf32>
    %233 = tpu.matmul %231, %232, %cst_90 {dimension_numbers = #tpu.dot_dimension_numbers<[2], [1], [1], [2], [0, 0, 0, 1, 1, 2], [0], [0]>} : vector<4x16x16xbf16>, vector<4x16x16xbf16>, vector<4x16x16xf32> -> vector<4x16x16xf32>
    "tpu.trace_stop"() : () -> ()
    %234 = vector.extract_strided_slice %200 {offsets = [0, 0, 16], sizes = [4, 16, 16], strides = [1, 1, 1]} : vector<4x16x32xf32> to vector<4x16x16xf32>
    %235 = vector.extract_strided_slice %202 {offsets = [0, 0, 16], sizes = [4, 16, 16], strides = [1, 1, 1]} : vector<4x16x32xf32> to vector<4x16x16xf32>
    %236 = vector.extract_strided_slice %204 {offsets = [0, 0, 16], sizes = [4, 16, 16], strides = [1, 1, 1]} : vector<4x16x32xf32> to vector<4x16x16xf32>
    %237 = arith.truncf %234 : vector<4x16x16xf32> to vector<4x16x16xbf16>
    %238 = arith.truncf %235 : vector<4x16x16xf32> to vector<4x16x16xbf16>
    "tpu.trace_start"() <{level = 10 : i32, message = "gqc,gkc->gqk"}> : () -> ()
    %cst_91 = arith.constant dense<0.000000e+00> : vector<4x16x16xf32>
    %239 = tpu.matmul %237, %238, %cst_91 {dimension_numbers = #tpu.dot_dimension_numbers<[2], [2], [1], [1], [0, 0, 0, 1, 1, 1], [0], [0]>} : vector<4x16x16xbf16>, vector<4x16x16xbf16>, vector<4x16x16xf32> -> vector<4x16x16xf32>
    "tpu.trace_stop"() : () -> ()
    %240 = vector.shape_cast %234 : vector<4x16x16xf32> to vector<4x16x1x16xf32>
    %241 = vector.shape_cast %205 : vector<16x16x16xf32> to vector<1x16x16x16xf32>
    %242 = vector.broadcast %240 : vector<4x16x1x16xf32> to vector<4x16x16x16xf32>
    %243 = vector.broadcast %241 : vector<1x16x16x16xf32> to vector<4x16x16x16xf32>
    %244 = arith.mulf %242, %243 : vector<4x16x16x16xf32>
    %cst_92 = arith.constant dense<0.000000e+00> : vector<4x16x16xf32>
    %245 = vector.multi_reduction <add>, %244, %cst_92 [3] : vector<4x16x16x16xf32> to vector<4x16x16xf32>
    %246 = arith.addf %239, %245 : vector<4x16x16xf32>
    %cst_93 = arith.constant 2.500000e-01 : f32
    %247 = vector.broadcast %cst_93 : f32 to vector<4x16x16xf32>
    %248 = arith.mulf %246, %247 : vector<4x16x16xf32>
    %cst_94 = arith.constant dense<0xFF800000> : vector<4x16xf32>
    %249 = vector.multi_reduction <maximumf>, %248, %cst_94 [2] : vector<4x16x16xf32> to vector<4x16xf32>
    %250 = vector.shape_cast %249 : vector<4x16xf32> to vector<4x16x1xf32>
    %251 = vector.broadcast %250 : vector<4x16x1xf32> to vector<4x16x16xf32>
    %252 = arith.subf %248, %251 : vector<4x16x16xf32>
    %253 = math.exp %252 : vector<4x16x16xf32>
    %cst_95 = arith.constant dense<0.000000e+00> : vector<4x16xf32>
    %254 = vector.multi_reduction <add>, %253, %cst_95 [2] : vector<4x16x16xf32> to vector<4x16xf32>
    %255 = vector.shape_cast %254 : vector<4x16xf32> to vector<4x16x1xf32>
    %256 = tpu.reciprocal %255 {approx = true} : vector<4x16x1xf32> -> vector<4x16x1xf32>
    %257 = vector.broadcast %256 : vector<4x16x1xf32> to vector<4x16x16xf32>
    %258 = arith.mulf %253, %257 : vector<4x16x16xf32>
    %259 = arith.truncf %258 : vector<4x16x16xf32> to vector<4x16x16xbf16>
    %260 = arith.truncf %236 : vector<4x16x16xf32> to vector<4x16x16xbf16>
    "tpu.trace_start"() <{level = 10 : i32, message = "gqk,gkc->gqc"}> : () -> ()
    %cst_96 = arith.constant dense<0.000000e+00> : vector<4x16x16xf32>
    %261 = tpu.matmul %259, %260, %cst_96 {dimension_numbers = #tpu.dot_dimension_numbers<[2], [1], [1], [2], [0, 0, 0, 1, 1, 2], [0], [0]>} : vector<4x16x16xbf16>, vector<4x16x16xbf16>, vector<4x16x16xf32> -> vector<4x16x16xf32>
    "tpu.trace_stop"() : () -> ()
    %c0_97 = arith.constant 0 : index
    %c0_98 = arith.constant 0 : index
    %262 = vector.load %arg18[%c0_97, %c0_98] : memref<32x32xbf16, #tpu.memory_space<vmem>>, vector<32x32xbf16>
    %c0_99 = arith.constant 0 : index
    %c0_100 = arith.constant 0 : index
    %263 = vector.load %arg19[%c0_99, %c0_100] : memref<1x32xf32, #tpu.memory_space<vmem>>, vector<1x32xf32>
    %264 = vector.shape_cast %233 : vector<4x16x16xf32> to vector<64x16xf32>
    %265 = arith.truncf %264 : vector<64x16xf32> to vector<64x16xbf16>
    %266 = vector.extract_strided_slice %262 {offsets = [0, 0], sizes = [16, 32], strides = [1, 1]} : vector<32x32xbf16> to vector<16x32xbf16>
    %cst_101 = arith.constant dense<0.000000e+00> : vector<64x32xf32>
    %267 = tpu.matmul %265, %266, %cst_101 {dimension_numbers = #tpu.dot_dimension_numbers<[1], [0], [0], [1], [0, 0, 1, 1], [], []>} : vector<64x16xbf16>, vector<16x32xbf16>, vector<64x32xf32> -> vector<64x32xf32>
    %268 = vector.shape_cast %261 : vector<4x16x16xf32> to vector<64x16xf32>
    %269 = arith.truncf %268 : vector<64x16xf32> to vector<64x16xbf16>
    %270 = vector.extract_strided_slice %262 {offsets = [16, 0], sizes = [16, 32], strides = [1, 1]} : vector<32x32xbf16> to vector<16x32xbf16>
    %cst_102 = arith.constant dense<0.000000e+00> : vector<64x32xf32>
    %271 = tpu.matmul %269, %270, %cst_102 {dimension_numbers = #tpu.dot_dimension_numbers<[1], [0], [0], [1], [0, 0, 1, 1], [], []>} : vector<64x16xbf16>, vector<16x32xbf16>, vector<64x32xf32> -> vector<64x32xf32>
    %272 = arith.addf %267, %271 : vector<64x32xf32>
    %273 = vector.broadcast %263 : vector<1x32xf32> to vector<64x32xf32>
    %274 = arith.addf %272, %273 : vector<64x32xf32>
    %275 = vector.shape_cast %274 : vector<64x32xf32> to vector<4x16x32xf32>
    %276 = arith.addf %176, %275 : vector<4x16x32xf32>
    %277 = vector.shape_cast %276 : vector<4x16x32xf32> to vector<64x32xf32>
    %c0_103 = arith.constant 0 : index
    %c0_104 = arith.constant 0 : index
    %278 = vector.load %arg20[%c0_103, %c0_104] : memref<32x96xbf16, #tpu.memory_space<vmem>>, vector<32x96xbf16>
    %c0_105 = arith.constant 0 : index
    %c0_106 = arith.constant 0 : index
    %279 = vector.load %arg21[%c0_105, %c0_106] : memref<1x96xf32, #tpu.memory_space<vmem>>, vector<1x96xf32>
    %c0_107 = arith.constant 0 : index
    %c0_108 = arith.constant 0 : index
    %280 = vector.load %arg22[%c0_107, %c0_108] : memref<96x32xbf16, #tpu.memory_space<vmem>>, vector<96x32xbf16>
    %c0_109 = arith.constant 0 : index
    %c0_110 = arith.constant 0 : index
    %281 = vector.load %arg23[%c0_109, %c0_110] : memref<1x32xf32, #tpu.memory_space<vmem>>, vector<1x32xf32>
    %cst_111 = arith.constant dense<0.000000e+00> : vector<64xf32>
    %282 = vector.multi_reduction <add>, %277, %cst_111 [1] : vector<64x32xf32> to vector<64xf32>
    %283 = vector.shape_cast %282 : vector<64xf32> to vector<64x1xf32>
    %cst_112 = arith.constant 3.200000e+01 : f32
    %284 = vector.broadcast %cst_112 : f32 to vector<64x1xf32>
    %285 = arith.divf %283, %284 : vector<64x1xf32>
    %286 = vector.broadcast %285 : vector<64x1xf32> to vector<64x32xf32>
    %287 = arith.subf %277, %286 : vector<64x32xf32>
    %288 = arith.mulf %287, %287 : vector<64x32xf32>
    %cst_113 = arith.constant dense<0.000000e+00> : vector<64xf32>
    %289 = vector.multi_reduction <add>, %288, %cst_113 [1] : vector<64x32xf32> to vector<64xf32>
    %290 = vector.shape_cast %289 : vector<64xf32> to vector<64x1xf32>
    %cst_114 = arith.constant 3.200000e+01 : f32
    %291 = vector.broadcast %cst_114 : f32 to vector<64x1xf32>
    %292 = arith.divf %290, %291 : vector<64x1xf32>
    %cst_115 = arith.constant 9.99999974E-6 : f32
    %293 = vector.broadcast %cst_115 : f32 to vector<64x1xf32>
    %294 = arith.addf %292, %293 : vector<64x1xf32>
    %295 = math.rsqrt %294 : vector<64x1xf32>
    %296 = vector.broadcast %295 : vector<64x1xf32> to vector<64x32xf32>
    %297 = arith.mulf %287, %296 : vector<64x32xf32>
    %298 = arith.truncf %297 : vector<64x32xf32> to vector<64x32xbf16>
    %cst_116 = arith.constant dense<0.000000e+00> : vector<64x96xf32>
    %299 = tpu.matmul %298, %278, %cst_116 {dimension_numbers = #tpu.dot_dimension_numbers<[1], [0], [0], [1], [0, 0, 1, 1], [], []>} : vector<64x32xbf16>, vector<32x96xbf16>, vector<64x96xf32> -> vector<64x96xf32>
    %300 = vector.broadcast %279 : vector<1x96xf32> to vector<64x96xf32>
    %301 = arith.addf %299, %300 : vector<64x96xf32>
    %302 = arith.mulf %301, %301 : vector<64x96xf32>
    %303 = arith.mulf %301, %302 : vector<64x96xf32>
    %cst_117 = arith.constant 4.471500e-02 : f32
    %304 = vector.broadcast %cst_117 : f32 to vector<64x96xf32>
    %305 = arith.mulf %304, %303 : vector<64x96xf32>
    %306 = arith.addf %301, %305 : vector<64x96xf32>
    %cst_118 = arith.constant 0.797884583 : f32
    %307 = vector.broadcast %cst_118 : f32 to vector<64x96xf32>
    %308 = arith.mulf %307, %306 : vector<64x96xf32>
    %309 = math.tanh %308 : vector<64x96xf32>
    %cst_119 = arith.constant 1.000000e+00 : f32
    %310 = vector.broadcast %cst_119 : f32 to vector<64x96xf32>
    %311 = arith.addf %310, %309 : vector<64x96xf32>
    %cst_120 = arith.constant 5.000000e-01 : f32
    %312 = vector.broadcast %cst_120 : f32 to vector<64x96xf32>
    %313 = arith.mulf %312, %311 : vector<64x96xf32>
    %314 = arith.mulf %301, %313 : vector<64x96xf32>
    %315 = arith.truncf %314 : vector<64x96xf32> to vector<64x96xbf16>
    %cst_121 = arith.constant dense<0.000000e+00> : vector<64x32xf32>
    %316 = tpu.matmul %315, %280, %cst_121 {dimension_numbers = #tpu.dot_dimension_numbers<[1], [0], [0], [1], [0, 0, 1, 1], [], []>} : vector<64x96xbf16>, vector<96x32xbf16>, vector<64x32xf32> -> vector<64x32xf32>
    %317 = arith.addf %277, %316 : vector<64x32xf32>
    %318 = vector.broadcast %281 : vector<1x32xf32> to vector<64x32xf32>
    %319 = arith.addf %317, %318 : vector<64x32xf32>
    %320 = vector.shape_cast %319 : vector<64x32xf32> to vector<4x16x32xf32>
    %c0_122 = arith.constant 0 : index
    %c0_123 = arith.constant 0 : index
    %c0_124 = arith.constant 0 : index
    %c0_125 = arith.constant 0 : index
    %321 = vector.load %arg25[%c0_122, %c0_123, %c0_124, %c0_125] : memref<1x4x16x32xf32, #tpu.memory_space<vmem>>, vector<1x4x16x32xf32>
    %322 = vector.shape_cast %321 : vector<1x4x16x32xf32> to vector<4x16x32xf32>
    %323 = vector.shape_cast %320 : vector<4x16x32xf32> to vector<1x4x16x32xf32>
    tpu.vector_store %arg25[%c0_122, %c0_123, %c0_124, %c0_125], %323 {strides = array<i32>} : memref<1x4x16x32xf32, #tpu.memory_space<vmem>>, vector<1x4x16x32xf32>,
    return
  }
  func.func @transform_0(%arg0: i32) -> (i32, i32, i32) {
    %c0_i32 = arith.constant 0 : i32
    %c0_i32_0 = arith.constant 0 : i32
    %c0_i32_1 = arith.constant 0 : i32
    return %arg0, %c0_i32, %c0_i32_0 : i32, i32, i32
  }
  func.func @transform_1(%arg0: i32) -> (i32, i32, i32) {
    %c0_i32 = arith.constant 0 : i32
    %c0_i32_0 = arith.constant 0 : i32
    %c0_i32_1 = arith.constant 0 : i32
    return %arg0, %c0_i32, %c0_i32_0 : i32, i32, i32
  }
  func.func @transform_2(%arg0: i32) -> (i32, i32, i32) {
    %c0_i32 = arith.constant 0 : i32
    %c0_i32_0 = arith.constant 0 : i32
    %c0_i32_1 = arith.constant 0 : i32
    return %arg0, %c0_i32, %c0_i32_0 : i32, i32, i32
  }
  func.func @transform_3(%arg0: i32) -> (i32, i32) {
    %c0_i32 = arith.constant 0 : i32
    %c0_i32_0 = arith.constant 0 : i32
    %c0_i32_1 = arith.constant 0 : i32
    return %c0_i32, %c0_i32_0 : i32, i32
  }
  func.func @transform_4(%arg0: i32) -> (i32, i32) {
    %c0_i32 = arith.constant 0 : i32
    %c0_i32_0 = arith.constant 0 : i32
    %c0_i32_1 = arith.constant 0 : i32
    return %c0_i32, %c0_i32_0 : i32, i32
  }
  func.func @transform_5(%arg0: i32) -> (i32, i32) {
    %c0_i32 = arith.constant 0 : i32
    %c0_i32_0 = arith.constant 0 : i32
    %c0_i32_1 = arith.constant 0 : i32
    return %c0_i32, %c0_i32_0 : i32, i32
  }
  func.func @transform_6(%arg0: i32) -> (i32, i32) {
    %c0_i32 = arith.constant 0 : i32
    %c0_i32_0 = arith.constant 0 : i32
    %c0_i32_1 = arith.constant 0 : i32
    return %c0_i32, %c0_i32_0 : i32, i32
  }
  func.func @transform_7(%arg0: i32) -> (i32, i32) {
    %c0_i32 = arith.constant 0 : i32
    %c0_i32_0 = arith.constant 0 : i32
    %c0_i32_1 = arith.constant 0 : i32
    return %c0_i32, %c0_i32_0 : i32, i32
  }
  func.func @transform_8(%arg0: i32) -> (i32, i32) {
    %c0_i32 = arith.constant 0 : i32
    %c0_i32_0 = arith.constant 0 : i32
    %c0_i32_1 = arith.constant 0 : i32
    return %c0_i32, %c0_i32_0 : i32, i32
  }
  func.func @transform_9(%arg0: i32) -> (i32, i32) {
    %c0_i32 = arith.constant 0 : i32
    %c0_i32_0 = arith.constant 0 : i32
    %c0_i32_1 = arith.constant 0 : i32
    return %c0_i32, %c0_i32_0 : i32, i32
  }
  func.func @transform_10(%arg0: i32) -> (i32, i32) {
    %c0_i32 = arith.constant 0 : i32
    %c0_i32_0 = arith.constant 0 : i32
    %c0_i32_1 = arith.constant 0 : i32
    return %c0_i32, %c0_i32_0 : i32, i32
  }
  func.func @transform_11(%arg0: i32) -> (i32, i32) {
    %c0_i32 = arith.constant 0 : i32
    %c0_i32_0 = arith.constant 0 : i32
    %c0_i32_1 = arith.constant 0 : i32
    return %c0_i32, %c0_i32_0 : i32, i32
  }
  func.func @transform_12(%arg0: i32) -> (i32, i32) {
    %c0_i32 = arith.constant 0 : i32
    %c0_i32_0 = arith.constant 0 : i32
    %c0_i32_1 = arith.constant 0 : i32
    return %c0_i32, %c0_i32_0 : i32, i32
  }
  func.func @transform_13(%arg0: i32) -> (i32, i32) {
    %c0_i32 = arith.constant 0 : i32
    %c0_i32_0 = arith.constant 0 : i32
    %c0_i32_1 = arith.constant 0 : i32
    return %c0_i32, %c0_i32_0 : i32, i32
  }
  func.func @transform_14(%arg0: i32) -> (i32, i32) {
    %c0_i32 = arith.constant 0 : i32
    %c0_i32_0 = arith.constant 0 : i32
    %c0_i32_1 = arith.constant 0 : i32
    return %c0_i32, %c0_i32_0 : i32, i32
  }
  func.func @transform_15(%arg0: i32) -> (i32, i32) {
    %c0_i32 = arith.constant 0 : i32
    %c0_i32_0 = arith.constant 0 : i32
    %c0_i32_1 = arith.constant 0 : i32
    return %c0_i32, %c0_i32_0 : i32, i32
  }
  func.func @transform_16(%arg0: i32) -> (i32, i32) {
    %c0_i32 = arith.constant 0 : i32
    %c0_i32_0 = arith.constant 0 : i32
    %c0_i32_1 = arith.constant 0 : i32
    return %c0_i32, %c0_i32_0 : i32, i32
  }
  func.func @transform_17(%arg0: i32) -> (i32, i32) {
    %c0_i32 = arith.constant 0 : i32
    %c0_i32_0 = arith.constant 0 : i32
    %c0_i32_1 = arith.constant 0 : i32
    return %c0_i32, %c0_i32_0 : i32, i32
  }
  func.func @transform_18(%arg0: i32) -> (i32, i32) {
    %c0_i32 = arith.constant 0 : i32
    %c0_i32_0 = arith.constant 0 : i32
    %c0_i32_1 = arith.constant 0 : i32
    return %c0_i32, %c0_i32_0 : i32, i32
  }
  func.func @transform_19(%arg0: i32) -> (i32, i32) {
    %c0_i32 = arith.constant 0 : i32
    %c0_i32_0 = arith.constant 0 : i32
    %c0_i32_1 = arith.constant 0 : i32
    return %c0_i32, %c0_i32_0 : i32, i32
  }
  func.func @transform_20(%arg0: i32) -> (i32, i32) {
    %c0_i32 = arith.constant 0 : i32
    %c0_i32_0 = arith.constant 0 : i32
    %c0_i32_1 = arith.constant 0 : i32
    return %c0_i32, %c0_i32_0 : i32, i32
  }
  func.func @transform_21(%arg0: i32) -> (i32, i32) {
    %c0_i32 = arith.constant 0 : i32
    %c0_i32_0 = arith.constant 0 : i32
    %c0_i32_1 = arith.constant 0 : i32
    return %c0_i32, %c0_i32_0 : i32, i32
  }
  func.func @transform_22(%arg0: i32) -> (i32, i32) {
    %c0_i32 = arith.constant 0 : i32
    %c0_i32_0 = arith.constant 0 : i32
    %c0_i32_1 = arith.constant 0 : i32
    return %c0_i32, %c0_i32_0 : i32, i32
  }
  func.func @transform_23(%arg0: i32) -> (i32, i32, i32) {
    %c0_i32 = arith.constant 0 : i32
    %c0_i32_0 = arith.constant 0 : i32
    %c0_i32_1 = arith.constant 0 : i32
    %c0_i32_2 = arith.constant 0 : i32
    return %c0_i32, %c0_i32_0, %c0_i32_1 : i32, i32, i32
  }
  func.func @transform_24(%arg0: i32) -> (i32, i32, i32, i32) {
    %c0_i32 = arith.constant 0 : i32
    %c0_i32_0 = arith.constant 0 : i32
    %c0_i32_1 = arith.constant 0 : i32
    %c0_i32_2 = arith.constant 0 : i32
    return %arg0, %c0_i32, %c0_i32_0, %c0_i32_1 : i32, i32, i32, i32
  }
}

</mosaic_0001>

<bundles_post_ra>
// kernel: decoder_forward.1
= control target key start
LH: loop header
LB: loop body
LE: loop exit
PB: predicated region body
PF: predicated region fallthrough
CT: control target
= control target key end

     0   :  { %s11487_s0 = inlined_call_operand.vmem [shape: f32[2,64,32], index: 0, kind: input, shape index: {}]   ;;  %s11488_s1 = inlined_call_operand.vmem [shape: f32[2,8,32], index: 1, kind: input, shape index: {}]   ;;  %s11489_s2 = inlined_call_operand.vmem [shape: f32[2,8,32], index: 2, kind: input, shape index: {}]   ;;  %s11490_s3 = inlined_call_operand.vmem [shape: bf16[32,32], index: 3, kind: input, shape index: {}]   ;;  %s11491_s4 = inlined_call_operand.vmem [shape: f32[1,32], index: 4, kind: input, shape index: {}]   ;;  %s11492_s5 = inlined_call_operand.vmem [shape: bf16[32,32], index: 5, kind: input, shape index: {}]   ;;  %s11493_s6 = inlined_call_operand.vmem [shape: f32[1,32], index: 6, kind: input, shape index: {}]   ;;  %s11494_s7 = inlined_call_operand.vmem [shape: bf16[32,32], index: 7, kind: input, shape index: {}]   ;;  %s11495_s8 = inlined_call_operand.vmem [shape: f32[1,32], index: 8, kind: input, shape index: {}]   ;;  %s11496_s9 = inlined_call_operand.vmem [shape: bf16[32,32], index: 9, kind: input, shape index: {}]   ;;  %s11497_s10 = inlined_call_operand.vmem [shape: f32[1,32], index: 10, kind: input, shape index: {}]   ;;  %s11498_s11 = inlined_call_operand.vmem [shape: bf16[32,96], index: 11, kind: input, shape index: {}]   ;;  %s11499_s12 = inlined_call_operand.vmem [shape: f32[1,96], index: 12, kind: input, shape index: {}]   ;;  %s11500_s13 = inlined_call_operand.vmem [shape: bf16[96,32], index: 13, kind: input, shape index: {}]   ;;  %s11501_s14 = inlined_call_operand.vmem [shape: f32[1,32], index: 14, kind: input, shape index: {}]   ;;  %s11502_s15 = inlined_call_operand.vmem [shape: bf16[32,96], index: 15, kind: input, shape index: {}]   ;;  %s11503_s16 = inlined_call_operand.vmem [shape: f32[1,96], index: 16, kind: input, shape index: {}]   ;;  %s11504_s17 = inlined_call_operand.vmem [shape: bf16[32,32], index: 17, kind: input, shape index: {}]   ;;  %s11505_s18 = inlined_call_operand.vmem [shape: f32[1,32], index: 18, kind: input, shape index: {}]   ;;  %s11506_s19 = inlined_call_operand.vmem [shape: bf16[32,96], index: 19, kind: input, shape index: {}]   ;;  %s11507_s20 = inlined_call_operand.vmem [shape: f32[1,96], index: 20, kind: input, shape index: {}]   ;;  %s11508_s21 = inlined_call_operand.vmem [shape: bf16[96,32], index: 21, kind: input, shape index: {}]   ;;  %s11509_s22 = inlined_call_operand.vmem [shape: f32[1,32], index: 22, kind: input, shape index: {}]   ;;  %s11510_s23 = inlined_call_operand.vmem [shape: f32[16,16,16], index: 23, kind: input, shape index: {}]   ;;  %s11511_s24 = inlined_call_operand.hbm [shape: f32[2,4,16,32], index: 24, kind: output, shape index: {}]  }
   0x1   :  { %11577 = sst [smem:[#allocation224_spill]] %s11487_s0 }
   0x2   :  { %11578 = sst [smem:[#allocation225_spill]] %s11488_s1 }
   0x3   :  { %11579 = sst [smem:[#allocation226_spill]] %s11489_s2 }
   0x4   :  { %11580 = sst [smem:[#allocation227_spill]] %s11490_s3 }
   0x5   :  { %11581 = sst [smem:[#allocation228_spill]] %s11491_s4 }
   0x6   :  { %11582 = sst [smem:[#allocation229_spill]] %s11492_s5 }
   0x7   :  { %11583 = sst [smem:[#allocation230_spill]] %s11493_s6 }
   0x8   :  { %11584 = sst [smem:[#allocation231_spill]] %s11494_s7 }
   0x9   :  { %11585 = sst [smem:[#allocation232_spill]] %s11495_s8 }
   0xa   :  { %11586 = sst [smem:[#allocation233_spill]] %s11496_s9 }
   0xb   :  { %11587 = sst [smem:[#allocation234_spill]] %s11497_s10 }
   0xc   :  { %11588 = sst [smem:[#allocation235_spill]] %s11498_s11 }
   0xd   :  { %29 = vsyncpa [#allocation3], 0 }
   0xe   :  { %31 = vsyncpa [#allocation3 + $0x1], 0  ;;  %s7156_s5 = smov 0   ;;  %s7158_s26 = smov 0  }
   0xf   :  { %s7160_s27 = smov 0   ;;  %s7162_s28 = smov 0  }
  0x10 LB: > { %11589 = sst [smem:[#allocation5_spill]] %s7008_s5  ;;  %s7177_s6 = sadd.s32 4294967295, %s7020_s28   ;;  %s7020_s28 = sphi %s7162_s28, %s12150_s28   ;;  %s7016_s27 = sphi %s7160_s27, %s12152_s27   ;;  %s7012_s26 = sphi %s7158_s26, %s12154_s26   ;;  %s7008_s5 = sphi %s7156_s5, %s12153_s5  }
  0x11   : > { %11590 = sst [smem:[#allocation6_spill]] %s7016_s27  ;;  %s6367_s2 = sadd.s32 4294967294, %s7020_s28  }
  0x12   : > { %11591 = sst [smem:[#allocation7_spill]] %s7020_s28  ;;  %s7181_s29 = sadd.s32 1, %s7020_s28  }
  0x13   : > { %11592 = sst [smem:[#allocation8_spill]] %s7181_s29  ;;  %s563_s0 = sadd.s32 1, %s7016_s27 }
  0x14   : > { %s560_s7 = ssub.s32 %s7020_s28, %s7181_s29  ;;  %p573_p0 = scmp.ne.s32.totalorder %s7016_s27, %s7012_s26 }
  0x15   : > { %p561_p1 = scmp.eq.s32.totalorder %s560_s7, 0  ;;  %p574_p2 = scmp.eq.s32.totalorder %s7177_s6, 1 }
  0x16   : > { %p579_p3 = scmp.ne.s32.totalorder %s7012_s26, %s7008_s5  ;;  %p580_p4 = scmp.eq.s32.totalorder %s6367_s2, 1 }
  0x17   : > { %s7192_s30 = scalar_select %p561_p1, %s7016_s27, %s563_s0  }
  0x18   : > { %p7194_p5 = por %p574_p2, %p573_p0  ;;  %p7198_p6 = por %p580_p4, %p579_p3 }
  0x19   : > { %11593 = sst [smem:[#allocation9_spill]] %s7192_s30  ;;  %p6370_p7 = scmp.ge.s32.totalorder %s7020_s28, 1 }
  0x1a   : > { %s11595_s25 = scalar_select %p7198_p6, 1, 0 }
  0x1b   : > { %p683_p8 = scmp.lt.s32.totalorder %s7020_s28, 3 }
  0x1c   : > { %11596 = sst [smem:[#allocation10_spill]] %s11595_s25 }
  0x1d   : > { %p684_p9 = pnand %p6370_p7, %p683_p8 }
  0x1f   : > { %687 = sbr.rel (%p684_p9) target bundleno = 5396 (0x1514), region = 116 }
  0x24   : > { %p757_p10 = scmp.lt.s32.totalorder %s7177_s6, 1  ;;  %vm781_vm0 = vcmask 261120   ;;  %s11597_s7 = sld [smem:[#allocation224_spill]]  ;;  %v2418_v20 = vld [vmem:[%s11510_s23] sm:$0xff]  ;;  %v2419_v22 = vld [vmem:[%s11510_s23 + $0x8] sm:$0xff]  ;;  %v2421_v24 = vld [vmem:[%s11510_s23 + $0x18] sm:$0xff] }
  0x25   : > { %s11598_s5 = sld [smem:[#allocation225_spill]]  ;;  %s7022_s28 = smov 16   ;;  %v2434_v23 = vld [vmem:[%s11510_s23 + $0x80] sm:$0xff]  ;;  %v2420_v26 = vld [vmem:[%s11510_s23 + $0x10] sm:$0xff]  ;;  %v2435_v27 = vld [vmem:[%s11510_s23 + $0x88] sm:$0xff]  ;;  %v7023_v42 = vmov 32.0  }
  0x26   : > { %s758_s8 = scalar_select %p757_p10, %s7177_s6, 1  ;;  %v2438_v25 = vld [vmem:[%s11510_s23 + $0xa0] sm:$0xff]  ;;  %v2425_v28 = vld [vmem:[%s11510_s23 + $0x38] sm:$0xff]  ;;  %v2436_v29 = vld [vmem:[%s11510_s23 + $0x90] sm:$0xff]  ;;  %6655 = vrcp.f32 %v7023_v42 }
  0x27   : > { %s11599_s2 = sld [smem:[#allocation226_spill]]  ;;  %v2437_v30 = vld [vmem:[%s11510_s23 + $0x98] sm:$0xff]  ;;  %v2426_v31 = vld [vmem:[%s11510_s23 + $0x40] sm:$0xff]  ;;  %v2423_v33 = vld [vmem:[%s11510_s23 + $0x28] sm:$0xff] }
  0x28   : > { %s6567_s4 = sshll.u32 %s758_s8, 6  ;;  %s6374_s1 = sshll.u32 %s758_s8, 3  ;;  %v2422_v32 = vld [vmem:[%s11510_s23 + $0x20] sm:$0xff]  ;;  %v2443_v34 = vld [vmem:[%s11510_s23 + $0xc8] sm:$0xff]  ;;  %v2424_v36 = vld [vmem:[%s11510_s23 + $0x30] sm:$0xff] }
  0x29   : > { %v2439_v35 = vld [vmem:[%s11510_s23 + $0xa8] sm:$0xff]  ;;  %v2444_v37 = vld [vmem:[%s11510_s23 + $0xd0] sm:$0xff]  ;;  %v2441_v39 = vld [vmem:[%s11510_s23 + $0xb8] sm:$0xff]  ;;  %s11610_s27 = sld [smem:[#allocation229_spill]]  ;;  %s11526_s8 = smov 112  }
  0x2a   : > { %s7209_s30 = scalar_lea.vmem %s11597_s7, %s6567_s4  ;;  %v2440_v38 = vld [vmem:[%s11510_s23 + $0xb0] sm:$0xff]  ;;  %v2430_v40 = vld [vmem:[%s11510_s23 + $0x60] sm:$0xff]  ;;  %v2427_v41 = vld [vmem:[%s11510_s23 + $0x48] sm:$0xff]  ;;  %s11605_s7 = sld [smem:[#allocation227_spill]] }
  0x2b   : > { %s765_s25 = scalar_lea.vmem %s11598_s5, %s6374_s1  ;;  %v7215_v0 = vld [vmem:[%s7209_s30 + $0x18] sm:$0xff]  ;;  %v7218_v1 = vld [vmem:[%s7209_s30 + $0x8] sm:$0xff]  ;;  %v7221_v2 = vld [vmem:[%s7209_s30] sm:$0xff]  ;;  %s11613_s0 = sld [smem:[#allocation228_spill]] }
  0x2c   : > { %v791_v3 = vsel %vm781_vm0, %v7215_v0, 0.0  ;;  %v785_v4 = vsel %vm781_vm0, %v7218_v1, 0.0  ;;  %v782_v5 = vsel %vm781_vm0, %v7221_v2, 0.0  ;;  %v7232_v6 = vld [vmem:[%s765_s25] sm:$0xff]  ;;  %v7238_v9 = vld [vmem:[%s7209_s30 + $0x10] sm:$0xff]  ;;  %v7250_v14 = vld [vmem:[%s7209_s30 + $0x38] sm:$0xff]  ;;  %v6656_v44 = vpop.eup %6655 }
  0x2d   : > { %s769_s4 = scalar_lea.vmem %s11599_s2, %s6374_s1  ;;  %792 = vadd.xlane.f32.xlu2 %v791_v3  ;;  %786 = vadd.xlane.f32.xlu1 %v785_v4  ;;  %v7235_v8 = vld [vmem:[%s7209_s30 + $0x20] sm:$0xff]  ;;  %v788_v12 = vsel %vm781_vm0, %v7238_v9, 0.0  ;;  %v7253_v15 = vld [vmem:[%s7209_s30 + $0x28] sm:$0xff]  ;;  %v803_v16 = vsel %vm781_vm0, %v7250_v14, 0.0  ;;  %v7260_v18 = vld [vmem:[%s7209_s30 + $0x30] sm:$0xff]  ;;  %v1090_v21 = vsel %vm781_vm0, %v7232_v6, 0.0  ;;  %vm811_vm1 = vweird.f32 %v6656_v44 }
  0x2e   : > { %v780_v7 = vld [vmem:[%s769_s4] sm:$0xff]  ;;  %783 = vadd.xlane.f32.xlu0 %v782_v5  ;;  %v794_v11 = vsel %vm781_vm0, %v7235_v8, 0.0  ;;  %v797_v17 = vsel %vm781_vm0, %v7253_v15, 0.0  ;;  %v800_v19 = vsel %vm781_vm0, %v7260_v18, 0.0  ;;  %v2428_v45 = vld [vmem:[%s11510_s23 + $0x50] sm:$0xff]  ;;  %v807_v46 = vmul.f32 32.0, %v6656_v44 }
  0x2f   : > { %v7241_v10 = vadd.f32 %v780_v7, %v7232_v6  ;;  %v2442_v43 = vld [vmem:[%s11510_s23 + $0xc0] sm:$0xff]  ;;  %v2429_v47 = vld [vmem:[%s11510_s23 + $0x58] sm:$0xff]  ;;  %s11611_s29 = smov %s11610_s27  ;;  %s11612_s2 = sld [smem:[#allocation231_spill]] }
  0x30   : > { %v808_v48 = vsub.f32 1.0, %v807_v46  ;;  %s11614_s1 = sld [smem:[#allocation230_spill]]  ;;  %s6978_s5 = scalar_lea.hbm %s11511_s24, 128 }
  0x31   : > { %v1031_v13 = vsel %vm781_vm0, %v7241_v10, 0.0  ;;  %s11615_s4 = sld [smem:[#allocation232_spill]] }
  0x32   : > { %v809_v49 = vmul.f32 %v6656_v44, %v808_v48  ;;  %s11620_s9 = sld [smem:[#allocation233_spill]] }
  0x33   : > { %s11621_s10 = sld [smem:[#allocation234_spill]] }
  0x34   : > { %v810_v50 = vadd.f32 %v6656_v44, %v809_v49  ;;  %s11622_s11 = sld [smem:[#allocation235_spill]] }
  0x35   : > { %795 = vadd.xlane.f32.xlu2 %v794_v11  ;;  %789 = vadd.xlane.f32.xlu1 %v788_v12 }
  0x36   : > { %1032 = vadd.xlane.f32.xlu0 %v1031_v13  ;;  %v7362_v51 = vsel %vm811_vm1, %v6656_v44, %v810_v50 }
  0x37   : > { %11600 = vst [vmem:[#allocation11_spill] sm:$0xff] %v7362_v51 }
  0x3d   : > { %804 = vadd.xlane.f32.xlu1 %v803_v16 }
  0x3e   : > { %798 = vadd.xlane.f32.xlu0 %v797_v17 }
  0x46   : > { %801 = vadd.xlane.f32.xlu0 %v800_v19 }
  0x4d   : > { %3901 = vrot.lane.b32.xlu2 %v2418_v20, %s7022_s28 }
  0x4e   : > { %1091 = vadd.xlane.f32.xlu0 %v1090_v21  ;;  %v2445_v21 = vld [vmem:[%s11510_s23 + $0xd8] sm:$0xff] }
  0x55   : > { %3903 = vrot.lane.b32.xlu2 %v2419_v22, %s7022_s28 }
  0x56   : > { %3933 = vrot.lane.b32.xlu1 %v2434_v23, %s7022_s28 }
  0x5d   : > { %3907 = vrot.lane.b32.xlu2 %v2421_v24, %s7022_s28 }
  0x5e   : > { %3941 = vrot.lane.b32.xlu1 %v2438_v25, %s7022_s28 }
  0x62   : > { %3905 = vrot.lane.b32.xlu0 %v2420_v26, %s7022_s28  ;;  %v2446_v26 = vld [vmem:[%s11510_s23 + $0xe0] sm:$0xff] }
  0x65   : > { %3935 = vrot.lane.b32.xlu2 %v2435_v27, %s7022_s28 }
  0x66   : > { %3915 = vrot.lane.b32.xlu1 %v2425_v28, %s7022_s28 }
  0x6a   : > { %3937 = vrot.lane.b32.xlu0 %v2436_v29, %s7022_s28 }
  0x6d   : > { %3939 = vrot.lane.b32.xlu2 %v2437_v30, %s7022_s28 }
  0x6e   : > { %3917 = vrot.lane.b32.xlu1 %v2426_v31, %s7022_s28 }
  0x72   : > { %3909 = vrot.lane.b32.xlu0 %v2422_v32, %s7022_s28 }
  0x75   : > { %3911 = vrot.lane.b32.xlu2 %v2423_v33, %s7022_s28 }
  0x76   : > { %3951 = vrot.lane.b32.xlu1 %v2443_v34, %s7022_s28 }
  0x7a   : > { %3943 = vrot.lane.b32.xlu0 %v2439_v35, %s7022_s28 }
  0x7d   : > { %3913 = vrot.lane.b32.xlu2 %v2424_v36, %s7022_s28 }
  0x7e   : > { %3953 = vrot.lane.b32.xlu1 %v2444_v37, %s7022_s28 }
  0x82   : > { %3945 = vrot.lane.b32.xlu0 %v2440_v38, %s7022_s28 }
  0x85   : > { %3947 = vrot.lane.b32.xlu2 %v2441_v39, %s7022_s28 }
  0x86   : > { %3925 = vrot.lane.b32.xlu1 %v2430_v40, %s7022_s28 }
  0x8a   : > { %3919 = vrot.lane.b32.xlu0 %v2427_v41, %s7022_s28 }
  0x8d   : > { %3949 = vrot.lane.b32.xlu2 %v2442_v43, %s7022_s28 }
  0x92   : > { %3921 = vrot.lane.b32.xlu0 %v2428_v45, %s7022_s28 }
  0x95   : > { %3923 = vrot.lane.b32.xlu2 %v2429_v47, %s7022_s28 }
  0xa0   : > { %v787_v52 = vpop.xlane.xlu1 %786  ;;  %v793_v59 = vpop.xlane.xlu2 %792 }
  0xa1   : > { %v814_v53 = vmul.f32 %v7362_v51, %v787_v52  ;;  %v784_v58 = vpop.xlane.xlu0 %783  ;;  %v816_v63 = vmul.f32 %v7362_v51, %v793_v59 }
  0xa2   : > { %v813_v62 = vmul.f32 %v7362_v51, %v784_v58 }
  0xa3   : > { %v7366_v54 = vsub.f32 %v7218_v1, %v814_v53  ;;  %v7383_v4 = vsub.f32 %v7215_v0, %v816_v63 }
  0xa4   : > { %v7378_v1 = vsub.f32 %v7221_v2, %v813_v62 }
  0xa5   : > { %v830_v56 = vmul.f32 %v7366_v54, %v7366_v54  ;;  %v832_v2 = vmul.f32 %v7383_v4, %v7383_v4 }
  0xa6   : > { %v829_v7 = vmul.f32 %v7378_v1, %v7378_v1 }
  0xa7   : > { %v840_v60 = vsel %vm781_vm0, %v830_v56, 0.0  ;;  %v846_v0 = vsel %vm781_vm0, %v832_v2, 0.0  ;;  %v6568_v2 = vld [vmem:[%s11605_s7] sm:$0xff] }
  0xa8   : > { %v790_v55 = vpop.xlane.xlu1 %789  ;;  %v837_v12 = vsel %vm781_vm0, %v829_v7, 0.0  ;;  %v6569_v7 = vld [vmem:[%s11605_s7 + $0x8] sm:$0xff] }
  0xa9   : > { %v815_v57 = vmul.f32 %v7362_v51, %v790_v55  ;;  %v1033_v17 = vpop.xlane.xlu0 %1032  ;;  %1007 = vmatpush.bf16.msra.mxu0 %v6569_v7 }
  0xaa   : > { %v1034_v50 = vmul.f32 %v1033_v17, %v7362_v51 }
  0xab   : > { %v7373_v61 = vsub.f32 %v7238_v9, %v815_v57  ;;  %v796_v9 = vpop.xlane.xlu2 %795 }
  0xac   : > { %v817_v11 = vmul.f32 %v7362_v51, %v796_v9  ;;  %v7468_v55 = vsub.f32 %v7241_v10, %v1034_v50 }
  0xad   : > { %v831_v3 = vmul.f32 %v7373_v61, %v7373_v61  ;;  %1008 = vmatpush.bf16.msra.mxu0 %v6568_v2 }
  0xae   : > { %v7393_v13 = vsub.f32 %v7235_v8, %v817_v11  ;;  %v2447_v8 = vld [vmem:[%s11510_s23 + $0xe8] sm:$0xff]  ;;  %v1036_v57 = vmul.f32 %v7468_v55, %v7468_v55 }
  0xaf   : > { %v843_v5 = vsel %vm781_vm0, %v831_v3, 0.0 }
  0xb0   : > { %841 = vadd.xlane.f32.xlu1 %v840_v60  ;;  %v833_v16 = vmul.f32 %v7393_v13, %v7393_v13  ;;  %v805_v23 = vpop.xlane.xlu1 %804  ;;  %v1037_v59 = vsel %vm781_vm0, %v1036_v57, 0.0 }
  0xb1   : > { %v799_v20 = vpop.xlane.xlu0 %798  ;;  %v820_v44 = vmul.f32 %v7362_v51, %v805_v23 }
  0xb2   : > { %v849_v19 = vsel %vm781_vm0, %v833_v16, 0.0  ;;  %v818_v32 = vmul.f32 %v7362_v51, %v799_v20 }
  0xb3   : > { %v7405_v22 = vpop.permute.xlu2 %3901  ;;  %v7457_v48 = vsub.f32 %v7250_v14, %v820_v44 }
  0xb4   : > { %v7428_v35 = vsub.f32 %v7253_v15, %v818_v32 }
  0xb5   : > { %v836_v52 = vmul.f32 %v7457_v48, %v7457_v48 }
  0xb6   : > { %v834_v38 = vmul.f32 %v7428_v35, %v7428_v35 }
  0xb7   : > { %v858_v56 = vsel %vm781_vm0, %v836_v52, 0.0 }
  0xb8   : > { %844 = vadd.xlane.f32.xlu1 %v843_v5  ;;  %v852_v15 = vsel %vm781_vm0, %v834_v38, 0.0 }
  0xb9   : > { %v802_v24 = vpop.xlane.xlu0 %801 }
  0xba   : > { %v819_v33 = vmul.f32 %v7362_v51, %v802_v24 }
  0xbb   : > { %v7409_v25 = vpop.permute.xlu2 %3903 }
  0xbc   : > { %838 = vadd.xlane.f32.xlu0 %v837_v12  ;;  %11601 = vst [vmem:[#allocation12_spill] sm:$0xff] %v7409_v25  ;;  %v7431_v36 = vsub.f32 %v7260_v18, %v819_v33 }
  0xbe   : > { %847 = vadd.xlane.f32.xlu2 %v846_v0  ;;  %v835_v41 = vmul.f32 %v7431_v36, %v7431_v36 }
  0xc0   : > { %v855_v18 = vsel %vm781_vm0, %v835_v41, 0.0 }
  0xc1   : > { %v1092_v28 = vpop.xlane.xlu0 %1091 }
  0xc2   : > { %v1093_v40 = vmul.f32 %v1092_v28, %v7362_v51 }
  0xc3   : > { %v7417_v29 = vpop.permute.xlu2 %3907 }
  0xc4   : > { %v7446_v43 = vsub.f32 %v7232_v6, %v1093_v40 }
  0xc6   : > { %850 = vadd.xlane.f32.xlu2 %v849_v19  ;;  %v1095_v46 = vmul.f32 %v7446_v43, %v7446_v43 }
  0xc8   : > { %v7414_v27 = vpop.permute.xlu1 %3933  ;;  %v1096_v49 = vsel %vm781_vm0, %v1095_v46, 0.0 }
  0xcb   : > { %v7425_v34 = vpop.permute.xlu2 %3935 }
  0xd0   : > { %3955 = vrot.lane.b32.xlu0 %v2445_v21, %s7022_s28  ;;  %v7419_v30 = vpop.permute.xlu1 %3941 }
  0xd1   : > { %3959 = vrot.lane.b32.xlu1 %v2447_v8, %s7022_s28 }
  0xd3   : > { %v7442_v42 = vpop.permute.xlu2 %3939 }
  0xd4   : > { %v7421_v31 = vpop.permute.xlu0 %3905 }
  0xd8   : > { %v7433_v37 = vpop.permute.xlu1 %3915 }
  0xdb   : > { %v7460_v6 = vpop.permute.xlu2 %3911 }
  0xdc   : > { %v7437_v39 = vpop.permute.xlu0 %3937 }
  0xde   : > { %3957 = vrot.lane.b32.xlu2 %v2446_v26, %s7022_s28 }
  0xe0   : > { %v7450_v45 = vpop.permute.xlu1 %3917 }
  0xe3   : > { %v7475_v58 = vpop.permute.xlu2 %3913 }
  0xe4   : > { %v7454_v47 = vpop.permute.xlu0 %3909 }
  0xe8   : > { %v7465_v53 = vpop.permute.xlu1 %3951 }
  0xeb   : > { %v7482_v63 = vpop.permute.xlu2 %3947 }
  0xec   : > { %v7471_v14 = vpop.permute.xlu0 %3943 }
  0xed   : > { %11602 = vst [vmem:[#allocation13_spill] sm:$0xff] %v7471_v14 }
  0xf0   : > { %v7478_v60 = vpop.permute.xlu1 %3953 }
  0xf1   : > { %11603 = vst [vmem:[#allocation14_spill] sm:$0xff] %v7478_v60 }
  0xf3   : > { %v7488_v5 = vpop.permute.xlu2 %3949 }
  0xf4   : > { %v7480_v62 = vpop.permute.xlu0 %3945 }
  0xf5   : > { %11604 = vst [vmem:[#allocation15_spill] sm:$0xff] %v7480_v62 }
  0xf8   : > { %v7484_v10 = vpop.permute.xlu1 %3925 }
  0xfa   : > { %853 = vadd.xlane.f32.xlu0 %v852_v15 }
  0xfb   : > { %856 = vadd.xlane.f32.xlu1 %v855_v18  ;;  %v7499_v16 = vpop.permute.xlu2 %3923 }
  0xfc   : > { %v7486_v3 = vpop.permute.xlu0 %3919 }
 0x103   : > { %1097 = vadd.xlane.f32.xlu1 %v1096_v49 }
 0x104   : > { %v7494_v12 = vpop.permute.xlu0 %3921 }
 0x105   : > { %11606 = vst [vmem:[#allocation16_spill] sm:$0xff] %v7494_v12 }
 0x107   : > { %859 = vadd.xlane.f32.xlu2 %v858_v56 }
 0x10f   : > { %1038 = vadd.xlane.f32.xlu2 %v1037_v59 }
 0x123   : > { %v842_v9 = vpop.xlane.xlu1 %841 }
 0x124   : > { %v862_v11 = vmul.f32 %v842_v9, %v7362_v51 }
 0x126   : > { %v870_v0 = vadd.f32 1e-05, %v862_v11 }
 0x128   : > { %6657 = vrsqrt.f32 %v870_v0  ;;  %vm893_vm2 = vweird.f32 %v870_v0 }
 0x12b   : > { %v845_v17 = vpop.xlane.xlu1 %844 }
 0x12c   : > { %v863_v19 = vmul.f32 %v845_v17, %v7362_v51 }
 0x12e   : > { %v6658_v20 = vpop.eup %6657  ;;  %v871_v24 = vadd.f32 1e-05, %v863_v19 }
 0x12f   : > { %v888_v21 = vmul.f32 %v6658_v20, %v870_v0  ;;  %v839_v8 = vpop.xlane.xlu0 %838  ;;  %vm894_vm3 = vweird.f32 %v6658_v20 }
 0x130   : > { %v861_v23 = vmul.f32 %v839_v8, %v7362_v51  ;;  %vm895_vm6 = vmor %vm893_vm2, %vm894_vm3  ;;  %vm903_vm8 = vweird.f32 %v871_v24 }
 0x131   : > { %v848_v26 = vpop.xlane.xlu2 %847  ;;  %v889_v33 = vmul.f32 %v6658_v20, %v888_v21 }
 0x132   : > { %v869_v28 = vadd.f32 1e-05, %v861_v23  ;;  %v864_v32 = vmul.f32 %v848_v26, %v7362_v51 }
 0x133   : > { %v890_v40 = vmul.f32 0.5, %v889_v33 }
 0x134   : > { %6659 = vrsqrt.f32 %v869_v28  ;;  %v872_v38 = vadd.f32 1e-05, %v864_v32  ;;  %vm883_vm4 = vweird.f32 %v869_v28 }
 0x135   : > { %6661 = vrsqrt.f32 %v871_v24  ;;  %v891_v18 = vsub.f32 1.5, %v890_v40 }
 0x136   : > { %6663 = vrsqrt.f32 %v872_v38  ;;  %vm913_vm12 = vweird.f32 %v872_v38 }
 0x137   : > { %v892_v57 = vmul.f32 %v6658_v20, %v891_v18 }
 0x139   : > { %v896_v2 = vsel %vm895_vm6, %v6658_v20, %v892_v57  ;;  %v851_v18 = vpop.xlane.xlu2 %850 }
 0x13a   : > { %v6660_v41 = vpop.eup %6659  ;;  %v958_v0 = vmul.f32 %v896_v2, %v7366_v54 }
 0x13b   : > { %v6662_v15 = vpop.eup %6661  ;;  %v878_v44 = vmul.f32 %v6660_v41, %v869_v28  ;;  %vm884_vm5 = vweird.f32 %v6660_v41 }
 0x13c   : > { %v6664_v46 = vpop.eup %6663  ;;  %v898_v52 = vmul.f32 %v6662_v15, %v871_v24  ;;  %vm885_vm7 = vmor %vm883_vm4, %vm884_vm5  ;;  %vm904_vm9 = vweird.f32 %v6662_v15 }
 0x13d   : > { %v879_v49 = vmul.f32 %v6660_v41, %v878_v44  ;;  %v908_v50 = vmul.f32 %v6664_v46, %v872_v38  ;;  %vm914_vm10 = vweird.f32 %v6664_v46  ;;  %vm905_vm11 = vmor %vm903_vm8, %vm904_vm9  ;;  %v865_v44 = vmul.f32 %v851_v18, %v7362_v51  ;;  %v6572_v18 = vld [vmem:[%s11612_s2] sm:$0xff] }
 0x13e   : > { %v899_v9 = vmul.f32 %v6662_v15, %v898_v52  ;;  %vm915_vm13 = vmor %vm913_vm12, %vm914_vm10 }
 0x13f   : > { %v880_v56 = vmul.f32 0.5, %v879_v49  ;;  %v909_v7 = vmul.f32 %v6664_v46, %v908_v50  ;;  %v873_v24 = vadd.f32 1e-05, %v865_v44 }
 0x140   : > { %v900_v8 = vmul.f32 0.5, %v899_v9  ;;  %v6571_v9 = vld [vmem:[%s11610_s27 + $0x8] sm:$0xff] }
 0x141   : > { %v881_v59 = vsub.f32 1.5, %v880_v56  ;;  %v910_v17 = vmul.f32 0.5, %v909_v7  ;;  %6665 = vrsqrt.f32 %v873_v24  ;;  %v7519_v7 = vpop.permute.xlu2 %3957  ;;  %1083 = vmatpush.bf16.msra.mxu2 %v6571_v9  ;;  %vm923_vm15 = vweird.f32 %v873_v24 }
 0x142   : > { %v901_v28 = vsub.f32 1.5, %v900_v8  ;;  %v7511_v49 = vpop.permute.xlu0 %3955  ;;  %11609 = vst [vmem:[#allocation19_spill] sm:$0xff] %v7519_v7 }
 0x143   : > { %v882_v11 = vmul.f32 %v6660_v41, %v881_v59  ;;  %v911_v26 = vsub.f32 1.5, %v910_v17  ;;  %11607 = vst [vmem:[#allocation17_spill] sm:$0xff] %v7511_v49  ;;  %v7513_v50 = vpop.permute.xlu1 %3959  ;;  %v6570_v17 = vld [vmem:[%s11611_s29] sm:$0xff] }
 0x144   : > { %v902_v33 = vmul.f32 %v6662_v15, %v901_v28  ;;  %11608 = vst [vmem:[#allocation18_spill] sm:$0xff] %v7513_v50 }
 0x145   : > { %v886_v19 = vsel %vm885_vm7, %v6660_v41, %v882_v11  ;;  %v912_v32 = vmul.f32 %v6664_v46, %v911_v26  ;;  %1084 = vmatpush.bf16.msra.mxu2 %v6570_v17 }
 0x146   : > { %v957_v21 = vmul.f32 %v886_v19, %v7378_v1  ;;  %v906_v40 = vsel %vm905_vm11, %v6662_v15, %v902_v33 }
 0x147   : > { %v916_v20 = vsel %vm915_vm13, %v6664_v46, %v912_v32  ;;  %v959_v54 = vmul.f32 %v906_v40, %v7373_v61  ;;  %v6666_v38 = vpop.eup %6665 }
 0x148   : > { %v969_v23 = vpack.c.bf16 %v958_v0, %v957_v21  ;;  %v960_v1 = vmul.f32 %v916_v20, %v7383_v4  ;;  %v918_v52 = vmul.f32 %v6666_v38, %v873_v24  ;;  %vm924_vm14 = vweird.f32 %v6666_v38 }
 0x149   : > { %vm925_vm2 = vmor %vm923_vm15, %vm924_vm14 }
 0x14a   : > { %6384 = vmatmul.msk.bf16.vlgmr.msra.gmra.mxu0 %vm781_vm0, %v969_v23  ;;  %v970_v41 = vpack.c.bf16 %v960_v1, %v959_v54  ;;  %v919_v57 = vmul.f32 %v6666_v38, %v918_v52  ;;  %v6573_v1 = vld [vmem:[%s11612_s2 + $0x8] sm:$0xff] }
 0x14b   : > { %1142 = vmatpush.bf16.msrb.mxu2 %v6573_v1 }
 0x14c   : > { %v920_v11 = vmul.f32 0.5, %v919_v57 }
 0x14e   : > { %v921_v19 = vsub.f32 1.5, %v920_v11 }
 0x14f   : > { %1143 = vmatpush.bf16.msrb.mxu2 %v6572_v18 }
 0x150   : > { %v922_v40 = vmul.f32 %v6666_v38, %v921_v19 }
 0x152   : > { %v926_v52 = vsel %vm925_vm2, %v6666_v38, %v922_v40  ;;  %vm1178_vm2 = vcmask 130048  }
 0x153   : > { %v961_v57 = vmul.f32 %v926_v52, %v7393_v13 }
 0x15a   : > { %6385 = vmatmul.msk.bf16.gmra.mxu0 %vm781_vm0, %v970_v41 }
 0x16d   : > { %v854_v46 = vpop.xlane.xlu0 %853 }
 0x16e   : > { %v866_v15 = vmul.f32 %v854_v46, %v7362_v51  ;;  %v857_v4 = vpop.xlane.xlu1 %856 }
 0x16f   : > { %v867_v61 = vmul.f32 %v857_v4, %v7362_v51 }
 0x170   : > { %v874_v56 = vadd.f32 1e-05, %v866_v15 }
 0x171   : > { %v7517_v59 = vadd.f32 1e-05, %v867_v61 }
 0x172   : > { %6667 = vrsqrt.f32 %v874_v56  ;;  %vm933_vm3 = vweird.f32 %v874_v56 }
 0x173   : > { %6669 = vrsqrt.f32 %v7517_v59  ;;  %vm943_vm6 = vweird.f32 %v7517_v59 }
 0x176   : > { %v1098_v26 = vpop.xlane.xlu1 %1097 }
 0x177   : > { %v1099_v54 = vmul.f32 %v1098_v26, %v7362_v51 }
 0x178   : > { %v6668_v2 = vpop.eup %6667 }
 0x179   : > { %v928_v21 = vmul.f32 %v6668_v2, %v874_v56  ;;  %v7528_v0 = vpop.eup %6669  ;;  %vm934_vm1 = vweird.f32 %v6668_v2  ;;  %v1100_v15 = vadd.f32 1e-05, %v1099_v54 }
 0x17a   : > { %v860_v8 = vpop.xlane.xlu2 %859  ;;  %v938_v33 = vmul.f32 %v7528_v0, %v7517_v59  ;;  %vm935_vm4 = vmor %vm933_vm3, %vm934_vm1  ;;  %vm944_vm7 = vweird.f32 %v7528_v0  ;;  %vm1361_vm3 = vcmask 1043456  }
 0x17b   : > { %v929_v23 = vmul.f32 %v6668_v2, %v928_v21  ;;  %v868_v28 = vmul.f32 %v860_v8, %v7362_v51  ;;  %vm945_vm10 = vmor %vm943_vm6, %vm944_vm7  ;;  %vm1107_vm14 = vweird.f32 %v1100_v15 }
 0x17c   : > { %v939_v44 = vmul.f32 %v7528_v0, %v938_v33 }
 0x17d   : > { %v930_v32 = vmul.f32 0.5, %v929_v23  ;;  %v876_v20 = vadd.f32 1e-05, %v868_v28 }
 0x17e   : > { %v940_v17 = vmul.f32 0.5, %v939_v44 }
 0x17f   : > { %v931_v41 = vsub.f32 1.5, %v930_v32  ;;  %6671 = vrsqrt.f32 %v876_v20  ;;  %vm953_vm8 = vweird.f32 %v876_v20 }
 0x180   : > { %6673 = vrsqrt.f32 %v1100_v15  ;;  %v941_v8 = vsub.f32 1.5, %v940_v17  ;;  %v2432_v17 = vld [vmem:[%s11510_s23 + $0x70] sm:$0xff] }
 0x181   : > { %v932_v46 = vmul.f32 %v6668_v2, %v931_v41 }
 0x182   : > { %v1039_v4 = vpop.xlane.xlu2 %1038  ;;  %v942_v13 = vmul.f32 %v7528_v0, %v941_v8 }
 0x183   : > { %v1040_v61 = vmul.f32 %v1039_v4, %v7362_v51  ;;  %v936_v24 = vsel %vm935_vm4, %v6668_v2, %v932_v46  ;;  %vm1231_vm4 = vcmask 64512  }
 0x184   : > { %v962_v9 = vmul.f32 %v936_v24, %v7428_v35  ;;  %v2431_v35 = vld [vmem:[%s11510_s23 + $0x68] sm:$0xff]  ;;  %v946_v59 = vsel %vm945_vm10, %v7528_v0, %v942_v13 }
 0x185   : > { %v6672_v11 = vpop.eup %6671  ;;  %v1041_v19 = vadd.f32 1e-05, %v1040_v61  ;;  %3927 = vrot.lane.b32.xlu0 %v2431_v35, %s7022_s28  ;;  %v963_v46 = vmul.f32 %v946_v59, %v7431_v36 }
 0x186   : > { %v948_v56 = vmul.f32 %v6672_v11, %v876_v20  ;;  %v971_v21 = vpack.c.bf16 %v962_v9, %v961_v57  ;;  %v6674_v26 = vpop.eup %6673  ;;  %vm954_vm5 = vweird.f32 %v6672_v11 }
 0x187   : > { %6675 = vrsqrt.f32 %v1041_v19  ;;  %vm955_vm9 = vmor %vm953_vm8, %vm954_vm5  ;;  %v1102_v40 = vmul.f32 %v6674_v26, %v1100_v15  ;;  %vm1048_vm12 = vweird.f32 %v1041_v19  ;;  %vm1108_vm15 = vweird.f32 %v6674_v26  ;;  %v2448_v15 = vld [vmem:[%s11510_s23 + $0xf0] sm:$0xff] }
 0x188   : > { %v949_v38 = vmul.f32 %v6672_v11, %v948_v56  ;;  %6386 = vmatmul.msk.bf16.gmra.mxu0 %vm781_vm0, %v971_v21  ;;  %vm1109_vm1 = vmor %vm1107_vm14, %vm1108_vm15  ;;  %3961 = vrot.lane.b32.xlu1 %v2448_v15, %s7022_s28  ;;  %v6645_v56 = vld [vmem:[%s11613_s0] ss:$0 sm:$0xff]  ;;  %s6596_s0 = sshll.u32 %s7177_s6, 6 }
 0x189   : > { %v1103_v44 = vmul.f32 %v6674_v26, %v1102_v40  ;;  %s6277_s27 = scalar_lea.hbm %s11511_s24, %s6596_s0 }
 0x18a   : > { %v950_v23 = vmul.f32 0.5, %v949_v38 }
 0x18b   : > { %v1104_v61 = vmul.f32 0.5, %v1103_v44  ;;  %v2433_v44 = vld [vmem:[%s11510_s23 + $0x78] sm:$0xff] }
 0x18c   : > { %v951_v28 = vsub.f32 1.5, %v950_v23  ;;  %3931 = vrot.lane.b32.xlu2 %v2433_v44, %s7022_s28 }
 0x18d   : > { %v6676_v2 = vpop.eup %6675  ;;  %v1105_v0 = vsub.f32 1.5, %v1104_v61  ;;  %3929 = vrot.lane.b32.xlu0 %v2432_v17, %s7022_s28 }
 0x18e   : > { %v1043_v32 = vmul.f32 %v6676_v2, %v1041_v19  ;;  %v952_v33 = vmul.f32 %v6672_v11, %v951_v28  ;;  %vm1049_vm11 = vweird.f32 %v6676_v2 }
 0x18f   : > { %vm1050_vm13 = vmor %vm1048_vm12, %vm1049_vm11 }
 0x190   : > { %v1044_v1 = vmul.f32 %v6676_v2, %v1043_v32  ;;  %v956_v54 = vsel %vm955_vm9, %v6672_v11, %v952_v33 }
 0x191   : > { %v964_v18 = vmul.f32 %v956_v54, %v7457_v48  ;;  %v1106_v48 = vmul.f32 %v6674_v26, %v1105_v0 }
 0x192   : > { %v1045_v41 = vmul.f32 0.5, %v1044_v1 }
 0x193   : > { %v972_v20 = vpack.c.bf16 %v964_v18, %v963_v46  ;;  %v1110_v36 = vsel %vm1109_vm1, %v6674_v26, %v1106_v48 }
 0x194   : > { %v1046_v52 = vsub.f32 1.5, %v1045_v41  ;;  %v1111_v11 = vmul.f32 %v1110_v36, %v7446_v43 }
 0x196   : > { %v1047_v4 = vmul.f32 %v6676_v2, %v1046_v52  ;;  %v1116_v19 = vpack.c.bf16 %v1111_v11, %v1111_v11 }
 0x198   : > { %6387 = vmatmul.msk.bf16.gmra.mxu0 %vm781_vm0, %v972_v20  ;;  %v1051_v24 = vsel %vm1050_vm13, %v6676_v2, %v1047_v4  ;;  %v6646_v20 = vld [vmem:[%s11614_s1] ss:$0 sm:$0xff]  ;;  %s7026_s1 = smov 96  }
 0x199   : > { %v1052_v57 = vmul.f32 %v1051_v24, %v7468_v55  ;;  %v2449_v55 = vld [vmem:[%s11510_s23 + $0xf8] sm:$0xff] }
 0x19a   : > { %3963 = vrot.lane.b32.xlu0 %v2449_v55, %s7022_s28  ;;  %s7027_s28 = smov 80  }
 0x19b   : > { %v1057_v9 = vpack.c.bf16 %v1052_v57, %v1052_v57 }
 0x19d   : > { %6396 = vmatmul.msk.bf16.vlgmr.msra.gmra.mxu2 %vm781_vm0, %v1057_v9 }
 0x1ad   : > { %6405 = vmatmul.msk.bf16.vlgmr.msrb.gmra.mxu2 %vm781_vm0, %v1116_v19 }
 0x1c7   : > { %v1010_v43 = vpop.f32.mrf.mxu0 }
 0x1c8   : > { %v1011_v21 = vadd.f32 %v6645_v56, %v1010_v43 }
 0x1ca   : > { %v1149_v8 = vpack.c.bf16 %v1011_v21, %v1011_v21  ;;  %v6647_v21 = vld [vmem:[%s11615_s4] ss:$0 sm:$0xff]  ;;  %s11631_s4 = smov 112  }
 0x1cc   : > { %v1166_v28 = vunpack.c.l.b16 %v1149_v8 }
 0x1cf   : > { %v1012_v38 = vpop.f32.mrf.mxu0 }
 0x1d0   : > { %v1013_v23 = vadd.f32 %v6645_v56, %v1012_v38 }
 0x1d2   : > { %v1150_v26 = vpack.c.bf16 %v1013_v23, %v1013_v23 }
 0x1d4   : > { %v1167_v2 = vunpack.c.l.b16 %v1150_v26 }
 0x1d6   : > { %v1174_v13 = vpack.c.b16 %v1167_v2, %v1166_v28 }
 0x1d7   : > { %v1015_v35 = vpop.f32.mrf.mxu0 }
 0x1d8   : > { %1394 = vrot.lane.b32.xlu0 %v1174_v13, %s11526_s8  ;;  %v1016_v32 = vadd.f32 %v6645_v56, %v1015_v35 }
 0x1da   : > { %v1151_v40 = vpack.c.bf16 %v1016_v32, %v1016_v32 }
 0x1dc   : > { %v1168_v59 = vunpack.c.l.b16 %v1151_v40 }
 0x1df   : > { %v1017_v33 = vpop.f32.mrf.mxu0 }
 0x1e0   : > { %v1018_v1 = vadd.f32 %v6645_v56, %v1017_v33 }
 0x1e2   : > { %v1152_v54 = vpack.c.bf16 %v1018_v1, %v1018_v1 }
 0x1e4   : > { %v1169_v41 = vunpack.c.l.b16 %v1152_v54 }
 0x1e6   : > { %v1175_v18 = vpack.c.b16 %v1169_v41, %v1168_v59 }
 0x1e8   : > { %1396 = vrot.lane.b32.xlu1 %v1175_v18, %s11526_s8 }
 0x205   : > { %v1020_v52 = vpop.f32.mrf.mxu0 }
 0x206   : > { %v1021_v9 = vadd.f32 %v6645_v56, %v1020_v52 }
 0x208   : > { %v1153_v55 = vpack.c.bf16 %v1021_v9, %v1021_v9 }
 0x20a   : > { %v1170_v43 = vunpack.c.l.b16 %v1153_v55 }
 0x20d   : > { %v1022_v46 = vpop.f32.mrf.mxu0 }
 0x20e   : > { %v1023_v24 = vadd.f32 %v6645_v56, %v1022_v46  ;;  %v7601_v46 = vpop.permute.xlu2 %3931 }
 0x210   : > { %v1154_v11 = vpack.c.bf16 %v1023_v24, %v1023_v24  ;;  %v7607_v24 = vpop.permute.xlu1 %3961 }
 0x211   : > { %11619 = vst [vmem:[#allocation23_spill] sm:$0xff] %v7607_v24 }
 0x212   : > { %v1171_v15 = vunpack.c.l.b16 %v1154_v11 }
 0x214   : > { %v1176_v38 = vpack.c.b16 %v1171_v15, %v1170_v43 }
 0x215   : > { %v1025_v36 = vpop.f32.mrf.mxu0 }
 0x216   : > { %v1026_v35 = vadd.f32 %v6645_v56, %v1025_v36 }
 0x218   : > { %v1155_v54 = vpack.c.bf16 %v1026_v35, %v1026_v35 }
 0x21a   : > { %v1172_v41 = vunpack.c.l.b16 %v1155_v54 }
 0x21d   : > { %v1027_v8 = vpop.f32.mrf.mxu0 }
 0x21e   : > { %v1028_v28 = vadd.f32 %v6645_v56, %v1027_v8  ;;  %v7597_v56 = vpop.permute.xlu0 %3927 }
 0x21f   : > { %11616 = vst [vmem:[#allocation20_spill] sm:$0xff] %v7597_v56 }
 0x220   : > { %v1086_v4 = vpop.f32.mrf.mxu2  ;;  %v1156_v40 = vpack.c.bf16 %v1028_v28, %v1028_v28 }
 0x221   : > { %v1087_v61 = vadd.f32 %v6646_v20, %v1086_v4 }
 0x222   : > { %v1173_v59 = vunpack.c.l.b16 %v1156_v40 }
 0x223   : > { %v1157_v57 = vpack.c.bf16 %v1087_v61, %v1087_v61 }
 0x224   : > { %v1177_v44 = vpack.c.b16 %v1173_v59, %v1172_v41 }
 0x225   : > { %v1403_v0 = vunpack.c.l.b16 %v1157_v57  ;;  %v1192_v48 = vsel %vm1178_vm2, %v1157_v57, 0 }
 0x226   : > { %1201 = vmatpush.bf16.xpose.msra.mxu3 %v1192_v48  ;;  %v7599_v52 = vpop.permute.xlu0 %3929 }
 0x227   : > { %v1404_v17 = vpack.c.b16 %v1403_v0, %v1403_v0  ;;  %11617 = vst [vmem:[#allocation21_spill] sm:$0xff] %v7599_v52 }
 0x228   : > { %v1088_v19 = vpop.f32.mrf.mxu2 }
 0x229   : > { %1405 = vrot.lane.b32.xlu2 %v1404_v17, %s11526_s8 }
 0x22d   : > { %6406 = vmatmul.msk.bf16.vlgmr.msra.gmra.mxu3 %vm1178_vm2, %v1174_v13 }
 0x22e   : > { %v7603_v20 = vpop.permute.xlu0 %3963 }
 0x22f   : > { %11618 = vst [vmem:[#allocation22_spill] sm:$0xff] %v7603_v20 }
 0x230   : > { %v1145_v23 = vpop.f32.mrf.mxu2 }
 0x231   : > { %v1146_v26 = vadd.f32 %v6647_v21, %v1145_v23  ;;  %1398 = vrot.lane.b32.xlu2 %v1176_v38, %s11526_s8 }
 0x233   : > { %v1328_v2 = vpack.c.bf16 %v1146_v26, %v1146_v26 }
 0x235   : > { %v1576_v32 = vunpack.c.l.b16 %v1328_v2  ;;  %v1363_v33 = vsel %vm1361_vm3, %v1328_v2, 0 }
 0x236   : > { %1372 = vmatpush.bf16.msra.mxu1 %v1363_v33 }
 0x237   : > { %v1577_v13 = vpack.c.b16 %v1576_v32, %v1576_v32 }
 0x238   : > { %v1147_v1 = vpop.f32.mrf.mxu2 }
 0x239   : > { %1578 = vrot.lane.b32.xlu0 %v1577_v13, %s11526_s8 }
 0x23d   : > { %6407 = vmatmul.msk.bf16.gmra.mxu3 %vm1178_vm2, %v1175_v18 }
 0x241   : > { %1400 = vrot.lane.b32.xlu0 %v1177_v44, %s11526_s8 }
 0x24a   : > { %v1395_v18 = vpop.permute.xlu0 %1394 }
 0x24d   : > { %6408 = vmatmul.msk.bf16.gmra.mxu3 %vm1178_vm2, %v1176_v38 }
 0x25a   : > { %v1397_v57 = vpop.permute.xlu1 %1396 }
 0x25d   : > { %6409 = vmatmul.msk.bf16.gmra.mxu3 %vm1178_vm2, %v1177_v44 }
 0x283   : > { %v1406_v4 = vpop.permute.xlu2 %1405 }
 0x284   : > { %v1420_v61 = vsel %vm1178_vm2, %v1406_v4, 0 }
 0x285   : > { %1429 = vmatpush.bf16.xpose.msra.mxu2 %v1420_v61 }
 0x28b   : > { %v1399_v9 = vpop.permute.xlu2 %1398 }
 0x28c   : > { %6414 = vmatmul.msk.bf16.vlgmr.msra.gmra.mxu2 %vm1178_vm2, %v1395_v18 }
 0x29c   : > { %6415 = vmatmul.msk.bf16.gmra.mxu2 %vm1178_vm2, %v1397_v57 }
 0x2ab   : > { %v1579_v0 = vpop.permute.xlu0 %1578 }
 0x2ac   : > { %6416 = vmatmul.msk.bf16.gmra.mxu2 %vm1178_vm2, %v1399_v9  ;;  %v1593_v48 = vsel %vm1361_vm3, %v1579_v0, 0 }
 0x2ad   : > { %1602 = vmatpush.bf16.msrb.mxu0 %v1593_v48 }
 0x2b0   : > { %v1203_v36 = vpop.f32.mrf.mxu3 }
 0x2b1   : > { %v1223_v11 = vmul.f32 0.25, %v1203_v36 }
 0x2b3   : > { %v1232_v17 = vsel %vm1231_vm4, %v1223_v11, -inf  ;;  %v1401_v15 = vpop.permute.xlu0 %1400 }
 0x2b4   : > { %1233 = vmax.xlane.f32.xlu0 %v1232_v17 }
 0x2b8   : > { %v1205_v19 = vpop.f32.mrf.mxu3 }
 0x2b9   : > { %v1224_v55 = vmul.f32 0.25, %v1205_v19 }
 0x2bb   : > { %v1235_v43 = vsel %vm1231_vm4, %v1224_v55, -inf }
 0x2bc   : > { %1236 = vmax.xlane.f32.xlu2 %v1235_v43  ;;  %6417 = vmatmul.msk.bf16.gmra.mxu2 %vm1178_vm2, %v1401_v15 }
 0x2c0   : > { %v1208_v21 = vpop.f32.mrf.mxu3 }
 0x2c1   : > { %v1225_v38 = vmul.f32 0.25, %v1208_v21 }
 0x2c3   : > { %v1238_v8 = vsel %vm1231_vm4, %v1225_v38, -inf }
 0x2c4   : > { %1239 = vmax.xlane.f32.xlu2 %v1238_v8 }
 0x2c8   : > { %v1210_v23 = vpop.f32.mrf.mxu3 }
 0x2c9   : > { %v1226_v26 = vmul.f32 0.25, %v1210_v23 }
 0x2cb   : > { %v1241_v28 = vsel %vm1231_vm4, %v1226_v26, -inf }
 0x2cc   : > { %1242 = vmax.xlane.f32.xlu1 %v1241_v28 }
 0x2d0   : > { %v1213_v2 = vpop.f32.mrf.mxu3 }
 0x2d1   : > { %v7617_v35 = vmul.f32 0.25, %v1213_v2 }
 0x2d3   : > { %v1244_v32 = vsel %vm1231_vm4, %v7617_v35, -inf }
 0x2d4   : > { %1245 = vmax.xlane.f32.xlu2 %v1244_v32 }
 0x2d8   : > { %v1215_v33 = vpop.f32.mrf.mxu3 }
 0x2d9   : > { %v7621_v40 = vmul.f32 0.25, %v1215_v33 }
 0x2db   : > { %v1247_v13 = vsel %vm1231_vm4, %v7621_v40, -inf }
 0x2dc   : > { %1248 = vmax.xlane.f32.xlu1 %v1247_v13 }
 0x2e0   : > { %v1218_v1 = vpop.f32.mrf.mxu3 }
 0x2e1   : > { %v7625_v54 = vmul.f32 0.25, %v1218_v1 }
 0x2e3   : > { %v1250_v59 = vsel %vm1231_vm4, %v7625_v54, -inf }
 0x2e4   : > { %1251 = vmax.xlane.f32.xlu1 %v1250_v59 }
 0x2e8   : > { %v1220_v41 = vpop.f32.mrf.mxu3 }
 0x2e9   : > { %v7629_v44 = vmul.f32 0.25, %v1220_v41 }
 0x2eb   : > { %v1253_v4 = vsel %vm1231_vm4, %v7629_v44, -inf }
 0x2ec   : > { %1254 = vmax.xlane.f32.xlu2 %v1253_v4 }
 0x30f   : > { %v1431_v61 = vpop.f32.mrf.mxu2 }
 0x310   : > { %v7633_v18 = vmul.f32 0.25, %v1431_v61 }
 0x312   : > { %v1459_v57 = vsel %vm1231_vm4, %v7633_v18, -inf }
 0x313   : > { %1460 = vmax.xlane.f32.xlu2 %v1459_v57 }
 0x317   : > { %v1433_v9 = vpop.f32.mrf.mxu2 }
 0x318   : > { %v7637_v0 = vmul.f32 0.25, %v1433_v9 }
 0x31a   : > { %v1462_v48 = vsel %vm1231_vm4, %v7637_v0, -inf }
 0x31b   : > { %1463 = vmax.xlane.f32.xlu1 %v1462_v48 }
 0x31f   : > { %v1436_v36 = vpop.f32.mrf.mxu2 }
 0x320   : > { %v7645_v33 = vmul.f32 0.25, %v1436_v36 }
 0x327   : > { %v1234_v17 = vpop.xlane.xlu0 %1233  ;;  %v1438_v15 = vpop.f32.mrf.mxu2 }
 0x328   : > { %v1256_v19 = vsub.f32 %v1223_v11, %v1234_v17  ;;  %v7653_v61 = vmul.f32 0.25, %v1438_v15 }
 0x32a   : > { %v1264_v43 = vmul.f32 1.442695, %v1256_v19  ;;  %v1468_v19 = vsel %vm1231_vm4, %v7653_v61, -inf }
 0x32c   : > { %6677 = vpow2.f32 %v1264_v43 }
 0x32f   : > { %v1237_v21 = vpop.xlane.xlu2 %1236  ;;  %v1441_v2 = vpop.f32.mrf.mxu2 }
 0x330   : > { %v1257_v8 = vsub.f32 %v1224_v55, %v1237_v21  ;;  %v1465_v55 = vsel %vm1231_vm4, %v7645_v33, -inf  ;;  %v7665_v43 = vmul.f32 0.25, %v1441_v2 }
 0x332   : > { %v7641_v23 = vpop.eup %6677  ;;  %v1266_v28 = vmul.f32 1.442695, %v1257_v8 }
 0x333   : > { %v1280_v32 = vsel %vm1231_vm4, %v7641_v23, 0.0 }
 0x334   : > { %6679 = vpow2.f32 %v1266_v28  ;;  %1281 = vadd.xlane.f32.xlu1 %v1280_v32 }
 0x337   : > { %v1240_v13 = vpop.xlane.xlu2 %1239  ;;  %v1443_v4 = vpop.f32.mrf.mxu2 }
 0x338   : > { %v1258_v1 = vsub.f32 %v1225_v38, %v1240_v13  ;;  %v7655_v9 = vmul.f32 0.25, %v1443_v4  ;;  %v1471_v13 = vsel %vm1231_vm4, %v7665_v43, -inf }
 0x33a   : > { %v7647_v59 = vpop.eup %6679  ;;  %v1268_v11 = vmul.f32 1.442695, %v1258_v1  ;;  %v1474_v15 = vsel %vm1231_vm4, %v7655_v9, -inf }
 0x33b   : > { %v1283_v41 = vsel %vm1231_vm4, %v7647_v59, 0.0 }
 0x33c   : > { %6681 = vpow2.f32 %v1268_v11  ;;  %1284 = vadd.xlane.f32.xlu0 %v1283_v41  ;;  %1466 = vmax.xlane.f32.xlu1 %v1465_v55 }
 0x33f   : > { %v1243_v57 = vpop.xlane.xlu1 %1242  ;;  %v1446_v41 = vpop.f32.mrf.mxu2 }
 0x340   : > { %v1259_v48 = vsub.f32 %v1226_v26, %v1243_v57  ;;  %v7679_v4 = vmul.f32 0.25, %v1446_v41 }
 0x342   : > { %v7657_v38 = vpop.eup %6681  ;;  %v1270_v36 = vmul.f32 1.442695, %v1259_v48 }
 0x343   : > { %v1286_v17 = vsel %vm1231_vm4, %v7657_v38, 0.0 }
 0x344   : > { %6683 = vpow2.f32 %v1270_v36  ;;  %1287 = vadd.xlane.f32.xlu2 %v1286_v17  ;;  %1469 = vmax.xlane.f32.xlu0 %v1468_v19  ;;  %v1477_v19 = vsel %vm1231_vm4, %v7679_v4, -inf }
 0x345   : > { %1475 = vmax.xlane.f32.xlu1 %v1474_v15 }
 0x347   : > { %v1246_v21 = vpop.xlane.xlu2 %1245  ;;  %v1448_v15 = vpop.f32.mrf.mxu2 }
 0x348   : > { %v1260_v26 = vsub.f32 %v7617_v35, %v1246_v21  ;;  %v7688_v21 = vmul.f32 0.25, %v1448_v15 }
 0x34a   : > { %v7668_v8 = vpop.eup %6683  ;;  %v1272_v28 = vmul.f32 1.442695, %v1260_v26 }
 0x34b   : > { %v1289_v32 = vsel %vm1231_vm4, %v7668_v8, 0.0 }
 0x34c   : > { %6685 = vpow2.f32 %v1272_v28  ;;  %1290 = vadd.xlane.f32.xlu0 %v1289_v32  ;;  %1472 = vmax.xlane.f32.xlu2 %v1471_v13  ;;  %v1480_v13 = vsel %vm1231_vm4, %v7688_v21, -inf }
 0x34f   : > { %v1249_v1 = vpop.xlane.xlu1 %1248 }
 0x350   : > { %v1261_v11 = vsub.f32 %v7621_v40, %v1249_v1 }
 0x352   : > { %v7675_v2 = vpop.eup %6685  ;;  %v1274_v55 = vmul.f32 1.442695, %v1261_v11 }
 0x353   : > { %v1292_v35 = vsel %vm1231_vm4, %v7675_v2, 0.0 }
 0x354   : > { %6687 = vpow2.f32 %v1274_v55  ;;  %1293 = vadd.xlane.f32.xlu1 %v1292_v35 }
 0x357   : > { %v1252_v57 = vpop.xlane.xlu1 %1251 }
 0x358   : > { %v1262_v48 = vsub.f32 %v7625_v54, %v1252_v57 }
 0x35a   : > { %v7682_v36 = vpop.eup %6687  ;;  %v1276_v17 = vmul.f32 1.442695, %v1262_v48 }
 0x35b   : > { %v1295_v40 = vsel %vm1231_vm4, %v7682_v36, 0.0 }
 0x35c   : > { %6689 = vpow2.f32 %v1276_v17  ;;  %1296 = vadd.xlane.f32.xlu2 %v1295_v40  ;;  %1478 = vmax.xlane.f32.xlu1 %v1477_v19 }
 0x35f   : > { %v1255_v26 = vpop.xlane.xlu2 %1254 }
 0x360   : > { %v1263_v28 = vsub.f32 %v7629_v44, %v1255_v26 }
 0x362   : > { %v7691_v32 = vpop.eup %6689  ;;  %v1278_v54 = vmul.f32 1.442695, %v1263_v28 }
 0x363   : > { %v1298_v1 = vsel %vm1231_vm4, %v7691_v32, 0.0 }
 0x364   : > { %6691 = vpow2.f32 %v1278_v54  ;;  %1481 = vmax.xlane.f32.xlu2 %v1480_v13  ;;  %1299 = vadd.xlane.f32.xlu1 %v1298_v1 }
 0x36a   : > { %v7697_v11 = vpop.eup %6691 }
 0x36b   : > { %v1301_v41 = vsel %vm1231_vm4, %v7697_v11, 0.0 }
 0x36c   : > { %1302 = vadd.xlane.f32.xlu0 %v1301_v41 }
 0x386   : > { %v1461_v55 = vpop.xlane.xlu2 %1460 }
 0x387   : > { %v1483_v44 = vsub.f32 %v7633_v18, %v1461_v55 }
 0x389   : > { %v1491_v35 = vmul.f32 1.442695, %v1483_v44 }
 0x38b   : > { %6693 = vpow2.f32 %v1491_v35 }
 0x38e   : > { %v1464_v57 = vpop.xlane.xlu1 %1463 }
 0x38f   : > { %v1484_v48 = vsub.f32 %v7637_v0, %v1464_v57 }
 0x391   : > { %v7703_v17 = vpop.eup %6693  ;;  %v1493_v40 = vmul.f32 1.442695, %v1484_v48 }
 0x392   : > { %v1507_v19 = vsel %vm1231_vm4, %v7703_v17, 0.0 }
 0x393   : > { %6695 = vpow2.f32 %v1493_v40  ;;  %1508 = vadd.xlane.f32.xlu0 %v1507_v19 }
 0x399   : > { %v7707_v15 = vpop.eup %6695 }
 0x39a   : > { %v1510_v26 = vsel %vm1231_vm4, %v7707_v15, 0.0 }
 0x39b   : > { %1511 = vadd.xlane.f32.xlu2 %v1510_v26 }
 0x3a7   : > { %v1282_v18 = vpop.xlane.xlu1 %1281 }
 0x3a8   : > { %6697 = vrcp.f32 %v1282_v18 }
 0x3ae   : > { %v6698_v13 = vpop.eup %6697 }
 0x3af   : > { %v1467_v28 = vpop.xlane.xlu1 %1466  ;;  %v1285_v54 = vpop.xlane.xlu0 %1284  ;;  %v1312_v41 = vmul.f32 %v6698_v13, %v7641_v23 }
 0x3b0   : > { %v1485_v0 = vsub.f32 %v7645_v33, %v1467_v28  ;;  %6699 = vrcp.f32 %v1285_v54 }
 0x3b1   : > { %v1320_v48 = vpack.c.bf16 %v1312_v41, %v1312_v41 }
 0x3b2   : > { %v1495_v1 = vmul.f32 1.442695, %v1485_v0 }
 0x3b3   : > { %v1337_v54 = vunpack.c.l.b16 %v1320_v48 }
 0x3b4   : > { %6701 = vpow2.f32 %v1495_v1 }
 0x3b6   : > { %v6700_v55 = vpop.eup %6699 }
 0x3b7   : > { %v1288_v44 = vpop.xlane.xlu2 %1287  ;;  %v1470_v35 = vpop.xlane.xlu0 %1469  ;;  %v1313_v57 = vmul.f32 %v6700_v55, %v7647_v59 }
 0x3b8   : > { %v1476_v40 = vpop.xlane.xlu1 %1475  ;;  %v1486_v19 = vsub.f32 %v7653_v61, %v1470_v35  ;;  %6703 = vrcp.f32 %v1288_v44 }
 0x3b9   : > { %v1488_v26 = vsub.f32 %v7655_v9, %v1476_v40  ;;  %v1321_v18 = vpack.c.bf16 %v1313_v57, %v1313_v57 }
 0x3ba   : > { %v7716_v7 = vpop.eup %6701  ;;  %v1497_v33 = vmul.f32 1.442695, %v1486_v19 }
 0x3bb   : > { %v1501_v28 = vmul.f32 1.442695, %v1488_v26  ;;  %v1513_v23 = vsel %vm1231_vm4, %v7716_v7, 0.0  ;;  %v1338_v13 = vunpack.c.l.b16 %v1321_v18 }
 0x3bc   : > { %6705 = vpow2.f32 %v1497_v33  ;;  %1514 = vadd.xlane.f32.xlu2 %v1513_v23 }
 0x3bd   : > { %6707 = vpow2.f32 %v1501_v28  ;;  %v1345_v59 = vpack.c.b16 %v1338_v13, %v1337_v54 }
 0x3be   : > { %v6704_v9 = vpop.eup %6703 }
 0x3bf   : > { %v1473_v0 = vpop.xlane.xlu2 %1472  ;;  %6410 = vmatmul.msk.bf16.vlgmr.msra.gmra.mxu1 %vm1231_vm4, %v1345_v59  ;;  %v1291_v61 = vpop.xlane.xlu0 %1290  ;;  %v1314_v57 = vmul.f32 %v6704_v9, %v7657_v38 }
 0x3c0   : > { %v1487_v1 = vsub.f32 %v7665_v43, %v1473_v0  ;;  %6709 = vrcp.f32 %v1291_v61 }
 0x3c1   : > { %v1322_v26 = vpack.c.bf16 %v1314_v57, %v1314_v57 }
 0x3c2   : > { %v7722_v41 = vpop.eup %6705  ;;  %v1499_v55 = vmul.f32 1.442695, %v1487_v1 }
 0x3c3   : > { %v7724_v44 = vpop.eup %6707  ;;  %v1516_v35 = vsel %vm1231_vm4, %v7722_v41, 0.0  ;;  %v1339_v23 = vunpack.c.l.b16 %v1322_v26 }
 0x3c4   : > { %6711 = vpow2.f32 %v1499_v55  ;;  %v1522_v48 = vsel %vm1231_vm4, %v7724_v44, 0.0  ;;  %1517 = vadd.xlane.f32.xlu1 %v1516_v35 }
 0x3c5   : > { %1523 = vadd.xlane.f32.xlu2 %v1522_v48 }
 0x3c6   : > { %v6710_v40 = vpop.eup %6709 }
 0x3c7   : > { %v1294_v19 = vpop.xlane.xlu1 %1293  ;;  %v1315_v43 = vmul.f32 %v6710_v40, %v7668_v8 }
 0x3c8   : > { %6713 = vrcp.f32 %v1294_v19 }
 0x3c9   : > { %v1323_v18 = vpack.c.bf16 %v1315_v43, %v1315_v43 }
 0x3ca   : > { %v7732_v33 = vpop.eup %6711 }
 0x3cb   : > { %v1519_v28 = vsel %vm1231_vm4, %v7732_v33, 0.0  ;;  %v1340_v38 = vunpack.c.l.b16 %v1323_v18 }
 0x3cc   : > { %1520 = vadd.xlane.f32.xlu1 %v1519_v28 }
 0x3cd   : > { %v1346_v54 = vpack.c.b16 %v1340_v38, %v1339_v23 }
 0x3ce   : > { %v6714_v0 = vpop.eup %6713 }
 0x3cf   : > { %v1297_v13 = vpop.xlane.xlu2 %1296  ;;  %v1479_v59 = vpop.xlane.xlu1 %1478  ;;  %6411 = vmatmul.msk.bf16.gmra.mxu1 %vm1231_vm4, %v1346_v54  ;;  %v1316_v9 = vmul.f32 %v6714_v0, %v7675_v2 }
 0x3d0   : > { %6715 = vrcp.f32 %v1297_v13  ;;  %v1489_v8 = vsub.f32 %v7679_v4, %v1479_v59 }
 0x3d1   : > { %v1324_v48 = vpack.c.bf16 %v1316_v9, %v1316_v9 }
 0x3d2   : > { %v1503_v61 = vmul.f32 1.442695, %v1489_v8 }
 0x3d3   : > { %v1341_v18 = vunpack.c.l.b16 %v1324_v48 }
 0x3d4   : > { %6717 = vpow2.f32 %v1503_v61 }
 0x3d6   : > { %v6716_v1 = vpop.eup %6715 }
 0x3d7   : > { %v1482_v55 = vpop.xlane.xlu2 %1481  ;;  %v1300_v35 = vpop.xlane.xlu1 %1299  ;;  %v1317_v57 = vmul.f32 %v6716_v1, %v7682_v36 }
 0x3d8   : > { %v1490_v40 = vsub.f32 %v7688_v21, %v1482_v55  ;;  %6719 = vrcp.f32 %v1300_v35 }
 0x3d9   : > { %v1325_v19 = vpack.c.bf16 %v1317_v57, %v1317_v57 }
 0x3da   : > { %v7741_v43 = vpop.eup %6717  ;;  %v1505_v26 = vmul.f32 1.442695, %v1490_v40 }
 0x3db   : > { %v1525_v4 = vsel %vm1231_vm4, %v7741_v43, 0.0  ;;  %v1342_v28 = vunpack.c.l.b16 %v1325_v19 }
 0x3dc   : > { %6721 = vpow2.f32 %v1505_v26  ;;  %1526 = vadd.xlane.f32.xlu1 %v1525_v4 }
 0x3dd   : > { %v1347_v2 = vpack.c.b16 %v1342_v28, %v1341_v18  ;;  %v6574_v28 = vld [vmem:[%s11620_s9] sm:$0xff] }
 0x3de   : > { %v6720_v36 = vpop.eup %6719  ;;  %1709 = vmatpush.bf16.msrb.mxu1 %v6574_v28 }
 0x3df   : > { %6412 = vmatmul.msk.bf16.gmra.mxu1 %vm1231_vm4, %v1347_v2  ;;  %v1303_v23 = vpop.xlane.xlu0 %1302  ;;  %v1318_v54 = vmul.f32 %v6720_v36, %v7691_v32 }
 0x3e0   : > { %6723 = vrcp.f32 %v1303_v23 }
 0x3e1   : > { %v1326_v0 = vpack.c.bf16 %v1318_v54, %v1318_v54 }
 0x3e2   : > { %v7746_v38 = vpop.eup %6721 }
 0x3e3   : > { %v1528_v21 = vsel %vm1231_vm4, %v7746_v38, 0.0  ;;  %v1343_v61 = vunpack.c.l.b16 %v1326_v0 }
 0x3e4   : > { %1529 = vadd.xlane.f32.xlu2 %v1528_v21 }
 0x3e6   : > { %v6724_v13 = vpop.eup %6723 }
 0x3e7   : > { %v1319_v59 = vmul.f32 %v6724_v13, %v7697_v11 }
 0x3e9   : > { %v1327_v8 = vpack.c.bf16 %v1319_v59, %v1319_v59 }
 0x3eb   : > { %v1344_v9 = vunpack.c.l.b16 %v1327_v8 }
 0x3ed   : > { %v1348_v1 = vpack.c.b16 %v1344_v9, %v1343_v61 }
 0x3ef   : > { %6413 = vmatmul.msk.bf16.gmra.mxu1 %vm1231_vm4, %v1348_v1 }
 0x406   : > { %v1509_v55 = vpop.xlane.xlu0 %1508 }
 0x407   : > { %6725 = vrcp.f32 %v1509_v55 }
 0x40d   : > { %v6726_v57 = vpop.eup %6725 }
 0x40e   : > { %v1512_v35 = vpop.xlane.xlu2 %1511  ;;  %v1539_v48 = vmul.f32 %v6726_v57, %v7703_v17 }
 0x40f   : > { %6727 = vrcp.f32 %v1512_v35 }
 0x410   : > { %v1547_v32 = vpack.c.bf16 %v1539_v48, %v1539_v48 }
 0x412   : > { %v1563_v11 = vunpack.c.l.b16 %v1547_v32  ;;  %v6575_v32 = vld [vmem:[%s11620_s9 + $0x8] sm:$0xff] }
 0x413   : > { %1662 = vmatpush.bf16.msrb.mxu3 %v6575_v32 }
 0x415   : > { %v6728_v40 = vpop.eup %6727 }
 0x416   : > { %v1540_v19 = vmul.f32 %v6728_v40, %v7707_v15 }
 0x418   : > { %v1548_v26 = vpack.c.bf16 %v1540_v19, %v1540_v19 }
 0x41a   : > { %v1564_v4 = vunpack.c.l.b16 %v1548_v26 }
 0x41c   : > { %v1571_v18 = vpack.c.b16 %v1564_v4, %v1563_v11 }
 0x41e   : > { %6418 = vmatmul.msk.bf16.vlgmr.msrb.gmra.mxu0 %vm1231_vm4, %v1571_v18 }
 0x42f   : > { %v1515_v2 = vpop.xlane.xlu2 %1514 }
 0x430   : > { %6729 = vrcp.f32 %v1515_v2 }
 0x436   : > { %v6730_v36 = vpop.eup %6729 }
 0x437   : > { %v1518_v23 = vpop.xlane.xlu1 %1517  ;;  %v1541_v17 = vmul.f32 %v6730_v36, %v7716_v7 }
 0x438   : > { %6731 = vrcp.f32 %v1518_v23  ;;  %v1524_v54 = vpop.xlane.xlu2 %1523 }
 0x439   : > { %v1549_v0 = vpack.c.bf16 %v1541_v17, %v1541_v17 }
 0x43b   : > { %v1565_v61 = vunpack.c.l.b16 %v1549_v0 }
 0x43c   : > { %v1374_v21 = vpop.f32.mrf.mxu1 }
 0x43e   : > { %v6732_v15 = vpop.eup %6731 }
 0x43f   : > { %v1521_v13 = vpop.xlane.xlu1 %1520  ;;  %v1542_v59 = vmul.f32 %v6732_v15, %v7722_v41 }
 0x440   : > { %6733 = vrcp.f32 %v1521_v13 }
 0x441   : > { %v1550_v8 = vpack.c.bf16 %v1542_v59, %v1542_v59  ;;  %6735 = vrcp.f32 %v1524_v54 }
 0x443   : > { %v1566_v9 = vunpack.c.l.b16 %v1550_v8 }
 0x444   : > { %v1376_v1 = vpop.f32.mrf.mxu1 }
 0x445   : > { %v1629_v55 = vpack.c.bf16 %v1376_v1, %v1374_v21  ;;  %v1572_v35 = vpack.c.b16 %v1566_v9, %v1565_v61 }
 0x446   : > { %v6734_v57 = vpop.eup %6733 }
 0x447   : > { %6419 = vmatmul.msk.bf16.gmra.mxu0 %vm1231_vm4, %v1572_v35  ;;  %6434 = vmatmul.msk.bf16.vlgmr.msrb.gmra.mxu1 %vm1178_vm2, %v1629_v55  ;;  %v6736_v7 = vpop.eup %6735  ;;  %v1543_v48 = vmul.f32 %v6734_v57, %v7732_v33 }
 0x448   : > { %v1544_v40 = vmul.f32 %v6736_v7, %v7724_v44 }
 0x449   : > { %v1551_v19 = vpack.c.bf16 %v1543_v48, %v1543_v48 }
 0x44a   : > { %v1552_v11 = vpack.c.bf16 %v1544_v40, %v1544_v40 }
 0x44b   : > { %v1567_v4 = vunpack.c.l.b16 %v1551_v19 }
 0x44c   : > { %v1379_v41 = vpop.f32.mrf.mxu1  ;;  %v1568_v18 = vunpack.c.l.b16 %v1552_v11 }
 0x44e   : > { %v1573_v23 = vpack.c.b16 %v1568_v18, %v1567_v4 }
 0x44f   : > { %v1527_v26 = vpop.xlane.xlu1 %1526 }
 0x450   : > { %6737 = vrcp.f32 %v1527_v26 }
 0x454   : > { %v1381_v28 = vpop.f32.mrf.mxu1 }
 0x455   : > { %v1630_v2 = vpack.c.bf16 %v1381_v28, %v1379_v41  ;;  %v6648_v28 = vld [vmem:[%s11621_s10] ss:$0 sm:$0xff] }
 0x456   : > { %v6738_v44 = vpop.eup %6737 }
 0x457   : > { %v1530_v36 = vpop.xlane.xlu2 %1529  ;;  %6420 = vmatmul.msk.bf16.gmra.mxu0 %vm1231_vm4, %v1573_v23  ;;  %6435 = vmatmul.msk.bf16.gmra.mxu1 %vm1178_vm2, %v1630_v2  ;;  %v1545_v33 = vmul.f32 %v6738_v44, %v7741_v43  ;;  %v6885_v44 = vld [vmem:[%s7209_s30] sm:$0xff] }
 0x458   : > { %6739 = vrcp.f32 %v1530_v36 }
 0x459   : > { %v1553_v54 = vpack.c.bf16 %v1545_v33, %v1545_v33 }
 0x45b   : > { %v1569_v59 = vunpack.c.l.b16 %v1553_v54 }
 0x45c   : > { %v1384_v17 = vpop.f32.mrf.mxu1 }
 0x45e   : > { %v6740_v21 = vpop.eup %6739 }
 0x45f   : > { %v1546_v15 = vmul.f32 %v6740_v21, %v7746_v38 }
 0x461   : > { %v1554_v13 = vpack.c.bf16 %v1546_v15, %v1546_v15 }
 0x463   : > { %v1570_v0 = vunpack.c.l.b16 %v1554_v13 }
 0x464   : > { %v1386_v8 = vpop.f32.mrf.mxu1 }
 0x465   : > { %v1631_v61 = vpack.c.bf16 %v1386_v8, %v1384_v17  ;;  %v1574_v9 = vpack.c.b16 %v1570_v0, %v1569_v59  ;;  %v6886_v59 = vld [vmem:[%s7209_s30 + $0x8] sm:$0xff] }
 0x467   : > { %6421 = vmatmul.msk.bf16.gmra.mxu0 %vm1231_vm4, %v1574_v9  ;;  %6436 = vmatmul.msk.bf16.gmra.mxu1 %vm1178_vm2, %v1631_v61 }
 0x46c   : > { %v1389_v1 = vpop.f32.mrf.mxu1 }
 0x474   : > { %v1391_v55 = vpop.f32.mrf.mxu1 }
 0x475   : > { %v1632_v35 = vpack.c.bf16 %v1391_v55, %v1389_v1 }
 0x477   : > { %6437 = vmatmul.msk.bf16.gmra.mxu1 %vm1178_vm2, %v1632_v35 }
 0x49b   : > { %v1604_v43 = vpop.f32.mrf.mxu0 }
 0x4a3   : > { %v1606_v57 = vpop.f32.mrf.mxu0 }
 0x4a4   : > { %v1633_v7 = vpack.c.bf16 %v1606_v57, %v1604_v43  ;;  %v6887_v43 = vld [vmem:[%s7209_s30 + $0x10] sm:$0xff] }
 0x4a6   : > { %6426 = vmatmul.msk.bf16.vlgmr.msrb.gmra.mxu3 %vm1178_vm2, %v1633_v7 }
 0x4c4   : > { %v1609_v38 = vpop.f32.mrf.mxu0  ;;  %v1711_v18 = vpop.f32.mrf.mxu1 }
 0x4cc   : > { %v1611_v48 = vpop.f32.mrf.mxu0  ;;  %v1713_v21 = vpop.f32.mrf.mxu1 }
 0x4cd   : > { %v1634_v40 = vpack.c.bf16 %v1611_v48, %v1609_v38 }
 0x4cf   : > { %6427 = vmatmul.msk.bf16.gmra.mxu3 %vm1178_vm2, %v1634_v40 }
 0x4d4   : > { %v1614_v41 = vpop.f32.mrf.mxu0  ;;  %v1716_v61 = vpop.f32.mrf.mxu1 }
 0x4dc   : > { %v1616_v32 = vpop.f32.mrf.mxu0  ;;  %v1718_v9 = vpop.f32.mrf.mxu1 }
 0x4dd   : > { %v1635_v19 = vpack.c.bf16 %v1616_v32, %v1614_v41  ;;  %v6888_v32 = vld [vmem:[%s7209_s30 + $0x18] sm:$0xff] }
 0x4df   : > { %6428 = vmatmul.msk.bf16.gmra.mxu3 %vm1178_vm2, %v1635_v19 }
 0x4e4   : > { %v1619_v26 = vpop.f32.mrf.mxu0  ;;  %v1721_v40 = vpop.f32.mrf.mxu1 }
 0x4ec   : > { %v1621_v11 = vpop.f32.mrf.mxu0 }
 0x4ed   : > { %v1636_v4 = vpack.c.bf16 %v1621_v11, %v1619_v26 }
 0x4ef   : > { %6429 = vmatmul.msk.bf16.gmra.mxu3 %vm1178_vm2, %v1636_v4 }
 0x529   : > { %v1664_v2 = vpop.f32.mrf.mxu3 }
 0x52a   : > { %v1712_v23 = vadd.f32 %v1711_v18, %v1664_v2  ;;  %v1723_v2 = vpop.f32.mrf.mxu1 }
 0x52c   : > { %v1734_v36 = vadd.f32 %v6648_v28, %v1712_v23  ;;  %v6889_v23 = vld [vmem:[%s7209_s30 + $0x20] sm:$0xff] }
 0x52e   : > { %v7783_v33 = vadd.f32 %v6885_v44, %v1734_v36 }
 0x530   : > { %v1768_v17 = vsel %vm781_vm0, %v7783_v33, 0.0 }
 0x531   : > { %1769 = vadd.xlane.f32.xlu2 %v1768_v17  ;;  %v1666_v15 = vpop.f32.mrf.mxu3 }
 0x532   : > { %v1714_v54 = vadd.f32 %v1713_v21, %v1666_v15 }
 0x534   : > { %v1735_v13 = vadd.f32 %v6648_v28, %v1714_v54  ;;  %v6890_v54 = vld [vmem:[%s7209_s30 + $0x28] sm:$0xff] }
 0x536   : > { %v7788_v0 = vadd.f32 %v6886_v59, %v1735_v13  ;;  %v1726_v59 = vpop.f32.mrf.mxu1 }
 0x538   : > { %v1771_v8 = vsel %vm781_vm0, %v7788_v0, 0.0 }
 0x539   : > { %1772 = vadd.xlane.f32.xlu1 %v1771_v8 }
 0x552   : > { %v1669_v1 = vpop.f32.mrf.mxu3 }
 0x553   : > { %v1717_v55 = vadd.f32 %v1716_v61, %v1669_v1 }
 0x555   : > { %v1736_v35 = vadd.f32 %v6648_v28, %v1717_v55  ;;  %v6891_v55 = vld [vmem:[%s7209_s30 + $0x30] sm:$0xff] }
 0x557   : > { %v7793_v57 = vadd.f32 %v6887_v43, %v1736_v35 }
 0x559   : > { %v1774_v7 = vsel %vm781_vm0, %v7793_v57, 0.0 }
 0x55a   : > { %1775 = vadd.xlane.f32.xlu0 %v1774_v7  ;;  %v1671_v38 = vpop.f32.mrf.mxu3  ;;  %v1728_v7 = vpop.f32.mrf.mxu1 }
 0x55b   : > { %v1719_v48 = vadd.f32 %v1718_v9, %v1671_v38 }
 0x55d   : > { %v1737_v41 = vadd.f32 %v6648_v28, %v1719_v48 }
 0x55f   : > { %v7798_v19 = vadd.f32 %v6888_v32, %v1737_v41  ;;  %v6892_v41 = vld [vmem:[%s7209_s30 + $0x38] sm:$0xff]  ;;  %s7025_s30 = smov 64  }
 0x561   : > { %v1777_v26 = vsel %vm781_vm0, %v7798_v19, 0.0 }
 0x562   : > { %1778 = vadd.xlane.f32.xlu2 %v1777_v26  ;;  %v1674_v11 = vpop.f32.mrf.mxu3 }
 0x563   : > { %v1722_v4 = vadd.f32 %v1721_v40, %v1674_v11 }
 0x565   : > { %v1738_v18 = vadd.f32 %v6648_v28, %v1722_v4 }
 0x567   : > { %v7803_v36 = vadd.f32 %v6889_v23, %v1738_v18 }
 0x569   : > { %v1780_v44 = vsel %vm781_vm0, %v7803_v36, 0.0 }
 0x56a   : > { %1781 = vadd.xlane.f32.xlu2 %v1780_v44  ;;  %v1676_v17 = vpop.f32.mrf.mxu3 }
 0x56b   : > { %v1724_v21 = vadd.f32 %v1723_v2, %v1676_v17 }
 0x56d   : > { %v1739_v15 = vadd.f32 %v6648_v28, %v1724_v21 }
 0x56f   : > { %v7808_v13 = vadd.f32 %v6890_v54, %v1739_v15 }
 0x571   : > { %v1783_v8 = vsel %vm781_vm0, %v7808_v13, 0.0 }
 0x572   : > { %1784 = vadd.xlane.f32.xlu1 %v1783_v8  ;;  %v1679_v61 = vpop.f32.mrf.mxu3 }
 0x573   : > { %v1727_v9 = vadd.f32 %v1726_v59, %v1679_v61 }
 0x575   : > { %v1740_v1 = vadd.f32 %v6648_v28, %v1727_v9 }
 0x577   : > { %v7813_v35 = vadd.f32 %v6891_v55, %v1740_v1 }
 0x579   : > { %v1786_v43 = vsel %vm781_vm0, %v7813_v35, 0.0 }
 0x57a   : > { %1787 = vadd.xlane.f32.xlu1 %v1786_v43  ;;  %v1681_v38 = vpop.f32.mrf.mxu3 }
 0x57b   : > { %v1729_v48 = vadd.f32 %v1728_v7, %v1681_v38 }
 0x57d   : > { %v1741_v40 = vadd.f32 %v6648_v28, %v1729_v48 }
 0x57f   : > { %v7818_v32 = vadd.f32 %v6892_v41, %v1741_v40  ;;  %v6577_v40 = vld [vmem:[%s11622_s11 + $0x8] sm:$0xff] }
 0x580   : > { %1981 = vmatpush.bf16.msrb.mxu2 %v6577_v40  ;;  %v6576_v40 = vld [vmem:[%s11622_s11] sm:$0xff] }
 0x581   : > { %v1789_v26 = vsel %vm781_vm0, %v7818_v32, 0.0 }
 0x582   : > { %1790 = vadd.xlane.f32.xlu0 %v1789_v26 }
 0x584   : > { %1982 = vmatpush.bf16.msrb.mxu2 %v6576_v40 }
 0x5a4   : > { %v1770_v11 = vpop.xlane.xlu2 %1769 }
 0x5a5   : > { %v1792_v4 = vmul.f32 %v1770_v11, %v7362_v51 }
 0x5a7   : > { %v7824_v18 = vsub.f32 %v7783_v33, %v1792_v4 }
 0x5a9   : > { %v1808_v2 = vmul.f32 %v7824_v18, %v7824_v18 }
 0x5ab   : > { %v1816_v23 = vsel %vm781_vm0, %v1808_v2, 0.0 }
 0x5ac   : > { %v1773_v44 = vpop.xlane.xlu1 %1772  ;;  %1817 = vadd.xlane.f32.xlu1 %v1816_v23 }
 0x5ad   : > { %v1793_v28 = vmul.f32 %v1773_v44, %v7362_v51 }
 0x5af   : > { %v7831_v17 = vsub.f32 %v7788_v0, %v1793_v28 }
 0x5b1   : > { %v1809_v21 = vmul.f32 %v7831_v17, %v7831_v17 }
 0x5b3   : > { %v1819_v15 = vsel %vm781_vm0, %v1809_v21, 0.0 }
 0x5b4   : > { %1820 = vadd.xlane.f32.xlu0 %v1819_v15 }
 0x5cd   : > { %v1776_v54 = vpop.xlane.xlu0 %1775 }
 0x5ce   : > { %v1794_v59 = vmul.f32 %v1776_v54, %v7362_v51 }
 0x5d0   : > { %v7838_v8 = vsub.f32 %v7793_v57, %v1794_v59 }
 0x5d2   : > { %v1810_v61 = vmul.f32 %v7838_v8, %v7838_v8 }
 0x5d4   : > { %v1822_v9 = vsel %vm781_vm0, %v1810_v61, 0.0 }
 0x5d5   : > { %v1779_v1 = vpop.xlane.xlu2 %1778  ;;  %1823 = vadd.xlane.f32.xlu0 %v1822_v9 }
 0x5d6   : > { %v1795_v55 = vmul.f32 %v1779_v1, %v7362_v51 }
 0x5d8   : > { %v7845_v43 = vsub.f32 %v7798_v19, %v1795_v55 }
 0x5da   : > { %v1811_v7 = vmul.f32 %v7845_v43, %v7845_v43 }
 0x5dc   : > { %v1825_v38 = vsel %vm781_vm0, %v1811_v7, 0.0 }
 0x5dd   : > { %1826 = vadd.xlane.f32.xlu2 %v1825_v38  ;;  %v1782_v48 = vpop.xlane.xlu2 %1781 }
 0x5de   : > { %v1796_v41 = vmul.f32 %v1782_v48, %v7362_v51 }
 0x5e0   : > { %v7855_v26 = vsub.f32 %v7803_v36, %v1796_v41 }
 0x5e2   : > { %v1812_v11 = vmul.f32 %v7855_v26, %v7855_v26 }
 0x5e4   : > { %v1828_v4 = vsel %vm781_vm0, %v1812_v11, 0.0 }
 0x5e5   : > { %1829 = vadd.xlane.f32.xlu2 %v1828_v4  ;;  %v1785_v2 = vpop.xlane.xlu1 %1784 }
 0x5e6   : > { %v1797_v23 = vmul.f32 %v1785_v2, %v7362_v51 }
 0x5e8   : > { %v7862_v44 = vsub.f32 %v7808_v13, %v1797_v23 }
 0x5ea   : > { %v1813_v28 = vmul.f32 %v7862_v44, %v7862_v44 }
 0x5ec   : > { %v1831_v21 = vsel %vm781_vm0, %v1813_v28, 0.0 }
 0x5ed   : > { %1832 = vadd.xlane.f32.xlu1 %v1831_v21  ;;  %v1788_v15 = vpop.xlane.xlu1 %1787 }
 0x5ee   : > { %v1798_v54 = vmul.f32 %v1788_v15, %v7362_v51 }
 0x5f0   : > { %v7869_v59 = vsub.f32 %v7813_v35, %v1798_v54 }
 0x5f2   : > { %v1814_v61 = vmul.f32 %v7869_v59, %v7869_v59 }
 0x5f4   : > { %v1834_v9 = vsel %vm781_vm0, %v1814_v61, 0.0 }
 0x5f5   : > { %1835 = vadd.xlane.f32.xlu0 %v1834_v9  ;;  %v1791_v1 = vpop.xlane.xlu0 %1790 }
 0x5f6   : > { %v1799_v55 = vmul.f32 %v1791_v1, %v7362_v51 }
 0x5f8   : > { %v7876_v7 = vsub.f32 %v7818_v32, %v1799_v55 }
 0x5fa   : > { %v1815_v38 = vmul.f32 %v7876_v7, %v7876_v7 }
 0x5fc   : > { %v1837_v48 = vsel %vm781_vm0, %v1815_v38, 0.0 }
 0x5fd   : > { %1838 = vadd.xlane.f32.xlu2 %v1837_v48 }
 0x61f   : > { %v1818_v41 = vpop.xlane.xlu1 %1817 }
 0x620   : > { %v1840_v11 = vmul.f32 %v1818_v41, %v7362_v51 }
 0x622   : > { %v1848_v4 = vadd.f32 1e-05, %v1840_v11 }
 0x624   : > { %6741 = vrsqrt.f32 %v1848_v4  ;;  %vm1862_vm6 = vweird.f32 %v1848_v4 }
 0x627   : > { %v1821_v2 = vpop.xlane.xlu0 %1820 }
 0x628   : > { %v1841_v23 = vmul.f32 %v1821_v2, %v7362_v51 }
 0x62a   : > { %v6742_v28 = vpop.eup %6741  ;;  %v1849_v21 = vadd.f32 1e-05, %v1841_v23 }
 0x62b   : > { %v1857_v15 = vmul.f32 %v6742_v28, %v1848_v4  ;;  %vm1863_vm5 = vweird.f32 %v6742_v28 }
 0x62c   : > { %6743 = vrsqrt.f32 %v1849_v21  ;;  %vm1864_vm8 = vmor %vm1862_vm6, %vm1863_vm5  ;;  %vm1872_vm9 = vweird.f32 %v1849_v21 }
 0x62d   : > { %v1858_v54 = vmul.f32 %v6742_v28, %v1857_v15 }
 0x62f   : > { %v1859_v61 = vmul.f32 0.5, %v1858_v54 }
 0x631   : > { %v1860_v1 = vsub.f32 1.5, %v1859_v61 }
 0x632   : > { %v6744_v9 = vpop.eup %6743 }
 0x633   : > { %v1867_v55 = vmul.f32 %v6744_v9, %v1849_v21  ;;  %v1861_v48 = vmul.f32 %v6742_v28, %v1860_v1  ;;  %vm1873_vm7 = vweird.f32 %v6744_v9 }
 0x634   : > { %vm1874_vm10 = vmor %vm1872_vm9, %vm1873_vm7 }
 0x635   : > { %v1868_v38 = vmul.f32 %v6744_v9, %v1867_v55  ;;  %v1865_v41 = vsel %vm1864_vm8, %v6742_v28, %v1861_v48 }
 0x636   : > { %v1936_v23 = vmul.f32 %v1865_v41, %v7824_v18 }
 0x637   : > { %v1869_v49 = vmul.f32 0.5, %v1868_v38 }
 0x639   : > { %v1870_v40 = vsub.f32 1.5, %v1869_v49 }
 0x63b   : > { %v1871_v11 = vmul.f32 %v6744_v9, %v1870_v40 }
 0x63d   : > { %v1875_v2 = vsel %vm1874_vm10, %v6744_v9, %v1871_v11 }
 0x63e   : > { %v1937_v15 = vmul.f32 %v1875_v2, %v7831_v17 }
 0x640   : > { %v1944_v54 = vpack.c.bf16 %v1937_v15, %v1936_v23 }
 0x642   : > { %6446 = vmatmul.msk.bf16.vlgmr.msrb.gmra.mxu2 %vm781_vm0, %v1944_v54 }
 0x648   : > { %v1824_v61 = vpop.xlane.xlu0 %1823 }
 0x649   : > { %v1842_v1 = vmul.f32 %v1824_v61, %v7362_v51 }
 0x64b   : > { %v1850_v55 = vadd.f32 1e-05, %v1842_v1 }
 0x64d   : > { %6745 = vrsqrt.f32 %v1850_v55  ;;  %vm1882_vm12 = vweird.f32 %v1850_v55 }
 0x650   : > { %v1827_v49 = vpop.xlane.xlu2 %1826 }
 0x651   : > { %v1843_v4 = vmul.f32 %v1827_v49, %v7362_v51 }
 0x653   : > { %v6746_v28 = vpop.eup %6745  ;;  %v1851_v38 = vadd.f32 1e-05, %v1843_v4 }
 0x654   : > { %v1877_v21 = vmul.f32 %v6746_v28, %v1850_v55  ;;  %vm1883_vm11 = vweird.f32 %v6746_v28 }
 0x655   : > { %6747 = vrsqrt.f32 %v1851_v38  ;;  %vm1884_vm14 = vmor %vm1882_vm12, %vm1883_vm11  ;;  %vm1892_vm15 = vweird.f32 %v1851_v38 }
 0x656   : > { %v1878_v9 = vmul.f32 %v6746_v28, %v1877_v21 }
 0x658   : > { %v1879_v48 = vmul.f32 0.5, %v1878_v9  ;;  %v1830_v18 = vpop.xlane.xlu2 %1829 }
 0x659   : > { %v1844_v17 = vmul.f32 %v1830_v18, %v7362_v51 }
 0x65a   : > { %v1880_v11 = vsub.f32 1.5, %v1879_v48 }
 0x65b   : > { %v6748_v40 = vpop.eup %6747  ;;  %v1852_v41 = vadd.f32 1e-05, %v1844_v17 }
 0x65c   : > { %v1887_v2 = vmul.f32 %v6748_v40, %v1851_v38  ;;  %v1881_v61 = vmul.f32 %v6746_v28, %v1880_v11  ;;  %vm1893_vm13 = vweird.f32 %v6748_v40 }
 0x65d   : > { %6749 = vrsqrt.f32 %v1852_v41  ;;  %vm1894_vm1 = vmor %vm1892_vm15, %vm1893_vm13  ;;  %vm1902_vm4 = vweird.f32 %v1852_v41  ;;  %vm2116_vm15 = vcmask 785408  }
 0x65e   : > { %v1888_v23 = vmul.f32 %v6748_v40, %v1887_v2  ;;  %v1885_v18 = vsel %vm1884_vm14, %v6746_v28, %v1881_v61  ;;  %v6583_v28 = vld [vmem:[%s11500_s13 + $0x28] sm:$0xff] }
 0x65f   : > { %2131 = vmatpush.bf16.msra.mxu0 %v6583_v28 }
 0x660   : > { %v1889_v15 = vmul.f32 0.5, %v1888_v23  ;;  %v1833_v54 = vpop.xlane.xlu1 %1832  ;;  %v1938_v23 = vmul.f32 %v1885_v18, %v7838_v8  ;;  %v6582_v8 = vld [vmem:[%s11500_s13 + $0x20] sm:$0xff] }
 0x661   : > { %v1845_v1 = vmul.f32 %v1833_v54, %v7362_v51 }
 0x662   : > { %v1890_v49 = vsub.f32 1.5, %v1889_v15 }
 0x663   : > { %v6750_v4 = vpop.eup %6749  ;;  %v1853_v21 = vadd.f32 1e-05, %v1845_v1  ;;  %2132 = vmatpush.bf16.msra.mxu0 %v6582_v8 }
 0x664   : > { %v1897_v9 = vmul.f32 %v6750_v4, %v1852_v41  ;;  %v1891_v17 = vmul.f32 %v6748_v40, %v1890_v49  ;;  %vm1903_vm3 = vweird.f32 %v6750_v4 }
 0x665   : > { %6751 = vrsqrt.f32 %v1853_v21  ;;  %vm1904_vm6 = vmor %vm1902_vm4, %vm1903_vm3  ;;  %vm1912_vm7 = vweird.f32 %v1853_v21 }
 0x666   : > { %v1898_v48 = vmul.f32 %v6750_v4, %v1897_v9  ;;  %v1895_v2 = vsel %vm1894_vm1, %v6748_v40, %v1891_v17 }
 0x667   : > { %v1939_v11 = vmul.f32 %v1895_v2, %v7845_v43 }
 0x668   : > { %v1899_v20 = vmul.f32 0.5, %v1898_v48  ;;  %v1836_v54 = vpop.xlane.xlu0 %1835 }
 0x669   : > { %v1846_v55 = vmul.f32 %v1836_v54, %v7362_v51  ;;  %v1945_v15 = vpack.c.bf16 %v1939_v11, %v1938_v23 }
 0x66a   : > { %v1900_v38 = vsub.f32 1.5, %v1899_v20 }
 0x66b   : > { %v6752_v62 = vpop.eup %6751  ;;  %v1854_v60 = vadd.f32 1e-05, %v1846_v55  ;;  %6447 = vmatmul.msk.bf16.gmra.mxu2 %vm781_vm0, %v1945_v15 }
 0x66c   : > { %v1907_v61 = vmul.f32 %v6752_v62, %v1853_v21  ;;  %v1901_v49 = vmul.f32 %v6750_v4, %v1900_v38  ;;  %vm1913_vm5 = vweird.f32 %v6752_v62 }
 0x66d   : > { %6753 = vrsqrt.f32 %v1854_v60  ;;  %vm1914_vm8 = vmor %vm1912_vm7, %vm1913_vm5  ;;  %vm1922_vm10 = vweird.f32 %v1854_v60 }
 0x66e   : > { %v1908_v43 = vmul.f32 %v6752_v62, %v1907_v61  ;;  %v1905_v2 = vsel %vm1904_vm6, %v6750_v4, %v1901_v49 }
 0x66f   : > { %v1940_v55 = vmul.f32 %v1905_v2, %v7855_v26 }
 0x670   : > { %v1909_v40 = vmul.f32 0.5, %v1908_v43  ;;  %v1839_v1 = vpop.xlane.xlu2 %1838 }
 0x671   : > { %v1847_v9 = vmul.f32 %v1839_v1, %v7362_v51 }
 0x672   : > { %v1910_v18 = vsub.f32 1.5, %v1909_v40 }
 0x673   : > { %v6754_v17 = vpop.eup %6753  ;;  %v1855_v20 = vadd.f32 1e-05, %v1847_v9 }
 0x674   : > { %v1917_v48 = vmul.f32 %v6754_v17, %v1854_v60  ;;  %v1911_v23 = vmul.f32 %v6752_v62, %v1910_v18  ;;  %vm1923_vm9 = vweird.f32 %v6754_v17  ;;  %v6581_v18 = vld [vmem:[%s11500_s13 + $0x18] sm:$0xff]  ;;  %v6580_v60 = vld [vmem:[%s11500_s13 + $0x10] sm:$0xff] }
 0x675   : > { %6755 = vrsqrt.f32 %v1855_v20  ;;  %vm1924_vm12 = vmor %vm1922_vm10, %vm1923_vm9  ;;  %vm1932_vm13 = vweird.f32 %v1855_v20  ;;  %2133 = vmatpush.bf16.msra.mxu0 %v6581_v18 }
 0x676   : > { %v1918_v11 = vmul.f32 %v6754_v17, %v1917_v48  ;;  %v1915_v54 = vsel %vm1914_vm8, %v6752_v62, %v1911_v23 }
 0x677   : > { %v1941_v15 = vmul.f32 %v1915_v54, %v7862_v44 }
 0x678   : > { %v1919_v28 = vmul.f32 0.5, %v1918_v11 }
 0x679   : > { %v1946_v38 = vpack.c.bf16 %v1941_v15, %v1940_v55  ;;  %2134 = vmatpush.bf16.msra.mxu0 %v6580_v60 }
 0x67a   : > { %v1920_v61 = vsub.f32 1.5, %v1919_v28 }
 0x67b   : > { %v6756_v41 = vpop.eup %6755  ;;  %6448 = vmatmul.msk.bf16.gmra.mxu2 %vm781_vm0, %v1946_v38 }
 0x67c   : > { %v1927_v8 = vmul.f32 %v6756_v41, %v1855_v20  ;;  %v1921_v4 = vmul.f32 %v6754_v17, %v1920_v61  ;;  %vm1933_vm11 = vweird.f32 %v6756_v41  ;;  %v6578_v20 = vld [vmem:[%s11500_s13] sm:$0xff] }
 0x67d   : > { %vm1934_vm14 = vmor %vm1932_vm13, %vm1933_vm11 }
 0x67e   : > { %v1928_v43 = vmul.f32 %v6756_v41, %v1927_v8  ;;  %v1925_v62 = vsel %vm1924_vm12, %v6754_v17, %v1921_v4  ;;  %v6579_v17 = vld [vmem:[%s11500_s13 + $0x8] sm:$0xff] }
 0x67f   : > { %v1942_v1 = vmul.f32 %v1925_v62, %v7869_v59  ;;  %v7922_v59 = vld [vmem:[%s11499_s12] ss:$0 sm:$0xff]  ;;  %2135 = vmatpush.bf16.msra.mxu0 %v6579_v17 }
 0x680   : > { %v1929_v21 = vmul.f32 0.5, %v1928_v43 }
 0x682   : > { %v1930_v40 = vsub.f32 1.5, %v1929_v21 }
 0x683   : > { %2136 = vmatpush.bf16.msra.mxu0 %v6578_v20 }
 0x684   : > { %v1931_v26 = vmul.f32 %v6756_v41, %v1930_v40 }
 0x686   : > { %v1935_v44 = vsel %vm1934_vm14, %v6756_v41, %v1931_v26 }
 0x687   : > { %v1943_v49 = vmul.f32 %v1935_v44, %v7876_v7 }
 0x689   : > { %v1947_v9 = vpack.c.bf16 %v1943_v49, %v1942_v1 }
 0x68b   : > { %6449 = vmatmul.msk.bf16.gmra.mxu2 %vm781_vm0, %v1947_v9 }
 0x6c5   : > { %v1984_v7 = vpop.f32.mrf.mxu2 }
 0x6c6   : > { %v1985_v48 = vadd.f32 %v7922_v59, %v1984_v7 }
 0x6c8   : > { %v2004_v2 = vmul.f32 %v1985_v48, %v1985_v48 }
 0x6ca   : > { %v2012_v23 = vmul.f32 %v2004_v2, %v1985_v48 }
 0x6cc   : > { %v2020_v11 = vmul.f32 0.044715, %v2012_v23 }
 0x6cd   : > { %v1986_v54 = vpop.f32.mrf.mxu2 }
 0x6ce   : > { %v2028_v55 = vadd.f32 %v2020_v11, %v1985_v48  ;;  %v1987_v15 = vadd.f32 %v7922_v59, %v1986_v54 }
 0x6d0   : > { %v2036_v28 = vmul.f32 0.7978846, %v2028_v55  ;;  %v2005_v38 = vmul.f32 %v1987_v15, %v1987_v15 }
 0x6d2   : > { %v2013_v41 = vmul.f32 %v2005_v38, %v1987_v15  ;;  %6757 = vtanh.f32 %v2036_v28 }
 0x6d4   : > { %v2021_v61 = vmul.f32 0.044715, %v2013_v41 }
 0x6d6   : > { %v2029_v8 = vadd.f32 %v2021_v61, %v1987_v15 }
 0x6d8   : > { %v2037_v43 = vmul.f32 0.7978846, %v2029_v8  ;;  %v6758_v21 = vpop.eup %6757 }
 0x6d9   : > { %v2052_v4 = vadd.f32 1.0, %v6758_v21 }
 0x6da   : > { %6759 = vtanh.f32 %v2037_v43 }
 0x6db   : > { %v2060_v62 = vmul.f32 0.5, %v2052_v4 }
 0x6dd   : > { %v2068_v1 = vmul.f32 %v2060_v62, %v1985_v48 }
 0x6e0   : > { %v6760_v40 = vpop.eup %6759 }
 0x6e1   : > { %v2053_v26 = vadd.f32 1.0, %v6760_v40 }
 0x6e3   : > { %v2061_v44 = vmul.f32 0.5, %v2053_v26 }
 0x6e5   : > { %v2069_v49 = vmul.f32 %v2061_v44, %v1987_v15 }
 0x6e7   : > { %v2076_v9 = vpack.c.bf16 %v2069_v49, %v2068_v1 }
 0x6e9   : > { %6474 = vmatmul.msk.bf16.vlgmr.msra.gmra.mxu0 %vm2116_vm15, %v2076_v9 }
 0x6ee   : > { %v1989_v18 = vpop.f32.mrf.mxu2 }
 0x6ef   : > { %v1990_v60 = vadd.f32 %v7922_v59, %v1989_v18 }
 0x6f1   : > { %v2006_v17 = vmul.f32 %v1990_v60, %v1990_v60 }
 0x6f3   : > { %v2014_v7 = vmul.f32 %v2006_v17, %v1990_v60 }
 0x6f5   : > { %v2022_v20 = vmul.f32 0.044715, %v2014_v7 }
 0x6f6   : > { %v1991_v2 = vpop.f32.mrf.mxu2 }
 0x6f7   : > { %v2030_v23 = vadd.f32 %v2022_v20, %v1990_v60  ;;  %v1992_v11 = vadd.f32 %v7922_v59, %v1991_v2 }
 0x6f9   : > { %v2038_v54 = vmul.f32 0.7978846, %v2030_v23  ;;  %v2007_v55 = vmul.f32 %v1992_v11, %v1992_v11 }
 0x6fb   : > { %v2015_v28 = vmul.f32 %v2007_v55, %v1992_v11  ;;  %6761 = vtanh.f32 %v2038_v54 }
 0x6fd   : > { %v2023_v48 = vmul.f32 0.044715, %v2015_v28 }
 0x6fe   : > { %v1994_v15 = vpop.f32.mrf.mxu2 }
 0x6ff   : > { %v2031_v38 = vadd.f32 %v2023_v48, %v1992_v11  ;;  %v1995_v41 = vadd.f32 %v7922_v59, %v1994_v15 }
 0x701   : > { %v2039_v61 = vmul.f32 0.7978846, %v2031_v38  ;;  %v2008_v8 = vmul.f32 %v1995_v41, %v1995_v41  ;;  %v6762_v43 = vpop.eup %6761 }
 0x702   : > { %v2054_v62 = vadd.f32 1.0, %v6762_v43 }
 0x703   : > { %6763 = vtanh.f32 %v2039_v61  ;;  %v2016_v21 = vmul.f32 %v2008_v8, %v1995_v41 }
 0x704   : > { %v2062_v17 = vmul.f32 0.5, %v2054_v62 }
 0x705   : > { %v2024_v4 = vmul.f32 0.044715, %v2016_v21 }
 0x706   : > { %v1996_v40 = vpop.f32.mrf.mxu2  ;;  %v2070_v54 = vmul.f32 %v2062_v17, %v1990_v60 }
 0x707   : > { %v2032_v26 = vadd.f32 %v2024_v4, %v1995_v41  ;;  %v1997_v44 = vadd.f32 %v7922_v59, %v1996_v40 }
 0x709   : > { %v6764_v1 = vpop.eup %6763  ;;  %v2040_v49 = vmul.f32 0.7978846, %v2032_v26  ;;  %v2009_v9 = vmul.f32 %v1997_v44, %v1997_v44 }
 0x70a   : > { %v2055_v18 = vadd.f32 1.0, %v6764_v1 }
 0x70b   : > { %v2017_v7 = vmul.f32 %v2009_v9, %v1997_v44  ;;  %6765 = vtanh.f32 %v2040_v49 }
 0x70c   : > { %v2063_v20 = vmul.f32 0.5, %v2055_v18 }
 0x70d   : > { %v2025_v2 = vmul.f32 0.044715, %v2017_v7 }
 0x70e   : > { %v1999_v23 = vpop.f32.mrf.mxu2  ;;  %v2071_v55 = vmul.f32 %v2063_v20, %v1992_v11 }
 0x70f   : > { %v2033_v28 = vadd.f32 %v2025_v2, %v1997_v44  ;;  %v2000_v48 = vadd.f32 %v7922_v59, %v1999_v23 }
 0x710   : > { %v2077_v15 = vpack.c.bf16 %v2071_v55, %v2070_v54 }
 0x711   : > { %v2041_v38 = vmul.f32 0.7978846, %v2033_v28  ;;  %v2010_v61 = vmul.f32 %v2000_v48, %v2000_v48  ;;  %v6766_v8 = vpop.eup %6765 }
 0x712   : > { %6475 = vmatmul.msk.bf16.gmra.mxu0 %vm2116_vm15, %v2077_v15  ;;  %v2056_v40 = vadd.f32 1.0, %v6766_v8 }
 0x713   : > { %6767 = vtanh.f32 %v2041_v38  ;;  %v2018_v43 = vmul.f32 %v2010_v61, %v2000_v48 }
 0x714   : > { %v2064_v9 = vmul.f32 0.5, %v2056_v40 }
 0x715   : > { %v2026_v21 = vmul.f32 0.044715, %v2018_v43 }
 0x716   : > { %v2001_v4 = vpop.f32.mrf.mxu2  ;;  %v2072_v20 = vmul.f32 %v2064_v9, %v1995_v41  ;;  %v6650_v41 = vld [vmem:[%s11501_s14] ss:$0 sm:$0xff] }
 0x717   : > { %v2034_v62 = vadd.f32 %v2026_v21, %v2000_v48  ;;  %v2002_v26 = vadd.f32 %v7922_v59, %v2001_v4 }
 0x719   : > { %v6768_v1 = vpop.eup %6767  ;;  %v2042_v60 = vmul.f32 0.7978846, %v2034_v62  ;;  %v2011_v11 = vmul.f32 %v2002_v26, %v2002_v26 }
 0x71a   : > { %v2057_v49 = vadd.f32 1.0, %v6768_v1 }
 0x71b   : > { %v2019_v18 = vmul.f32 %v2011_v11, %v2002_v26  ;;  %6769 = vtanh.f32 %v2042_v60 }
 0x71c   : > { %v2065_v17 = vmul.f32 0.5, %v2057_v49 }
 0x71d   : > { %v2027_v7 = vmul.f32 0.044715, %v2019_v18 }
 0x71e   : > { %v2073_v2 = vmul.f32 %v2065_v17, %v1997_v44 }
 0x71f   : > { %v2035_v23 = vadd.f32 %v2027_v7, %v2002_v26 }
 0x720   : > { %v2078_v54 = vpack.c.bf16 %v2073_v2, %v2072_v20 }
 0x721   : > { %v2043_v55 = vmul.f32 0.7978846, %v2035_v23  ;;  %v6770_v28 = vpop.eup %6769 }
 0x722   : > { %6476 = vmatmul.msk.bf16.gmra.mxu0 %vm2116_vm15, %v2078_v54  ;;  %v2058_v15 = vadd.f32 1.0, %v6770_v28 }
 0x723   : > { %6771 = vtanh.f32 %v2043_v55 }
 0x724   : > { %v2066_v61 = vmul.f32 0.5, %v2058_v15 }
 0x726   : > { %v2074_v43 = vmul.f32 %v2066_v61, %v2000_v48 }
 0x729   : > { %v6772_v59 = vpop.eup %6771 }
 0x72a   : > { %v2059_v38 = vadd.f32 1.0, %v6772_v59 }
 0x72c   : > { %v2067_v8 = vmul.f32 0.5, %v2059_v38 }
 0x72e   : > { %v2075_v21 = vmul.f32 %v2067_v8, %v2002_v26 }
 0x730   : > { %v2079_v4 = vpack.c.bf16 %v2075_v21, %v2074_v43 }
 0x732   : > { %6477 = vmatmul.msk.bf16.gmra.mxu0 %vm2116_vm15, %v2079_v4 }
 0x766   : > { %v2138_v44 = vpop.f32.mrf.mxu0 }
 0x767   : > { %v2158_v40 = vadd.f32 %v2138_v44, %v7783_v33 }
 0x769   : > { %v7943_v62 = vadd.f32 %v6650_v41, %v2158_v40 }
 0x76b   : > { %11623 = vst [vmem:[#allocation24_spill] sm:$0xff] %v7943_v62  ;;  %v2177_v1 = vsel %vm781_vm0, %v7943_v62, 0.0 }
 0x76c   : > { %2178 = vadd.xlane.f32.xlu1 %v2177_v1 }
 0x76e   : > { %v2140_v60 = vpop.f32.mrf.mxu0 }
 0x76f   : > { %v2159_v48 = vadd.f32 %v2140_v60, %v7788_v0 }
 0x771   : > { %v7948_v26 = vadd.f32 %v6650_v41, %v2159_v48 }
 0x773   : > { %11624 = vst [vmem:[#allocation25_spill] sm:$0xff] %v7948_v26  ;;  %v2180_v11 = vsel %vm781_vm0, %v7948_v26, 0.0 }
 0x774   : > { %2181 = vadd.xlane.f32.xlu0 %v2180_v11 }
 0x78f   : > { %v2143_v49 = vpop.f32.mrf.mxu0 }
 0x790   : > { %v2160_v9 = vadd.f32 %v2143_v49, %v7793_v57 }
 0x792   : > { %v7953_v18 = vadd.f32 %v6650_v41, %v2160_v9 }
 0x794   : > { %11625 = vst [vmem:[#allocation26_spill] sm:$0xff] %v7953_v18  ;;  %v2183_v33 = vsel %vm781_vm0, %v7953_v18, 0.0 }
 0x795   : > { %2184 = vadd.xlane.f32.xlu2 %v2183_v33 }
 0x797   : > { %v2145_v17 = vpop.f32.mrf.mxu0 }
 0x798   : > { %v2161_v7 = vadd.f32 %v2145_v17, %v7798_v19 }
 0x79a   : > { %v7958_v20 = vadd.f32 %v6650_v41, %v2161_v7 }
 0x79c   : > { %11626 = vst [vmem:[#allocation27_spill] sm:$0xff] %v7958_v20  ;;  %v2186_v0 = vsel %vm781_vm0, %v7958_v20, 0.0 }
 0x79d   : > { %2187 = vadd.xlane.f32.xlu1 %v2186_v0 }
 0x79f   : > { %v2148_v2 = vpop.f32.mrf.mxu0 }
 0x7a0   : > { %v2162_v23 = vadd.f32 %v2148_v2, %v7803_v36 }
 0x7a2   : > { %v7963_v54 = vadd.f32 %v6650_v41, %v2162_v23 }
 0x7a4   : > { %11627 = vst [vmem:[#allocation28_spill] sm:$0xff] %v7963_v54  ;;  %v2189_v57 = vsel %vm781_vm0, %v7963_v54, 0.0 }
 0x7a5   : > { %2190 = vadd.xlane.f32.xlu0 %v2189_v57 }
 0x7a7   : > { %v2150_v55 = vpop.f32.mrf.mxu0 }
 0x7a8   : > { %v2163_v28 = vadd.f32 %v2150_v55, %v7808_v13 }
 0x7aa   : > { %v7968_v15 = vadd.f32 %v6650_v41, %v2163_v28 }
 0x7ac   : > { %11628 = vst [vmem:[#allocation29_spill] sm:$0xff] %v7968_v15  ;;  %v2192_v19 = vsel %vm781_vm0, %v7968_v15, 0.0 }
 0x7ad   : > { %2193 = vadd.xlane.f32.xlu0 %v2192_v19  ;;  %v6585_v19 = vld [vmem:[%s11502_s15 + $0x8] sm:$0xff] }
 0x7ae   : > { %2395 = vmatpush.bf16.msra.mxu3 %v6585_v19 }
 0x7af   : > { %v2153_v59 = vpop.f32.mrf.mxu0 }
 0x7b0   : > { %v2164_v38 = vadd.f32 %v2153_v59, %v7813_v35 }
 0x7b2   : > { %v7973_v61 = vadd.f32 %v6650_v41, %v2164_v38 }
 0x7b4   : > { %11629 = vst [vmem:[#allocation30_spill] sm:$0xff] %v7973_v61  ;;  %v2195_v36 = vsel %vm781_vm0, %v7973_v61, 0.0 }
 0x7b5   : > { %2196 = vadd.xlane.f32.xlu2 %v2195_v36 }
 0x7b7   : > { %v2155_v8 = vpop.f32.mrf.mxu0 }
 0x7b8   : > { %v2165_v43 = vadd.f32 %v2155_v8, %v7818_v32 }
 0x7ba   : > { %v7978_v21 = vadd.f32 %v6650_v41, %v2165_v43 }
 0x7bc   : > { %11630 = vst [vmem:[#allocation31_spill] sm:$0xff] %v7978_v21  ;;  %v2198_v13 = vsel %vm781_vm0, %v7978_v21, 0.0 }
 0x7bd   : > { %2199 = vadd.xlane.f32.xlu1 %v2198_v13 }
 0x7df   : > { %v2179_v4 = vpop.xlane.xlu1 %2178 }
 0x7e0   : > { %v2201_v44 = vmul.f32 %v2179_v4, %v7362_v51 }
 0x7e2   : > { %v7984_v35 = vsub.f32 %v7943_v62, %v2201_v44 }
 0x7e4   : > { %v2217_v40 = vmul.f32 %v7984_v35, %v7984_v35 }
 0x7e6   : > { %v2225_v1 = vsel %vm781_vm0, %v2217_v40, 0.0 }
 0x7e7   : > { %2226 = vadd.xlane.f32.xlu2 %v2225_v1  ;;  %v2182_v60 = vpop.xlane.xlu0 %2181 }
 0x7e8   : > { %v2202_v32 = vmul.f32 %v2182_v60, %v7362_v51 }
 0x7ea   : > { %v7991_v41 = vsub.f32 %v7948_v26, %v2202_v32 }
 0x7ec   : > { %v2218_v48 = vmul.f32 %v7991_v41, %v7991_v41 }
 0x7ee   : > { %v2228_v11 = vsel %vm781_vm0, %v2218_v48, 0.0 }
 0x7ef   : > { %2229 = vadd.xlane.f32.xlu1 %v2228_v11 }
 0x808   : > { %v2185_v49 = vpop.xlane.xlu2 %2184 }
 0x809   : > { %v2203_v9 = vmul.f32 %v2185_v49, %v7362_v51 }
 0x80b   : > { %v7998_v33 = vsub.f32 %v7953_v18, %v2203_v9  ;;  %v8253_v18 = vld [vmem:[%s11510_s23 + $0x18] sm:$0xff] }
 0x80d   : > { %v2219_v17 = vmul.f32 %v7998_v33, %v7998_v33 }
 0x80f   : > { %v2231_v7 = vsel %vm781_vm0, %v2219_v17, 0.0 }
 0x810   : > { %v2188_v0 = vpop.xlane.xlu1 %2187  ;;  %2232 = vadd.xlane.f32.xlu0 %v2231_v7 }
 0x811   : > { %v2204_v2 = vmul.f32 %v2188_v0, %v7362_v51 }
 0x813   : > { %v8005_v23 = vsub.f32 %v7958_v20, %v2204_v2  ;;  %v6584_v2 = vld [vmem:[%s11502_s15] sm:$0xff] }
 0x814   : > { %2396 = vmatpush.bf16.msra.mxu3 %v6584_v2 }
 0x815   : > { %v2220_v57 = vmul.f32 %v8005_v23, %v8005_v23 }
 0x817   : > { %v2234_v55 = vsel %vm781_vm0, %v2220_v57, 0.0 }
 0x818   : > { %2235 = vadd.xlane.f32.xlu2 %v2234_v55  ;;  %v2191_v28 = vpop.xlane.xlu0 %2190 }
 0x819   : > { %v2205_v59 = vmul.f32 %v2191_v28, %v7362_v51 }
 0x81b   : > { %v8015_v38 = vsub.f32 %v7963_v54, %v2205_v59 }
 0x81d   : > { %v2221_v36 = vmul.f32 %v8015_v38, %v8015_v38 }
 0x81f   : > { %v2237_v8 = vsel %vm781_vm0, %v2221_v36, 0.0 }
 0x820   : > { %2238 = vadd.xlane.f32.xlu1 %v2237_v8  ;;  %v2194_v43 = vpop.xlane.xlu0 %2193 }
 0x821   : > { %v2206_v13 = vmul.f32 %v2194_v43, %v7362_v51 }
 0x823   : > { %v8022_v4 = vsub.f32 %v7968_v15, %v2206_v13 }
 0x825   : > { %v2222_v44 = vmul.f32 %v8022_v4, %v8022_v4 }
 0x827   : > { %v2240_v40 = vsel %vm781_vm0, %v2222_v44, 0.0 }
 0x828   : > { %v2197_v1 = vpop.xlane.xlu2 %2196  ;;  %2241 = vadd.xlane.f32.xlu0 %v2240_v40 }
 0x829   : > { %v2207_v60 = vmul.f32 %v2197_v1, %v7362_v51 }
 0x82b   : > { %v8029_v32 = vsub.f32 %v7973_v61, %v2207_v60 }
 0x82d   : > { %v2223_v48 = vmul.f32 %v8029_v32, %v8029_v32 }
 0x82f   : > { %v2243_v11 = vsel %vm781_vm0, %v2223_v48, 0.0 }
 0x830   : > { %2244 = vadd.xlane.f32.xlu2 %v2243_v11  ;;  %v2200_v49 = vpop.xlane.xlu1 %2199 }
 0x831   : > { %v2208_v9 = vmul.f32 %v2200_v49, %v7362_v51 }
 0x833   : > { %v8036_v17 = vsub.f32 %v7978_v21, %v2208_v9 }
 0x835   : > { %v2224_v7 = vmul.f32 %v8036_v17, %v8036_v17 }
 0x837   : > { %v2246_v0 = vsel %vm781_vm0, %v2224_v7, 0.0 }
 0x838   : > { %2247 = vadd.xlane.f32.xlu1 %v2246_v0 }
 0x85a   : > { %v2227_v57 = vpop.xlane.xlu2 %2226 }
 0x85b   : > { %v2249_v55 = vmul.f32 %v2227_v57, %v7362_v51 }
 0x85d   : > { %v2257_v28 = vadd.f32 1e-05, %v2249_v55 }
 0x85f   : > { %6773 = vrsqrt.f32 %v2257_v28  ;;  %vm2271_vm3 = vweird.f32 %v2257_v28 }
 0x862   : > { %v2230_v19 = vpop.xlane.xlu1 %2229 }
 0x863   : > { %v2250_v59 = vmul.f32 %v2230_v19, %v7362_v51 }
 0x865   : > { %v6774_v36 = vpop.eup %6773  ;;  %v2258_v8 = vadd.f32 1e-05, %v2250_v59 }
 0x866   : > { %v2266_v43 = vmul.f32 %v6774_v36, %v2257_v28  ;;  %vm2272_vm1 = vweird.f32 %v6774_v36 }
 0x867   : > { %6775 = vrsqrt.f32 %v2258_v8  ;;  %vm2273_vm5 = vmor %vm2271_vm3, %vm2272_vm1  ;;  %vm2281_vm6 = vweird.f32 %v2258_v8 }
 0x868   : > { %v2267_v13 = vmul.f32 %v6774_v36, %v2266_v43 }
 0x86a   : > { %v2268_v44 = vmul.f32 0.5, %v2267_v13 }
 0x86c   : > { %v2269_v1 = vsub.f32 1.5, %v2268_v44 }
 0x86d   : > { %v6776_v40 = vpop.eup %6775 }
 0x86e   : > { %v2276_v60 = vmul.f32 %v6776_v40, %v2258_v8  ;;  %v2270_v11 = vmul.f32 %v6774_v36, %v2269_v1  ;;  %vm2282_vm4 = vweird.f32 %v6776_v40 }
 0x86f   : > { %vm2283_vm7 = vmor %vm2281_vm6, %vm2282_vm4 }
 0x870   : > { %v2277_v48 = vmul.f32 %v6776_v40, %v2276_v60  ;;  %v2274_v7 = vsel %vm2273_vm5, %v6774_v36, %v2270_v11 }
 0x871   : > { %v2345_v57 = vmul.f32 %v2274_v7, %v7984_v35 }
 0x872   : > { %v2278_v49 = vmul.f32 0.5, %v2277_v48 }
 0x874   : > { %v2279_v9 = vsub.f32 1.5, %v2278_v49 }
 0x876   : > { %v2280_v0 = vmul.f32 %v6776_v40, %v2279_v9 }
 0x878   : > { %v2284_v2 = vsel %vm2283_vm7, %v6776_v40, %v2280_v0 }
 0x879   : > { %v2346_v55 = vmul.f32 %v2284_v2, %v7991_v41 }
 0x87b   : > { %v2357_v19 = vpack.c.bf16 %v2346_v55, %v2345_v57 }
 0x87d   : > { %6486 = vmatmul.msk.bf16.vlgmr.msra.gmra.mxu3 %vm781_vm0, %v2357_v19 }
 0x883   : > { %v2233_v59 = vpop.xlane.xlu0 %2232 }
 0x884   : > { %v2251_v43 = vmul.f32 %v2233_v59, %v7362_v51 }
 0x886   : > { %v2259_v13 = vadd.f32 1e-05, %v2251_v43 }
 0x888   : > { %6777 = vrsqrt.f32 %v2259_v13  ;;  %vm2291_vm9 = vweird.f32 %v2259_v13 }
 0x88b   : > { %v2236_v28 = vpop.xlane.xlu2 %2235 }
 0x88c   : > { %v2252_v44 = vmul.f32 %v2236_v28, %v7362_v51 }
 0x88e   : > { %v6778_v36 = vpop.eup %6777  ;;  %v2260_v1 = vadd.f32 1e-05, %v2252_v44 }
 0x88f   : > { %v2286_v8 = vmul.f32 %v6778_v36, %v2259_v13  ;;  %vm2292_vm8 = vweird.f32 %v6778_v36 }
 0x890   : > { %6779 = vrsqrt.f32 %v2260_v1  ;;  %vm2293_vm11 = vmor %vm2291_vm9, %vm2292_vm8  ;;  %vm2301_vm12 = vweird.f32 %v2260_v1 }
 0x891   : > { %v2287_v40 = vmul.f32 %v6778_v36, %v2286_v8 }
 0x893   : > { %v2288_v60 = vmul.f32 0.5, %v2287_v40  ;;  %v2239_v35 = vpop.xlane.xlu1 %2238 }
 0x894   : > { %v2253_v41 = vmul.f32 %v2239_v35, %v7362_v51 }
 0x895   : > { %v2289_v49 = vsub.f32 1.5, %v2288_v60 }
 0x896   : > { %v6780_v48 = vpop.eup %6779  ;;  %v2261_v11 = vadd.f32 1e-05, %v2253_v41 }
 0x897   : > { %v2296_v9 = vmul.f32 %v6780_v48, %v2260_v1  ;;  %v2290_v57 = vmul.f32 %v6778_v36, %v2289_v49  ;;  %vm2302_vm10 = vweird.f32 %v6780_v48 }
 0x898   : > { %6781 = vrsqrt.f32 %v2261_v11  ;;  %vm2303_vm13 = vmor %vm2301_vm12, %vm2302_vm10  ;;  %vm2311_vm1 = vweird.f32 %v2261_v11 }
 0x899   : > { %v2297_v7 = vmul.f32 %v6780_v48, %v2296_v9  ;;  %v2294_v44 = vsel %vm2293_vm11, %v6778_v36, %v2290_v57 }
 0x89a   : > { %v2347_v35 = vmul.f32 %v2294_v44, %v7998_v33 }
 0x89b   : > { %v2298_v0 = vmul.f32 0.5, %v2297_v7  ;;  %v2242_v2 = vpop.xlane.xlu0 %2241 }
 0x89c   : > { %v2254_v55 = vmul.f32 %v2242_v2, %v7362_v51 }
 0x89d   : > { %v2299_v19 = vsub.f32 1.5, %v2298_v0 }
 0x89e   : > { %v6782_v59 = vpop.eup %6781  ;;  %v2262_v43 = vadd.f32 1e-05, %v2254_v55 }
 0x89f   : > { %v2306_v28 = vmul.f32 %v6782_v59, %v2261_v11  ;;  %v2300_v8 = vmul.f32 %v6780_v48, %v2299_v19  ;;  %vm2312_vm14 = vweird.f32 %v6782_v59 }
 0x8a0   : > { %6783 = vrsqrt.f32 %v2262_v43  ;;  %vm2313_vm4 = vmor %vm2311_vm1, %vm2312_vm14  ;;  %vm2321_vm5 = vweird.f32 %v2262_v43  ;;  %vm3253_vm14 = vcmask 1041409   ;;  %vm3255_vm1 = vcmask 1042434  }
 0x8a1   : > { %v2307_v40 = vmul.f32 %v6782_v59, %v2306_v28  ;;  %v2304_v60 = vsel %vm2303_vm13, %v6780_v48, %v2300_v8  ;;  %vm3206_vm13 = vcmask 130112  }
 0x8a2   : > { %v2348_v41 = vmul.f32 %v2304_v60, %v8005_v23 }
 0x8a3   : > { %v2308_v49 = vmul.f32 0.5, %v2307_v40  ;;  %v2245_v9 = vpop.xlane.xlu2 %2244 }
 0x8a4   : > { %v2255_v13 = vmul.f32 %v2245_v9, %v7362_v51  ;;  %v2358_v7 = vpack.c.bf16 %v2348_v41, %v2347_v35 }
 0x8a5   : > { %v2309_v1 = vsub.f32 1.5, %v2308_v49 }
 0x8a6   : > { %v6784_v0 = vpop.eup %6783  ;;  %v2263_v2 = vadd.f32 1e-05, %v2255_v13  ;;  %6487 = vmatmul.msk.bf16.gmra.mxu3 %vm781_vm0, %v2358_v7 }
 0x8a7   : > { %v2316_v36 = vmul.f32 %v6784_v0, %v2262_v43  ;;  %v2310_v19 = vmul.f32 %v6782_v59, %v2309_v1  ;;  %vm2322_vm3 = vweird.f32 %v6784_v0 }
 0x8a8   : > { %6785 = vrsqrt.f32 %v2263_v2  ;;  %vm2323_vm6 = vmor %vm2321_vm5, %vm2322_vm3  ;;  %vm2331_vm8 = vweird.f32 %v2263_v2  ;;  %vm3257_vm3 = vcmask 1043459   ;;  %vm3261_vm5 = vcmask 1045509  }
 0x8a9   : > { %v2317_v57 = vmul.f32 %v6784_v0, %v2316_v36  ;;  %v2314_v40 = vsel %vm2313_vm4, %v6782_v59, %v2310_v19  ;;  %vm3259_vm4 = vcmask 1044484  }
 0x8aa   : > { %v2349_v49 = vmul.f32 %v2314_v40, %v8015_v38 }
 0x8ab   : > { %v2318_v55 = vmul.f32 0.5, %v2317_v57  ;;  %v2248_v48 = vpop.xlane.xlu1 %2247 }
 0x8ac   : > { %v2256_v33 = vmul.f32 %v2248_v48, %v7362_v51 }
 0x8ad   : > { %v2319_v23 = vsub.f32 1.5, %v2318_v55 }
 0x8ae   : > { %v6786_v28 = vpop.eup %6785  ;;  %v2264_v44 = vadd.f32 1e-05, %v2256_v33 }
 0x8af   : > { %v2326_v8 = vmul.f32 %v6786_v28, %v2263_v2  ;;  %v2320_v60 = vmul.f32 %v6784_v0, %v2319_v23  ;;  %vm2332_vm7 = vweird.f32 %v6786_v28  ;;  %v8067_v23 = vld [vmem:[%s11503_s16] ss:$0 sm:$0xff] }
 0x8b0   : > { %6787 = vrsqrt.f32 %v2264_v44  ;;  %vm2333_vm10 = vmor %vm2331_vm8, %vm2332_vm7  ;;  %vm2341_vm11 = vweird.f32 %v2264_v44  ;;  %vm3265_vm7 = vcmask 1047559  }
 0x8b1   : > { %v2327_v35 = vmul.f32 %v6786_v28, %v2326_v8  ;;  %v2324_v41 = vsel %vm2323_vm6, %v6784_v0, %v2320_v60  ;;  %vm3263_vm6 = vcmask 1046534  }
 0x8b2   : > { %v2350_v9 = vmul.f32 %v2324_v41, %v8022_v4 }
 0x8b3   : > { %v2328_v13 = vmul.f32 0.5, %v2327_v35 }
 0x8b4   : > { %v2359_v7 = vpack.c.bf16 %v2350_v9, %v2349_v49 }
 0x8b5   : > { %v2329_v1 = vsub.f32 1.5, %v2328_v13 }
 0x8b6   : > { %v6788_v11 = vpop.eup %6787  ;;  %6488 = vmatmul.msk.bf16.gmra.mxu3 %vm781_vm0, %v2359_v7 }
 0x8b7   : > { %v2336_v36 = vmul.f32 %v6788_v11, %v2264_v44  ;;  %v2330_v59 = vmul.f32 %v6786_v28, %v2329_v1  ;;  %vm2342_vm9 = vweird.f32 %v6788_v11 }
 0x8b8   : > { %vm2343_vm12 = vmor %vm2341_vm11, %vm2342_vm9 }
 0x8b9   : > { %v2337_v57 = vmul.f32 %v6788_v11, %v2336_v36  ;;  %v2334_v0 = vsel %vm2333_vm10, %v6786_v28, %v2330_v59 }
 0x8ba   : > { %v2351_v48 = vmul.f32 %v2334_v0, %v8029_v32 }
 0x8bb   : > { %v2338_v43 = vmul.f32 0.5, %v2337_v57 }
 0x8bd   : > { %v2339_v55 = vsub.f32 1.5, %v2338_v43 }
 0x8bf   : > { %v2340_v38 = vmul.f32 %v6788_v11, %v2339_v55 }
 0x8c1   : > { %v2344_v4 = vsel %vm2343_vm12, %v6788_v11, %v2340_v38 }
 0x8c2   : > { %v2352_v19 = vmul.f32 %v2344_v4, %v8036_v17  ;;  %v8078_v17 = vld [vmem:[%s11510_s23 + $0x8] sm:$0xff] }
 0x8c4   : > { %v2360_v33 = vpack.c.bf16 %v2352_v19, %v2351_v48 }
 0x8c6   : > { %6489 = vmatmul.msk.bf16.gmra.mxu3 %vm781_vm0, %v2360_v33  ;;  %v8119_v33 = vld [vmem:[%s11510_s23] sm:$0xff] }
 0x900   : > { %v2398_v2 = vpop.f32.mrf.mxu3 }
 0x901   : > { %v8070_v8 = vadd.f32 %v8067_v23, %v2398_v2 }
 0x903   : > { %v2522_v28 = vperm.slane %v8070_v8, 0  ;;  %v2466_v60 = vrot.slane %v8070_v8, 1  ;;  %v2467_v9 = vrot.slane %v8070_v8, 2  ;;  %v2468_v11 = vrot.slane %v8070_v8, 3 }
 0x904   : > { %v2470_v57 = vrot.slane %v8070_v8, 5  ;;  %v2471_v0 = vrot.slane %v8070_v8, 6  ;;  %v2469_v4 = vrot.slane %v8070_v8, 4 }
 0x905   : > { %v3997_v44 = vmul.f32 %v7405_v22, %v2522_v28  ;;  %v3998_v32 = vmul.f32 %v7409_v25, %v2522_v28  ;;  %v2651_v40 = vmul.f32 %v8078_v17, %v2522_v28  ;;  %v8085_v41 = vperm.slane %v2466_v60, 0 }
 0x906   : > { %v2524_v13 = vperm.slane %v2467_v9, 0  ;;  %v8094_v1 = vperm.slane %v2468_v11, 0  ;;  %v8103_v59 = vperm.slane %v2470_v57, 0  ;;  %v8112_v48 = vperm.slane %v2471_v0, 0 }
 0x907   : > { %4253 = vrot.lane.b32.xlu1 %v3997_v44, %s11631_s4  ;;  %4255 = vrot.lane.b32.xlu0 %v3998_v32, %s11631_s4  ;;  %v2781_v35 = vsel %vm1178_vm2, %v2651_v40, 0.0  ;;  %v4000_v49 = vmul.f32 %v7417_v29, %v8085_v41  ;;  %v3999_v43 = vmul.f32 %v7421_v31, %v8085_v41  ;;  %v8114_v19 = vperm.slane %v2469_v4, 0 }
 0x908   : > { %2782 = vadd.xlane.f32.xlu2 %v2781_v35  ;;  %v4002_v7 = vmul.f32 %v7460_v6, %v2524_v13  ;;  %v4003_v36 = vmul.f32 %v7475_v58, %v8094_v1  ;;  %v4008_v55 = vmul.f32 %v7499_v16, %v8103_v59  ;;  %v4001_v38 = vmul.f32 %v7454_v47, %v2524_v13  ;;  %v2400_v9 = vpop.f32.mrf.mxu3 }
 0x909   : > { %v2650_v2 = vmul.f32 %v8119_v33, %v2522_v28  ;;  %v4009_v44 = vmul.f32 %v7484_v10, %v8112_v48  ;;  %v4006_v32 = vmul.f32 %v7486_v3, %v8114_v19  ;;  %v4007_v60 = vmul.f32 %v7494_v12, %v8103_v59 }
 0x90a   : > { %v2472_v35 = vrot.slane %v8070_v8, 7 }
 0x90b   : > { %v2778_v40 = vsel %vm1178_vm2, %v2650_v2, 0.0  ;;  %v8164_v2 = vld [vmem:[%s11510_s23 + $0x28] sm:$0xff] }
 0x90c   : > { %v8133_v28 = vperm.slane %v2472_v35, 0 }
 0x90e   : > { %v4011_v4 = vmul.f32 %v7599_v52, %v8133_v28 }
 0x90f   : > { %4259 = vrot.lane.b32.xlu1 %v4000_v49, %s11631_s4  ;;  %v4012_v49 = vmul.f32 %v7601_v46, %v8133_v28 }
 0x917   : > { %4263 = vrot.lane.b32.xlu1 %v4002_v7, %s11631_s4  ;;  %v4004_v7 = vmul.f32 %v7433_v37, %v8094_v1 }
 0x91f   : > { %4265 = vrot.lane.b32.xlu1 %v4003_v36, %s11631_s4  ;;  %v4005_v36 = vmul.f32 %v7450_v45, %v8114_v19 }
 0x920   : > { %4257 = vrot.lane.b32.xlu2 %v3999_v43, %s11631_s4  ;;  %v4010_v43 = vmul.f32 %v7597_v56, %v8112_v48 }
 0x927   : > { %4275 = vrot.lane.b32.xlu1 %v4008_v55, %s11631_s4  ;;  %v8153_v55 = vld [vmem:[%s11510_s23 + $0x10] sm:$0xff] }
 0x928   : > { %4261 = vrot.lane.b32.xlu2 %v4001_v38, %s11631_s4  ;;  %v2652_v0 = vmul.f32 %v8153_v55, %v8085_v41 }
 0x929   : > { %v8141_v11 = vpop.f32.mrf.mxu3 }
 0x92a   : > { %v2784_v38 = vsel %vm1178_vm2, %v2652_v0, 0.0 }
 0x92f   : > { %4277 = vrot.lane.b32.xlu1 %v4009_v44, %s11631_s4  ;;  %v2655_v44 = vmul.f32 %v8164_v2, %v2524_v13 }
 0x930   : > { %4271 = vrot.lane.b32.xlu2 %v4006_v32, %s11631_s4 }
 0x931   : > { %2779 = vadd.xlane.f32.xlu0 %v2778_v40  ;;  %v8146_v57 = vpop.f32.mrf.mxu3  ;;  %v2793_v40 = vsel %vm1178_vm2, %v2655_v44, 0.0 }
 0x938   : > { %4273 = vrot.lane.b32.xlu2 %v4007_v60, %s11631_s4  ;;  %v8174_v60 = vld [vmem:[%s11510_s23 + $0x20] sm:$0xff] }
 0x939   : > { %v8167_v32 = vpop.f32.mrf.mxu3  ;;  %v2654_v35 = vmul.f32 %v8174_v60, %v2524_v13  ;;  %v8191_v13 = vld [vmem:[%s11510_s23 + $0x38] sm:$0xff] }
 0x93a   : > { %11632 = vst [vmem:[#allocation32_spill] sm:$0xff] %v8167_v32 }
 0x940   : > { %4283 = vrot.lane.b32.xlu2 %v4012_v49, %s11631_s4  ;;  %v8180_v49 = vld [vmem:[%s11510_s23 + $0x40] sm:$0xff] }
 0x945   : > { %4267 = vrot.lane.b32.xlu0 %v4004_v7, %s11631_s4  ;;  %v2658_v7 = vmul.f32 %v8180_v49, %v8114_v19 }
 0x947   : > { %v2802_v0 = vsel %vm1178_vm2, %v2658_v7, 0.0 }
 0x94d   : > { %4269 = vrot.lane.b32.xlu0 %v4005_v36, %s11631_s4  ;;  %v8184_v36 = vpop.f32.mrf.mxu3 }
 0x94e   : > { %11633 = vst [vmem:[#allocation33_spill] sm:$0xff] %v8184_v36 }
 0x955   : > { %4279 = vrot.lane.b32.xlu0 %v4010_v43, %s11631_s4  ;;  %v2790_v43 = vsel %vm1178_vm2, %v2654_v35, 0.0  ;;  %v2413_v7 = vpop.f32.mrf.mxu3 }
 0x959   : > { %2785 = vadd.xlane.f32.xlu1 %v2784_v38  ;;  %v2657_v38 = vmul.f32 %v8191_v13, %v8094_v1 }
 0x95d   : > { %4281 = vrot.lane.b32.xlu0 %v4011_v4, %s11631_s4  ;;  %v8198_v4 = vld [vmem:[%s11510_s23 + $0x58] sm:$0xff]  ;;  %v2415_v51 = vpop.f32.mrf.mxu3 }
 0x95e   : > { %v2661_v44 = vmul.f32 %v8198_v4, %v8103_v59 }
 0x960   : > { %v2811_v35 = vsel %vm1178_vm2, %v2661_v44, 0.0 }
 0x961   : > { %2794 = vadd.xlane.f32.xlu1 %v2793_v40  ;;  %v2799_v40 = vsel %vm1178_vm2, %v2657_v38, 0.0  ;;  %v8217_v38 = vld [vmem:[%s11510_s23 + $0x70] sm:$0xff] }
 0x962   : > { %v2664_v44 = vmul.f32 %v8217_v38, %v8133_v28 }
 0x969   : > { %2791 = vadd.xlane.f32.xlu2 %v2790_v43  ;;  %2803 = vadd.xlane.f32.xlu1 %v2802_v0  ;;  %v8205_v43 = vadd.f32 %v8067_v23, %v2400_v9  ;;  %v8210_v0 = vld [vmem:[%s11510_s23 + $0x50] sm:$0xff]  ;;  %v2820_v9 = vsel %vm1178_vm2, %v2664_v44, 0.0 }
 0x96a   : > { %v2660_v61 = vmul.f32 %v8210_v0, %v8103_v59  ;;  %v8229_v59 = vld [vmem:[%s11510_s23 + $0x68] sm:$0xff] }
 0x96b   : > { %v2663_v21 = vmul.f32 %v8229_v59, %v8112_v48  ;;  %v2474_v36 = vrot.slane %v8205_v43, 2  ;;  %v2477_v32 = vrot.slane %v8205_v43, 5 }
 0x96d   : > { %v2817_v15 = vsel %vm1178_vm2, %v2663_v21, 0.0 }
 0x971   : > { %2800 = vadd.xlane.f32.xlu2 %v2799_v40  ;;  %2812 = vadd.xlane.f32.xlu1 %v2811_v35  ;;  %v2808_v40 = vsel %vm1178_vm2, %v2660_v61, 0.0  ;;  %v8224_v35 = vperm.slane %v8205_v43, 0  ;;  %v8236_v61 = vld [vmem:[%s11510_s23 + $0x88] sm:$0xff] }
 0x973   : > { %v2667_v44 = vmul.f32 %v8236_v61, %v8224_v35 }
 0x975   : > { %v2829_v54 = vsel %vm1178_vm2, %v2667_v44, 0.0 }
 0x979   : > { %2809 = vadd.xlane.f32.xlu2 %v2808_v40  ;;  %2821 = vadd.xlane.f32.xlu1 %v2820_v9  ;;  %v8241_v40 = vadd.f32 %v8067_v23, %v2413_v7  ;;  %v8244_v9 = vadd.f32 %v8067_v23, %v2415_v51  ;;  %v2653_v7 = vmul.f32 %v8253_v18, %v8085_v41 }
 0x97b   : > { %11634 = vst [vmem:[#allocation34_spill] sm:$0xff] %v8241_v40  ;;  %v2456_v20 = vpack.c.bf16 %v8241_v40, %v8241_v40  ;;  %v2457_v51 = vpack.c.bf16 %v8244_v9, %v8244_v9  ;;  %v2787_v44 = vsel %vm1178_vm2, %v2653_v7, 0.0 }
 0x97c   : > { %11635 = vst [vmem:[#allocation35_spill] sm:$0xff] %v8244_v9  ;;  %v2479_v9 = vrot.slane %v8205_v43, 7 }
 0x97d   : > { %v3544_v26 = vunpack.c.l.b16 %v2456_v20  ;;  %v3545_v21 = vunpack.c.l.b16 %v2457_v51  ;;  %v2451_v20 = vpack.c.bf16 %v8205_v43, %v8205_v43  ;;  %v2450_v51 = vpack.c.bf16 %v8070_v8, %v8070_v8 }
 0x981   : > { %2818 = vadd.xlane.f32.xlu2 %v2817_v15  ;;  %2830 = vadd.xlane.f32.xlu1 %v2829_v54  ;;  %v8260_v15 = vpack.c.b16 %v3545_v21, %v3544_v26  ;;  %v8265_v54 = vld [vmem:[%s11510_s23 + $0x30] sm:$0xff]  ;;  %v8275_v26 = vld [vmem:[%s11510_s23 + $0x48] sm:$0xff]  ;;  %v3165_v21 = vunpack.c.l.b16 %v2451_v20 }
 0x982   : > { %v2656_v62 = vmul.f32 %v8265_v54, %v8094_v1  ;;  %v2659_v7 = vmul.f32 %v8275_v26, %v8114_v19  ;;  %v8292_v19 = vld [vmem:[%s11510_s23 + $0x60] sm:$0xff] }
 0x983   : > { %11636 = vst [vmem:[#allocation36_spill] sm:$0xff] %v8260_v15  ;;  %v2662_v8 = vmul.f32 %v8292_v19, %v8112_v48  ;;  %v2476_v15 = vrot.slane %v8205_v43, 4 }
 0x984   : > { %v2796_v41 = vsel %vm1178_vm2, %v2656_v62, 0.0  ;;  %v2805_v1 = vsel %vm1178_vm2, %v2659_v7, 0.0  ;;  %v4014_v62 = vmul.f32 %v7425_v34, %v8224_v35  ;;  %v2473_v7 = vrot.slane %v8205_v43, 1 }
 0x985   : > { %v2814_v20 = vsel %vm1178_vm2, %v2662_v8, 0.0 }
 0x987   : > { %2788 = vadd.xlane.f32.xlu0 %v2787_v44  ;;  %v3164_v44 = vunpack.c.l.b16 %v2450_v51  ;;  %v8303_v51 = vld [vmem:[%s11510_s23 + $0x78] sm:$0xff] }
 0x98f   : > { %2797 = vadd.xlane.f32.xlu0 %v2796_v41  ;;  %v8284_v41 = vpack.c.b16 %v3165_v21, %v3164_v44  ;;  %v2665_v21 = vmul.f32 %v8303_v51, %v8133_v28  ;;  %v8320_v28 = vperm.slane %v2476_v15, 0 }
 0x991   : > { %11637 = vst [vmem:[#allocation37_spill] sm:$0xff] %v8284_v41  ;;  %v2823_v48 = vsel %vm1178_vm2, %v2665_v21, 0.0  ;;  %v2478_v21 = vrot.slane %v8205_v43, 6 }
 0x997   : > { %2806 = vadd.xlane.f32.xlu0 %v2805_v1  ;;  %v8307_v1 = vperm.slane %v2473_v7, 0  ;;  %v4021_v7 = vmul.f32 %v7488_v5, %v8320_v28 }
 0x999   : > { %4287 = vrot.lane.b32.xlu2 %v4014_v62, %s11631_s4  ;;  %v4015_v44 = vmul.f32 %v7437_v39, %v8307_v1  ;;  %v2475_v62 = vrot.slane %v8205_v43, 3  ;;  %v11643_v43 = vld [vmem:[#allocation15_spill] sm:$0xff] }
 0x99a   : > { %5021 = vrot.lane.b32.xlu1 %v8284_v41, %s11631_s4 }
 0x99b   : > { %v8314_v8 = vperm.slane %v2475_v62, 0  ;;  %v8334_v62 = vld [vmem:[%s11510_s23 + $0x80] sm:$0xff] }
 0x99c   : > { %v2666_v15 = vmul.f32 %v8334_v62, %v8224_v35 }
 0x99e   : > { %v2826_v40 = vsel %vm1178_vm2, %v2666_v15, 0.0 }
 0x99f   : > { %2815 = vadd.xlane.f32.xlu0 %v2814_v20  ;;  %v4020_v20 = vmul.f32 %v7482_v63, %v8314_v8 }
 0x9a2   : > { %3774 = vrot.lane.b32.xlu1 %v8284_v41, %s7025_s30 }
 0x9a7   : > { %2824 = vadd.xlane.f32.xlu0 %v2823_v48  ;;  %v4013_v48 = vmul.f32 %v7414_v27, %v8224_v35 }
 0x9aa   : > { %4289 = vrot.lane.b32.xlu1 %v4015_v44, %s11631_s4  ;;  %v8329_v44 = vperm.slane %v2478_v21, 0  ;;  %v8347_v21 = vpop.permute.xlu0 %4255 }
 0x9ab   : > { %11638 = vst [vmem:[#allocation38_spill] sm:$0xff] %v8347_v21  ;;  %v4022_v21 = vmul.f32 %v7465_v53, %v8320_v28 }
 0x9b2   : > { %4299 = vrot.lane.b32.xlu1 %v4020_v20, %s11631_s4  ;;  %v4026_v20 = vmul.f32 %v7513_v50, %v8329_v44  ;;  %v8356_v15 = vpop.xlane.xlu0 %2779 }
 0x9b3   : > { %11639 = vst [vmem:[#allocation39_spill] sm:$0xff] %v8356_v15 }
 0x9ba   : > { %4301 = vrot.lane.b32.xlu1 %v4021_v7, %s11631_s4  ;;  %v8345_v7 = vperm.slane %v2479_v9, 0 }
 0x9bb   : > { %4285 = vrot.lane.b32.xlu0 %v4013_v48, %s11631_s4  ;;  %v4016_v48 = vmul.f32 %v7442_v42, %v8307_v1 }
 0x9bc   : > { %v4027_v35 = vmul.f32 %v7607_v24, %v8345_v7  ;;  %v11644_v24 = vld [vmem:[#allocation22_spill] sm:$0xff] }
 0x9bd   : > { %v4028_v50 = vmul.f32 %v11644_v24, %v8345_v7 }
 0x9c2   : > { %2827 = vadd.xlane.f32.xlu2 %v2826_v40  ;;  %4311 = vrot.lane.b32.xlu1 %v4026_v20, %s11631_s4  ;;  %v2532_v40 = vperm.slane %v2474_v36, 0  ;;  %v8360_v20 = vpop.permute.xlu0 %4267  ;;  %v8368_v36 = vperm.slane %v2477_v32, 0 }
 0x9c3   : > { %3167 = vrot.lane.b32.xlu0 %v8284_v41, %s7026_s1  ;;  %11640 = vst [vmem:[#allocation40_spill] sm:$0xff] %v8360_v20  ;;  %v4019_v20 = vmul.f32 %v11643_v43, %v8314_v8 }
 0x9c4   : > { %v4017_v9 = vmul.f32 %v7419_v30, %v2532_v40 }
 0x9ca   : > { %4313 = vrot.lane.b32.xlu1 %v4027_v35, %s11631_s4  ;;  %v4018_v35 = vmul.f32 %v7471_v14, %v2532_v40 }
 0x9cb   : > { %4291 = vrot.lane.b32.xlu0 %v4016_v48, %s11631_s4  ;;  %v8371_v48 = vpop.permute.xlu0 %4269 }
 0x9cc   : > { %11641 = vst [vmem:[#allocation41_spill] sm:$0xff] %v8371_v48 }
 0x9d3   : > { %4293 = vrot.lane.b32.xlu0 %v4017_v9, %s11631_s4  ;;  %v11642_v9 = vld [vmem:[#allocation14_spill] sm:$0xff]  ;;  %v8382_v32 = vpop.permute.xlu0 %4279 }
 0x9d4   : > { %v4023_v15 = vmul.f32 %v11642_v9, %v8368_v36  ;;  %11645 = vst [vmem:[#allocation14_spill] sm:$0xff] %v8382_v32 }
 0x9da   : > { %5023 = vrot.lane.b32.xlu2 %v8284_v41, %s7027_s28 }
 0x9db   : > { %4303 = vrot.lane.b32.xlu0 %v4022_v21, %s11631_s4  ;;  %v8388_v21 = vld [vmem:[%s11510_s23 + $0xa0] sm:$0xff] }
 0x9dc   : > { %11646 = vst [vmem:[#allocation42_spill] sm:$0xff] %v8388_v21 }
 0x9e2   : > { %4295 = vrot.lane.b32.xlu2 %v4018_v35, %s11631_s4  ;;  %v2670_v35 = vmul.f32 %v8388_v21, %v2532_v40  ;;  %v11650_v21 = vld [vmem:[#allocation19_spill] sm:$0xff] }
 0x9e3   : > { %4305 = vrot.lane.b32.xlu0 %v4023_v15, %s11631_s4  ;;  %v11647_v15 = vld [vmem:[#allocation17_spill] sm:$0xff]  ;;  %v4025_v14 = vmul.f32 %v11650_v21, %v8329_v44 }
 0x9e4   : > { %v4024_v48 = vmul.f32 %v11647_v15, %v8368_v36  ;;  %v2838_v43 = vsel %vm1178_vm2, %v2670_v35, 0.0 }
 0x9ea   : > { %4297 = vrot.lane.b32.xlu2 %v4019_v20, %s11631_s4  ;;  %v8395_v20 = vpop.permute.xlu0 %4281 }
 0x9eb   : > { %4315 = vrot.lane.b32.xlu0 %v4028_v50, %s11631_s4  ;;  %11648 = vst [vmem:[#allocation43_spill] sm:$0xff] %v8395_v20  ;;  %v8400_v50 = vld [vmem:[%s11510_s23 + $0xb8] sm:$0xff] }
 0x9ec   : > { %11649 = vst [vmem:[#allocation44_spill] sm:$0xff] %v8400_v50  ;;  %v2673_v32 = vmul.f32 %v8400_v50, %v8314_v8 }
 0x9f2   : > { %4307 = vrot.lane.b32.xlu2 %v4024_v48, %s11631_s4  ;;  %v2847_v48 = vsel %vm1178_vm2, %v2673_v32, 0.0 }
 0x9f4   : > { %2839 = vadd.xlane.f32.xlu1 %v2838_v43  ;;  %v8413_v43 = vld [vmem:[%s11510_s23 + $0xd0] sm:$0xff] }
 0x9f5   : > { %11652 = vst [vmem:[#allocation46_spill] sm:$0xff] %v8413_v43  ;;  %v2676_v20 = vmul.f32 %v8413_v43, %v8368_v36 }
 0x9f7   : > { %v2856_v50 = vsel %vm1178_vm2, %v2676_v20, 0.0 }
 0x9fa   : > { %4309 = vrot.lane.b32.xlu2 %v4025_v14, %s11631_s4  ;;  %v8408_v35 = vpop.xlane.xlu0 %2788  ;;  %v8423_v14 = vld [vmem:[%s11510_s23 + $0xe8] sm:$0xff] }
 0x9fb   : > { %11651 = vst [vmem:[#allocation45_spill] sm:$0xff] %v8408_v35  ;;  %v2679_v32 = vmul.f32 %v8423_v14, %v8329_v44  ;;  %v8431_v35 = vld [vmem:[%s11510_s23 + $0x90] sm:$0xff] }
 0x9fc   : > { %2848 = vadd.xlane.f32.xlu1 %v2847_v48  ;;  %11654 = vst [vmem:[#allocation48_spill] sm:$0xff] %v8423_v14  ;;  %v2668_v20 = vmul.f32 %v8431_v35, %v8307_v1  ;;  %v8448_v14 = vadd.f32 %v8067_v23, %v8141_v11  ;;  %v8466_v11 = vld [vmem:[%s11510_s23 + $0xc0] sm:$0xff] }
 0x9fd   : > { %v2865_v48 = vsel %vm1178_vm2, %v2679_v32, 0.0  ;;  %11655 = vst [vmem:[#allocation49_spill] sm:$0xff] %v8431_v35  ;;  %v8443_v32 = vld [vmem:[%s11510_s23 + $0xa8] sm:$0xff] }
 0x9fe   : > { %v2832_v43 = vsel %vm1178_vm2, %v2668_v20, 0.0 }
 0xa02   : > { %v8418_v15 = vpop.xlane.xlu0 %2797 }
 0xa03   : > { %11653 = vst [vmem:[#allocation47_spill] sm:$0xff] %v8418_v15 }
 0xa04   : > { %2857 = vadd.xlane.f32.xlu1 %v2856_v50  ;;  %v8435_v50 = vpop.permute.xlu1 %4253 }
 0xa05   : > { %11656 = vst [vmem:[#allocation50_spill] sm:$0xff] %v8435_v50 }
 0xa0a   : > { %v8437_v15 = vpop.xlane.xlu0 %2806 }
 0xa0b   : > { %11657 = vst [vmem:[#allocation51_spill] sm:$0xff] %v8437_v15 }
 0xa0c   : > { %2866 = vadd.xlane.f32.xlu1 %v2865_v48  ;;  %v2671_v48 = vmul.f32 %v8443_v32, %v2532_v40  ;;  %v8450_v21 = vpop.permute.xlu1 %4259  ;;  %v2538_v40 = vperm.slane %v8448_v14, 0 }
 0xa0d   : > { %11658 = vst [vmem:[#allocation52_spill] sm:$0xff] %v8450_v21 }
 0xa0e   : > { %v2841_v15 = vsel %vm1178_vm2, %v2671_v48, 0.0  ;;  %v4030_v48 = vmul.f32 %v7409_v25, %v2538_v40 }
 0xa12   : > { %v8452_v35 = vpop.xlane.xlu0 %2815 }
 0xa13   : > { %11659 = vst [vmem:[#allocation53_spill] sm:$0xff] %v8452_v35  ;;  %v2674_v35 = vmul.f32 %v8466_v11, %v8320_v28 }
 0xa14   : > { %v8473_v50 = vpop.permute.xlu1 %4263 }
 0xa15   : > { %2833 = vadd.xlane.f32.xlu0 %v2832_v43  ;;  %v8458_v43 = vld [vmem:[%s11510_s23 + $0x98] sm:$0xff]  ;;  %v2850_v21 = vsel %vm1178_vm2, %v2674_v35, 0.0  ;;  %11661 = vst [vmem:[#allocation55_spill] sm:$0xff] %v8473_v50 }
 0xa16   : > { %11660 = vst [vmem:[#allocation54_spill] sm:$0xff] %v8458_v43  ;;  %v2669_v20 = vmul.f32 %v8458_v43, %v8307_v1  ;;  %v8481_v43 = vld [vmem:[%s11510_s23 + $0xb0] sm:$0xff] }
 0xa17   : > { %11663 = vst [vmem:[#allocation57_spill] sm:$0xff] %v8481_v43 }
 0xa1a   : > { %v8475_v1 = vpop.xlane.xlu0 %2824 }
 0xa1b   : > { %11662 = vst [vmem:[#allocation56_spill] sm:$0xff] %v8475_v1 }
 0xa1c   : > { %v8503_v25 = vpop.permute.xlu1 %4265 }
 0xa1d   : > { %2842 = vadd.xlane.f32.xlu0 %v2841_v15  ;;  %v2835_v15 = vsel %vm1178_vm2, %v2669_v20, 0.0  ;;  %v2672_v20 = vmul.f32 %v8481_v43, %v8314_v8  ;;  %v8499_v8 = vld [vmem:[%s11510_s23 + $0xc8] sm:$0xff]  ;;  %11666 = vst [vmem:[#allocation60_spill] sm:$0xff] %v8503_v25 }
 0xa1e   : > { %11665 = vst [vmem:[#allocation59_spill] sm:$0xff] %v8499_v8  ;;  %v2675_v50 = vmul.f32 %v8499_v8, %v8320_v28  ;;  %v8518_v28 = vld [vmem:[%s11510_s23 + $0xe0] sm:$0xff]  ;;  %v2683_v8 = vmul.f32 %v8078_v17, %v2538_v40 }
 0xa1f   : > { %v2678_v25 = vmul.f32 %v8518_v28, %v8329_v44 }
 0xa23   : > { %2836 = vadd.xlane.f32.xlu2 %v2835_v15  ;;  %v8488_v15 = vld [vmem:[%s11510_s23 + $0xd8] sm:$0xff] }
 0xa24   : > { %v2677_v35 = vmul.f32 %v8488_v15, %v8368_v36  ;;  %v8508_v36 = vld [vmem:[%s11510_s23 + $0xf0] sm:$0xff]  ;;  %v8523_v43 = vpop.permute.xlu1 %4275 }
 0xa25   : > { %2851 = vadd.xlane.f32.xlu0 %v2850_v21  ;;  %4319 = vrot.lane.b32.xlu1 %v4030_v48, %s11631_s4  ;;  %v2844_v21 = vsel %vm1178_vm2, %v2672_v20, 0.0  ;;  %v2680_v20 = vmul.f32 %v8508_v36, %v8345_v7  ;;  %11667 = vst [vmem:[#allocation61_spill] sm:$0xff] %v8523_v43 }
 0xa26   : > { %v2859_v48 = vsel %vm1178_vm2, %v2677_v35, 0.0  ;;  %v2853_v35 = vsel %vm1178_vm2, %v2675_v50, 0.0  ;;  %v2862_v50 = vsel %vm1178_vm2, %v2678_v25, 0.0  ;;  %v2480_v25 = vrot.slane %v8448_v14, 1 }
 0xa2b   : > { %2845 = vadd.xlane.f32.xlu2 %v2844_v21  ;;  %v2868_v21 = vsel %vm1178_vm2, %v2680_v20, 0.0  ;;  %v2877_v20 = vsel %vm1178_vm2, %v2683_v8, 0.0  ;;  %v2682_v8 = vmul.f32 %v8119_v33, %v2538_v40 }
 0xa2d   : > { %2860 = vadd.xlane.f32.xlu0 %v2859_v48  ;;  %v8494_v1 = vpop.permute.xlu0 %4285 }
 0xa2e   : > { %11664 = vst [vmem:[#allocation58_spill] sm:$0xff] %v8494_v1 }
 0xa33   : > { %2854 = vadd.xlane.f32.xlu2 %v2853_v35  ;;  %v8532_v35 = vld [vmem:[%s11510_s23 + $0xf8] sm:$0xff] }
 0xa34   : > { %v2681_v44 = vmul.f32 %v8532_v35, %v8345_v7  ;;  %v2481_v7 = vrot.slane %v8448_v14, 2 }
 0xa35   : > { %2869 = vadd.xlane.f32.xlu0 %v2868_v21  ;;  %v3168_v48 = vpop.permute.xlu0 %3167 }
 0xa36   : > { %v3280_v1 = vsel %vm1178_vm2, %v3168_v48, 0  ;;  %v2871_v17 = vsel %vm1178_vm2, %v2681_v44, 0.0  ;;  %v8543_v48 = vperm.slane %v2480_v25, 0  ;;  %v8550_v44 = vperm.slane %v2481_v7, 0 }
 0xa37   : > { %3289 = vmatpush.bf16.xpose.msra.mxu1 %v3280_v1  ;;  %v8537_v1 = vpop.permute.xlu1 %4277  ;;  %v2483_v25 = vrot.slane %v8448_v14, 4 }
 0xa38   : > { %11668 = vst [vmem:[#allocation62_spill] sm:$0xff] %v8537_v1  ;;  %v4033_v33 = vmul.f32 %v7454_v47, %v8550_v44 }
 0xa3b   : > { %2863 = vadd.xlane.f32.xlu2 %v2862_v50  ;;  %v2874_v50 = vsel %vm1178_vm2, %v2682_v8, 0.0  ;;  %v4029_v8 = vmul.f32 %v7405_v22, %v2538_v40 }
 0xa3d   : > { %2878 = vadd.xlane.f32.xlu0 %v2877_v20  ;;  %v4031_v20 = vmul.f32 %v7421_v31, %v8543_v48 }
 0xa3e   : > { %6490 = vmatmul.msk.bf16.vlgmr.msra.gmra.mxu1 %vm1178_vm2, %v8284_v41  ;;  %v2482_v41 = vrot.slane %v8448_v14, 3 }
 0xa3f   : > { %v8541_v21 = vpop.xlane.xlu1 %2785 }
 0xa40   : > { %11669 = vst [vmem:[#allocation63_spill] sm:$0xff] %v8541_v21  ;;  %v2541_v21 = vperm.slane %v2482_v41, 0  ;;  %v4034_v41 = vmul.f32 %v7460_v6, %v8550_v44 }
 0xa43   : > { %2872 = vadd.xlane.f32.xlu2 %v2871_v17 }
 0xa47   : > { %v8552_v17 = vpop.xlane.xlu1 %2794 }
 0xa48   : > { %11670 = vst [vmem:[#allocation64_spill] sm:$0xff] %v8552_v17  ;;  %v2484_v17 = vrot.slane %v8448_v14, 5 }
 0xa4a   : > { %v8572_v40 = vperm.slane %v2484_v17, 0 }
 0xa4f   : > { %2875 = vadd.xlane.f32.xlu1 %v2874_v50  ;;  %v8560_v50 = vperm.slane %v2483_v25, 0  ;;  %v4036_v25 = vmul.f32 %v7433_v37, %v2541_v21 }
 0xa51   : > { %4321 = vrot.lane.b32.xlu0 %v4031_v20, %s11631_s4  ;;  %v8563_v20 = vpop.xlane.xlu1 %2803  ;;  %v4038_v7 = vmul.f32 %v7486_v3, %v8560_v50 }
 0xa52   : > { %11671 = vst [vmem:[#allocation65_spill] sm:$0xff] %v8563_v20  ;;  %v2486_v20 = vrot.slane %v8448_v14, 7 }
 0xa54   : > { %v8585_v17 = vperm.slane %v2486_v20, 0 }
 0xa56   : > { %v4044_v43 = vmul.f32 %v7601_v46, %v8585_v17 }
 0xa59   : > { %4325 = vrot.lane.b32.xlu0 %v4033_v33, %s11631_s4  ;;  %v4032_v33 = vmul.f32 %v7417_v29, %v8543_v48  ;;  %v8579_v1 = vpop.xlane.xlu1 %2812 }
 0xa5a   : > { %11672 = vst [vmem:[#allocation66_spill] sm:$0xff] %v8579_v1 }
 0xa5b   : > { %4317 = vrot.lane.b32.xlu2 %v4029_v8, %s11631_s4  ;;  %v4039_v8 = vmul.f32 %v7494_v12, %v8572_v40 }
 0xa61   : > { %4335 = vrot.lane.b32.xlu0 %v4038_v7, %s11631_s4  ;;  %v4037_v7 = vmul.f32 %v7450_v45, %v8560_v50  ;;  %v8595_v1 = vpop.xlane.xlu1 %2821 }
 0xa62   : > { %11673 = vst [vmem:[#allocation67_spill] sm:$0xff] %v8595_v1 }
 0xa63   : > { %4323 = vrot.lane.b32.xlu2 %v4032_v33, %s11631_s4  ;;  %v2485_v33 = vrot.slane %v8448_v14, 6 }
 0xa68   : > { %4331 = vrot.lane.b32.xlu1 %v4036_v25, %s11631_s4  ;;  %v4035_v25 = vmul.f32 %v7475_v58, %v2541_v21 }
 0xa69   : > { %4337 = vrot.lane.b32.xlu0 %v4039_v8, %s11631_s4  ;;  %v2544_v8 = vperm.slane %v2485_v33, 0  ;;  %v8603_v12 = vpop.xlane.xlu1 %2830 }
 0xa6a   : > { %11674 = vst [vmem:[#allocation68_spill] sm:$0xff] %v8603_v12 }
 0xa6b   : > { %4327 = vrot.lane.b32.xlu2 %v4034_v41, %s11631_s4  ;;  %v4042_v20 = vmul.f32 %v7597_v56, %v2544_v8  ;;  %v4040_v41 = vmul.f32 %v7499_v16, %v8572_v40  ;;  %v4041_v33 = vmul.f32 %v7484_v10, %v2544_v8 }
 0xa70   : > { %4333 = vrot.lane.b32.xlu1 %v4037_v7, %s11631_s4  ;;  %v8605_v7 = vpop.xlane.xlu2 %2782 }
 0xa71   : > { %4347 = vrot.lane.b32.xlu0 %v4044_v43, %s11631_s4  ;;  %11675 = vst [vmem:[#allocation69_spill] sm:$0xff] %v8605_v7  ;;  %v4043_v43 = vmul.f32 %v7599_v52, %v8585_v17  ;;  %v2686_v7 = vmul.f32 %v8174_v60, %v8550_v44  ;;  %v2692_v60 = vmul.f32 %v8210_v0, %v8572_v40 }
 0xa73   : > { %4329 = vrot.lane.b32.xlu2 %v4035_v25, %s11631_s4  ;;  %v8612_v25 = vpop.permute.xlu1 %5021  ;;  %v2886_v52 = vsel %vm1178_vm2, %v2686_v7, 0.0 }
 0xa74   : > { %11676 = vst [vmem:[#allocation70_spill] sm:$0xff] %v8612_v25 }
 0xa78   : > { %4343 = vrot.lane.b32.xlu1 %v4042_v20, %s11631_s4  ;;  %v8614_v20 = vpop.permute.xlu2 %4257 }
 0xa79   : > { %11677 = vst [vmem:[#allocation71_spill] sm:$0xff] %v8614_v20 }
 0xa7b   : > { %4339 = vrot.lane.b32.xlu2 %v4040_v41, %s11631_s4  ;;  %v8616_v1 = vpop.permute.xlu1 %3774 }
 0xa80   : > { %4345 = vrot.lane.b32.xlu1 %v4043_v43, %s11631_s4  ;;  %v8618_v41 = vpop.permute.xlu2 %4261 }
 0xa81   : > { %11678 = vst [vmem:[#allocation72_spill] sm:$0xff] %v8618_v41  ;;  %v2685_v41 = vmul.f32 %v8253_v18, %v8543_v48 }
 0xa83   : > { %4341 = vrot.lane.b32.xlu2 %v4041_v33, %s11631_s4  ;;  %v8622_v12 = vpop.permute.xlu1 %4289  ;;  %v2689_v33 = vmul.f32 %v8191_v13, %v2541_v21  ;;  %v2883_v7 = vsel %vm1178_vm2, %v2685_v41, 0.0 }
 0xa84   : > { %11679 = vst [vmem:[#allocation73_spill] sm:$0xff] %v8622_v12  ;;  %v8637_v12 = vpop.permute.xlu0 %4291 }
 0xa85   : > { %v2895_v25 = vsel %vm1178_vm2, %v2689_v33, 0.0  ;;  %11683 = vst [vmem:[#allocation77_spill] sm:$0xff] %v8637_v12  ;;  %v2904_v33 = vsel %vm1178_vm2, %v2692_v60, 0.0 }
 0xa88   : > { %v8625_v43 = vpop.permute.xlu2 %4271 }
 0xa89   : > { %11680 = vst [vmem:[#allocation74_spill] sm:$0xff] %v8625_v43  ;;  %v2687_v43 = vmul.f32 %v8164_v2, %v8550_v44  ;;  %v2690_v2 = vmul.f32 %v8180_v49, %v8560_v50 }
 0xa8b   : > { %v8629_v56 = vpop.permute.xlu1 %4299  ;;  %v2889_v60 = vsel %vm1178_vm2, %v2687_v43, 0.0  ;;  %v8671_v43 = vadd.f32 %v8067_v23, %v8146_v57 }
 0xa8c   : > { %11681 = vst [vmem:[#allocation75_spill] sm:$0xff] %v8629_v56  ;;  %v2695_v56 = vmul.f32 %v8229_v59, %v2544_v8 }
 0xa8e   : > { %v2913_v41 = vsel %vm1178_vm2, %v2695_v56, 0.0  ;;  %v2898_v56 = vsel %vm1178_vm2, %v2690_v2, 0.0 }
 0xa90   : > { %v8633_v20 = vpop.permute.xlu2 %4273 }
 0xa91   : > { %11682 = vst [vmem:[#allocation76_spill] sm:$0xff] %v8633_v20  ;;  %v2688_v20 = vmul.f32 %v8265_v54, %v2541_v21  ;;  %v2691_v54 = vmul.f32 %v8275_v26, %v8560_v50  ;;  %v2694_v26 = vmul.f32 %v8292_v19, %v2544_v8  ;;  %v2697_v8 = vmul.f32 %v8303_v51, %v8585_v17 }
 0xa93   : > { %v8644_v18 = vpop.permute.xlu1 %4301  ;;  %v2910_v50 = vsel %vm1178_vm2, %v2694_v26, 0.0 }
 0xa94   : > { %11684 = vst [vmem:[#allocation78_spill] sm:$0xff] %v8644_v18 }
 0xa98   : > { %v8650_v12 = vpop.permute.xlu2 %4283 }
 0xa99   : > { %11685 = vst [vmem:[#allocation79_spill] sm:$0xff] %v8650_v12  ;;  %v2489_v12 = vrot.slane %v8671_v43, 3 }
 0xa9b   : > { %2887 = vadd.xlane.f32.xlu0 %v2886_v52  ;;  %v2684_v52 = vmul.f32 %v8153_v55, %v8543_v48  ;;  %v8652_v55 = vpop.permute.xlu0 %4293  ;;  %v2892_v48 = vsel %vm1178_vm2, %v2688_v20, 0.0  ;;  %v8659_v21 = vpop.permute.xlu1 %4311 }
 0xa9c   : > { %11686 = vst [vmem:[#allocation80_spill] sm:$0xff] %v8652_v55 }
 0xa9d   : > { %11687 = vst [vmem:[#allocation81_spill] sm:$0xff] %v8659_v21 }
 0xaa0   : > { %v8663_v44 = vpop.xlane.xlu2 %2791 }
 0xaa1   : > { %11688 = vst [vmem:[#allocation82_spill] sm:$0xff] %v8663_v44 }
 0xaa3   : > { %2896 = vadd.xlane.f32.xlu0 %v2895_v25  ;;  %v2880_v25 = vsel %vm1178_vm2, %v2684_v52, 0.0  ;;  %v2901_v52 = vsel %vm1178_vm2, %v2691_v54, 0.0  ;;  %v8666_v20 = vpop.permute.xlu0 %4303  ;;  %v8676_v49 = vpop.permute.xlu1 %4313  ;;  %v2919_v54 = vsel %vm1178_vm2, %v2697_v8, 0.0 }
 0xaa4   : > { %11689 = vst [vmem:[#allocation83_spill] sm:$0xff] %v8666_v20 }
 0xaa5   : > { %11690 = vst [vmem:[#allocation84_spill] sm:$0xff] %v8676_v49 }
 0xaaa   : > { %2884 = vadd.xlane.f32.xlu1 %v2883_v7  ;;  %v2693_v7 = vmul.f32 %v8198_v4, %v8572_v40  ;;  %v2696_v40 = vmul.f32 %v8217_v38, %v8585_v17 }
 0xaab   : > { %2905 = vadd.xlane.f32.xlu0 %v2904_v33  ;;  %v2546_v33 = vperm.slane %v8671_v43, 0 }
 0xaac   : > { %2881 = vadd.xlane.f32.xlu2 %v2880_v25  ;;  %v8680_v25 = vpop.xlane.xlu2 %2800  ;;  %v2916_v2 = vsel %vm1178_vm2, %v2696_v40, 0.0 }
 0xaad   : > { %11691 = vst [vmem:[#allocation85_spill] sm:$0xff] %v8680_v25  ;;  %v4046_v57 = vmul.f32 %v7425_v34, %v2546_v33  ;;  %v2699_v26 = vmul.f32 %v8236_v61, %v2546_v33  ;;  %v4045_v40 = vmul.f32 %v7414_v27, %v2546_v33  ;;  %v2453_v61 = vpack.c.bf16 %v8671_v43, %v8671_v43 }
 0xab2   : > { %2893 = vadd.xlane.f32.xlu1 %v2892_v48  ;;  %v2907_v48 = vsel %vm1178_vm2, %v2693_v7, 0.0 }
 0xab3   : > { %2914 = vadd.xlane.f32.xlu0 %v2913_v41  ;;  %v8683_v41 = vpop.permute.xlu0 %4305 }
 0xab4   : > { %2890 = vadd.xlane.f32.xlu2 %v2889_v60  ;;  %11692 = vst [vmem:[#allocation86_spill] sm:$0xff] %v8683_v41  ;;  %v8691_v60 = vpop.xlane.xlu1 %2839 }
 0xab5   : > { %11693 = vst [vmem:[#allocation87_spill] sm:$0xff] %v8691_v60 }
 0xaba   : > { %2902 = vadd.xlane.f32.xlu1 %v2901_v52  ;;  %v8695_v52 = vpop.xlane.xlu2 %2809 }
 0xabb   : > { %11694 = vst [vmem:[#allocation88_spill] sm:$0xff] %v8695_v52 }
 0xabc   : > { %2899 = vadd.xlane.f32.xlu2 %v2898_v56  ;;  %v8697_v56 = vpop.permute.xlu0 %4315  ;;  %v8700_v7 = vpop.xlane.xlu1 %2848 }
 0xabd   : > { %11695 = vst [vmem:[#allocation89_spill] sm:$0xff] %v8697_v56 }
 0xabe   : > { %11696 = vst [vmem:[#allocation90_spill] sm:$0xff] %v8700_v7  ;;  %v2492_v7 = vrot.slane %v8671_v43, 6 }
 0xac2   : > { %2911 = vadd.xlane.f32.xlu1 %v2910_v50  ;;  %v2925_v50 = vsel %vm1178_vm2, %v2699_v26, 0.0  ;;  %v8703_v38 = vpop.xlane.xlu2 %2818  ;;  %v3299_v26 = vunpack.c.l.b16 %v2453_v61 }
 0xac3   : > { %11697 = vst [vmem:[#allocation91_spill] sm:$0xff] %v8703_v38 }
 0xac4   : > { %2908 = vadd.xlane.f32.xlu2 %v2907_v48  ;;  %v8705_v17 = vpop.xlane.xlu0 %2833  ;;  %v8707_v48 = vpop.xlane.xlu1 %2857 }
 0xac5   : > { %11698 = vst [vmem:[#allocation92_spill] sm:$0xff] %v8705_v17 }
 0xac6   : > { %11699 = vst [vmem:[#allocation93_spill] sm:$0xff] %v8707_v48 }
 0xac7   : > { %4351 = vrot.lane.b32.xlu0 %v4046_v57, %s11631_s4 }
 0xaca   : > { %2920 = vadd.xlane.f32.xlu1 %v2919_v54  ;;  %v8709_v57 = vpop.permute.xlu2 %4287  ;;  %v2487_v54 = vrot.slane %v8671_v43, 1 }
 0xacb   : > { %11700 = vst [vmem:[#allocation94_spill] sm:$0xff] %v8709_v57 }
 0xacc   : > { %2917 = vadd.xlane.f32.xlu2 %v2916_v2  ;;  %v8711_v8 = vpop.xlane.xlu0 %2842  ;;  %v2452_v2 = vpack.c.bf16 %v8448_v14, %v8448_v14  ;;  %v8722_v38 = vpop.xlane.xlu1 %2866  ;;  %v2698_v14 = vmul.f32 %v8334_v62, %v2546_v33 }
 0xacd   : > { %11701 = vst [vmem:[#allocation95_spill] sm:$0xff] %v8711_v8  ;;  %v11713_v8 = vld [vmem:[#allocation18_spill] sm:$0xff] }
 0xace   : > { %11702 = vst [vmem:[#allocation96_spill] sm:$0xff] %v8722_v38  ;;  %v3298_v52 = vunpack.c.l.b16 %v2452_v2  ;;  %v2488_v2 = vrot.slane %v8671_v43, 2 }
 0xad0   : > { %v8726_v44 = vpack.c.b16 %v3299_v26, %v3298_v52  ;;  %v2922_v52 = vsel %vm1178_vm2, %v2698_v14, 0.0  ;;  %v8754_v33 = vperm.slane %v2488_v2, 0 }
 0xad2   : > { %v8724_v25 = vpop.xlane.xlu2 %2827  ;;  %11704 = vst [vmem:[#allocation98_spill] sm:$0xff] %v8726_v44 }
 0xad3   : > { %11703 = vst [vmem:[#allocation97_spill] sm:$0xff] %v8724_v25 }
 0xad4   : > { %2926 = vadd.xlane.f32.xlu2 %v2925_v50  ;;  %v8720_v50 = vperm.slane %v2487_v54, 0  ;;  %v8731_v48 = vpop.xlane.xlu0 %2851  ;;  %v8739_v61 = vpop.permute.xlu1 %4319 }
 0xad5   : > { %11705 = vst [vmem:[#allocation99_spill] sm:$0xff] %v8731_v48  ;;  %v4049_v48 = vmul.f32 %v7419_v30, %v8754_v33 }
 0xad6   : > { %v4047_v20 = vmul.f32 %v7437_v39, %v8720_v50  ;;  %11706 = vst [vmem:[#allocation100_spill] sm:$0xff] %v8739_v61  ;;  %v4048_v54 = vmul.f32 %v7442_v42, %v8720_v50 }
 0xada   : > { %v8745_v26 = vpop.permute.xlu2 %5023 }
 0xadb   : > { %11707 = vst [vmem:[#allocation101_spill] sm:$0xff] %v8745_v26 }
 0xae3   : > { %4349 = vrot.lane.b32.xlu1 %v4045_v40, %s11631_s4  ;;  %v8737_v40 = vperm.slane %v2489_v12, 0  ;;  %v8752_v12 = vpop.xlane.xlu0 %2860 }
 0xae4   : > { %11708 = vst [vmem:[#allocation102_spill] sm:$0xff] %v8752_v12  ;;  %v2491_v12 = vrot.slane %v8671_v43, 5 }
 0xae5   : > { %v4052_v38 = vmul.f32 %v7482_v63, %v8737_v40 }
 0xaeb   : > { %3301 = vrot.lane.b32.xlu1 %v8726_v44, %s7026_s1  ;;  %v8771_v2 = vpop.xlane.xlu0 %2869 }
 0xaec   : > { %4353 = vrot.lane.b32.xlu2 %v4047_v20, %s11631_s4  ;;  %v2490_v20 = vrot.slane %v8671_v43, 4  ;;  %11711 = vst [vmem:[#allocation105_spill] sm:$0xff] %v8771_v2 }
 0xaee   : > { %v8756_v14 = vperm.slane %v2490_v20, 0 }
 0xaf0   : > { %v4053_v60 = vmul.f32 %v7488_v5, %v8756_v14 }
 0xaf1   : > { %2923 = vadd.xlane.f32.xlu0 %v2922_v52  ;;  %v8758_v52 = vpop.xlane.xlu1 %2875 }
 0xaf2   : > { %11709 = vst [vmem:[#allocation103_spill] sm:$0xff] %v8758_v52  ;;  %v4054_v52 = vmul.f32 %v7465_v53, %v8756_v14 }
 0xaf3   : > { %4355 = vrot.lane.b32.xlu1 %v4048_v54, %s11631_s4  ;;  %v8766_v54 = vpop.permute.xlu2 %4295 }
 0xaf4   : > { %4363 = vrot.lane.b32.xlu2 %v4052_v38, %s11631_s4  ;;  %11710 = vst [vmem:[#allocation104_spill] sm:$0xff] %v8766_v54  ;;  %v8769_v38 = vperm.slane %v2492_v7, 0  ;;  %v8791_v54 = vpop.xlane.xlu0 %2878 }
 0xaf5   : > { %11715 = vst [vmem:[#allocation107_spill] sm:$0xff] %v8791_v54 }
 0xaf6   : > { %v4058_v17 = vmul.f32 %v11713_v8, %v8769_v38 }
 0xaf9   : > { %v8773_v20 = vpop.permute.xlu1 %4331 }
 0xafa   : > { %11712 = vst [vmem:[#allocation106_spill] sm:$0xff] %v8773_v20 }
 0xafb   : > { %4357 = vrot.lane.b32.xlu1 %v4049_v48, %s11631_s4  ;;  %v2493_v48 = vrot.slane %v8671_v43, 7  ;;  %v8787_v7 = vpop.permute.xlu2 %4297 }
 0xafc   : > { %4365 = vrot.lane.b32.xlu2 %v4053_v60, %s11631_s4  ;;  %v8785_v60 = vperm.slane %v2491_v12, 0  ;;  %11714 = vst [vmem:[#allocation18_spill] sm:$0xff] %v8787_v7  ;;  %v8805_v12 = vpop.permute.xlu0 %4321 }
 0xafd   : > { %v8789_v20 = vperm.slane %v2493_v48, 0  ;;  %11719 = vst [vmem:[#allocation109_spill] sm:$0xff] %v8805_v12 }
 0xafe   : > { %v4055_v43 = vmul.f32 %v11642_v9, %v8785_v60 }
 0xaff   : > { %v4060_v48 = vmul.f32 %v11644_v24, %v8789_v20 }
 0xb01   : > { %v8793_v2 = vpop.permute.xlu1 %4333 }
 0xb02   : > { %11716 = vst [vmem:[#allocation108_spill] sm:$0xff] %v8793_v2  ;;  %v11723_v2 = vld [vmem:[#allocation13_spill] sm:$0xff] }
 0xb03   : > { %4367 = vrot.lane.b32.xlu1 %v4054_v52, %s11631_s4  ;;  %v11717_v52 = vld [vmem:[#allocation23_spill] sm:$0xff]  ;;  %v4050_v56 = vmul.f32 %v11723_v2, %v8754_v33 }
 0xb04   : > { %4375 = vrot.lane.b32.xlu2 %v4058_v17, %s11631_s4  ;;  %v4059_v25 = vmul.f32 %v11717_v52, %v8789_v20  ;;  %v8803_v17 = vpop.permute.xlu2 %4307 }
 0xb05   : > { %3799 = vrot.lane.b32.xlu0 %v8726_v44, %s7025_s30  ;;  %11718 = vst [vmem:[#allocation23_spill] sm:$0xff] %v8803_v17 }
 0xb09   : > { %v8809_v54 = vpop.permute.xlu1 %4343 }
 0xb0a   : > { %11720 = vst [vmem:[#allocation110_spill] sm:$0xff] %v8809_v54  ;;  %v11726_v54 = vld [vmem:[#allocation15_spill] sm:$0xff] }
 0xb0b   : > { %4369 = vrot.lane.b32.xlu1 %v4055_v43, %s11631_s4  ;;  %v4051_v41 = vmul.f32 %v11726_v54, %v8737_v40 }
 0xb0c   : > { %4377 = vrot.lane.b32.xlu2 %v4059_v25, %s11631_s4  ;;  %v8814_v43 = vpop.permute.xlu2 %4309  ;;  %v8816_v25 = vpop.permute.xlu0 %4325 }
 0xb0d   : > { %5143 = vrot.lane.b32.xlu0 %v8726_v44, %s7027_s28  ;;  %11721 = vst [vmem:[#allocation111_spill] sm:$0xff] %v8814_v43 }
 0xb0e   : > { %11722 = vst [vmem:[#allocation112_spill] sm:$0xff] %v8816_v25  ;;  %v11729_v25 = vld [vmem:[#allocation17_spill] sm:$0xff] }
 0xb0f   : > { %v4056_v43 = vmul.f32 %v11729_v25, %v8785_v60 }
 0xb11   : > { %v8820_v17 = vpop.permute.xlu1 %4345 }
 0xb12   : > { %11724 = vst [vmem:[#allocation13_spill] sm:$0xff] %v8820_v17 }
 0xb13   : > { %4379 = vrot.lane.b32.xlu1 %v4060_v48, %s11631_s4 }
 0xb14   : > { %v8823_v12 = vpop.xlane.xlu2 %2836  ;;  %v8827_v48 = vpop.permute.xlu0 %4335 }
 0xb15   : > { %5141 = vrot.lane.b32.xlu0 %v8726_v44, %s11631_s4  ;;  %11725 = vst [vmem:[#allocation113_spill] sm:$0xff] %v8823_v12  ;;  %v11733_v12 = vld [vmem:[#allocation42_spill] sm:$0xff] }
 0xb16   : > { %11727 = vst [vmem:[#allocation15_spill] sm:$0xff] %v8827_v48  ;;  %v2702_v49 = vmul.f32 %v11733_v12, %v8754_v33  ;;  %v11734_v48 = vld [vmem:[#allocation19_spill] sm:$0xff] }
 0xb17   : > { %v4057_v57 = vmul.f32 %v11734_v48, %v8769_v38 }
 0xb1c   : > { %v8834_v7 = vpop.xlane.xlu2 %2845  ;;  %v8837_v17 = vpop.permute.xlu0 %4337 }
 0xb1d   : > { %4359 = vrot.lane.b32.xlu0 %v4050_v56, %s11631_s4  ;;  %v8829_v61 = vpop.xlane.xlu1 %2884  ;;  %11730 = vst [vmem:[#allocation17_spill] sm:$0xff] %v8834_v7  ;;  %v11736_v7 = vld [vmem:[#allocation44_spill] sm:$0xff] }
 0xb1e   : > { %11728 = vst [vmem:[#allocation114_spill] sm:$0xff] %v8829_v61  ;;  %v2934_v61 = vsel %vm1178_vm2, %v2702_v49, 0.0 }
 0xb1f   : > { %11731 = vst [vmem:[#allocation115_spill] sm:$0xff] %v8837_v17  ;;  %v11737_v17 = vld [vmem:[#allocation49_spill] sm:$0xff] }
 0xb20   : > { %v2700_v21 = vmul.f32 %v11737_v17, %v8720_v50 }
 0xb22   : > { %v2928_v55 = vsel %vm1178_vm2, %v2700_v21, 0.0 }
 0xb25   : > { %4361 = vrot.lane.b32.xlu0 %v4051_v41, %s11631_s4  ;;  %v8839_v56 = vpop.xlane.xlu1 %2893  ;;  %v8847_v41 = vpop.xlane.xlu2 %2854 }
 0xb26   : > { %11732 = vst [vmem:[#allocation116_spill] sm:$0xff] %v8839_v56  ;;  %v8853_v56 = vpop.permute.xlu0 %4347 }
 0xb27   : > { %11735 = vst [vmem:[#allocation42_spill] sm:$0xff] %v8847_v41 }
 0xb28   : > { %11738 = vst [vmem:[#allocation44_spill] sm:$0xff] %v8853_v56 }
 0xb2d   : > { %4371 = vrot.lane.b32.xlu0 %v4056_v43, %s11631_s4  ;;  %v2705_v43 = vmul.f32 %v11736_v7, %v8737_v40  ;;  %v8855_v18 = vpop.xlane.xlu1 %2902  ;;  %v8859_v49 = vpop.xlane.xlu2 %2863  ;;  %v2703_v7 = vmul.f32 %v8443_v32, %v8754_v33 }
 0xb2e   : > { %11739 = vst [vmem:[#allocation49_spill] sm:$0xff] %v8855_v18  ;;  %v8865_v41 = vpop.xlane.xlu0 %2887 }
 0xb2f   : > { %v2943_v12 = vsel %vm1178_vm2, %v2705_v43, 0.0  ;;  %11740 = vst [vmem:[#allocation117_spill] sm:$0xff] %v8859_v49  ;;  %v2937_v43 = vsel %vm1178_vm2, %v2703_v7, 0.0 }
 0xb35   : > { %2935 = vadd.xlane.f32.xlu2 %v2934_v61  ;;  %4373 = vrot.lane.b32.xlu0 %v4057_v57, %s11631_s4  ;;  %v11741_v57 = vld [vmem:[#allocation46_spill] sm:$0xff]  ;;  %v8867_v17 = vpop.xlane.xlu1 %2911 }
 0xb36   : > { %v2708_v61 = vmul.f32 %v11741_v57, %v8785_v60  ;;  %11742 = vst [vmem:[#allocation46_spill] sm:$0xff] %v8865_v41  ;;  %v8875_v57 = vpop.xlane.xlu2 %2872  ;;  %v8877_v18 = vpop.xlane.xlu0 %2896 }
 0xb37   : > { %11743 = vst [vmem:[#allocation118_spill] sm:$0xff] %v8867_v17 }
 0xb38   : > { %v2952_v56 = vsel %vm1178_vm2, %v2708_v61, 0.0  ;;  %11746 = vst [vmem:[#allocation119_spill] sm:$0xff] %v8877_v18 }
 0xb3d   : > { %2944 = vadd.xlane.f32.xlu2 %v2943_v12  ;;  %2929 = vadd.xlane.f32.xlu1 %v2928_v55  ;;  %v11744_v55 = vld [vmem:[#allocation48_spill] sm:$0xff]  ;;  %v2706_v12 = vmul.f32 %v8466_v11, %v8756_v14  ;;  %v8881_v17 = vpop.xlane.xlu1 %2920 }
 0xb3e   : > { %v2711_v21 = vmul.f32 %v11744_v55, %v8769_v38  ;;  %11745 = vst [vmem:[#allocation48_spill] sm:$0xff] %v8875_v57  ;;  %v8885_v61 = vpop.permute.xlu2 %4317  ;;  %v8888_v11 = vpop.xlane.xlu0 %2905  ;;  %v2712_v55 = vmul.f32 %v8508_v36, %v8789_v20 }
 0xb3f   : > { %v2946_v33 = vsel %vm1178_vm2, %v2706_v12, 0.0  ;;  %11747 = vst [vmem:[#allocation120_spill] sm:$0xff] %v8881_v17 }
 0xb40   : > { %v2961_v32 = vsel %vm1178_vm2, %v2711_v21, 0.0  ;;  %11748 = vst [vmem:[#allocation121_spill] sm:$0xff] %v8885_v61  ;;  %v11751_v21 = vld [vmem:[#allocation54_spill] sm:$0xff] }
 0xb41   : > { %11749 = vst [vmem:[#allocation122_spill] sm:$0xff] %v8888_v11  ;;  %v2701_v12 = vmul.f32 %v11751_v21, %v8720_v50 }
 0xb45   : > { %2953 = vadd.xlane.f32.xlu2 %v2952_v56  ;;  %2938 = vadd.xlane.f32.xlu1 %v2937_v43  ;;  %v2709_v56 = vmul.f32 %v8488_v15, %v8785_v60  ;;  %v2964_v15 = vsel %vm1178_vm2, %v2712_v55, 0.0  ;;  %v11756_v55 = vld [vmem:[#allocation12_spill] sm:$0xff] }
 0xb46   : > { %v8905_v17 = vpop.xlane.xlu0 %2914 }
 0xb47   : > { %v2955_v7 = vsel %vm1178_vm2, %v2709_v56, 0.0  ;;  %v8901_v56 = vpop.permute.xlu2 %4323 }
 0xb48   : > { %11753 = vst [vmem:[#allocation54_spill] sm:$0xff] %v8901_v56 }
 0xb4d   : > { %2962 = vadd.xlane.f32.xlu2 %v2961_v32  ;;  %2947 = vadd.xlane.f32.xlu1 %v2946_v33  ;;  %v11752_v32 = vld [vmem:[#allocation32_spill] sm:$0xff] }
 0xb4e   : > { %v8898_v33 = vadd.f32 %v8067_v23, %v11752_v32  ;;  %11754 = vst [vmem:[#allocation32_spill] sm:$0xff] %v8905_v17  ;;  %v11755_v23 = vld [vmem:[#allocation57_spill] sm:$0xff] }
 0xb4f   : > { %v2704_v50 = vmul.f32 %v11755_v23, %v8737_v40 }
 0xb50   : > { %v8908_v36 = vperm.slane %v8898_v33, 0  ;;  %v2494_v40 = vrot.slane %v8898_v33, 1  ;;  %v2499_v41 = vrot.slane %v8898_v33, 6 }
 0xb52   : > { %v4062_v32 = vmul.f32 %v11756_v55, %v8908_v36 }
 0xb55   : > { %v8890_v43 = vpop.permute.xlu1 %4349  ;;  %2956 = vadd.xlane.f32.xlu1 %v2955_v7  ;;  %v2931_v7 = vsel %vm1178_vm2, %v2701_v12, 0.0  ;;  %v2940_v12 = vsel %vm1178_vm2, %v2704_v50, 0.0  ;;  %v2710_v50 = vmul.f32 %v8518_v28, %v8769_v38 }
 0xb56   : > { %11750 = vst [vmem:[#allocation123_spill] sm:$0xff] %v8890_v43 }
 0xb5d   : > { %2965 = vadd.xlane.f32.xlu1 %v2964_v15  ;;  %v3302_v60 = vpop.permute.xlu1 %3301  ;;  %v8918_v15 = vpop.permute.xlu0 %4351 }
 0xb5e   : > { %v3403_v61 = vsel %vm1178_vm2, %v3302_v60, 0  ;;  %11757 = vst [vmem:[#allocation57_spill] sm:$0xff] %v8918_v15  ;;  %v11759_v60 = vld [vmem:[#allocation59_spill] sm:$0xff]  ;;  %v2495_v15 = vrot.slane %v8898_v33, 2 }
 0xb5f   : > { %2932 = vadd.xlane.f32.xlu0 %v2931_v7  ;;  %3412 = vmatpush.bf16.xpose.msra.mxu2 %v3403_v61  ;;  %v8920_v61 = vpop.permute.xlu2 %4327  ;;  %v2707_v7 = vmul.f32 %v11759_v60, %v8756_v14  ;;  %v2958_v14 = vsel %vm1178_vm2, %v2710_v50, 0.0 }
 0xb60   : > { %11758 = vst [vmem:[#allocation12_spill] sm:$0xff] %v8920_v61 }
 0xb61   : > { %v2949_v56 = vsel %vm1178_vm2, %v2707_v7, 0.0 }
 0xb65   : > { %4383 = vrot.lane.b32.xlu2 %v4062_v32, %s11631_s4  ;;  %v8926_v17 = vpop.xlane.xlu0 %2923  ;;  %v8928_v32 = vperm.slane %v2494_v40, 0  ;;  %v2713_v40 = vmul.f32 %v8532_v35, %v8789_v20 }
 0xb66   : > { %6491 = vmatmul.msk.bf16.vlgmr.msra.gmra.mxu2 %vm1178_vm2, %v8726_v44  ;;  %11760 = vst [vmem:[#allocation59_spill] sm:$0xff] %v8926_v17  ;;  %v2498_v17 = vrot.slane %v8898_v33, 5 }
 0xb67   : > { %2941 = vadd.xlane.f32.xlu0 %v2940_v12  ;;  %v8930_v44 = vpop.permute.xlu2 %4329  ;;  %v4063_v12 = vmul.f32 %v7421_v31, %v8928_v32 }
 0xb68   : > { %11761 = vst [vmem:[#allocation124_spill] sm:$0xff] %v8930_v44 }
 0xb6f   : > { %2950 = vadd.xlane.f32.xlu0 %v2949_v56  ;;  %v8941_v56 = vperm.slane %v2495_v15, 0  ;;  %v8945_v11 = vpop.permute.xlu2 %4339  ;;  %v8953_v15 = vperm.slane %v2498_v17, 0 }
 0xb70   : > { %11763 = vst [vmem:[#allocation126_spill] sm:$0xff] %v8945_v11 }
 0xb71   : > { %v4065_v38 = vmul.f32 %v7454_v47, %v8941_v56  ;;  %v4072_v35 = vmul.f32 %v7499_v16, %v8953_v15 }
 0xb76   : > { %4385 = vrot.lane.b32.xlu1 %v4063_v12, %s11631_s4  ;;  %v2967_v12 = vsel %vm1178_vm2, %v2713_v40, 0.0  ;;  %v8964_v40 = vld [vmem:[%s11510_s23] sm:$0xff] }
 0xb77   : > { %2959 = vadd.xlane.f32.xlu0 %v2958_v14  ;;  %v8939_v7 = vpop.permute.xlu0 %3799  ;;  %v8957_v20 = vpop.permute.xlu2 %4341  ;;  %v2714_v17 = vmul.f32 %v8964_v40, %v8908_v36 }
 0xb78   : > { %11762 = vst [vmem:[#allocation125_spill] sm:$0xff] %v8939_v7 }
 0xb79   : > { %11764 = vst [vmem:[#allocation127_spill] sm:$0xff] %v8957_v20 }
 0xb7e   : > { %4389 = vrot.lane.b32.xlu1 %v4065_v38, %s11631_s4  ;;  %v2970_v38 = vsel %vm1178_vm2, %v2714_v17, 0.0  ;;  %v2497_v17 = vrot.slane %v8898_v33, 4 }
 0xb7f   : > { %2968 = vadd.xlane.f32.xlu0 %v2967_v12  ;;  %v5144_v50 = vpop.permute.xlu0 %5143  ;;  %v8969_v12 = vpop.xlane.xlu2 %2881 }
 0xb80   : > { %v5245_v14 = vsel %vm1178_vm2, %v5144_v50, 0  ;;  %11765 = vst [vmem:[#allocation128_spill] sm:$0xff] %v8969_v12  ;;  %v4061_v50 = vmul.f32 %v7405_v22, %v8908_v36 }
 0xb81   : > { %5254 = vmatpush.bf16.xpose.msrb.mxu3 %v5245_v14 }
 0xb86   : > { %4403 = vrot.lane.b32.xlu1 %v4072_v35, %s11631_s4 }
 0xb87   : > { %v5142_v11 = vpop.permute.xlu0 %5141  ;;  %v8974_v14 = vpop.xlane.xlu2 %2890 }
 0xb88   : > { %6499 = vmatmul.msk.bf16.vlgmr.msrb.gmra.mxu3 %vm1178_vm2, %v5142_v11  ;;  %11766 = vst [vmem:[#allocation129_spill] sm:$0xff] %v8974_v14  ;;  %v2496_v11 = vrot.slane %v8898_v33, 3  ;;  %v2560_v14 = vperm.slane %v2499_v41, 0 }
 0xb8a   : > { %v8977_v35 = vperm.slane %v2496_v11, 0 }
 0xb8c   : > { %v4068_v18 = vmul.f32 %v7433_v37, %v8977_v35 }
 0xb8e   : > { %2971 = vadd.xlane.f32.xlu2 %v2970_v38  ;;  %v8985_v38 = vperm.slane %v2497_v17, 0  ;;  %v4073_v17 = vmul.f32 %v7484_v10, %v2560_v14 }
 0xb8f   : > { %v8979_v20 = vpop.xlane.xlu2 %2899 }
 0xb90   : > { %11767 = vst [vmem:[#allocation130_spill] sm:$0xff] %v8979_v20  ;;  %v4070_v11 = vmul.f32 %v7486_v3, %v8985_v38 }
 0xb93   : > { %4381 = vrot.lane.b32.xlu0 %v4061_v50, %s11631_s4  ;;  %v2721_v50 = vmul.f32 %v8191_v13, %v8977_v35  ;;  %v2500_v13 = vrot.slane %v8898_v33, 7 }
 0xb95   : > { %v2991_v20 = vsel %vm1178_vm2, %v2721_v50, 0.0  ;;  %v9007_v50 = vld [vmem:[%s11510_s23 + $0x8] sm:$0xff] }
 0xb96   : > { %v2715_v41 = vmul.f32 %v9007_v50, %v8908_v36  ;;  %v2726_v36 = vmul.f32 %v8292_v19, %v2560_v14  ;;  %v4066_v19 = vmul.f32 %v7460_v6, %v8941_v56 }
 0xb97   : > { %v8989_v61 = vpop.xlane.xlu2 %2908 }
 0xb98   : > { %11768 = vst [vmem:[#allocation131_spill] sm:$0xff] %v8989_v61 }
 0xb9f   : > { %v9000_v12 = vpop.xlane.xlu2 %2917 }
 0xba0   : > { %11769 = vst [vmem:[#allocation132_spill] sm:$0xff] %v9000_v12 }
 0xba6   : > { %4395 = vrot.lane.b32.xlu2 %v4068_v18, %s11631_s4  ;;  %v2724_v18 = vmul.f32 %v8210_v0, %v8953_v15  ;;  %v9011_v0 = vperm.slane %v2500_v13, 0  ;;  %v3006_v13 = vsel %vm1178_vm2, %v2726_v36, 0.0 }
 0xba8   : > { %v3000_v61 = vsel %vm1178_vm2, %v2724_v18, 0.0  ;;  %v9020_v18 = vpop.xlane.xlu2 %2926 }
 0xba9   : > { %11770 = vst [vmem:[#allocation133_spill] sm:$0xff] %v9020_v18 }
 0xbae   : > { %4399 = vrot.lane.b32.xlu2 %v4070_v11, %s11631_s4  ;;  %v2973_v11 = vsel %vm1178_vm2, %v2715_v41, 0.0 }
 0xbb0   : > { %2992 = vadd.xlane.f32.xlu1 %v2991_v20  ;;  %v2725_v20 = vmul.f32 %v8198_v4, %v8953_v15  ;;  %v9024_v12 = vpop.permute.xlu2 %4353  ;;  %v2727_v4 = vmul.f32 %v8229_v59, %v2560_v14  ;;  %v6927_v59 = vld [vmem:[%s11503_s16] ss:$0 sm:$0xff] }
 0xbb1   : > { %11771 = vst [vmem:[#allocation134_spill] sm:$0xff] %v9024_v12 }
 0xbb2   : > { %v3009_v41 = vsel %vm1178_vm2, %v2727_v4, 0.0  ;;  %v9050_v4 = vld [vmem:[%s11510_s23 + $0x10] sm:$0xff] }
 0xbb6   : > { %4405 = vrot.lane.b32.xlu2 %v4073_v17, %s11631_s4  ;;  %v4076_v17 = vmul.f32 %v7601_v46, %v9011_v0 }
 0xbb8   : > { %3001 = vadd.xlane.f32.xlu1 %v3000_v61  ;;  %v3003_v61 = vsel %vm1178_vm2, %v2725_v20, 0.0  ;;  %v9031_v20 = vpop.permute.xlu2 %4363 }
 0xbb9   : > { %11772 = vst [vmem:[#allocation135_spill] sm:$0xff] %v9031_v20  ;;  %v11776_v20 = vld [vmem:[#allocation16_spill] sm:$0xff] }
 0xbba   : > { %v4071_v12 = vmul.f32 %v11776_v20, %v8953_v15 }
 0xbbd   : > { %2974 = vadd.xlane.f32.xlu0 %v2973_v11  ;;  %v4064_v11 = vmul.f32 %v7417_v29, %v8928_v32 }
 0xbbe   : > { %4411 = vrot.lane.b32.xlu2 %v4076_v17, %s11631_s4 }
 0xbc0   : > { %3004 = vadd.xlane.f32.xlu1 %v3003_v61  ;;  %v9036_v17 = vpop.permute.xlu2 %4365  ;;  %v11774_v61 = vld [vmem:[#allocation33_spill] sm:$0xff] }
 0xbc1   : > { %11773 = vst [vmem:[#allocation136_spill] sm:$0xff] %v9036_v17  ;;  %v9042_v36 = vadd.f32 %v6927_v59, %v11774_v61  ;;  %v4069_v61 = vmul.f32 %v7450_v45, %v8985_v38  ;;  %v9069_v17 = vld [vmem:[%s11510_s23 + $0x20] sm:$0xff] }
 0xbc3   : > { %v2507_v26 = vrot.slane %v9042_v36, 7 }
 0xbc8   : > { %3007 = vadd.xlane.f32.xlu1 %v3006_v13  ;;  %v4067_v13 = vmul.f32 %v7475_v58, %v8977_v35 }
 0xbd0   : > { %3010 = vadd.xlane.f32.xlu1 %v3009_v41  ;;  %v2716_v41 = vmul.f32 %v9050_v4, %v8928_v32 }
 0xbd1   : > { %4387 = vrot.lane.b32.xlu0 %v4064_v11, %s11631_s4  ;;  %v9055_v11 = vperm.slane %v9042_v36, 0 }
 0xbd3   : > { %v4078_v59 = vmul.f32 %v7425_v34, %v9055_v11  ;;  %v2730_v43 = vmul.f32 %v8334_v62, %v9055_v11  ;;  %v2502_v62 = vrot.slane %v9042_v36, 2 }
 0xbd9   : > { %4391 = vrot.lane.b32.xlu0 %v4066_v19, %s11631_s4  ;;  %v2976_v19 = vsel %vm1178_vm2, %v2716_v41, 0.0  ;;  %v2718_v41 = vmul.f32 %v9069_v17, %v8941_v56 }
 0xbe1   : > { %4393 = vrot.lane.b32.xlu0 %v4067_v13, %s11631_s4  ;;  %v9062_v13 = vpop.permute.xlu2 %4375 }
 0xbe2   : > { %11775 = vst [vmem:[#allocation33_spill] sm:$0xff] %v9062_v13 }
 0xbe7   : > { %2977 = vadd.xlane.f32.xlu2 %v2976_v19  ;;  %v2982_v19 = vsel %vm1178_vm2, %v2718_v41, 0.0  ;;  %v11778_v41 = vld [vmem:[#allocation20_spill] sm:$0xff] }
 0xbe9   : > { %4415 = vrot.lane.b32.xlu1 %v4078_v59, %s11631_s4  ;;  %4397 = vrot.lane.b32.xlu0 %v4069_v61, %s11631_s4  ;;  %v9077_v13 = vpop.permute.xlu2 %4377  ;;  %v9082_v59 = vld [vmem:[%s11510_s23 + $0x30] sm:$0xff] }
 0xbea   : > { %11777 = vst [vmem:[#allocation16_spill] sm:$0xff] %v9077_v13  ;;  %v2720_v61 = vmul.f32 %v9082_v59, %v8977_v35  ;;  %v11780_v35 = vld [vmem:[#allocation21_spill] sm:$0xff] }
 0xbec   : > { %v2988_v18 = vsel %vm1178_vm2, %v2720_v61, 0.0 }
 0xbef   : > { %2983 = vadd.xlane.f32.xlu2 %v2982_v19  ;;  %v4074_v19 = vmul.f32 %v11778_v41, %v2560_v14  ;;  %v2729_v14 = vmul.f32 %v8303_v51, %v9011_v0  ;;  %v2455_v51 = vpack.c.bf16 %v9042_v36, %v9042_v36 }
 0xbf1   : > { %4401 = vrot.lane.b32.xlu0 %v4071_v12, %s11631_s4  ;;  %v9089_v15 = vpop.xlane.xlu2 %2935  ;;  %v9094_v12 = vld [vmem:[%s11510_s23 + $0x48] sm:$0xff] }
 0xbf2   : > { %11779 = vst [vmem:[#allocation20_spill] sm:$0xff] %v9089_v15  ;;  %v2723_v13 = vmul.f32 %v9094_v12, %v8985_v38 }
 0xbf4   : > { %v2997_v57 = vsel %vm1178_vm2, %v2723_v13, 0.0 }
 0xbf7   : > { %2989 = vadd.xlane.f32.xlu2 %v2988_v18  ;;  %v4075_v18 = vmul.f32 %v11780_v35, %v9011_v0 }
 0xbf9   : > { %4407 = vrot.lane.b32.xlu0 %v4074_v19, %s11631_s4  ;;  %v9104_v61 = vpop.xlane.xlu2 %2944  ;;  %v3015_v19 = vsel %vm1178_vm2, %v2729_v14, 0.0  ;;  %v2454_v14 = vpack.c.bf16 %v8898_v33, %v8898_v33 }
 0xbfa   : > { %11781 = vst [vmem:[#allocation21_spill] sm:$0xff] %v9104_v61 }
 0xbff   : > { %2998 = vadd.xlane.f32.xlu2 %v2997_v57  ;;  %v3018_v57 = vsel %vm1178_vm2, %v2730_v43, 0.0  ;;  %v3421_v43 = vunpack.c.l.b16 %v2454_v14 }
 0xc01   : > { %4409 = vrot.lane.b32.xlu0 %v4075_v18, %s11631_s4  ;;  %v9107_v15 = vpop.xlane.xlu2 %2953  ;;  %v4077_v18 = vmul.f32 %v7414_v27, %v9055_v11 }
 0xc02   : > { %11782 = vst [vmem:[#allocation137_spill] sm:$0xff] %v9107_v15 }
 0xc07   : > { %3016 = vadd.xlane.f32.xlu2 %v3015_v19  ;;  %v3422_v19 = vunpack.c.l.b16 %v2455_v51 }
 0xc09   : > { %v9112_v13 = vpop.xlane.xlu2 %2962 }
 0xc0a   : > { %11783 = vst [vmem:[#allocation138_spill] sm:$0xff] %v9112_v13  ;;  %v9129_v13 = vld [vmem:[%s11510_s23 + $0x18] sm:$0xff] }
 0xc0b   : > { %v2717_v61 = vmul.f32 %v9129_v13, %v8928_v32  ;;  %v9149_v32 = vld [vmem:[%s11510_s23 + $0x28] sm:$0xff] }
 0xc0d   : > { %v2979_v51 = vsel %vm1178_vm2, %v2717_v61, 0.0 }
 0xc11   : > { %v9121_v15 = vpop.permute.xlu2 %4383 }
 0xc12   : > { %11784 = vst [vmem:[#allocation139_spill] sm:$0xff] %v9121_v15 }
 0xc13   : > { %3019 = vadd.xlane.f32.xlu1 %v3018_v57  ;;  %v9124_v57 = vpack.c.b16 %v3422_v19, %v3421_v43  ;;  %v2503_v19 = vrot.slane %v9042_v36, 3  ;;  %v9143_v43 = vpop.permute.xlu0 %4359 }
 0xc14   : > { %11787 = vst [vmem:[#allocation142_spill] sm:$0xff] %v9143_v43 }
 0xc15   : > { %11785 = vst [vmem:[#allocation140_spill] sm:$0xff] %v9124_v57  ;;  %v9153_v15 = vperm.slane %v2503_v19, 0 }
 0xc19   : > { %v9137_v33 = vpop.xlane.xlu2 %2971 }
 0xc1a   : > { %11786 = vst [vmem:[#allocation141_spill] sm:$0xff] %v9137_v33 }
 0xc1b   : > { %v9164_v33 = vpop.permute.xlu0 %4361 }
 0xc1c   : > { %11789 = vst [vmem:[#allocation144_spill] sm:$0xff] %v9164_v33  ;;  %v2501_v33 = vrot.slane %v9042_v36, 1 }
 0xc1f   : > { %4413 = vrot.lane.b32.xlu2 %v4077_v18, %s11631_s4  ;;  %v9133_v18 = vperm.slane %v2502_v62, 0  ;;  %v2719_v62 = vmul.f32 %v9149_v32, %v8941_v56  ;;  %v9169_v56 = vld [vmem:[%s11510_s23 + $0x40] sm:$0xff] }
 0xc20   : > { %v2722_v19 = vmul.f32 %v9169_v56, %v8985_v38  ;;  %v9188_v38 = vld [vmem:[%s11510_s23 + $0x70] sm:$0xff] }
 0xc21   : > { %v4082_v14 = vmul.f32 %v11723_v2, %v9133_v18  ;;  %v2985_v61 = vsel %vm1178_vm2, %v2719_v62, 0.0  ;;  %v9161_v43 = vpop.permute.xlu2 %4395 }
 0xc22   : > { %11788 = vst [vmem:[#allocation143_spill] sm:$0xff] %v9161_v43  ;;  %v2506_v43 = vrot.slane %v9042_v36, 6 }
 0xc23   : > { %v9194_v44 = vpop.permute.xlu0 %4371 }
 0xc24   : > { %11791 = vst [vmem:[#allocation146_spill] sm:$0xff] %v9194_v44  ;;  %v9211_v44 = vperm.slane %v2507_v26, 0  ;;  %v2505_v26 = vrot.slane %v9042_v36, 5 }
 0xc27   : > { %3424 = vrot.lane.b32.xlu2 %v9124_v57, %s7026_s1 }
 0xc29   : > { %v9183_v49 = vpop.permute.xlu2 %4399 }
 0xc2a   : > { %11790 = vst [vmem:[#allocation145_spill] sm:$0xff] %v9183_v49 }
 0xc2b   : > { %2980 = vadd.xlane.f32.xlu0 %v2979_v51  ;;  %v4083_v51 = vmul.f32 %v11726_v54, %v9153_v15  ;;  %v9216_v7 = vpop.permute.xlu0 %4373 }
 0xc2c   : > { %4423 = vrot.lane.b32.xlu1 %v4082_v14, %s11631_s4  ;;  %v2504_v14 = vrot.slane %v9042_v36, 4  ;;  %11793 = vst [vmem:[#allocation148_spill] sm:$0xff] %v9216_v7 }
 0xc2e   : > { %v9173_v62 = vperm.slane %v2504_v14, 0  ;;  %v2728_v14 = vmul.f32 %v9188_v38, %v9011_v0 }
 0xc2f   : > { %3824 = vrot.lane.b32.xlu2 %v9124_v57, %s7025_s30 }
 0xc33   : > { %2986 = vadd.xlane.f32.xlu0 %v2985_v61  ;;  %v2994_v61 = vsel %vm1178_vm2, %v2722_v19, 0.0  ;;  %v9192_v19 = vperm.slane %v2506_v43, 0  ;;  %v9207_v43 = vld [vmem:[%s11510_s23 + $0x88] sm:$0xff] }
 0xc34   : > { %4425 = vrot.lane.b32.xlu1 %v4083_v51, %s11631_s4  ;;  %v4085_v51 = vmul.f32 %v7488_v5, %v9173_v62 }
 0xc35   : > { %v4089_v49 = vmul.f32 %v11734_v48, %v9192_v19  ;;  %v4081_v48 = vmul.f32 %v7419_v30, %v9133_v18 }
 0xc37   : > { %5263 = vrot.lane.b32.xlu2 %v9124_v57, %s7027_s28 }
 0xc3b   : > { %2995 = vadd.xlane.f32.xlu0 %v2994_v61  ;;  %v2563_v61 = vperm.slane %v2501_v33, 0  ;;  %v2731_v33 = vmul.f32 %v9207_v43, %v9055_v11  ;;  %v9226_v11 = vpop.xlane.xlu0 %2932 }
 0xc3c   : > { %4429 = vrot.lane.b32.xlu1 %v4085_v51, %s11631_s4  ;;  %v3012_v51 = vsel %vm1178_vm2, %v2728_v14, 0.0  ;;  %v9214_v14 = vpop.permute.xlu2 %4405  ;;  %11794 = vst [vmem:[#allocation149_spill] sm:$0xff] %v9226_v11 }
 0xc3d   : > { %v4080_v0 = vmul.f32 %v7442_v42, %v2563_v61  ;;  %11792 = vst [vmem:[#allocation147_spill] sm:$0xff] %v9214_v14  ;;  %v4079_v7 = vmul.f32 %v7437_v39, %v2563_v61 }
 0xc3f   : > { %5261 = vrot.lane.b32.xlu2 %v9124_v57, %s11631_s4 }
 0xc43   : > { %3013 = vadd.xlane.f32.xlu0 %v3012_v51  ;;  %v4091_v51 = vmul.f32 %v11717_v52, %v9211_v44 }
 0xc44   : > { %4437 = vrot.lane.b32.xlu1 %v4089_v49, %s11631_s4  ;;  %v3021_v49 = vsel %vm1178_vm2, %v2731_v33, 0.0  ;;  %v9230_v14 = vpop.permute.xlu2 %4411 }
 0xc45   : > { %11795 = vst [vmem:[#allocation150_spill] sm:$0xff] %v9230_v14 }
 0xc47   : > { %4419 = vrot.lane.b32.xlu2 %v4080_v0, %s11631_s4  ;;  %v9228_v0 = vperm.slane %v2505_v26, 0  ;;  %v4084_v26 = vmul.f32 %v7482_v63, %v9153_v15 }
 0xc49   : > { %v4087_v33 = vmul.f32 %v11642_v9, %v9228_v0 }
 0xc4b   : > { %3022 = vadd.xlane.f32.xlu0 %v3021_v49 }
 0xc4c   : > { %4441 = vrot.lane.b32.xlu1 %v4091_v51, %s11631_s4  ;;  %v9237_v51 = vpop.xlane.xlu0 %2941 }
 0xc4d   : > { %11797 = vst [vmem:[#allocation152_spill] sm:$0xff] %v9237_v51 }
 0xc4f   : > { %4421 = vrot.lane.b32.xlu2 %v4081_v48, %s11631_s4 }
 0xc54   : > { %v9243_v36 = vpop.xlane.xlu0 %2950 }
 0xc55   : > { %11799 = vst [vmem:[#allocation154_spill] sm:$0xff] %v9243_v36  ;;  %v4088_v36 = vmul.f32 %v11729_v25, %v9228_v0 }
 0xc57   : > { %4433 = vrot.lane.b32.xlu2 %v4087_v33, %s11631_s4  ;;  %v4086_v33 = vmul.f32 %v7465_v53, %v9173_v62 }
 0xc5a   : > { %v9235_v49 = vpop.xlane.xlu2 %2977 }
 0xc5b   : > { %11796 = vst [vmem:[#allocation151_spill] sm:$0xff] %v9235_v49 }
 0xc5c   : > { %v9252_v49 = vpop.xlane.xlu0 %2959 }
 0xc5d   : > { %11801 = vst [vmem:[#allocation156_spill] sm:$0xff] %v9252_v49 }
 0xc5f   : > { %4417 = vrot.lane.b32.xlu0 %v4079_v7, %s11631_s4  ;;  %v2733_v7 = vmul.f32 %v11751_v21, %v2563_v61  ;;  %v9271_v21 = vld [vmem:[%s11510_s23 + $0x90] sm:$0xff] }
 0xc62   : > { %v9241_v48 = vpop.xlane.xlu2 %2983 }
 0xc63   : > { %11798 = vst [vmem:[#allocation153_spill] sm:$0xff] %v9241_v48  ;;  %v3027_v48 = vsel %vm1178_vm2, %v2733_v7, 0.0  ;;  %v9274_v7 = vpop.permute.xlu1 %4355 }
 0xc67   : > { %4427 = vrot.lane.b32.xlu0 %v4084_v26, %s11631_s4  ;;  %v9262_v26 = vpop.xlane.xlu0 %2968 }
 0xc68   : > { %11803 = vst [vmem:[#allocation158_spill] sm:$0xff] %v9262_v26 }
 0xc6a   : > { %v9248_v14 = vpop.xlane.xlu2 %2989 }
 0xc6b   : > { %11800 = vst [vmem:[#allocation155_spill] sm:$0xff] %v9248_v14  ;;  %v2736_v14 = vmul.f32 %v11755_v23, %v9153_v15 }
 0xc6f   : > { %4431 = vrot.lane.b32.xlu0 %v4086_v33, %s11631_s4  ;;  %v2732_v33 = vmul.f32 %v9271_v21, %v2563_v61  ;;  %v9290_v61 = vld [vmem:[%s11510_s23 + $0xa8] sm:$0xff] }
 0xc71   : > { %v3024_v23 = vsel %vm1178_vm2, %v2732_v33, 0.0  ;;  %v4092_v33 = vmul.f32 %v11644_v24, %v9211_v44 }
 0xc72   : > { %v9256_v51 = vpop.xlane.xlu2 %2998 }
 0xc73   : > { %11802 = vst [vmem:[#allocation157_spill] sm:$0xff] %v9256_v51  ;;  %v2739_v51 = vmul.f32 %v11759_v60, %v9173_v62 }
 0xc76   : > { %3028 = vadd.xlane.f32.xlu1 %v3027_v48  ;;  %v3036_v48 = vsel %vm1178_vm2, %v2736_v14, 0.0  ;;  %v2735_v14 = vmul.f32 %v9290_v61, %v9133_v18 }
 0xc77   : > { %4435 = vrot.lane.b32.xlu0 %v4088_v36, %s11631_s4  ;;  %v4090_v36 = vmul.f32 %v11713_v8, %v9192_v19 }
 0xc78   : > { %v3033_v60 = vsel %vm1178_vm2, %v2735_v14, 0.0 }
 0xc7a   : > { %v9266_v49 = vpop.xlane.xlu2 %3016 }
 0xc7b   : > { %11804 = vst [vmem:[#allocation159_spill] sm:$0xff] %v9266_v49  ;;  %v9281_v49 = vpop.permute.xlu0 %4381 }
 0xc7c   : > { %11805 = vst [vmem:[#allocation160_spill] sm:$0xff] %v9281_v49  ;;  %v2742_v49 = vmul.f32 %v8518_v28, %v9192_v19 }
 0xc7e   : > { %3037 = vadd.xlane.f32.xlu1 %v3036_v48  ;;  %v3045_v48 = vsel %vm1178_vm2, %v2739_v51, 0.0  ;;  %v9309_v51 = vld [vmem:[%s11510_s23 + $0xc0] sm:$0xff]  ;;  %v3054_v14 = vsel %vm1178_vm2, %v2742_v49, 0.0 }
 0xc7f   : > { %4439 = vrot.lane.b32.xlu0 %v4090_v36, %s11631_s4  ;;  %v9297_v36 = vpop.permute.xlu1 %4357 }
 0xc80   : > { %3025 = vadd.xlane.f32.xlu2 %v3024_v23  ;;  %11807 = vst [vmem:[#allocation162_spill] sm:$0xff] %v9297_v36 }
 0xc82   : > { %v9285_v26 = vpop.permute.xlu2 %4413 }
 0xc83   : > { %11806 = vst [vmem:[#allocation161_spill] sm:$0xff] %v9285_v26  ;;  %v9301_v23 = vpop.xlane.xlu0 %2974 }
 0xc84   : > { %11808 = vst [vmem:[#allocation163_spill] sm:$0xff] %v9301_v23  ;;  %v9376_v23 = vld [vmem:[%s11510_s23 + $0xb8] sm:$0xff] }
 0xc86   : > { %3046 = vadd.xlane.f32.xlu1 %v3045_v48  ;;  %v2738_v48 = vmul.f32 %v9309_v51, %v9173_v62 }
 0xc87   : > { %4443 = vrot.lane.b32.xlu0 %v4092_v33, %s11631_s4  ;;  %v9316_v28 = vpop.permute.xlu1 %4367 }
 0xc88   : > { %3034 = vadd.xlane.f32.xlu2 %v3033_v60  ;;  %v3042_v33 = vsel %vm1178_vm2, %v2738_v48, 0.0  ;;  %11809 = vst [vmem:[#allocation164_spill] sm:$0xff] %v9316_v28  ;;  %v9323_v60 = vld [vmem:[%s11510_s23 + $0xf8] sm:$0xff] }
 0xc89   : > { %v2745_v62 = vmul.f32 %v9323_v60, %v9211_v44 }
 0xc8a   : > { %v3425_v26 = vpop.permute.xlu2 %3424 }
 0xc8b   : > { %v3526_v11 = vsel %vm1178_vm2, %v3425_v26, 0  ;;  %v9318_v26 = vpop.permute.xlu0 %4387  ;;  %v3063_v48 = vsel %vm1178_vm2, %v2745_v62, 0.0 }
 0xc8c   : > { %3535 = vmatpush.bf16.xpose.msrb.mxu1 %v3526_v11  ;;  %11810 = vst [vmem:[#allocation165_spill] sm:$0xff] %v9318_v26 }
 0xc8e   : > { %3055 = vadd.xlane.f32.xlu1 %v3054_v14 }
 0xc90   : > { %3043 = vadd.xlane.f32.xlu2 %v3042_v33  ;;  %v9338_v33 = vpop.permute.xlu1 %4369 }
 0xc91   : > { %11811 = vst [vmem:[#allocation166_spill] sm:$0xff] %v9338_v33 }
 0xc92   : > { %v3825_v11 = vpop.permute.xlu2 %3824 }
 0xc93   : > { %6492 = vmatmul.msk.bf16.vlgmr.msrb.gmra.mxu1 %vm1178_vm2, %v9124_v57  ;;  %3837 = vmatpush.bf16.msrb.mxu0 %v3825_v11  ;;  %v9340_v24 = vpop.permute.xlu0 %4391  ;;  %v9346_v57 = vld [vmem:[%s11510_s23 + $0xf0] sm:$0xff] }
 0xc94   : > { %3787 = vmatpush.bf16.msra.mxu1 %v8616_v1  ;;  %v9332_v1 = vld [vmem:[%s11510_s23 + $0xd8] sm:$0xff]  ;;  %11812 = vst [vmem:[#allocation167_spill] sm:$0xff] %v9340_v24  ;;  %v2744_v28 = vmul.f32 %v9346_v57, %v9211_v44 }
 0xc95   : > { %v2741_v49 = vmul.f32 %v9332_v1, %v9228_v0 }
 0xc96   : > { %3064 = vadd.xlane.f32.xlu1 %v3063_v48  ;;  %v3060_v62 = vsel %vm1178_vm2, %v2744_v28, 0.0 }
 0xc97   : > { %v3051_v14 = vsel %vm1178_vm2, %v2741_v49, 0.0 }
 0xc98   : > { %3052 = vadd.xlane.f32.xlu2 %v3051_v14  ;;  %v9351_v49 = vpop.permute.xlu1 %4379  ;;  %v11815_v14 = vld [vmem:[#allocation34_spill] sm:$0xff] }
 0xc99   : > { %11813 = vst [vmem:[#allocation168_spill] sm:$0xff] %v9351_v49  ;;  %v2570_v24 = vperm.slane %v11815_v14, 0  ;;  %v2509_v28 = vrot.slane %v11815_v14, 2 }
 0xc9a   : > { %v5264_v26 = vpop.permute.xlu2 %5263 }
 0xc9b   : > { %v5365_v11 = vsel %vm1178_vm2, %v5264_v26, 0  ;;  %v9353_v48 = vpop.permute.xlu0 %4393  ;;  %v9361_v26 = vld [vmem:[%s11510_s23 + $0xa0] sm:$0xff]  ;;  %v9371_v49 = vperm.slane %v2509_v28, 0 }
 0xc9c   : > { %5374 = vmatpush.bf16.xpose.msra.mxu0 %v5365_v11  ;;  %11814 = vst [vmem:[#allocation169_spill] sm:$0xff] %v9353_v48  ;;  %v2734_v44 = vmul.f32 %v9361_v26, %v9133_v18  ;;  %v4094_v11 = vmul.f32 %v11756_v55, %v2570_v24  ;;  %v2737_v18 = vmul.f32 %v9376_v23, %v9153_v15 }
 0xc9d   : > { %v4097_v55 = vmul.f32 %v7454_v47, %v9371_v49  ;;  %v9396_v47 = vld [vmem:[%s11510_s23 + $0xd0] sm:$0xff] }
 0xc9e   : > { %v3030_v48 = vsel %vm1178_vm2, %v2734_v44, 0.0  ;;  %v4093_v44 = vmul.f32 %v7405_v22, %v2570_v24  ;;  %v2740_v15 = vmul.f32 %v9396_v47, %v9228_v0  ;;  %v9414_v0 = vld [vmem:[%s11510_s23 + $0xe8] sm:$0xff] }
 0xca0   : > { %3061 = vadd.xlane.f32.xlu2 %v3060_v62  ;;  %v9356_v33 = vpop.xlane.xlu1 %2929 }
 0xca3   : > { %v9367_v62 = vpop.permute.xlu0 %4397 }
 0xca4   : > { %11816 = vst [vmem:[#allocation34_spill] sm:$0xff] %v9367_v62  ;;  %v2512_v62 = vrot.slane %v11815_v14, 5 }
 0xca6   : > { %v9391_v28 = vperm.slane %v2512_v62, 0  ;;  %v3048_v62 = vsel %vm1178_vm2, %v2740_v15, 0.0 }
 0xca8   : > { %v9383_v36 = vpop.xlane.xlu1 %2938  ;;  %v4104_v22 = vmul.f32 %v7499_v16, %v9391_v28  ;;  %v2743_v16 = vmul.f32 %v9414_v0, %v9192_v19 }
 0xca9   : > { %11817 = vst [vmem:[#allocation170_spill] sm:$0xff] %v9383_v36 }
 0xcaa   : > { %v3057_v15 = vsel %vm1178_vm2, %v2743_v16, 0.0  ;;  %v2747_v16 = vmul.f32 %v9007_v50, %v2570_v24  ;;  %v2510_v50 = vrot.slane %v11815_v14, 3 }
 0xcaf   : > { %4447 = vrot.lane.b32.xlu1 %v4094_v11, %s11631_s4  ;;  %v9389_v11 = vpop.permute.xlu0 %4401 }
 0xcb0   : > { %11818 = vst [vmem:[#allocation171_spill] sm:$0xff] %v9389_v11 }
 0xcb1   : > { %3031 = vadd.xlane.f32.xlu0 %v3030_v48  ;;  %v3039_v48 = vsel %vm1178_vm2, %v2737_v18, 0.0  ;;  %v9404_v18 = vpop.xlane.xlu1 %2947 }
 0xcb2   : > { %11819 = vst [vmem:[#allocation172_spill] sm:$0xff] %v9404_v18 }
 0xcb7   : > { %4453 = vrot.lane.b32.xlu1 %v4097_v55, %s11631_s4  ;;  %v2513_v55 = vrot.slane %v11815_v14, 6 }
 0xcb8   : > { %4445 = vrot.lane.b32.xlu2 %v4093_v44, %s11631_s4 }
 0xcb9   : > { %3040 = vadd.xlane.f32.xlu0 %v3039_v48  ;;  %v9407_v44 = vperm.slane %v2513_v55, 0  ;;  %v9409_v48 = vpop.permute.xlu0 %4407  ;;  %v9422_v55 = vpop.xlane.xlu1 %2956 }
 0xcba   : > { %11820 = vst [vmem:[#allocation173_spill] sm:$0xff] %v9409_v48 }
 0xcbf   : > { %4467 = vrot.lane.b32.xlu1 %v4104_v22, %s11631_s4  ;;  %v4105_v22 = vmul.f32 %v7484_v10, %v9407_v44  ;;  %v2508_v10 = vrot.slane %v11815_v14, 1 }
 0xcc1   : > { %3049 = vadd.xlane.f32.xlu0 %v3048_v62  ;;  %v2746_v62 = vmul.f32 %v8964_v40, %v2570_v24  ;;  %v9425_v48 = vpop.permute.xlu0 %4409  ;;  %v9428_v18 = vpop.xlane.xlu1 %2965  ;;  %v3069_v40 = vsel %vm1178_vm2, %v2747_v16, 0.0 }
 0xcc2   : > { %11821 = vst [vmem:[#allocation174_spill] sm:$0xff] %v9425_v48 }
 0xcc3   : > { %v3066_v11 = vsel %vm1178_vm2, %v2746_v62, 0.0 }
 0xcc7   : > { %4469 = vrot.lane.b32.xlu1 %v4105_v22, %s11631_s4 }
 0xcc9   : > { %3058 = vadd.xlane.f32.xlu0 %v3057_v15  ;;  %v9430_v19 = vpop.xlane.xlu0 %2980  ;;  %v9433_v36 = vpop.permute.xlu1 %4385  ;;  %v9438_v15 = vperm.slane %v2508_v10, 0 }
 0xcca   : > { %11822 = vst [vmem:[#allocation175_spill] sm:$0xff] %v9433_v36 }
 0xccb   : > { %v4096_v36 = vmul.f32 %v7417_v29, %v9438_v15  ;;  %v2748_v24 = vmul.f32 %v9050_v4, %v9438_v15  ;;  %v2751_v29 = vmul.f32 %v9149_v32, %v9371_v49  ;;  %v2511_v4 = vrot.slane %v11815_v14, 4 }
 0xcd1   : > { %3067 = vadd.xlane.f32.xlu0 %v3066_v11  ;;  %v9436_v22 = vpop.xlane.xlu0 %2986  ;;  %v4095_v11 = vmul.f32 %v7421_v31, %v9438_v15  ;;  %v9444_v62 = vpop.permute.xlu1 %4389  ;;  %v3072_v31 = vsel %vm1178_vm2, %v2748_v24, 0.0  ;;  %v3081_v24 = vsel %vm1178_vm2, %v2751_v29, 0.0 }
 0xcd2   : > { %11823 = vst [vmem:[#allocation176_spill] sm:$0xff] %v9444_v62  ;;  %v11915_v62 = vld [vmem:[#allocation72_spill] sm:$0xff] }
 0xcd9   : > { %v9446_v48 = vpop.xlane.xlu0 %2995  ;;  %v9454_v10 = vpop.permute.xlu1 %4403 }
 0xcda   : > { %11824 = vst [vmem:[#allocation177_spill] sm:$0xff] %v9454_v10 }
 0xce1   : > { %3070 = vadd.xlane.f32.xlu2 %v3069_v40  ;;  %v9457_v16 = vpop.xlane.xlu0 %3013  ;;  %v4098_v40 = vmul.f32 %v7460_v6, %v9371_v49  ;;  %v9469_v10 = vpop.xlane.xlu1 %2992 }
 0xce5   : > { %4449 = vrot.lane.b32.xlu0 %v4095_v11, %s11631_s4  ;;  %v9461_v11 = vperm.slane %v2510_v50, 0 }
 0xce7   : > { %v4099_v6 = vmul.f32 %v7475_v58, %v9461_v11 }
 0xce9   : > { %v9479_v50 = vpop.xlane.xlu0 %3022 }
 0xced   : > { %4451 = vrot.lane.b32.xlu0 %v4096_v36, %s11631_s4  ;;  %v4100_v36 = vmul.f32 %v7433_v37, %v9461_v11 }
 0xcf1   : > { %3073 = vadd.xlane.f32.xlu1 %v3072_v31  ;;  %v9472_v31 = vperm.slane %v2511_v4, 0  ;;  %v9487_v4 = vpop.xlane.xlu1 %3001 }
 0xcf3   : > { %v2754_v32 = vmul.f32 %v9169_v56, %v9472_v31  ;;  %v4101_v37 = vmul.f32 %v7450_v45, %v9472_v31  ;;  %v4102_v58 = vmul.f32 %v7486_v3, %v9472_v31  ;;  %v4103_v3 = vmul.f32 %v11776_v20, %v9391_v28 }
 0xcf5   : > { %4455 = vrot.lane.b32.xlu0 %v4098_v40, %s11631_s4  ;;  %v2514_v40 = vrot.slane %v11815_v14, 7  ;;  %v3090_v29 = vsel %vm1178_vm2, %v2754_v32, 0.0 }
 0xcf7   : > { %v9491_v56 = vperm.slane %v2514_v40, 0  ;;  %v4106_v40 = vmul.f32 %v11778_v41, %v9407_v44 }
 0xcf9   : > { %3082 = vadd.xlane.f32.xlu1 %v3081_v24  ;;  %4459 = vrot.lane.b32.xlu2 %v4100_v36, %s11631_s4  ;;  %v6947_v36 = vld [vmem:[%s11510_s23 + $0x58] sm:$0xff]  ;;  %v9497_v24 = vpop.permute.xlu0 %4417  ;;  %v4108_v14 = vmul.f32 %v7601_v46, %v9491_v56  ;;  %v9506_v32 = vpop.xlane.xlu1 %3004 }
 0xcfa   : > { %v2757_v45 = vmul.f32 %v6947_v36, %v9391_v28  ;;  %11825 = vst [vmem:[#allocation178_spill] sm:$0xff] %v9497_v24  ;;  %v11828_v36 = vld [vmem:[#allocation35_spill] sm:$0xff] }
 0xcfb   : > { %v9521_v20 = vperm.slane %v11828_v36, 0 }
 0xcfd   : > { %4457 = vrot.lane.b32.xlu0 %v4099_v6, %s11631_s4  ;;  %v3099_v6 = vsel %vm1178_vm2, %v2757_v45, 0.0 }
 0xd01   : > { %3091 = vadd.xlane.f32.xlu1 %v3090_v29  ;;  %4461 = vrot.lane.b32.xlu2 %v4101_v37, %s11631_s4  ;;  %v9509_v37 = vpop.permute.xlu0 %4427  ;;  %v9514_v46 = vpop.xlane.xlu1 %3007 }
 0xd02   : > { %11826 = vst [vmem:[#allocation179_spill] sm:$0xff] %v9509_v37 }
 0xd05   : > { %4463 = vrot.lane.b32.xlu0 %v4102_v58, %s11631_s4  ;;  %v4107_v58 = vmul.f32 %v11780_v35, %v9491_v56  ;;  %v2750_v35 = vmul.f32 %v9069_v17, %v9371_v49  ;;  %v6949_v17 = vld [vmem:[%s11510_s23 + $0x50] sm:$0xff] }
 0xd06   : > { %v2756_v49 = vmul.f32 %v6949_v17, %v9391_v28  ;;  %v2763_v17 = vmul.f32 %v9207_v43, %v9521_v20 }
 0xd09   : > { %3100 = vadd.xlane.f32.xlu1 %v3099_v6  ;;  %4475 = vrot.lane.b32.xlu2 %v4108_v14, %s11631_s4  ;;  %v9516_v29 = vpop.permute.xlu0 %4431  ;;  %v9524_v45 = vpop.xlane.xlu1 %3010  ;;  %v4110_v14 = vmul.f32 %v7425_v34, %v9521_v20  ;;  %v6948_v34 = vld [vmem:[%s11510_s23 + $0x38] sm:$0xff] }
 0xd0a   : > { %11827 = vst [vmem:[#allocation180_spill] sm:$0xff] %v9516_v29 }
 0xd0d   : > { %4465 = vrot.lane.b32.xlu0 %v4103_v3, %s11631_s4 }
 0xd11   : > { %v9529_v41 = vpop.permute.xlu0 %4435  ;;  %v9531_v6 = vpop.permute.xlu1 %4415 }
 0xd12   : > { %11829 = vst [vmem:[#allocation35_spill] sm:$0xff] %v9529_v41 }
 0xd13   : > { %11830 = vst [vmem:[#allocation181_spill] sm:$0xff] %v9531_v6 }
 0xd15   : > { %4471 = vrot.lane.b32.xlu0 %v4106_v40, %s11631_s4 }
 0xd19   : > { %v9533_v3 = vpop.permute.xlu0 %4439  ;;  %v9537_v40 = vpop.xlane.xlu1 %3019 }
 0xd1a   : > { %11831 = vst [vmem:[#allocation182_spill] sm:$0xff] %v9533_v3 }
 0xd1d   : > { %4473 = vrot.lane.b32.xlu0 %v4107_v58, %s11631_s4  ;;  %v3078_v58 = vsel %vm1178_vm2, %v2750_v35, 0.0 }
 0xd21   : > { %v9544_v37 = vpop.permute.xlu0 %4443  ;;  %v9546_v29 = vpop.permute.xlu1 %4423 }
 0xd22   : > { %4479 = vrot.lane.b32.xlu1 %v4110_v14, %s11631_s4  ;;  %v2753_v14 = vmul.f32 %v6948_v34, %v9461_v11  ;;  %11832 = vst [vmem:[#allocation183_spill] sm:$0xff] %v9544_v37  ;;  %v2749_v34 = vmul.f32 %v9129_v13, %v9438_v15  ;;  %v9564_v37 = vpop.permute.xlu2 %5261  ;;  %v2752_v13 = vmul.f32 %v9082_v59, %v9461_v11  ;;  %v3117_v15 = vsel %vm1178_vm2, %v2763_v17, 0.0 }
 0xd23   : > { %11833 = vst [vmem:[#allocation184_spill] sm:$0xff] %v9546_v29  ;;  %v2755_v59 = vmul.f32 %v9094_v12, %v9472_v31 }
 0xd24   : > { %v3087_v3 = vsel %vm1178_vm2, %v2753_v14, 0.0  ;;  %11835 = vst [vmem:[#allocation186_spill] sm:$0xff] %v9564_v37  ;;  %v3075_v28 = vsel %vm1178_vm2, %v2749_v34, 0.0  ;;  %v6951_v34 = vld [vmem:[%s11510_s23 + $0x78] sm:$0xff]  ;;  %v3084_v43 = vsel %vm1178_vm2, %v2752_v13, 0.0  ;;  %v6952_v13 = vld [vmem:[%s11510_s23 + $0x60] sm:$0xff] }
 0xd25   : > { %v2517_v37 = vrot.slane %v11828_v36, 3 }
 0xd29   : > { %v9553_v35 = vpop.xlane.xlu0 %3031  ;;  %v9556_v24 = vpop.permute.xlu1 %4425 }
 0xd2a   : > { %11834 = vst [vmem:[#allocation185_spill] sm:$0xff] %v9556_v24 }
 0xd31   : > { %v9575_v41 = vpop.permute.xlu1 %4429 }
 0xd32   : > { %3079 = vadd.xlane.f32.xlu2 %v3078_v58  ;;  %v3096_v58 = vsel %vm1178_vm2, %v2756_v49, 0.0  ;;  %v9569_v49 = vpop.xlane.xlu0 %3040  ;;  %11836 = vst [vmem:[#allocation187_spill] sm:$0xff] %v9575_v41 }
 0xd39   : > { %v9589_v17 = vpop.permute.xlu1 %4437 }
 0xd3a   : > { %3088 = vadd.xlane.f32.xlu2 %v3087_v3  ;;  %v6950_v3 = vld [vmem:[%s11510_s23 + $0x68] sm:$0xff]  ;;  %v9587_v11 = vpop.xlane.xlu0 %3049  ;;  %11838 = vst [vmem:[#allocation189_spill] sm:$0xff] %v9589_v17  ;;  %v2519_v17 = vrot.slane %v11828_v36, 5 }
 0xd3b   : > { %v2759_v14 = vmul.f32 %v6950_v3, %v9407_v44  ;;  %v2761_v3 = vmul.f32 %v6951_v34, %v9491_v56  ;;  %v2758_v34 = vmul.f32 %v6952_v13, %v9407_v44 }
 0xd3d   : > { %v3102_v12 = vsel %vm1178_vm2, %v2758_v34, 0.0 }
 0xd42   : > { %3097 = vadd.xlane.f32.xlu2 %v3096_v58  ;;  %v3105_v58 = vsel %vm1178_vm2, %v2759_v14, 0.0  ;;  %v3111_v14 = vsel %vm1178_vm2, %v2761_v3, 0.0  ;;  %v2516_v3 = vrot.slane %v11828_v36, 2 }
 0xd44   : > { %v9602_v31 = vperm.slane %v2516_v3, 0  ;;  %v9617_v3 = vperm.slane %v2517_v37, 0 }
 0xd47   : > { %3076 = vadd.xlane.f32.xlu0 %v3075_v28  ;;  %v9582_v28 = vpop.permute.xlu2 %4419 }
 0xd48   : > { %11837 = vst [vmem:[#allocation188_spill] sm:$0xff] %v9582_v28 }
 0xd4a   : > { %3106 = vadd.xlane.f32.xlu2 %v3105_v58  ;;  %v3093_v58 = vsel %vm1178_vm2, %v2755_v59, 0.0  ;;  %v2760_v59 = vmul.f32 %v9188_v38, %v9491_v56  ;;  %v4109_v38 = vmul.f32 %v7414_v27, %v9521_v20  ;;  %v2518_v56 = vrot.slane %v11828_v36, 4 }
 0xd4c   : > { %3118 = vadd.xlane.f32.xlu1 %v3117_v15  ;;  %v3108_v13 = vsel %vm1178_vm2, %v2760_v59, 0.0  ;;  %v9632_v37 = vperm.slane %v2518_v56, 0  ;;  %v11846_v56 = vld [vmem:[#allocation36_spill] sm:$0xff] }
 0xd4e   : > { %v4117_v27 = vmul.f32 %v7488_v5, %v9632_v37 }
 0xd4f   : > { %3085 = vadd.xlane.f32.xlu0 %v3084_v43  ;;  %v9592_v15 = vpop.permute.xlu2 %4421  ;;  %v9599_v43 = vpop.xlane.xlu0 %3058 }
 0xd50   : > { %11839 = vst [vmem:[#allocation190_spill] sm:$0xff] %v9592_v15 }
 0xd52   : > { %3112 = vadd.xlane.f32.xlu2 %v3111_v14  ;;  %v9604_v14 = vpop.permute.xlu1 %4441 }
 0xd53   : > { %11840 = vst [vmem:[#allocation191_spill] sm:$0xff] %v9604_v14 }
 0xd57   : > { %3094 = vadd.xlane.f32.xlu0 %v3093_v58  ;;  %v4114_v58 = vmul.f32 %v11723_v2, %v9602_v31  ;;  %v9611_v44 = vpop.permute.xlu2 %4433  ;;  %v9615_v34 = vpop.xlane.xlu0 %3067  ;;  %v4115_v2 = vmul.f32 %v11726_v54, %v9617_v3 }
 0xd58   : > { %11841 = vst [vmem:[#allocation192_spill] sm:$0xff] %v9611_v44 }
 0xd59   : > { %11842 = vst [vmem:[#allocation193_spill] sm:$0xff] %v9615_v34 }
 0xd5f   : > { %3103 = vadd.xlane.f32.xlu0 %v3102_v12  ;;  %v9619_v12 = vpop.xlane.xlu1 %3028  ;;  %v9630_v59 = vpop.permute.xlu0 %4449 }
 0xd60   : > { %11843 = vst [vmem:[#allocation194_spill] sm:$0xff] %v9630_v59 }
 0xd65   : > { %4487 = vrot.lane.b32.xlu1 %v4114_v58, %s11631_s4  ;;  %v9627_v58 = vpop.xlane.xlu2 %3025 }
 0xd67   : > { %3109 = vadd.xlane.f32.xlu0 %v3108_v13  ;;  %v9634_v13 = vpop.xlane.xlu1 %3037  ;;  %v9644_v41 = vpop.permute.xlu0 %4451 }
 0xd68   : > { %11845 = vst [vmem:[#allocation196_spill] sm:$0xff] %v9644_v41 }
 0xd6a   : > { %4477 = vrot.lane.b32.xlu2 %v4109_v38, %s11631_s4  ;;  %v2521_v38 = vrot.slane %v11828_v36, 7 }
 0xd6c   : > { %v9642_v14 = vperm.slane %v2521_v38, 0 }
 0xd6d   : > { %4489 = vrot.lane.b32.xlu1 %v4115_v2, %s11631_s4  ;;  %v9640_v54 = vpop.xlane.xlu2 %3034  ;;  %v2515_v2 = vrot.slane %v11828_v36, 1 }
 0xd6e   : > { %11844 = vst [vmem:[#allocation195_spill] sm:$0xff] %v9642_v14  ;;  %v4123_v59 = vmul.f32 %v11717_v52, %v9642_v14  ;;  %v4116_v52 = vmul.f32 %v7482_v63, %v9617_v3 }
 0xd6f   : > { %v9651_v44 = vpop.xlane.xlu1 %3046  ;;  %v9654_v5 = vperm.slane %v2515_v2, 0  ;;  %v9660_v41 = vpop.permute.xlu0 %4455  ;;  %v6953_v2 = vld [vmem:[%s11510_s23 + $0x80] sm:$0xff] }
 0xd70   : > { %11847 = vst [vmem:[#allocation197_spill] sm:$0xff] %v9660_v41 }
 0xd71   : > { %v4111_v38 = vmul.f32 %v7437_v39, %v9654_v5  ;;  %v2762_v39 = vmul.f32 %v6953_v2, %v9521_v20 }
 0xd73   : > { %v3114_v63 = vsel %vm1178_vm2, %v2762_v39, 0.0 }
 0xd75   : > { %4493 = vrot.lane.b32.xlu1 %v4117_v27, %s11631_s4  ;;  %v9656_v27 = vpop.xlane.xlu2 %3043 }
 0xd77   : > { %v9663_v15 = vpop.xlane.xlu1 %3055 }
 0xd78   : > { %11848 = vst [vmem:[#allocation198_spill] sm:$0xff] %v9663_v15 }
 0xd7b   : > { %3547 = vrot.lane.b32.xlu0 %v11846_v56, %s7026_s1  ;;  %s754_s1 = sand.u32 1, %s7012_s26  }
 0xd7c   : > { %s6371_s25 = sshll.u32 %s754_s1, 6  ;;  %s6266_s6 = scalar_lea.sflag [#allocation3], %s754_s1 }
 0xd7d   : > { %4505 = vrot.lane.b32.xlu1 %v4123_v59, %s11631_s4  ;;  %v9667_v28 = vpop.xlane.xlu2 %3052  ;;  %v9670_v59 = vpop.permute.xlu0 %4457 }
 0xd7e   : > { %11849 = vst [vmem:[#allocation199_spill] sm:$0xff] %v9670_v59  ;;  %v9685_v59 = vperm.slane %v2519_v17, 0 }
 0xd7f   : > { %v9676_v41 = vpop.xlane.xlu1 %3064 }
 0xd80   : > { %11850 = vst [vmem:[#allocation200_spill] sm:$0xff] %v9676_v41  ;;  %v4120_v20 = vmul.f32 %v11729_v25, %v9685_v59 }
 0xd83   : > { %4481 = vrot.lane.b32.xlu0 %v4111_v38, %s11631_s4  ;;  %v4118_v38 = vmul.f32 %v7465_v53, %v9632_v37  ;;  %v2520_v53 = vrot.slane %v11828_v36, 6 }
 0xd85   : > { %v9687_v24 = vpop.permute.xlu0 %4463  ;;  %v9695_v2 = vperm.slane %v2520_v53, 0 }
 0xd86   : > { %11852 = vst [vmem:[#allocation202_spill] sm:$0xff] %v9687_v24  ;;  %v2766_v24 = vmul.f32 %v9361_v26, %v9602_v31 }
 0xd87   : > { %v9689_v29 = vpop.permute.xlu1 %4447  ;;  %v4122_v17 = vmul.f32 %v11713_v8, %v9695_v2 }
 0xd88   : > { %11853 = vst [vmem:[#allocation203_spill] sm:$0xff] %v9689_v29  ;;  %v3126_v36 = vsel %vm1178_vm2, %v2766_v24, 0.0 }
 0xd8b   : > { %4491 = vrot.lane.b32.xlu0 %v4116_v52, %s11631_s4  ;;  %v9683_v52 = vpop.xlane.xlu2 %3061 }
 0xd8c   : > { %11851 = vst [vmem:[#allocation201_spill] sm:$0xff] %v9683_v52 }
 0xd93   : > { %3115 = vadd.xlane.f32.xlu2 %v3114_v63  ;;  %4495 = vrot.lane.b32.xlu0 %v4118_v38, %s11631_s4  ;;  %v9697_v39 = vpop.permute.xlu2 %4445  ;;  %v9699_v38 = vpop.permute.xlu0 %4465 }
 0xd94   : > { %11854 = vst [vmem:[#allocation204_spill] sm:$0xff] %v9697_v39  ;;  %v9703_v63 = vpop.permute.xlu1 %4453 }
 0xd95   : > { %11855 = vst [vmem:[#allocation205_spill] sm:$0xff] %v9699_v38 }
 0xd96   : > { %11856 = vst [vmem:[#allocation206_spill] sm:$0xff] %v9703_v63 }
 0xd9b   : > { %4499 = vrot.lane.b32.xlu0 %v4120_v20, %s11631_s4  ;;  %v9708_v25 = vpop.xlane.xlu2 %3070  ;;  %v2769_v20 = vmul.f32 %v9376_v23, %v9617_v3  ;;  %v9713_v53 = vpop.permute.xlu0 %4471 }
 0xd9c   : > { %11857 = vst [vmem:[#allocation207_spill] sm:$0xff] %v9708_v25  ;;  %v9717_v8 = vpop.permute.xlu1 %4467  ;;  %v11970_v25 = vld [vmem:[#allocation162_spill] sm:$0xff] }
 0xd9d   : > { %11858 = vst [vmem:[#allocation208_spill] sm:$0xff] %v9713_v53  ;;  %v3135_v38 = vsel %vm1178_vm2, %v2769_v20, 0.0 }
 0xd9e   : > { %11859 = vst [vmem:[#allocation209_spill] sm:$0xff] %v9717_v8 }
 0xda3   : > { %4503 = vrot.lane.b32.xlu0 %v4122_v17, %s11631_s4  ;;  %v9720_v26 = vpop.permute.xlu2 %4459  ;;  %v2772_v17 = vmul.f32 %v9396_v47, %v9685_v59  ;;  %v9726_v24 = vpop.permute.xlu0 %4473 }
 0xda4   : > { %11860 = vst [vmem:[#allocation210_spill] sm:$0xff] %v9720_v26  ;;  %v9728_v23 = vpop.permute.xlu1 %4469  ;;  %v11888_v26 = vld [vmem:[#allocation71_spill] sm:$0xff] }
 0xda5   : > { %11861 = vst [vmem:[#allocation211_spill] sm:$0xff] %v9726_v24  ;;  %v4643_v39 = vsel %vm1178_vm2, %v11888_v26, 0.0 }
 0xda6   : > { %11862 = vst [vmem:[#allocation212_spill] sm:$0xff] %v9728_v23  ;;  %v4112_v23 = vmul.f32 %v7442_v42, %v9654_v5  ;;  %v4113_v42 = vmul.f32 %v7419_v30, %v9602_v31 }
 0xda7   : > { %3127 = vadd.xlane.f32.xlu1 %v3126_v36  ;;  %v3144_v36 = vsel %vm1178_vm2, %v2772_v17, 0.0  ;;  %v2776_v17 = vmul.f32 %v9346_v57, %v9642_v14 }
 0xdab   : > { %3849 = vrot.lane.b32.xlu2 %v11846_v56, %s7025_s30  ;;  %v9731_v29 = vpop.permute.xlu2 %4461 }
 0xdac   : > { %11863 = vst [vmem:[#allocation213_spill] sm:$0xff] %v9731_v29  ;;  %v9739_v47 = vpop.xlane.xlu1 %3073 }
 0xdad   : > { %11865 = vst [vmem:[#allocation215_spill] sm:$0xff] %v9739_v47 }
 0xdaf   : > { %3136 = vadd.xlane.f32.xlu1 %v3135_v38  ;;  %v2775_v38 = vmul.f32 %v9414_v0, %v9695_v2  ;;  %v3156_v0 = vsel %vm1178_vm2, %v2776_v17, 0.0 }
 0xdb1   : > { %v3153_v8 = vsel %vm1178_vm2, %v2775_v38, 0.0  ;;  %v11870_v38 = vld [vmem:[#allocation38_spill] sm:$0xff] }
 0xdb2   : > { %v4640_v17 = vsel %vm1178_vm2, %v11870_v38, 0.0 }
 0xdb3   : > { %5383 = vrot.lane.b32.xlu2 %v11846_v56, %s7027_s28  ;;  %s11428_s28 = scalar_lea.vmem [#allocation2], %s6371_s25 }
 0xdb4   : > { %v9752_v24 = vpop.xlane.xlu1 %3082  ;;  %s6278_s25 = sshll.u32 %s11428_s28, 4  ;;  %s6279_s25 = int_to_ptr.vmem [resolvable:$true] %s6278_s25 }
 0xdb5   : > { %11868 = vst [vmem:[#allocation218_spill] sm:$0xff] %v9752_v24  ;;  %v9943_v24 = vpop.f32.mrf.mxu1 }
 0xdb7   : > { %3145 = vadd.xlane.f32.xlu1 %v3144_v36  ;;  %v9747_v36 = vpop.permute.xlu2 %4475 }
 0xdb8   : > { %11866 = vst [vmem:[#allocation216_spill] sm:$0xff] %v9747_v36 }
 0xdba   : > { %v9737_v20 = vpop.xlane.xlu0 %3076 }
 0xdbb   : > { %5381 = vrot.lane.b32.xlu2 %v11846_v56, %s11631_s4  ;;  %11864 = vst [vmem:[#allocation214_spill] sm:$0xff] %v9737_v20 }
 0xdbc   : > { %v9770_v30 = vpop.xlane.xlu1 %3091 }
 0xdbd   : > { %11872 = vst [vmem:[#allocation220_spill] sm:$0xff] %v9770_v30 }
 0xdbf   : > { %3154 = vadd.xlane.f32.xlu1 %v3153_v8  ;;  %v2764_v8 = vmul.f32 %v9271_v21, %v9654_v5  ;;  %v9759_v57 = vpop.xlane.xlu2 %3079  ;;  %v4119_v21 = vmul.f32 %v11642_v9, %v9685_v59 }
 0xdc0   : > { %11869 = vst [vmem:[#allocation219_spill] sm:$0xff] %v9759_v57 }
 0xdc2   : > { %v9750_v63 = vpop.xlane.xlu0 %3085 }
 0xdc3   : > { %4483 = vrot.lane.b32.xlu2 %v4112_v23, %s11631_s4  ;;  %11867 = vst [vmem:[#allocation217_spill] sm:$0xff] %v9750_v63  ;;  %v3120_v23 = vsel %vm1178_vm2, %v2764_v8, 0.0 }
 0xdc7   : > { %3157 = vadd.xlane.f32.xlu1 %v3156_v0  ;;  %v2767_v0 = vmul.f32 %v9290_v61, %v9602_v31  ;;  %v9774_v8 = vpop.xlane.xlu2 %3088  ;;  %v2770_v61 = vmul.f32 %v9309_v51, %v9632_v37  ;;  %v11875_v31 = vld [vmem:[#allocation19_spill] sm:$0xff]  ;;  %v2773_v51 = vmul.f32 %v9332_v1, %v9685_v59 }
 0xdc8   : > { %11873 = vst [vmem:[#allocation221_spill] sm:$0xff] %v9774_v8  ;;  %v11936_v8 = vld [vmem:[#allocation93_spill] sm:$0xff] }
 0xdca   : > { %v9766_v36 = vpop.xlane.xlu0 %3094 }
 0xdcb   : > { %4485 = vrot.lane.b32.xlu2 %v4113_v42, %s11631_s4  ;;  %11871 = vst [vmem:[#allocation38_spill] sm:$0xff] %v9766_v36  ;;  %v3129_v42 = vsel %vm1178_vm2, %v2767_v0, 0.0  ;;  %v3138_v0 = vsel %vm1178_vm2, %v2770_v61, 0.0 }
 0xdcd   : > { %3121 = vadd.xlane.f32.xlu0 %v3120_v23  ;;  %v11874_v23 = vld [vmem:[#allocation60_spill] sm:$0xff] }
 0xdce   : > { %v4655_v38 = vsel %vm1178_vm2, %v11874_v23, 0.0 }
 0xdcf   : > { %4641 = vadd.xlane.f32.xlu1 %v4640_v17  ;;  %v4121_v17 = vmul.f32 %v11875_v31, %v9695_v2  ;;  %v9790_v23 = vpop.xlane.xlu2 %3097  ;;  %v3147_v31 = vsel %vm1178_vm2, %v2773_v51, 0.0 }
 0xdd2   : > { %v9782_v9 = vpop.xlane.xlu0 %3103 }
 0xdd3   : > { %4497 = vrot.lane.b32.xlu2 %v4119_v21, %s11631_s4  ;;  %11876 = vst [vmem:[#allocation60_spill] sm:$0xff] %v9782_v9  ;;  %v9785_v21 = vpop.xlane.xlu1 %3100 }
 0xdd4   : > { %11877 = vst [vmem:[#allocation19_spill] sm:$0xff] %v9785_v21 }
 0xdd5   : > { %3130 = vadd.xlane.f32.xlu0 %v3129_v42  ;;  %v11878_v42 = vld [vmem:[#allocation61_spill] sm:$0xff] }
 0xdd6   : > { %v4670_v53 = vsel %vm1178_vm2, %v11878_v42, 0.0  ;;  %11879 = vst [vmem:[#allocation61_spill] sm:$0xff] %v9790_v23 }
 0xdd7   : > { %4656 = vadd.xlane.f32.xlu1 %v4655_v38 }
 0xdda   : > { %v9797_v29 = vpop.xlane.xlu0 %3109 }
 0xddb   : > { %4501 = vrot.lane.b32.xlu2 %v4121_v17, %s11631_s4  ;;  %v9794_v38 = vpop.permute.xlu1 %4479  ;;  %11881 = vst [vmem:[#allocation223_spill] sm:$0xff] %v9797_v29  ;;  %v11882_v17 = vld [vmem:[#allocation62_spill] sm:$0xff] }
 0xddc   : > { %11880 = vst [vmem:[#allocation222_spill] sm:$0xff] %v9794_v38  ;;  %v4673_v61 = vsel %vm1178_vm2, %v11882_v17, 0.0  ;;  %v11884_v38 = vld [vmem:[#allocation58_spill] sm:$0xff]  ;;  %v11885_v17 = vld [vmem:[#allocation125_spill] sm:$0xff] }
 0xddd   : > { %3139 = vadd.xlane.f32.xlu0 %v3138_v0  ;;  %v2777_v0 = vmul.f32 %v9323_v60, %v9642_v14  ;;  %v11920_v14 = vld [vmem:[#allocation108_spill] sm:$0xff] }
 0xddf   : > { %4671 = vadd.xlane.f32.xlu1 %v4670_v53  ;;  %v9803_v53 = vpop.xlane.xlu2 %3106  ;;  %v3159_v1 = vsel %vm1178_vm2, %v2777_v0, 0.0  ;;  %v11889_v0 = vld [vmem:[#allocation101_spill] sm:$0xff] }
 0xde0   : > { %11883 = vst [vmem:[#allocation62_spill] sm:$0xff] %v9803_v53 }
 0xde3   : > { %v9805_v42 = vpop.xlane.xlu1 %3118 }
 0xde5   : > { %3148 = vadd.xlane.f32.xlu0 %v3147_v31  ;;  %v4685_v31 = vsel %vm1178_vm2, %v11884_v38, 0.0 }
 0xde7   : > { %4674 = vadd.xlane.f32.xlu1 %v4673_v61  ;;  %v9812_v61 = vpop.xlane.xlu2 %3112 }
 0xde8   : > { %11886 = vst [vmem:[#allocation58_spill] sm:$0xff] %v9812_v61  ;;  %v4757_v61 = vsel %vm1178_vm2, %v11920_v14, 0.0 }
 0xdeb   : > { %v9814_v60 = vpop.permute.xlu1 %4487 }
 0xdec   : > { %11887 = vst [vmem:[#allocation125_spill] sm:$0xff] %v9814_v60 }
 0xded   : > { %3160 = vadd.xlane.f32.xlu0 %v3159_v1  ;;  %v3548_v59 = vpop.permute.xlu0 %3547  ;;  %v5125_v1 = vsel %vm1178_vm2, %v11889_v0, 0  ;;  %v6954_v0 = vld [vmem:[%s11510_s23 + $0x98] sm:$0xff] }
 0xdee   : > { %v3649_v51 = vsel %vm1178_vm2, %v3548_v59, 0  ;;  %v11890_v59 = vld [vmem:[#allocation77_spill] sm:$0xff] }
 0xdef   : > { %4686 = vadd.xlane.f32.xlu1 %v4685_v31  ;;  %3658 = vmatpush.bf16.xpose.msrb.mxu2 %v3649_v51  ;;  %v4694_v38 = vsel %vm1178_vm2, %v11890_v59, 0.0  ;;  %v11891_v51 = vld [vmem:[#allocation55_spill] sm:$0xff]  ;;  %v2765_v59 = vmul.f32 %v6954_v0, %v9654_v5 }
 0xdf0   : > { %v4652_v31 = vsel %vm1178_vm2, %v11891_v51, 0.0 }
 0xdf3   : > { %v9828_v60 = vpop.permute.xlu1 %4489 }
 0xdf4   : > { %11893 = vst [vmem:[#allocation101_spill] sm:$0xff] %v9828_v60 }
 0xdf5   : > { %4644 = vadd.xlane.f32.xlu0 %v4643_v39  ;;  %v11894_v39 = vld [vmem:[#allocation80_spill] sm:$0xff] }
 0xdf6   : > { %6493 = vmatmul.msk.bf16.vlgmr.msrb.gmra.mxu2 %vm1178_vm2, %v11846_v56  ;;  %v4697_v26 = vsel %vm1178_vm2, %v11894_v39, 0.0  ;;  %v11896_v56 = vld [vmem:[#allocation75_spill] sm:$0xff]  ;;  %v6955_v39 = vld [vmem:[%s11510_s23 + $0xb0] sm:$0xff] }
 0xdf7   : > { %3812 = vmatpush.bf16.msra.mxu2 %v11885_v17  ;;  %4695 = vadd.xlane.f32.xlu1 %v4694_v38  ;;  %v9826_v17 = vpop.permute.xlu2 %4477  ;;  %v11895_v38 = vld [vmem:[#allocation74_spill] sm:$0xff]  ;;  %v4706_v60 = vsel %vm1178_vm2, %v11896_v56, 0.0 }
 0xdf8   : > { %11892 = vst [vmem:[#allocation71_spill] sm:$0xff] %v9826_v17  ;;  %v4664_v51 = vsel %vm1178_vm2, %v11895_v38, 0.0 }
 0xdfb   : > { %5134 = vmatpush.bf16.xpose.msrb.mxu2 %v5125_v1  ;;  %v3123_v1 = vsel %vm1178_vm2, %v2765_v59, 0.0  ;;  %v9847_v5 = vpop.permute.xlu1 %4493  ;;  %v11898_v59 = vld [vmem:[#allocation14_spill] sm:$0xff] }
 0xdfc   : > { %11897 = vst [vmem:[#allocation77_spill] sm:$0xff] %v9847_v5  ;;  %v11907_v5 = vld [vmem:[#allocation50_spill] sm:$0xff] }
 0xdfd   : > { %4653 = vadd.xlane.f32.xlu0 %v4652_v31 }
 0xdff   : > { %4698 = vadd.xlane.f32.xlu1 %v4697_v26  ;;  %v2768_v26 = vmul.f32 %v6955_v39, %v9617_v3  ;;  %v9858_v39 = vpop.permute.xlu0 %4481 }
 0xe00   : > { %11900 = vst [vmem:[#allocation55_spill] sm:$0xff] %v9858_v39  ;;  %v11912_v39 = vld [vmem:[#allocation86_spill] sm:$0xff] }
 0xe01   : > { %v3132_v0 = vsel %vm1178_vm2, %v2768_v26, 0.0 }
 0xe03   : > { %v9860_v26 = vpop.permute.xlu1 %4505 }
 0xe04   : > { %3124 = vadd.xlane.f32.xlu2 %v3123_v1  ;;  %v4676_v1 = vsel %vm1178_vm2, %v11898_v59, 0.0  ;;  %11901 = vst [vmem:[#allocation80_spill] sm:$0xff] %v9860_v26  ;;  %v11902_v59 = vld [vmem:[#allocation43_spill] sm:$0xff] }
 0xe05   : > { %4665 = vadd.xlane.f32.xlu0 %v4664_v51  ;;  %v11899_v51 = vld [vmem:[#allocation78_spill] sm:$0xff]  ;;  %11930 = vst [vmem:[#allocation43_spill] sm:$0xff] %v9943_v24 }
 0xe06   : > { %v9839_v31 = vpop.xlane.xlu2 %3115  ;;  %v4709_v56 = vsel %vm1178_vm2, %v11899_v51, 0.0  ;;  %v11903_v51 = vld [vmem:[#allocation81_spill] sm:$0xff] }
 0xe07   : > { %4707 = vadd.xlane.f32.xlu1 %v4706_v60  ;;  %v6956_v60 = vld [vmem:[%s11510_s23 + $0xc8] sm:$0xff] }
 0xe08   : > { %v2771_v3 = vmul.f32 %v6956_v60, %v9632_v37  ;;  %v9871_v60 = vpop.permute.xlu0 %4491 }
 0xe09   : > { %11904 = vst [vmem:[#allocation74_spill] sm:$0xff] %v9871_v60  ;;  %v11909_v60 = vld [vmem:[#allocation18_spill] sm:$0xff] }
 0xe0c   : > { %3133 = vadd.xlane.f32.xlu2 %v3132_v0  ;;  %v3141_v0 = vsel %vm1178_vm2, %v2771_v3, 0.0 }
 0xe0d   : > { %4677 = vadd.xlane.f32.xlu0 %v4676_v1  ;;  %v4679_v1 = vsel %vm1178_vm2, %v11902_v59, 0.0 }
 0xe0e   : > { %v3850_v38 = vpop.permute.xlu2 %3849 }
 0xe0f   : > { %3862 = vmatpush.bf16.msrb.mxu1 %v3850_v38  ;;  %4710 = vadd.xlane.f32.xlu1 %v4709_v56  ;;  %v4724_v38 = vsel %vm1178_vm2, %v11903_v51, 0.0  ;;  %v6957_v56 = vld [vmem:[%s11510_s23 + $0xe0] sm:$0xff] }
 0xe10   : > { %v2774_v37 = vmul.f32 %v6957_v56, %v9695_v2  ;;  %v4637_v2 = vsel %vm1178_vm2, %v11907_v5, 0.0  ;;  %v9884_v56 = vpop.permute.xlu0 %4495  ;;  %v4715_v5 = vsel %vm1178_vm2, %v11912_v39, 0.0 }
 0xe11   : > { %11908 = vst [vmem:[#allocation75_spill] sm:$0xff] %v9884_v56 }
 0xe12   : > { %v3150_v3 = vsel %vm1178_vm2, %v2774_v37, 0.0  ;;  %v4703_v37 = vsel %vm1178_vm2, %v11909_v60, 0.0  ;;  %v11914_v60 = vld [vmem:[#allocation124_spill] sm:$0xff] }
 0xe14   : > { %3142 = vadd.xlane.f32.xlu2 %v3141_v0  ;;  %v11905_v0 = vld [vmem:[#allocation94_spill] sm:$0xff] }
 0xe15   : > { %4680 = vadd.xlane.f32.xlu0 %v4679_v1  ;;  %v4688_v59 = vsel %vm1178_vm2, %v11905_v0, 0.0  ;;  %v11906_v1 = vld [vmem:[#allocation84_spill] sm:$0xff] }
 0xe16   : > { %v4727_v51 = vsel %vm1178_vm2, %v11906_v1, 0.0  ;;  %v11911_v1 = vld [vmem:[#allocation52_spill] sm:$0xff] }
 0xe17   : > { %4725 = vadd.xlane.f32.xlu1 %v4724_v38 }
 0xe18   : > { %v9898_v56 = vpop.permute.xlu0 %4499 }
 0xe19   : > { %11913 = vst [vmem:[#allocation14_spill] sm:$0xff] %v9898_v56  ;;  %v11918_v56 = vld [vmem:[#allocation97_spill] sm:$0xff] }
 0xe1a   : > { %v9873_v26 = vpop.xlane.xlu1 %3127 }
 0xe1c   : > { %3151 = vadd.xlane.f32.xlu2 %v3150_v3  ;;  %v11910_v3 = vld [vmem:[#allocation100_spill] sm:$0xff] }
 0xe1d   : > { %4689 = vadd.xlane.f32.xlu0 %v4688_v59  ;;  %v4736_v0 = vsel %vm1178_vm2, %v11910_v3, 0.0  ;;  %v3201_v59 = vlaneseq }
 0xe1f   : > { %4728 = vadd.xlane.f32.xlu1 %v4727_v51  ;;  %v4646_v51 = vsel %vm1178_vm2, %v11911_v1, 0.0  ;;  %v4649_v1 = vsel %vm1178_vm2, %v11915_v62, 0.0  ;;  %v11921_v62 = vld [vmem:[#allocation68_spill] sm:$0xff] }
 0xe22   : > { %v9880_v38 = vpop.xlane.xlu1 %3136 }
 0xe24   : > { %4638 = vadd.xlane.f32.xlu2 %v4637_v2  ;;  %v9896_v2 = vand.u32 127, %v3201_v59  ;;  %v11917_v59 = vld [vmem:[#allocation89_spill] sm:$0xff] }
 0xe25   : > { %4704 = vadd.xlane.f32.xlu0 %v4703_v37  ;;  %v4751_v37 = vsel %vm1178_vm2, %v11914_v60, 0.0 }
 0xe26   : > { %v9903_v3 = vadd.s32 4294967288, %v9896_v2  ;;  %v3229_v60 = vperm.slane %v11918_v56, %v9896_v2  ;;  %v11924_v56 = vld [vmem:[#allocation95_spill] sm:$0xff] }
 0xe27   : > { %4737 = vadd.xlane.f32.xlu1 %v4736_v0 }
 0xe28   : > { %v3230_v21 = vperm.slane %v11921_v62, %v9903_v3  ;;  %v3236_v53 = vperm.slane %v11924_v56, %v9903_v3  ;;  %v11929_v56 = vld [vmem:[#allocation40_spill] sm:$0xff] }
 0xe29   : > { %v4658_v30 = vsel %vm1178_vm2, %v11929_v56, 0.0  ;;  %v11935_v56 = vld [vmem:[#allocation123_spill] sm:$0xff] }
 0xe2a   : > { %v9890_v17 = vpop.xlane.xlu1 %3145  ;;  %v3231_v14 = vsel %vm3206_vm13, %v3230_v21, %v3229_v60  ;;  %v11931_v21 = vld [vmem:[#allocation109_spill] sm:$0xff] }
 0xe2b   : > { %v4739_v60 = vsel %vm1178_vm2, %v11931_v21, 0.0  ;;  %v4781_v21 = vsel %vm1178_vm2, %v11935_v56, 0.0 }
 0xe2c   : > { %4647 = vadd.xlane.f32.xlu2 %v4646_v51  ;;  %v11916_v51 = vld [vmem:[#allocation113_spill] sm:$0xff] }
 0xe2d   : > { %4716 = vadd.xlane.f32.xlu0 %v4715_v5  ;;  %v3233_v39 = vperm.slane %v11916_v51, %v9903_v3  ;;  %v4730_v5 = vsel %vm1178_vm2, %v11917_v59, 0.0  ;;  %v11922_v51 = vld [vmem:[#allocation17_spill] sm:$0xff] }
 0xe2e   : > { %v3238_v59 = vperm.slane %v11922_v51, %v9896_v2 }
 0xe2f   : > { %4752 = vadd.xlane.f32.xlu1 %v4751_v37  ;;  %v11919_v37 = vld [vmem:[#allocation92_spill] sm:$0xff] }
 0xe30   : > { %v3232_v6 = vperm.slane %v11919_v37, %v9896_v2  ;;  %v11925_v37 = vld [vmem:[#allocation42_spill] sm:$0xff] }
 0xe31   : > { %v3242_v29 = vperm.slane %v11925_v37, %v9903_v3 }
 0xe32   : > { %v9905_v0 = vpop.xlane.xlu1 %3154 }
 0xe34   : > { %4650 = vadd.xlane.f32.xlu2 %v4649_v1  ;;  %v3234_v1 = vsel %vm3206_vm13, %v3233_v39, %v3232_v6  ;;  %v11927_v6 = vld [vmem:[#allocation87_spill] sm:$0xff] }
 0xe35   : > { %4731 = vadd.xlane.f32.xlu0 %v4730_v5  ;;  %v9924_v5 = vpop.permute.xlu0 %4503  ;;  %v3235_v39 = vperm.slane %v11927_v6, %v9896_v2  ;;  %v3267_v51 = vsel %vm3253_vm14, %v3234_v1, %v3231_v14  ;;  %v11932_v6 = vld [vmem:[#allocation102_spill] sm:$0xff] }
 0xe36   : > { %11923 = vst [vmem:[#allocation78_spill] sm:$0xff] %v9924_v5  ;;  %v11928_v5 = vld [vmem:[#allocation99_spill] sm:$0xff]  ;;  %v3245_v1 = vperm.slane %v11932_v6, %v9903_v3 }
 0xe37   : > { %4758 = vadd.xlane.f32.xlu1 %v4757_v61  ;;  %v11926_v61 = vld [vmem:[#allocation90_spill] sm:$0xff]  ;;  %v3241_v9 = vperm.slane %v11928_v5, %v9896_v2  ;;  %v9951_v5 = vpop.permute.xlu2 %5383 }
 0xe38   : > { %v3239_v23 = vperm.slane %v11926_v61, %v9903_v3  ;;  %v3237_v61 = vsel %vm3206_vm13, %v3236_v53, %v3235_v39  ;;  %11933 = vst [vmem:[#allocation81_spill] sm:$0xff] %v9951_v5  ;;  %v3244_v53 = vperm.slane %v11936_v8, %v9896_v2  ;;  %v11940_v8 = vld [vmem:[#allocation129_spill] sm:$0xff] }
 0xe39   : > { %v3243_v14 = vsel %vm3206_vm13, %v3242_v29, %v3241_v9  ;;  %v11937_v29 = vld [vmem:[#allocation96_spill] sm:$0xff] }
 0xe3a   : > { %v9933_v62 = vpop.xlane.xlu1 %3157  ;;  %v3240_v37 = vsel %vm3206_vm13, %v3239_v23, %v3238_v59  ;;  %v3268_v23 = vsel %vm3255_vm1, %v3237_v61, %v3267_v51  ;;  %v11934_v59 = vld [vmem:[#allocation117_spill] sm:$0xff]  ;;  %v3248_v9 = vperm.slane %v11937_v29, %v9903_v3  ;;  %v11939_v61 = vld [vmem:[#allocation128_spill] sm:$0xff]  ;;  %v3246_v56 = vsel %vm3206_vm13, %v3245_v1, %v3244_v53  ;;  %v11942_v29 = vld [vmem:[#allocation103_spill] sm:$0xff] }
 0xe3b   : > { %v3269_v39 = vsel %vm3257_vm3, %v3240_v37, %v3268_v23  ;;  %v3342_v37 = vperm.slane %v11940_v8, %v9903_v3  ;;  %v11941_v23 = vld [vmem:[#allocation105_spill] sm:$0xff]  ;;  %v3335_v36 = vperm.slane %v11942_v29, %v9896_v2  ;;  %v11945_v53 = vld [vmem:[#allocation46_spill] sm:$0xff] }
 0xe3c   : > { %4659 = vadd.xlane.f32.xlu2 %v4658_v30  ;;  %v3247_v30 = vperm.slane %v11934_v59, %v9896_v2  ;;  %v3270_v51 = vsel %vm3259_vm4, %v3243_v14, %v3269_v39  ;;  %v3338_v59 = vperm.slane %v11939_v61, %v9896_v2  ;;  %v11943_v14 = vld [vmem:[#allocation114_spill] sm:$0xff]  ;;  %v3341_v57 = vperm.slane %v11945_v53, %v9896_v2  ;;  %v11946_v8 = vld [vmem:[#allocation41_spill] sm:$0xff] }
 0xe3d   : > { %4740 = vadd.xlane.f32.xlu0 %v4739_v60  ;;  %v11938_v60 = vld [vmem:[#allocation48_spill] sm:$0xff]  ;;  %v3339_v39 = vperm.slane %v11943_v14, %v9903_v3  ;;  %v3271_v1 = vsel %vm3261_vm5, %v3246_v56, %v3270_v51  ;;  %v4661_v63 = vsel %vm1178_vm2, %v11946_v8, 0.0  ;;  %v3293_v8 = vpop.f32.mrf.mxu1 }
 0xe3e   : > { %v3251_v6 = vperm.slane %v11938_v60, %v9903_v3  ;;  %v3249_v60 = vsel %vm3206_vm13, %v3248_v9, %v3247_v30  ;;  %v11948_v9 = vld [vmem:[#allocation12_spill] sm:$0xff]  ;;  %v3343_v56 = vsel %vm3206_vm13, %v3342_v37, %v3341_v57  ;;  %v11952_v57 = vld [vmem:[#allocation119_spill] sm:$0xff]  ;;  %v11953_v37 = vld [vmem:[#allocation49_spill] sm:$0xff] }
 0xe3f   : > { %4782 = vadd.xlane.f32.xlu1 %v4781_v21  ;;  %v3250_v21 = vperm.slane %v11941_v23, %v9896_v2  ;;  %v11947_v23 = vld [vmem:[#allocation107_spill] sm:$0xff]  ;;  %v3340_v30 = vsel %vm3206_vm13, %v3339_v39, %v3338_v59  ;;  %v4748_v14 = vsel %vm1178_vm2, %v11948_v9, 0.0  ;;  %v3272_v51 = vsel %vm3263_vm6, %v3249_v60, %v3271_v1  ;;  %v10004_v60 = vpop.permute.xlu2 %5381  ;;  %v11954_v1 = vld [vmem:[#allocation149_spill] sm:$0xff] }
 0xe40   : > { %v9968_v5 = vpop.xlane.xlu0 %3121  ;;  %v3336_v34 = vperm.slane %v11947_v23, %v9903_v3  ;;  %11951 = vst [vmem:[#allocation84_spill] sm:$0xff] %v10004_v60  ;;  %v3363_v9 = vperm.slane %v11954_v1, %v9903_v3  ;;  %v11960_v1 = vld [vmem:[#allocation131_spill] sm:$0xff] }
 0xe41   : > { %v3252_v29 = vsel %vm3206_vm13, %v3251_v6, %v3250_v21  ;;  %v11950_v6 = vld [vmem:[#allocation130_spill] sm:$0xff]  ;;  %v11961_v60 = vld [vmem:[#allocation15_spill] sm:$0xff] }
 0xe42   : > { %v9980_v61 = vpop.xlane.xlu1 %4641  ;;  %v3337_v53 = vsel %vm3206_vm13, %v3336_v34, %v3335_v36  ;;  %v3347_v21 = vperm.slane %v11950_v6, %v9896_v2  ;;  %v3273_v59 = vsel %vm3265_vm7, %v3252_v29, %v3272_v51  ;;  %v3345_v34 = vperm.slane %v11952_v57, %v9903_v3  ;;  %v11955_v29 = vld [vmem:[#allocation76_spill] sm:$0xff]  ;;  %v11956_v51 = vld [vmem:[#allocation79_spill] sm:$0xff] }
 0xe43   : > { %11944 = vst [vmem:[#allocation94_spill] sm:$0xff] %v9980_v61  ;;  %v11949_v61 = vld [vmem:[#allocation116_spill] sm:$0xff]  ;;  %v3383_v39 = vsel %vm3253_vm14, %v3340_v30, %v3337_v53  ;;  %v4667_v30 = vsel %vm1178_vm2, %v11955_v29, 0.0  ;;  %v4682_v53 = vsel %vm1178_vm2, %v11956_v51, 0.0  ;;  %v3362_v57 = vperm.slane %v9356_v33, %v9896_v2 }
 0xe44   : > { %4662 = vadd.xlane.f32.xlu2 %v4661_v63  ;;  %v3344_v23 = vperm.slane %v11949_v61, %v9896_v2  ;;  %v4790_v63 = vsel %vm1178_vm2, %v9274_v7, 0.0  ;;  %v3384_v36 = vsel %vm3255_vm1, %v3343_v56, %v3383_v39  ;;  %v3348_v61 = vperm.slane %v11953_v37, %v9903_v3 }
 0xe45   : > { %4749 = vadd.xlane.f32.xlu0 %v4748_v14  ;;  %v10015_v7 = vadd.f32 %v3293_v8, %v3273_v59  ;;  %v11959_v8 = vld [vmem:[#allocation122_spill] sm:$0xff]  ;;  %v3351_v29 = vperm.slane %v11960_v1, %v9903_v3  ;;  %v3364_v33 = vsel %vm3206_vm13, %v3363_v9, %v3362_v57  ;;  %v11968_v9 = vld [vmem:[#allocation20_spill] sm:$0xff] }
 0xe46   : > { %v3346_v6 = vsel %vm3206_vm13, %v3345_v34, %v3344_v23  ;;  %v3349_v56 = vsel %vm3206_vm13, %v3348_v61, %v3347_v21  ;;  %v3350_v59 = vperm.slane %v11959_v8, %v9896_v2  ;;  %v4760_v23 = vsel %vm1178_vm2, %v11961_v60, 0.0  ;;  %v11962_v21 = vld [vmem:[#allocation133_spill] sm:$0xff]  ;;  %v11963_v61 = vld [vmem:[#allocation170_spill] sm:$0xff]  ;;  %v11965_v8 = vld [vmem:[#allocation32_spill] sm:$0xff] }
 0xe47   : > { %4791 = vadd.xlane.f32.xlu1 %v4790_v63  ;;  %v11957_v63 = vld [vmem:[#allocation59_spill] sm:$0xff]  ;;  %v3385_v51 = vsel %vm3257_vm3, %v3346_v6, %v3384_v36  ;;  %v3360_v34 = vperm.slane %v11962_v21, %v9903_v3  ;;  %v3354_v1 = vperm.slane %v11965_v8, %v9903_v3  ;;  %v11966_v36 = vld [vmem:[#allocation118_spill] sm:$0xff]  ;;  %v3365_v57 = vperm.slane %v11968_v9, %v9896_v2 }
 0xe48   : > { %v10013_v14 = vpop.xlane.xlu0 %3130  ;;  %v3359_v39 = vperm.slane %v11957_v63, %v9896_v2  ;;  %v3366_v63 = vperm.slane %v11963_v61, %v9903_v3  ;;  %v3353_v6 = vperm.slane %v11966_v36, %v9896_v2  ;;  %v11967_v60 = vld [vmem:[#allocation154_spill] sm:$0xff]  ;;  %v3386_v21 = vsel %vm3259_vm4, %v3349_v56, %v3385_v51  ;;  %v11971_v36 = vld [vmem:[#allocation132_spill] sm:$0xff] }
 0xe49   : > { %v3372_v47 = vperm.slane %v11967_v60, %v9903_v3  ;;  %v4793_v8 = vsel %vm1178_vm2, %v11970_v25, 0.0  ;;  %v3352_v52 = vsel %vm3206_vm13, %v3351_v29, %v3350_v59  ;;  %v3356_v24 = vperm.slane %v11971_v36, %v9896_v2  ;;  %v11972_v60 = vld [vmem:[#allocation172_spill] sm:$0xff]  ;;  %v11973_v25 = vld [vmem:[#allocation134_spill] sm:$0xff]  ;;  %v3414_v36 = vpop.f32.mrf.mxu2 }
 0xe4a   : > { %v10027_v37 = vpop.xlane.xlu1 %4656  ;;  %v3361_v61 = vsel %vm3206_vm13, %v3360_v34, %v3359_v39  ;;  %v3371_v56 = vperm.slane %v11972_v60, %v9896_v2  ;;  %v3367_v39 = vsel %vm3206_vm13, %v3366_v63, %v3365_v57  ;;  %v3462_v34 = vperm.slane %v9430_v19, %v9903_v3  ;;  %v10078_v63 = vpop.permute.xlu2 %4483  ;;  %v11976_v57 = vld [vmem:[#allocation158_spill] sm:$0xff] }
 0xe4b   : > { %11958 = vst [vmem:[#allocation50_spill] sm:$0xff] %v10027_v37  ;;  %v11964_v37 = vld [vmem:[#allocation152_spill] sm:$0xff]  ;;  %v3390_v51 = vsel %vm3253_vm14, %v3364_v33, %v3361_v61  ;;  %v4787_v59 = vsel %vm1178_vm2, %v11973_v25, 0.0  ;;  %v3375_v29 = vperm.slane %v9422_v55, %v9903_v3  ;;  %v11978_v55 = vld [vmem:[#allocation151_spill] sm:$0xff]  ;;  %v11980_v25 = vld [vmem:[#allocation137_spill] sm:$0xff] }
 0xe4c   : > { %v3368_v41 = vperm.slane %v11964_v37, %v9896_v2  ;;  %4668 = vadd.xlane.f32.xlu2 %v4667_v30  ;;  %v11969_v37 = vld [vmem:[#allocation21_spill] sm:$0xff]  ;;  %v11974_v33 = vld [vmem:[#allocation156_spill] sm:$0xff]  ;;  %11975 = vst [vmem:[#allocation18_spill] sm:$0xff] %v10078_v63  ;;  %v3391_v19 = vsel %vm3255_vm1, %v3367_v39, %v3390_v51 }
 0xe4d   : > { %4761 = vadd.xlane.f32.xlu0 %v4760_v23  ;;  %v3369_v30 = vperm.slane %v11969_v37, %v9903_v3  ;;  %v3373_v37 = vsel %vm3206_vm13, %v3372_v47, %v3371_v56  ;;  %v3377_v61 = vperm.slane %v11974_v33, %v9896_v2  ;;  %v3461_v47 = vperm.slane %v11978_v55, %v9896_v2  ;;  %v11982_v51 = vld [vmem:[#allocation153_spill] sm:$0xff] }
 0xe4e   : > { %v3374_v33 = vperm.slane %v11980_v25, %v9896_v2  ;;  %v3464_v39 = vperm.slane %v11982_v51, %v9896_v2  ;;  %v11983_v55 = vld [vmem:[#allocation141_spill] sm:$0xff] }
 0xe4f   : > { %4794 = vadd.xlane.f32.xlu1 %v4793_v8  ;;  %v3370_v23 = vsel %vm3206_vm13, %v3369_v30, %v3368_v41  ;;  %v3465_v41 = vperm.slane %v9436_v22, %v9903_v3  ;;  %v3381_v30 = vperm.slane %v11976_v57, %v9903_v3  ;;  %v11977_v8 = vld [vmem:[#allocation163_spill] sm:$0xff]  ;;  %v11981_v22 = vld [vmem:[#allocation138_spill] sm:$0xff]  ;;  %v3380_v57 = vperm.slane %v9428_v18, %v9896_v2 }
 0xe50   : > { %v10067_v9 = vpop.xlane.xlu0 %3139  ;;  %v3459_v60 = vperm.slane %v11977_v8, %v9903_v3  ;;  %v3378_v20 = vperm.slane %v11981_v22, %v9903_v3  ;;  %v3392_v63 = vsel %vm3257_vm3, %v3370_v23, %v3391_v19  ;;  %v3458_v15 = vperm.slane %v11983_v55, %v9896_v2  ;;  %v11984_v19 = vld [vmem:[#allocation164_spill] sm:$0xff] }
 0xe51   : > { %v3393_v8 = vsel %vm3259_vm4, %v3373_v37, %v3392_v63  ;;  %v3466_v22 = vsel %vm3206_vm13, %v3465_v41, %v3464_v39  ;;  %v3470_v23 = vperm.slane %v9446_v48, %v9896_v2  ;;  %v4808_v51 = vsel %vm1178_vm2, %v11984_v19, 0.0 }
 0xe52   : > { %v10087_v56 = vpop.xlane.xlu1 %4671  ;;  %v3379_v25 = vsel %vm3206_vm13, %v3378_v20, %v3377_v61  ;;  %v3376_v18 = vsel %vm3206_vm13, %v3375_v29, %v3374_v33  ;;  %v3382_v37 = vsel %vm3206_vm13, %v3381_v30, %v3380_v57  ;;  %v3460_v63 = vsel %vm3206_vm13, %v3459_v60, %v3458_v15  ;;  %v11986_v61 = vld [vmem:[#allocation157_spill] sm:$0xff]  ;;  %v10140_v19 = vpop.permute.xlu2 %4485 }
 0xe53   : > { %11979 = vst [vmem:[#allocation100_spill] sm:$0xff] %v10087_v56  ;;  %v3463_v56 = vsel %vm3206_vm13, %v3462_v34, %v3461_v47  ;;  %v11985_v34 = vld [vmem:[#allocation155_spill] sm:$0xff]  ;;  %v3387_v20 = vsel %vm3261_vm5, %v3352_v52, %v3386_v21  ;;  %v3471_v41 = vperm.slane %v11986_v61, %v9903_v3  ;;  %v11987_v47 = vld [vmem:[#allocation120_spill] sm:$0xff]  ;;  %v3468_v30 = vperm.slane %v9469_v10, %v9903_v3 }
 0xe54   : > { %4683 = vadd.xlane.f32.xlu2 %v4682_v53  ;;  %v3467_v53 = vperm.slane %v11985_v34, %v9896_v2  ;;  %v3506_v48 = vsel %vm3253_vm14, %v3463_v56, %v3460_v63  ;;  %v3357_v29 = vperm.slane %v11987_v47, %v9903_v3  ;;  %v10127_v21 = vmul.f32 0.25, %v10015_v7  ;;  %v11990_v61 = vld [vmem:[#allocation159_spill] sm:$0xff] }
 0xe55   : > { %4788 = vadd.xlane.f32.xlu0 %v4787_v59  ;;  %v3394_v59 = vsel %vm3261_vm5, %v3376_v18, %v3393_v8  ;;  %v3507_v15 = vsel %vm3255_vm1, %v3466_v22, %v3506_v48  ;;  %v3472_v56 = vsel %vm3206_vm13, %v3471_v41, %v3470_v23  ;;  %v3355_v39 = vsel %vm3206_vm13, %v3354_v1, %v3353_v6  ;;  %v3416_v22 = vpop.f32.mrf.mxu2  ;;  %v11988_v23 = vld [vmem:[#allocation73_spill] sm:$0xff]  ;;  %v11989_v1 = vld [vmem:[#allocation144_spill] sm:$0xff] }
 0xe56   : > { %v3395_v52 = vsel %vm3263_vm6, %v3379_v25, %v3394_v59  ;;  %v3358_v57 = vsel %vm3206_vm13, %v3357_v29, %v3356_v24  ;;  %v3474_v10 = vperm.slane %v9506_v32, %v9903_v3  ;;  %v3469_v8 = vsel %vm3206_vm13, %v3468_v30, %v3467_v53  ;;  %v3537_v29 = vpop.f32.mrf.mxu1 }
 0xe57   : > { %4809 = vadd.xlane.f32.xlu1 %v4808_v51  ;;  %v3396_v33 = vsel %vm3265_vm7, %v3382_v37, %v3395_v52  ;;  %v3388_v25 = vsel %vm3263_vm6, %v3355_v39, %v3387_v20  ;;  %v3508_v7 = vsel %vm3257_vm3, %v3469_v8, %v3507_v15  ;;  %v4691_v51 = vsel %vm1178_vm2, %v11988_v23, 0.0  ;;  %v11992_v23 = vld [vmem:[#allocation83_spill] sm:$0xff] }
 0xe58   : > { %v10123_v60 = vpop.xlane.xlu0 %3148  ;;  %v4799_v24 = vsel %vm1178_vm2, %v11989_v1, 0.0  ;;  %v3473_v32 = vperm.slane %v9487_v4, %v9896_v2  ;;  %v3479_v6 = vperm.slane %v9457_v16, %v9896_v2  ;;  %v3509_v18 = vsel %vm3259_vm4, %v3472_v56, %v3508_v7  ;;  %v11991_v56 = vld [vmem:[#allocation104_spill] sm:$0xff] }
 0xe59   : > { %v3417_v37 = vadd.f32 %v3416_v22, %v3396_v33  ;;  %v3389_v63 = vsel %vm3265_vm7, %v3358_v57, %v3388_v25  ;;  %v3477_v34 = vperm.slane %v9524_v45, %v9903_v3  ;;  %v3480_v41 = vperm.slane %v11990_v61, %v9903_v3 }
 0xe5a   : > { %v10136_v55 = vpop.xlane.xlu1 %4674  ;;  %v3415_v53 = vadd.f32 %v3414_v36, %v3389_v63  ;;  %v3475_v20 = vsel %vm3206_vm13, %v3474_v10, %v3473_v32  ;;  %v3676_v4 = vsel %vm1178_vm2, %v10127_v21, -inf  ;;  %v3476_v16 = vperm.slane %v9514_v46, %v9896_v2  ;;  %v10178_v10 = vpop.permute.xlu2 %4497 }
 0xe5b   : > { %v3510_v48 = vsel %vm3261_vm5, %v3475_v20, %v3509_v18  ;;  %v3481_v59 = vsel %vm3206_vm13, %v3480_v41, %v3479_v6  ;;  %v10165_v45 = vmul.f32 0.25, %v3417_v37  ;;  %v4700_v33 = vsel %vm1178_vm2, %v11991_v56, 0.0  ;;  %v11994_v18 = vld [vmem:[#allocation23_spill] sm:$0xff] }
 0xe5c   : > { %4692 = vadd.xlane.f32.xlu2 %v4691_v51  ;;  %v3478_v36 = vsel %vm3206_vm13, %v3477_v34, %v3476_v16  ;;  %v10168_v30 = vmul.f32 0.25, %v3415_v53  ;;  %v4712_v51 = vsel %vm1178_vm2, %v11992_v23, 0.0  ;;  %v4718_v37 = vsel %vm1178_vm2, %v11994_v18, 0.0  ;;  %v11995_v20 = vld [vmem:[#allocation111_spill] sm:$0xff] }
 0xe5d   : > { %4800 = vadd.xlane.f32.xlu0 %v4799_v24  ;;  %v3511_v15 = vsel %vm3263_vm6, %v3478_v36, %v3510_v48  ;;  %v3682_v57 = vsel %vm1178_vm2, %v10165_v45, -inf  ;;  %v4721_v61 = vsel %vm1178_vm2, %v11995_v20, 0.0 }
 0xe5e   : > { %v3512_v46 = vsel %vm3265_vm7, %v3481_v59, %v3511_v15  ;;  %v3679_v8 = vsel %vm1178_vm2, %v10168_v30, -inf  ;;  %v11996_v59 = vld [vmem:[#allocation121_spill] sm:$0xff]  ;;  %v3608_v15 = vperm.slane %v9968_v5, %v9896_v2  ;;  %v3615_v5 = vperm.slane %v9880_v38, %v9903_v3 }
 0xe5f   : > { %3677 = vmax.xlane.f32.xlu1 %v3676_v4  ;;  %v3538_v39 = vadd.f32 %v3537_v29, %v3512_v46  ;;  %v4733_v36 = vsel %vm1178_vm2, %v11996_v59, 0.0  ;;  %v3605_v29 = vperm.slane %v9839_v31, %v9896_v2  ;;  %v3606_v46 = vperm.slane %v9805_v42, %v9903_v3 }
 0xe60   : > { %v10163_v47 = vpop.xlane.xlu0 %3160  ;;  %v3611_v42 = vperm.slane %v9873_v26, %v9896_v2  ;;  %v3621_v26 = vperm.slane %v10123_v60, %v9903_v3  ;;  %v3626_v60 = vperm.slane %v9933_v62, %v9896_v2 }
 0xe61   : > { %v10182_v25 = vmul.f32 0.25, %v3538_v39  ;;  %v3607_v31 = vsel %vm3206_vm13, %v3606_v46, %v3605_v29  ;;  %v3627_v59 = vperm.slane %v10163_v47, %v9903_v3 }
 0xe62   : > { %v10171_v52 = vpop.xlane.xlu1 %4686  ;;  %v10192_v24 = vpop.permute.xlu2 %4501 }
 0xe63   : > { %v3685_v1 = vsel %vm1178_vm2, %v10182_v25, -inf  ;;  %11993 = vst [vmem:[#allocation52_spill] sm:$0xff] %v10192_v24 }
 0xe64   : > { %4701 = vadd.xlane.f32.xlu2 %v4700_v33 }
 0xe65   : > { %3683 = vmax.xlane.f32.xlu0 %v3682_v57  ;;  %v3612_v57 = vperm.slane %v10013_v14, %v9903_v3 }
 0xe67   : > { %3680 = vmax.xlane.f32.xlu1 %v3679_v8 }
 0xe68   : > { %v10184_v22 = vpop.xlane.xlu0 %4644 }
 0xe6a   : > { %v10186_v7 = vpop.xlane.xlu1 %4695 }
 0xe6c   : > { %4713 = vadd.xlane.f32.xlu2 %v4712_v51  ;;  %v3617_v51 = vperm.slane %v10067_v9, %v9896_v2 }
 0xe6d   : > { %3686 = vmax.xlane.f32.xlu0 %v3685_v1 }
 0xe70   : > { %v10194_v32 = vpop.xlane.xlu0 %4653 }
 0xe72   : > { %v10196_v6 = vpop.xlane.xlu1 %4698 }
 0xe74   : > { %4719 = vadd.xlane.f32.xlu2 %v4718_v37 }
 0xe77   : > { %v3125_v63 = vpop.xlane.xlu2 %3124 }
 0xe78   : > { %v10200_v34 = vpop.xlane.xlu0 %4665  ;;  %v3609_v48 = vperm.slane %v3125_v63, %v9903_v3  ;;  %v11998_v63 = vld [vmem:[#allocation54_spill] sm:$0xff] }
 0xe79   : > { %v10234_v18 = vpop.f32.mrf.mxu2  ;;  %v4742_v20 = vsel %vm1178_vm2, %v11998_v63, 0.0 }
 0xe7a   : > { %v10202_v53 = vpop.xlane.xlu1 %4707  ;;  %v3610_v56 = vsel %vm3206_vm13, %v3609_v48, %v3608_v15  ;;  %v3620_v48 = vperm.slane %v9890_v17, %v9896_v2  ;;  %v3624_v15 = vperm.slane %v9905_v0, %v9903_v3 }
 0xe7b   : > { %v3636_v1 = vsel %vm3253_vm14, %v3610_v56, %v3607_v31 }
 0xe7c   : > { %4722 = vadd.xlane.f32.xlu2 %v4721_v61  ;;  %v3613_v61 = vsel %vm3206_vm13, %v3612_v57, %v3611_v42  ;;  %v3628_v57 = vsel %vm3206_vm13, %v3627_v59, %v3626_v60 }
 0xe7d   : > { %v3637_v9 = vsel %vm3255_vm1, %v3613_v61, %v3636_v1  ;;  %v12001_v61 = vld [vmem:[#allocation106_spill] sm:$0xff] }
 0xe7f   : > { %v3134_v41 = vpop.xlane.xlu2 %3133 }
 0xe80   : > { %v10206_v4 = vpop.xlane.xlu0 %4677  ;;  %v3614_v33 = vperm.slane %v3134_v41, %v9896_v2 }
 0xe82   : > { %v10208_v16 = vpop.xlane.xlu1 %4710  ;;  %v3616_v37 = vsel %vm3206_vm13, %v3615_v5, %v3614_v33  ;;  %v3622_v33 = vsel %vm3206_vm13, %v3621_v26, %v3620_v48  ;;  %v3662_v5 = vpop.f32.mrf.mxu2  ;;  %v12002_v48 = vld [vmem:[#allocation57_spill] sm:$0xff] }
 0xe83   : > { %v3638_v41 = vsel %vm3257_vm3, %v3616_v37, %v3637_v9  ;;  %v4784_v59 = vsel %vm1178_vm2, %v12002_v48, 0.0 }
 0xe84   : > { %4734 = vadd.xlane.f32.xlu2 %v4733_v36 }
 0xe87   : > { %v3143_v39 = vpop.xlane.xlu2 %3142 }
 0xe88   : > { %v3618_v8 = vperm.slane %v3143_v39, %v9903_v3  ;;  %v10224_v23 = vpop.xlane.xlu0 %4680 }
 0xe8a   : > { %v10236_v14 = vpop.xlane.xlu1 %4725  ;;  %v3619_v38 = vsel %vm3206_vm13, %v3618_v8, %v3617_v51  ;;  %v12000_v8 = vld [vmem:[#allocation112_spill] sm:$0xff] }
 0xe8b   : > { %11997 = vst [vmem:[#allocation86_spill] sm:$0xff] %v10236_v14  ;;  %v3639_v36 = vsel %vm3259_vm4, %v3619_v38, %v3638_v41  ;;  %v4745_v0 = vsel %vm1178_vm2, %v12000_v8, 0.0  ;;  %v4754_v38 = vsel %vm1178_vm2, %v12001_v61, 0.0  ;;  %v12010_v61 = vld [vmem:[#allocation142_spill] sm:$0xff] }
 0xe8c   : > { %4743 = vadd.xlane.f32.xlu2 %v4742_v20  ;;  %v3640_v47 = vsel %vm3261_vm5, %v3622_v33, %v3639_v36  ;;  %v12003_v36 = vld [vmem:[#allocation45_spill] sm:$0xff]  ;;  %v12005_v33 = vld [vmem:[#allocation63_spill] sm:$0xff] }
 0xe8f   : > { %v3152_v29 = vpop.xlane.xlu2 %3151 }
 0xe90   : > { %v3623_v46 = vperm.slane %v3152_v29, %v9896_v2  ;;  %v10255_v56 = vpop.xlane.xlu0 %4689  ;;  %v3209_v29 = vperm.slane %v12003_v36, %v9903_v3 }
 0xe92   : > { %v3625_v17 = vsel %vm3206_vm13, %v3624_v15, %v3623_v46  ;;  %v10261_v39 = vpop.xlane.xlu1 %4728  ;;  %v12004_v46 = vld [vmem:[#allocation39_spill] sm:$0xff] }
 0xe93   : > { %11999 = vst [vmem:[#allocation124_spill] sm:$0xff] %v10261_v39  ;;  %v3641_v31 = vsel %vm3263_vm6, %v3625_v17, %v3640_v47  ;;  %v3203_v60 = vperm.slane %v12004_v46, %v9896_v2  ;;  %v3208_v17 = vperm.slane %v12005_v33, %v9896_v2  ;;  %v12012_v46 = vld [vmem:[#allocation64_spill] sm:$0xff]  ;;  %v12013_v33 = vld [vmem:[#allocation85_spill] sm:$0xff]  ;;  %v12020_v39 = vld [vmem:[#allocation135_spill] sm:$0xff] }
 0xe94   : > { %4746 = vadd.xlane.f32.xlu2 %v4745_v0  ;;  %v3642_v42 = vsel %vm3265_vm7, %v3628_v57, %v3641_v31  ;;  %v12007_v57 = vld [vmem:[#allocation69_spill] sm:$0xff] }
 0xe95   : > { %v3663_v62 = vadd.f32 %v3662_v5, %v3642_v42  ;;  %v3205_v8 = vperm.slane %v12007_v57, %v9903_v3  ;;  %v3210_v0 = vsel %vm3206_vm13, %v3209_v29, %v3208_v17  ;;  %v12008_v5 = vld [vmem:[#allocation82_spill] sm:$0xff]  ;;  %v3212_v29 = vperm.slane %v12012_v46, %v9903_v3  ;;  %v12016_v46 = vld [vmem:[#allocation88_spill] sm:$0xff] }
 0xe96   : > { %v3211_v42 = vperm.slane %v12008_v5, %v9896_v2  ;;  %v3215_v17 = vperm.slane %v12013_v33, %v9903_v3  ;;  %v12014_v5 = vld [vmem:[#allocation65_spill] sm:$0xff]  ;;  %v3220_v33 = vperm.slane %v12016_v46, %v9896_v2  ;;  %v3489_v46 = vperm.slane %v9640_v54, %v9903_v3 }
 0xe97   : > { %v10269_v51 = vpop.xlane.xlu2 %4638  ;;  %v10271_v1 = vmul.f32 0.25, %v3663_v62  ;;  %v12009_v62 = vld [vmem:[#allocation47_spill] sm:$0xff]  ;;  %v3207_v48 = vsel %vm3206_vm13, %v3205_v8, %v3203_v60 }
 0xe98   : > { %v10273_v37 = vpop.xlane.xlu0 %4704  ;;  %v3254_v57 = vsel %vm3253_vm14, %v3210_v0, %v3207_v48  ;;  %v3213_v24 = vsel %vm3206_vm13, %v3212_v29, %v3211_v42  ;;  %v3488_v42 = vperm.slane %v9553_v35, %v9896_v2  ;;  %v12019_v35 = vld [vmem:[#allocation56_spill] sm:$0xff] }
 0xe99   : > { %v3694_v63 = vsel %vm1178_vm2, %v10271_v1, -inf  ;;  %v3256_v0 = vsel %vm3255_vm1, %v3213_v24, %v3254_v57  ;;  %v12018_v24 = vld [vmem:[#allocation91_spill] sm:$0xff] }
 0xe9a   : > { %v10277_v20 = vpop.xlane.xlu1 %4737  ;;  %3695 = vmax.xlane.f32.xlu1 %v3694_v63  ;;  %v3214_v63 = vperm.slane %v12009_v62, %v9896_v2  ;;  %v3217_v62 = vperm.slane %v12014_v5, %v9896_v2  ;;  %v12017_v5 = vld [vmem:[#allocation53_spill] sm:$0xff] }
 0xe9c   : > { %4755 = vadd.xlane.f32.xlu2 %v4754_v38  ;;  %v4796_v38 = vsel %vm1178_vm2, %v12010_v61, 0.0  ;;  %v12015_v61 = vld [vmem:[#allocation66_spill] sm:$0xff]  ;;  %v3216_v8 = vsel %vm3206_vm13, %v3215_v17, %v3214_v63  ;;  %v3223_v63 = vperm.slane %v12017_v5, %v9896_v2  ;;  %v3486_v17 = vperm.slane %v9619_v12, %v9903_v3 }
 0xe9d   : > { %v3221_v60 = vperm.slane %v12015_v61, %v9903_v3  ;;  %v3492_v61 = vperm.slane %v9569_v49, %v9903_v3  ;;  %v3258_v57 = vsel %vm3257_vm3, %v3216_v8, %v3256_v0  ;;  %v3491_v12 = vperm.slane %v9634_v13, %v9896_v2  ;;  %v12021_v0 = vld [vmem:[#allocation67_spill] sm:$0xff] }
 0xe9f   : > { %v10281_v26 = vpop.xlane.xlu2 %4647  ;;  %v3222_v8 = vsel %vm3206_vm13, %v3221_v60, %v3220_v33  ;;  %v3493_v13 = vsel %vm3206_vm13, %v3492_v61, %v3491_v12  ;;  %v3494_v33 = vperm.slane %v9656_v27, %v9896_v2  ;;  %v12022_v61 = vld [vmem:[#allocation198_spill] sm:$0xff] }
 0xea0   : > { %v10283_v9 = vpop.xlane.xlu0 %4716  ;;  %v3500_v27 = vperm.slane %v12022_v61, %v9896_v2 }
 0xea2   : > { %v10285_v41 = vpop.xlane.xlu1 %4752 }
 0xea4   : > { %4785 = vadd.xlane.f32.xlu2 %v4784_v59  ;;  %v12011_v59 = vld [vmem:[#allocation51_spill] sm:$0xff] }
 0xea5   : > { %v3218_v36 = vperm.slane %v12011_v59, %v9903_v3 }
 0xea7   : > { %v10291_v15 = vpop.xlane.xlu2 %4650  ;;  %v3219_v48 = vsel %vm3206_vm13, %v3218_v36, %v3217_v62  ;;  %v3224_v36 = vperm.slane %v12018_v24, %v9903_v3  ;;  %v3227_v62 = vperm.slane %v12019_v35, %v9903_v3  ;;  %v4802_v24 = vsel %vm1178_vm2, %v12020_v39, 0.0 }
 0xea8   : > { %v10297_v47 = vpop.xlane.xlu0 %4731  ;;  %v3226_v35 = vperm.slane %v12021_v0, %v9896_v2  ;;  %v3260_v54 = vsel %vm3259_vm4, %v3219_v48, %v3258_v57  ;;  %v3501_v48 = vperm.slane %v9599_v43, %v9903_v3  ;;  %v12026_v0 = vld [vmem:[#allocation201_spill] sm:$0xff] }
 0xea9   : > { %12006 = vst [vmem:[#allocation72_spill] sm:$0xff] %v10297_v47  ;;  %v3490_v47 = vsel %vm3206_vm13, %v3489_v46, %v3488_v42  ;;  %v3262_v42 = vsel %vm3261_vm5, %v3222_v8, %v3260_v54  ;;  %v12024_v46 = vld [vmem:[#allocation43_spill] sm:$0xff] }
 0xeaa   : > { %v10302_v31 = vpop.xlane.xlu1 %4758  ;;  %v3228_v39 = vsel %vm3206_vm13, %v3227_v62, %v3226_v35  ;;  %v3503_v35 = vperm.slane %v12026_v0, %v9896_v2  ;;  %v12035_v0 = vld [vmem:[#allocation218_spill] sm:$0xff] }
 0xeac   : > { %4797 = vadd.xlane.f32.xlu2 %v4796_v38  ;;  %v3485_v38 = vperm.slane %v9627_v58, %v9896_v2  ;;  %v3483_v58 = vperm.slane %v9479_v50, %v9903_v3  ;;  %v3482_v50 = vperm.slane %v9537_v40, %v9896_v2  ;;  %v3225_v40 = vsel %vm3206_vm13, %v3224_v36, %v3223_v63 }
 0xead   : > { %v3498_v63 = vperm.slane %v9667_v28, %v9903_v3 }
 0xeae   : > { %v3487_v49 = vsel %vm3206_vm13, %v3486_v17, %v3485_v38  ;;  %v3484_v14 = vsel %vm3206_vm13, %v3483_v58, %v3482_v50  ;;  %v3497_v38 = vperm.slane %v9587_v11, %v9896_v2  ;;  %v3264_v11 = vsel %vm3263_vm6, %v3225_v40, %v3262_v42  ;;  %v12027_v40 = vld [vmem:[#allocation207_spill] sm:$0xff]  ;;  %v12030_v42 = vld [vmem:[#allocation193_spill] sm:$0xff] }
 0xeaf   : > { %v10326_v59 = vpop.xlane.xlu2 %4659  ;;  %v3513_v60 = vsel %vm3253_vm14, %v3487_v49, %v3484_v14  ;;  %v3495_v14 = vperm.slane %v9651_v44, %v9903_v3  ;;  %v3266_v57 = vsel %vm3265_vm7, %v3228_v39, %v3264_v11  ;;  %v3502_v44 = vsel %vm3206_vm13, %v3501_v48, %v3500_v27  ;;  %v12031_v11 = vld [vmem:[#allocation217_spill] sm:$0xff] }
 0xeb0   : > { %v10334_v29 = vpop.xlane.xlu0 %4740  ;;  %v3514_v58 = vsel %vm3255_vm1, %v3490_v47, %v3513_v60  ;;  %v3499_v28 = vsel %vm3206_vm13, %v3498_v63, %v3497_v38  ;;  %v12023_v47 = vld [vmem:[#allocation214_spill] sm:$0xff]  ;;  %v3292_v50 = vadd.f32 %v12024_v46, %v3266_v57  ;;  %v12028_v38 = vld [vmem:[#allocation215_spill] sm:$0xff]  ;;  %v12029_v60 = vld [vmem:[#allocation200_spill] sm:$0xff]  ;;  %v3581_v63 = vperm.slane %v12030_v42, %v9896_v2 }
 0xeb1   : > { %v3515_v36 = vsel %vm3257_vm3, %v3493_v13, %v3514_v58  ;;  %v3585_v62 = vperm.slane %v12023_v47, %v9903_v3  ;;  %v3496_v12 = vsel %vm3206_vm13, %v3495_v14, %v3494_v33  ;;  %v3582_v13 = vperm.slane %v12027_v40, %v9903_v3  ;;  %v12033_v47 = vld [vmem:[#allocation38_spill] sm:$0xff] }
 0xeb2   : > { %v10351_v5 = vpop.xlane.xlu1 %4782  ;;  %v3516_v54 = vsel %vm3259_vm4, %v3496_v12, %v3515_v36  ;;  %v3584_v39 = vperm.slane %v12028_v38, %v9896_v2  ;;  %v3504_v33 = vperm.slane %v12029_v60, %v9903_v3  ;;  %v3590_v14 = vperm.slane %v12031_v11, %v9896_v2  ;;  %v12032_v36 = vld [vmem:[#allocation219_spill] sm:$0xff] }
 0xeb3   : > { %v3517_v48 = vsel %vm3261_vm5, %v3499_v28, %v3516_v54  ;;  %v10415_v27 = vmul.f32 0.25, %v3292_v50  ;;  %v3587_v57 = vperm.slane %v12032_v36, %v9896_v2  ;;  %v3594_v46 = vperm.slane %v12033_v47, %v9903_v3  ;;  %v12036_v50 = vld [vmem:[#allocation220_spill] sm:$0xff] }
 0xeb4   : > { %4803 = vadd.xlane.f32.xlu2 %v4802_v24  ;;  %v12025_v24 = vld [vmem:[#allocation136_spill] sm:$0xff]  ;;  %v3586_v58 = vsel %vm3206_vm13, %v3585_v62, %v3584_v39  ;;  %v3518_v61 = vsel %vm3263_vm6, %v3502_v44, %v3517_v48  ;;  %v3505_v28 = vsel %vm3206_vm13, %v3504_v33, %v3503_v35  ;;  %v3583_v12 = vsel %vm3206_vm13, %v3582_v13, %v3581_v63  ;;  %v3539_v13 = vpop.f32.mrf.mxu1 }
 0xeb5   : > { %v4805_v8 = vsel %vm1178_vm2, %v12025_v24, 0.0  ;;  %v12034_v24 = vld [vmem:[#allocation221_spill] sm:$0xff]  ;;  %v3588_v44 = vperm.slane %v12035_v0, %v9903_v3  ;;  %v3593_v54 = vperm.slane %v12036_v50, %v9896_v2  ;;  %v3629_v40 = vsel %vm3253_vm14, %v3586_v58, %v3583_v12  ;;  %v12037_v48 = vld [vmem:[#allocation60_spill] sm:$0xff]  ;;  %v12042_v0 = vld [vmem:[#allocation58_spill] sm:$0xff] }
 0xeb6   : > { %v3591_v62 = vperm.slane %v12034_v24, %v9903_v3  ;;  %v3519_v39 = vsel %vm3265_vm7, %v3505_v28, %v3518_v61  ;;  %v3599_v42 = vperm.slane %v12037_v48, %v9896_v2  ;;  %v3673_v11 = vsel %vm1178_vm2, %v10415_v27, -inf  ;;  %v12038_v58 = vld [vmem:[#allocation61_spill] sm:$0xff]  ;;  %v12041_v24 = vld [vmem:[#allocation19_spill] sm:$0xff] }
 0xeb7   : > { %v10380_v17 = vpop.xlane.xlu2 %4662  ;;  %v3589_v60 = vsel %vm3206_vm13, %v3588_v44, %v3587_v57  ;;  %v3595_v33 = vsel %vm3206_vm13, %v3594_v46, %v3593_v54  ;;  %v3596_v36 = vperm.slane %v12038_v58, %v9896_v2  ;;  %v3540_v28 = vadd.f32 %v3539_v13, %v3519_v39  ;;  %v12040_v57 = vld [vmem:[#allocation62_spill] sm:$0xff] }
 0xeb8   : > { %v10388_v43 = vpop.xlane.xlu0 %4749  ;;  %v3592_v35 = vsel %vm3206_vm13, %v3591_v62, %v3590_v14  ;;  %v3630_v61 = vsel %vm3255_vm1, %v3589_v60, %v3629_v40  ;;  %v12039_v14 = vld [vmem:[#allocation223_spill] sm:$0xff]  ;;  %v3600_v46 = vperm.slane %v12040_v57, %v9903_v3  ;;  %v3597_v62 = vperm.slane %v12041_v24, %v9903_v3 }
 0xeb9   : > { %v3602_v47 = vperm.slane %v12039_v14, %v9896_v2  ;;  %v3631_v12 = vsel %vm3257_vm3, %v3592_v35, %v3630_v61  ;;  %v3603_v44 = vperm.slane %v12042_v0, %v9903_v3  ;;  %v10462_v60 = vmul.f32 0.25, %v3540_v28 }
 0xeba   : > { %v4792_v49 = vpop.xlane.xlu1 %4791  ;;  %v3632_v50 = vsel %vm3259_vm4, %v3595_v33, %v3631_v12  ;;  %v3601_v54 = vsel %vm3206_vm13, %v3600_v46, %v3599_v42  ;;  %v3598_v40 = vsel %vm3206_vm13, %v3597_v62, %v3596_v36 }
 0xebb   : > { %v3604_v39 = vsel %vm3206_vm13, %v3603_v44, %v3602_v47  ;;  %v3633_v35 = vsel %vm3261_vm5, %v3598_v40, %v3632_v50  ;;  %v5205_v58 = vperm.slane %v4792_v49, %v9903_v3  ;;  %v3688_v47 = vsel %vm1178_vm2, %v10462_v60, -inf }
 0xebc   : > { %4806 = vadd.xlane.f32.xlu2 %v4805_v8 }
 0xebf   : > { %v10425_v8 = vpop.xlane.xlu2 %4668 }
 0xec0   : > { %v10432_v38 = vpop.xlane.xlu0 %4761 }
 0xec2   : > { %v10440_v63 = vpop.xlane.xlu1 %4794 }
 0xec4   : > { %3674 = vmax.xlane.f32.xlu2 %v3673_v11  ;;  %v3634_v11 = vsel %vm3263_vm6, %v3601_v54, %v3633_v35 }
 0xec5   : > { %v3635_v33 = vsel %vm3265_vm7, %v3604_v39, %v3634_v11 }
 0xec6   : > { %v3661_v36 = vadd.f32 %v10234_v18, %v3635_v33  ;;  %v12043_v33 = vld [vmem:[#allocation166_spill] sm:$0xff] }
 0xec7   : > { %v10460_v13 = vpop.xlane.xlu2 %4683 }
 0xec8   : > { %v4789_v48 = vpop.xlane.xlu0 %4788  ;;  %v10477_v28 = vmul.f32 0.25, %v3661_v36  ;;  %v4811_v36 = vsel %vm1178_vm2, %v12043_v33, 0.0 }
 0xec9   : > { %v5204_v61 = vperm.slane %v4789_v48, %v9896_v2 }
 0xeca   : > { %v10469_v42 = vpop.xlane.xlu1 %4809  ;;  %v3691_v24 = vsel %vm1178_vm2, %v10477_v28, -inf }
 0xecb   : > { %v10473_v14 = vsel %vm3206_vm13, %v5205_v58, %v5204_v61 }
 0xecc   : > { %3689 = vmax.xlane.f32.xlu2 %v3688_v47 }
 0xecf   : > { %v10479_v57 = vpop.xlane.xlu2 %4692 }
 0xed0   : > { %v10481_v49 = vpop.xlane.xlu0 %4800 }
 0xed2   : > { %v3678_v46 = vpop.xlane.xlu1 %3677 }
 0xed3   : > { %v3698_v12 = vsub.f32 %v10127_v21, %v3678_v46 }
 0xed4   : > { %3692 = vmax.xlane.f32.xlu2 %v3691_v24  ;;  %v12044_v24 = vld [vmem:[#allocation110_spill] sm:$0xff] }
 0xed5   : > { %v3707_v18 = vmul.f32 1.442695, %v3698_v12 }
 0xed7   : > { %6789 = vpow2.f32 %v3707_v18  ;;  %v10486_v62 = vpop.xlane.xlu2 %4701  ;;  %v4772_v18 = vsel %vm1178_vm2, %v12044_v24, 0.0 }
 0xed8   : > { %v3684_v0 = vpop.xlane.xlu0 %3683 }
 0xed9   : > { %v3700_v44 = vsub.f32 %v10165_v45, %v3684_v0 }
 0xeda   : > { %v3681_v50 = vpop.xlane.xlu1 %3680 }
 0xedb   : > { %v3711_v54 = vmul.f32 1.442695, %v3700_v44  ;;  %v3699_v40 = vsub.f32 %v10168_v30, %v3681_v50  ;;  %v5178_v44 = vperm.slane %v10277_v20, %v9903_v3 }
 0xedd   : > { %v10490_v39 = vpop.eup %6789  ;;  %6791 = vpow2.f32 %v3711_v54  ;;  %v3709_v35 = vmul.f32 1.442695, %v3699_v40  ;;  %v12045_v40 = vld [vmem:[#allocation195_spill] sm:$0xff] }
 0xede   : > { %v3724_v21 = vsel %vm1178_vm2, %v10490_v39, 0.0 }
 0xedf   : > { %6793 = vpow2.f32 %v3709_v35  ;;  %v10494_v48 = vpop.xlane.xlu2 %4713  ;;  %3725 = vadd.xlane.f32.xlu0 %v3724_v21  ;;  %v12046_v35 = vld [vmem:[#allocation22_spill] sm:$0xff] }
 0xee0   : > { %v3687_v46 = vpop.xlane.xlu0 %3686  ;;  %v4124_v21 = vmul.f32 %v12046_v35, %v12045_v40  ;;  %v12048_v40 = vld [vmem:[#allocation168_spill] sm:$0xff] }
 0xee1   : > { %v3701_v12 = vsub.f32 %v10182_v25, %v3687_v46  ;;  %v12047_v25 = vld [vmem:[#allocation13_spill] sm:$0xff]  ;;  %v4826_v35 = vsel %vm1178_vm2, %v12048_v40, 0.0 }
 0xee3   : > { %v10496_v11 = vpop.eup %6791  ;;  %v3713_v54 = vmul.f32 1.442695, %v3701_v12 }
 0xee4   : > { %v3730_v30 = vsel %vm1178_vm2, %v10496_v11, 0.0 }
 0xee5   : > { %v10498_v58 = vpop.eup %6793  ;;  %6795 = vpow2.f32 %v3713_v54 }
 0xee6   : > { %v3727_v45 = vsel %vm1178_vm2, %v10498_v58, 0.0 }
 0xee7   : > { %v10504_v61 = vpop.xlane.xlu2 %4719  ;;  %3728 = vadd.xlane.f32.xlu1 %v3727_v45  ;;  %3731 = vadd.xlane.f32.xlu0 %v3730_v30  ;;  %v4775_v30 = vsel %vm1178_vm2, %v12047_v25, 0.0 }
 0xeeb   : > { %v10526_v12 = vpop.eup %6795 }
 0xeef   : > { %v10508_v47 = vpop.xlane.xlu2 %4722  ;;  %4812 = vadd.xlane.f32.xlu1 %v4811_v36  ;;  %v5180_v36 = vperm.slane %v10334_v29, %v9896_v2 }
 0xef7   : > { %v4735_v0 = vpop.xlane.xlu2 %4734  ;;  %4773 = vadd.xlane.f32.xlu1 %v4772_v18  ;;  %v3733_v18 = vsel %vm1178_vm2, %v10526_v12, 0.0 }
 0xef8   : > { %v5177_v50 = vperm.slane %v4735_v0, %v9896_v2 }
 0xefa   : > { %v5179_v45 = vsel %vm3206_vm13, %v5178_v44, %v5177_v50  ;;  %v5184_v44 = vperm.slane %v10388_v43, %v9903_v3 }
 0xefb   : > { %4507 = vrot.lane.b32.xlu0 %v4124_v21, %s11631_s4  ;;  %s7028_s4 = smov 48  }
 0xeff   : > { %v4744_v33 = vpop.xlane.xlu2 %4743  ;;  %4776 = vadd.xlane.f32.xlu1 %v4775_v30 }
 0xf00   : > { %v5181_v20 = vperm.slane %v4744_v33, %v9903_v3  ;;  %v12049_v33 = vld [vmem:[#allocation175_spill] sm:$0xff] }
 0xf02   : > { %v5182_v46 = vsel %vm3206_vm13, %v5181_v20, %v5180_v36  ;;  %v4835_v36 = vsel %vm1178_vm2, %v12049_v33, 0.0 }
 0xf03   : > { %v5225_v24 = vsel %vm3253_vm14, %v5182_v46, %v5179_v45  ;;  %v5186_v45 = vperm.slane %v10285_v41, %v9896_v2  ;;  %v5201_v46 = vperm.slane %v10351_v5, %v9896_v2 }
 0xf07   : > { %v4747_v0 = vpop.xlane.xlu2 %4746  ;;  %3734 = vadd.xlane.f32.xlu1 %v3733_v18 }
 0xf08   : > { %v5183_v50 = vperm.slane %v4747_v0, %v9896_v2  ;;  %v12050_v0 = vld [vmem:[#allocation181_spill] sm:$0xff] }
 0xf0a   : > { %v5185_v29 = vsel %vm3206_vm13, %v5184_v44, %v5183_v50  ;;  %v4880_v44 = vsel %vm1178_vm2, %v12050_v0, 0.0  ;;  %v12054_v0 = vld [vmem:[#allocation184_spill] sm:$0xff] }
 0xf0b   : > { %v5226_v54 = vsel %vm3255_vm1, %v5185_v29, %v5225_v24  ;;  %v5207_v29 = vperm.slane %v10440_v63, %v9896_v2  ;;  %v5210_v63 = vperm.slane %v10481_v49, %v9896_v2  ;;  %v4892_v49 = vsel %vm1178_vm2, %v12054_v0, 0.0  ;;  %v12060_v0 = vld [vmem:[#allocation171_spill] sm:$0xff] }
 0xf0f   : > { %v4756_v21 = vpop.xlane.xlu2 %4755  ;;  %4827 = vadd.xlane.f32.xlu1 %v4826_v35  ;;  %v12051_v35 = vld [vmem:[#allocation126_spill] sm:$0xff] }
 0xf10   : > { %v5187_v25 = vperm.slane %v4756_v21, %v9903_v3  ;;  %v4766_v21 = vsel %vm1178_vm2, %v12051_v35, 0.0 }
 0xf12   : > { %v5188_v30 = vsel %vm3206_vm13, %v5187_v25, %v5186_v45  ;;  %v12052_v45 = vld [vmem:[#allocation176_spill] sm:$0xff]  ;;  %v5190_v25 = vperm.slane %v10432_v38, %v9903_v3 }
 0xf13   : > { %v5227_v43 = vsel %vm3257_vm3, %v5188_v30, %v5226_v54 }
 0xf17   : > { %v4786_v20 = vpop.xlane.xlu2 %4785  ;;  %4836 = vadd.xlane.f32.xlu1 %v4835_v36  ;;  %v5189_v36 = vperm.slane %v10302_v31, %v9896_v2  ;;  %v5214_v31 = vperm.slane %v10469_v42, %v9903_v3 }
 0xf18   : > { %v5202_v24 = vperm.slane %v4786_v20, %v9903_v3 }
 0xf1a   : > { %v5203_v18 = vsel %vm3206_vm13, %v5202_v24, %v5201_v46  ;;  %v5191_v46 = vsel %vm3206_vm13, %v5190_v25, %v5189_v36  ;;  %v12057_v25 = vld [vmem:[#allocation16_spill] sm:$0xff] }
 0xf1b   : > { %v5232_v41 = vsel %vm3253_vm14, %v10473_v14, %v5203_v18  ;;  %v4841_v14 = vsel %vm1178_vm2, %v12052_v45, 0.0  ;;  %v12053_v18 = vld [vmem:[#allocation127_spill] sm:$0xff]  ;;  %v10575_v38 = vsel %vm3259_vm4, %v5191_v46, %v5227_v43 }
 0xf1f   : > { %v4798_v50 = vpop.xlane.xlu2 %4797  ;;  %4881 = vadd.xlane.f32.xlu1 %v4880_v44 }
 0xf20   : > { %v5208_v54 = vperm.slane %v4798_v50, %v9903_v3 }
 0xf22   : > { %v5209_v40 = vsel %vm3206_vm13, %v5208_v54, %v5207_v29 }
 0xf23   : > { %v5233_v5 = vsel %vm3255_vm1, %v5209_v40, %v5232_v41  ;;  %v4769_v41 = vsel %vm1178_vm2, %v12053_v18, 0.0  ;;  %v12055_v40 = vld [vmem:[#allocation33_spill] sm:$0xff]  ;;  %v12059_v18 = vld [vmem:[#allocation139_spill] sm:$0xff] }
 0xf24   : > { %v4820_v43 = vsel %vm1178_vm2, %v12055_v40, 0.0 }
 0xf25   : > { %4767 = vadd.xlane.f32.xlu0 %v4766_v21 }
 0xf27   : > { %v4804_v30 = vpop.xlane.xlu2 %4803  ;;  %4842 = vadd.xlane.f32.xlu1 %v4841_v14  ;;  %v3696_v14 = vpop.xlane.xlu1 %3695 }
 0xf28   : > { %v5211_v33 = vperm.slane %v4804_v30, %v9903_v3  ;;  %v4823_v30 = vsel %vm1178_vm2, %v12057_v25, 0.0  ;;  %v12063_v25 = vld [vmem:[#allocation35_spill] sm:$0xff] }
 0xf2a   : > { %v5212_v20 = vsel %vm3206_vm13, %v5211_v33, %v5210_v63  ;;  %v3704_v63 = vsub.f32 %v10271_v1, %v3696_v14  ;;  %v12058_v33 = vld [vmem:[#allocation145_spill] sm:$0xff]  ;;  %v4859_v1 = vsel %vm1178_vm2, %v12060_v0, 0.0 }
 0xf2b   : > { %v5234_v24 = vsel %vm3257_vm3, %v5212_v20, %v5233_v5  ;;  %v12056_v5 = vld [vmem:[#allocation185_spill] sm:$0xff]  ;;  %v4856_v36 = vsel %vm1178_vm2, %v12058_v33, 0.0 }
 0xf2c   : > { %v4895_v35 = vsel %vm1178_vm2, %v12056_v5, 0.0  ;;  %v3719_v46 = vmul.f32 1.442695, %v3704_v63 }
 0xf2d   : > { %4770 = vadd.xlane.f32.xlu0 %v4769_v41  ;;  %v4832_v41 = vsel %vm1178_vm2, %v12059_v18, 0.0 }
 0xf2f   : > { %v4807_v44 = vpop.xlane.xlu2 %4806  ;;  %4893 = vadd.xlane.f32.xlu1 %v4892_v49 }
 0xf30   : > { %v5213_v50 = vperm.slane %v4807_v44, %v9896_v2 }
 0xf32   : > { %v5215_v29 = vsel %vm3206_vm13, %v5214_v31, %v5213_v50 }
 0xf33   : > { %v10584_v54 = vsel %vm3259_vm4, %v5215_v29, %v5234_v24  ;;  %v12061_v29 = vld [vmem:[#allocation115_spill] sm:$0xff] }
 0xf34   : > { %v4763_v40 = vsel %vm1178_vm2, %v12061_v29, 0.0 }
 0xf35   : > { %4821 = vadd.xlane.f32.xlu0 %v4820_v43 }
 0xf37   : > { %v3675_v21 = vpop.xlane.xlu2 %3674  ;;  %4896 = vadd.xlane.f32.xlu1 %v4895_v35 }
 0xf38   : > { %v3697_v45 = vsub.f32 %v10415_v27, %v3675_v21 }
 0xf3a   : > { %v3705_v42 = vmul.f32 1.442695, %v3697_v45  ;;  %v12062_v45 = vld [vmem:[#allocation146_spill] sm:$0xff] }
 0xf3c   : > { %6797 = vpow2.f32 %v3705_v42 }
 0xf3d   : > { %4824 = vadd.xlane.f32.xlu0 %v4823_v30  ;;  %6799 = vpow2.f32 %v3719_v46  ;;  %v4910_v30 = vsel %vm1178_vm2, %v12063_v25, 0.0 }
 0xf3f   : > { %v3690_v20 = vpop.xlane.xlu2 %3689  ;;  %4857 = vadd.xlane.f32.xlu1 %v4856_v36 }
 0xf40   : > { %v3702_v35 = vsub.f32 %v10462_v60, %v3690_v20  ;;  %v12064_v60 = vld [vmem:[#allocation148_spill] sm:$0xff]  ;;  %v12065_v20 = vld [vmem:[#allocation161_spill] sm:$0xff] }
 0xf41   : > { %v4817_v36 = vsel %vm1178_vm2, %v12064_v60, 0.0  ;;  %v4877_v46 = vsel %vm1178_vm2, %v12065_v20, 0.0 }
 0xf42   : > { %v10596_v24 = vpop.eup %6797  ;;  %v3715_v42 = vmul.f32 1.442695, %v3702_v35 }
 0xf43   : > { %v3721_v27 = vsel %vm1178_vm2, %v10596_v24, 0.0  ;;  %v10605_v50 = vpop.eup %6799 }
 0xf44   : > { %3722 = vadd.xlane.f32.xlu2 %v3721_v27  ;;  %v3742_v43 = vsel %vm1178_vm2, %v10605_v50, 0.0  ;;  %v12066_v27 = vld [vmem:[#allocation189_spill] sm:$0xff] }
 0xf45   : > { %4833 = vadd.xlane.f32.xlu0 %v4832_v41  ;;  %v4913_v18 = vsel %vm1178_vm2, %v12066_v27, 0.0  ;;  %v12072_v27 = vld [vmem:[#allocation160_spill] sm:$0xff] }
 0xf47   : > { %v3693_v49 = vpop.xlane.xlu2 %3692  ;;  %4860 = vadd.xlane.f32.xlu1 %v4859_v1 }
 0xf48   : > { %v3703_v44 = vsub.f32 %v10477_v28, %v3693_v49  ;;  %v4814_v28 = vsel %vm1178_vm2, %v12062_v45, 0.0 }
 0xf4a   : > { %v3717_v31 = vmul.f32 1.442695, %v3703_v44 }
 0xf4c   : > { %6801 = vpow2.f32 %v3717_v31  ;;  %4764 = vadd.xlane.f32.xlu2 %v4763_v40  ;;  %v12067_v40 = vld [vmem:[#allocation188_spill] sm:$0xff] }
 0xf4d   : > { %6803 = vpow2.f32 %v3715_v42 }
 0xf4f   : > { %3743 = vadd.xlane.f32.xlu1 %v3742_v43  ;;  %v4886_v43 = vsel %vm1178_vm2, %v12067_v40, 0.0  ;;  %v12075_v40 = vld [vmem:[#allocation70_spill] sm:$0xff] }
 0xf52   : > { %v10611_v5 = vpop.eup %6801  ;;  %v10614_v21 = vpop.xlane.xlu0 %3725 }
 0xf53   : > { %v3739_v14 = vsel %vm1178_vm2, %v10611_v5, 0.0  ;;  %v10628_v41 = vpop.eup %6803 }
 0xf54   : > { %4815 = vadd.xlane.f32.xlu2 %v4814_v28  ;;  %3740 = vadd.xlane.f32.xlu0 %v3739_v14  ;;  %v3736_v29 = vsel %vm1178_vm2, %v10628_v41, 0.0  ;;  %v12068_v14 = vld [vmem:[#allocation150_spill] sm:$0xff] }
 0xf55   : > { %v4874_v42 = vsel %vm1178_vm2, %v12068_v14, 0.0  ;;  %v12078_v14 = vld [vmem:[#allocation55_spill] sm:$0xff] }
 0xf57   : > { %4911 = vadd.xlane.f32.xlu1 %v4910_v30 }
 0xf5a   : > { %v3729_v63 = vpop.xlane.xlu1 %3728  ;;  %v3732_v33 = vpop.xlane.xlu0 %3731 }
 0xf5b   : > { %6805 = vrcp.f32 %v3729_v63 }
 0xf5c   : > { %6807 = vrcp.f32 %v3732_v33  ;;  %4818 = vadd.xlane.f32.xlu2 %v4817_v36  ;;  %4878 = vadd.xlane.f32.xlu0 %v4877_v46  ;;  %v12070_v33 = vld [vmem:[#allocation190_spill] sm:$0xff]  ;;  %v12071_v36 = vld [vmem:[#allocation204_spill] sm:$0xff] }
 0xf5d   : > { %v4889_v60 = vsel %vm1178_vm2, %v12070_v33, 0.0  ;;  %v4925_v20 = vsel %vm1178_vm2, %v12071_v36, 0.0  ;;  %6809 = vrcp.f32 %v10614_v21 }
 0xf5f   : > { %4914 = vadd.xlane.f32.xlu1 %v4913_v18  ;;  %v4829_v18 = vsel %vm1178_vm2, %v12072_v27, 0.0  ;;  %v12082_v27 = vld [vmem:[#allocation167_spill] sm:$0xff] }
 0xf61   : > { %v6806_v0 = vpop.eup %6805 }
 0xf62   : > { %v6808_v1 = vpop.eup %6807  ;;  %v3755_v49 = vmul.f32 %v6806_v0, %v10498_v58  ;;  %v10631_v44 = vpop.xlane.xlu1 %4812  ;;  %v12073_v0 = vld [vmem:[#allocation143_spill] sm:$0xff] }
 0xf63   : > { %v3756_v31 = vmul.f32 %v6808_v1, %v10496_v11  ;;  %v12069_v11 = vld [vmem:[#allocation44_spill] sm:$0xff]  ;;  %v4850_v1 = vsel %vm1178_vm2, %v12073_v0, 0.0 }
 0xf64   : > { %v3763_v35 = vpack.c.bf16 %v3755_v49, %v3755_v49  ;;  %3737 = vadd.xlane.f32.xlu2 %v3736_v29  ;;  %4887 = vadd.xlane.f32.xlu0 %v4886_v43  ;;  %v4778_v63 = vsel %vm1178_vm2, %v12069_v11, 0.0  ;;  %v12074_v49 = vld [vmem:[#allocation196_spill] sm:$0xff]  ;;  %v12076_v43 = vld [vmem:[#allocation165_spill] sm:$0xff] }
 0xf65   : > { %v3764_v45 = vpack.c.bf16 %v3756_v31, %v3756_v31  ;;  %v4934_v31 = vsel %vm1178_vm2, %v12074_v49, 0.0  ;;  %v12083_v0 = vld [vmem:[#allocation192_spill] sm:$0xff]  ;;  %v12084_v49 = vld [vmem:[#allocation210_spill] sm:$0xff] }
 0xf66   : > { %v3796_v28 = vunpack.c.l.b16 %v3763_v35  ;;  %v4838_v35 = vsel %vm1178_vm2, %v12076_v43, 0.0 }
 0xf67   : > { %v3797_v25 = vunpack.c.l.b16 %v3764_v45  ;;  %4875 = vadd.xlane.f32.xlu1 %v4874_v42  ;;  %v12077_v45 = vld [vmem:[#allocation34_spill] sm:$0xff]  ;;  %v4979_v42 = vsel %vm1178_vm2, %v12078_v14, 0.0 }
 0xf69   : > { %v3798_v58 = vpack.c.b16 %v3797_v25, %v3796_v28  ;;  %v4853_v28 = vsel %vm1178_vm2, %v12077_v45, 0.0 }
 0xf6a   : > { %v4774_v30 = vpop.xlane.xlu1 %4773 }
 0xf6b   : > { %6495 = vmatmul.msk.bf16.vlgmr.msra.gmra.mxu2 %vm1178_vm2, %v3798_v58  ;;  %v12079_v58 = vld [vmem:[#allocation178_spill] sm:$0xff] }
 0xf6c   : > { %4779 = vadd.xlane.f32.xlu2 %v4778_v63  ;;  %4890 = vadd.xlane.f32.xlu0 %v4889_v60  ;;  %v4883_v11 = vsel %vm1178_vm2, %v12079_v58, 0.0  ;;  %v12080_v63 = vld [vmem:[#allocation180_spill] sm:$0xff]  ;;  %v12081_v60 = vld [vmem:[#allocation197_spill] sm:$0xff] }
 0xf6d   : > { %v4904_v33 = vsel %vm1178_vm2, %v12080_v63, 0.0  ;;  %v4940_v36 = vsel %vm1178_vm2, %v12081_v60, 0.0 }
 0xf6f   : > { %4926 = vadd.xlane.f32.xlu1 %v4925_v20 }
 0xf72   : > { %v10647_v46 = vpop.xlane.xlu1 %4776 }
 0xf74   : > { %4830 = vadd.xlane.f32.xlu2 %v4829_v18  ;;  %4851 = vadd.xlane.f32.xlu0 %v4850_v1  ;;  %v4844_v18 = vsel %vm1178_vm2, %v12082_v27, 0.0  ;;  %v4907_v1 = vsel %vm1178_vm2, %v12083_v0, 0.0 }
 0xf77   : > { %4935 = vadd.xlane.f32.xlu1 %v4934_v31  ;;  %v4946_v31 = vsel %vm1178_vm2, %v12084_v49, 0.0  ;;  %v5196_v49 = vperm.slane %v4774_v30, %v9903_v3 }
 0xf7a   : > { %v10655_v29 = vpop.xlane.xlu1 %3734 }
 0xf7b   : > { %6498 = vmatmul.msk.bf16.vlgmr.msrb.gmra.mxu2 %vm1178_vm2, %v12075_v40  ;;  %v10679_v40 = vpop.permute.xlu0 %4507 }
 0xf7c   : > { %4839 = vadd.xlane.f32.xlu2 %v4838_v35  ;;  %4854 = vadd.xlane.f32.xlu0 %v4853_v28  ;;  %12085 = vst [vmem:[#allocation113_spill] sm:$0xff] %v10679_v40  ;;  %v12086_v35 = vld [vmem:[#allocation169_spill] sm:$0xff] }
 0xf7d   : > { %v4847_v45 = vsel %vm1178_vm2, %v12086_v35, 0.0  ;;  %v12087_v28 = vld [vmem:[#allocation173_spill] sm:$0xff] }
 0xf7e   : > { %v4868_v14 = vsel %vm1178_vm2, %v12087_v28, 0.0  ;;  %v12092_v28 = vld [vmem:[#allocation187_spill] sm:$0xff] }
 0xf7f   : > { %4980 = vadd.xlane.f32.xlu1 %v4979_v42  ;;  %v12088_v42 = vld [vmem:[#allocation213_spill] sm:$0xff] }
 0xf80   : > { %v4949_v58 = vsel %vm1178_vm2, %v12088_v42, 0.0  ;;  %v12093_v42 = vld [vmem:[#allocation183_spill] sm:$0xff] }
 0xf82   : > { %v4828_v25 = vpop.xlane.xlu1 %4827 }
 0xf84   : > { %4884 = vadd.xlane.f32.xlu2 %v4883_v11  ;;  %4905 = vadd.xlane.f32.xlu0 %v4904_v33  ;;  %v12089_v33 = vld [vmem:[#allocation179_spill] sm:$0xff] }
 0xf85   : > { %v4898_v60 = vsel %vm1178_vm2, %v12089_v33, 0.0  ;;  %v5003_v33 = vsel %vm1178_vm2, %v10178_v10, 0.0  ;;  %v5223_v10 = vperm.slane %v4828_v25, %v9903_v3 }
 0xf87   : > { %4941 = vadd.xlane.f32.xlu1 %v4940_v36  ;;  %v12090_v36 = vld [vmem:[#allocation174_spill] sm:$0xff] }
 0xf88   : > { %v4871_v27 = vsel %vm1178_vm2, %v12090_v36, 0.0  ;;  %v12095_v36 = vld [vmem:[#allocation177_spill] sm:$0xff] }
 0xf8a   : > { %v10671_v20 = vpop.xlane.xlu1 %4836 }
 0xf8c   : > { %4845 = vadd.xlane.f32.xlu2 %v4844_v18  ;;  %4908 = vadd.xlane.f32.xlu0 %v4907_v1  ;;  %v12091_v18 = vld [vmem:[#allocation75_spill] sm:$0xff] }
 0xf8d   : > { %v5000_v0 = vsel %vm1178_vm2, %v12091_v18, 0.0  ;;  %v12096_v18 = vld [vmem:[#allocation194_spill] sm:$0xff] }
 0xf8f   : > { %4947 = vadd.xlane.f32.xlu1 %v4946_v31 }
 0xf92   : > { %v10681_v43 = vpop.xlane.xlu1 %4881 }
 0xf94   : > { %4848 = vadd.xlane.f32.xlu2 %v4847_v45  ;;  %4869 = vadd.xlane.f32.xlu0 %v4868_v14  ;;  %v4901_v14 = vsel %vm1178_vm2, %v12092_v28, 0.0 }
 0xf97   : > { %4950 = vadd.xlane.f32.xlu1 %v4949_v58  ;;  %v4922_v58 = vsel %vm1178_vm2, %v12093_v42, 0.0 }
 0xf98   : > { %v4768_v11 = vpop.xlane.xlu0 %4767 }
 0xf9a   : > { %v10689_v63 = vpop.xlane.xlu1 %4842 }
 0xf9c   : > { %4899 = vadd.xlane.f32.xlu2 %v4898_v60  ;;  %4872 = vadd.xlane.f32.xlu0 %v4871_v27  ;;  %v4862_v27 = vsel %vm1178_vm2, %v12095_v36, 0.0  ;;  %v12099_v36 = vld [vmem:[#allocation222_spill] sm:$0xff] }
 0xf9f   : > { %5001 = vadd.xlane.f32.xlu1 %v5000_v0  ;;  %v4931_v0 = vsel %vm1178_vm2, %v12096_v18, 0.0  ;;  %v12100_v18 = vld [vmem:[#allocation211_spill] sm:$0xff] }
 0xfa0   : > { %v4771_v1 = vpop.xlane.xlu0 %4770  ;;  %v4967_v25 = vsel %vm1178_vm2, %v12100_v18, 0.0 }
 0xfa1   : > { %v5195_v31 = vperm.slane %v4771_v1, %v9896_v2  ;;  %v12097_v1 = vld [vmem:[#allocation208_spill] sm:$0xff] }
 0xfa2   : > { %v10699_v35 = vpop.xlane.xlu1 %4893 }
 0xfa3   : > { %v10702_v45 = vsel %vm3206_vm13, %v5196_v49, %v5195_v31  ;;  %v4964_v49 = vsel %vm1178_vm2, %v12097_v1, 0.0  ;;  %v6810_v1 = vpop.eup %6809 }
 0xfa4   : > { %4902 = vadd.xlane.f32.xlu2 %v4901_v14  ;;  %4923 = vadd.xlane.f32.xlu0 %v4922_v58  ;;  %v12098_v58 = vld [vmem:[#allocation147_spill] sm:$0xff] }
 0xfa7   : > { %5004 = vadd.xlane.f32.xlu1 %v5003_v33  ;;  %v4865_v33 = vsel %vm1178_vm2, %v12098_v58, 0.0 }
 0xfa8   : > { %v10710_v30 = vpop.xlane.xlu0 %4821 }
 0xfaa   : > { %v10712_v60 = vpop.xlane.xlu1 %4896 }
 0xfab   : > { %12094 = vst [vmem:[#allocation89_spill] sm:$0xff] %v10712_v60  ;;  %v12104_v60 = vld [vmem:[#allocation191_spill] sm:$0xff] }
 0xfac   : > { %4863 = vadd.xlane.f32.xlu2 %v4862_v27  ;;  %4932 = vadd.xlane.f32.xlu0 %v4931_v0  ;;  %v4976_v27 = vsel %vm1178_vm2, %v12099_v36, 0.0 }
 0xfaf   : > { %4965 = vadd.xlane.f32.xlu1 %v4964_v49  ;;  %v3754_v49 = vmul.f32 %v6810_v1, %v10490_v39 }
 0xfb0   : > { %v4825_v31 = vpop.xlane.xlu0 %4824 }
 0xfb1   : > { %v5222_v28 = vperm.slane %v4825_v31, %v9896_v2  ;;  %v12102_v31 = vld [vmem:[#allocation182_spill] sm:$0xff]  ;;  %v3762_v36 = vpack.c.bf16 %v3754_v49, %v3754_v49 }
 0xfb2   : > { %v10723_v14 = vpop.xlane.xlu1 %4857 }
 0xfb3   : > { %v10726_v42 = vsel %vm3206_vm13, %v5223_v10, %v5222_v28  ;;  %v4916_v10 = vsel %vm1178_vm2, %v12102_v31, 0.0  ;;  %v12103_v28 = vld [vmem:[#allocation206_spill] sm:$0xff]  ;;  %v3772_v49 = vunpack.c.l.b16 %v3762_v36 }
 0xfb4   : > { %4866 = vadd.xlane.f32.xlu2 %v4865_v33  ;;  %4977 = vadd.xlane.f32.xlu0 %v4976_v27  ;;  %v4937_v58 = vsel %vm1178_vm2, %v12103_v28, 0.0  ;;  %v4919_v28 = vsel %vm1178_vm2, %v12104_v60, 0.0  ;;  %v5216_v60 = vperm.slane %v10631_v44, %v9896_v2 }
 0xfb7   : > { %v3723_v0 = vpop.xlane.xlu2 %3722  ;;  %4968 = vadd.xlane.f32.xlu1 %v4967_v25 }
 0xfb8   : > { %6811 = vrcp.f32 %v3723_v0  ;;  %v10742_v18 = vpop.xlane.xlu0 %4833  ;;  %v5193_v0 = vperm.slane %v4768_v11, %v9903_v3 }
 0xfba   : > { %v10734_v21 = vpop.xlane.xlu1 %4860 }
 0xfbb   : > { %12101 = vst [vmem:[#allocation97_spill] sm:$0xff] %v10734_v21 }
 0xfbc   : > { %4917 = vadd.xlane.f32.xlu2 %v4916_v10  ;;  %4938 = vadd.xlane.f32.xlu0 %v4937_v58  ;;  %v12105_v10 = vld [vmem:[#allocation125_spill] sm:$0xff] }
 0xfbd   : > { %v4988_v58 = vsel %vm1178_vm2, %v12105_v10, 0.0 }
 0xfbe   : > { %v6812_v33 = vpop.eup %6811 }
 0xfbf   : > { %v3753_v27 = vmul.f32 %v6812_v33, %v10596_v24  ;;  %v4765_v25 = vpop.xlane.xlu2 %4764  ;;  %v12106_v33 = vld [vmem:[#allocation81_spill] sm:$0xff] }
 0xfc0   : > { %v5192_v21 = vperm.slane %v4765_v25, %v9896_v2 }
 0xfc1   : > { %v3761_v39 = vpack.c.bf16 %v3753_v27, %v3753_v27  ;;  %v5485_v27 = vsel %vm1178_vm2, %v12106_v33, 0 }
 0xfc2   : > { %v5194_v1 = vsel %vm3206_vm13, %v5193_v0, %v5192_v21  ;;  %v3744_v31 = vpop.xlane.xlu1 %3743 }
 0xfc3   : > { %v3771_v40 = vunpack.c.l.b16 %v3761_v39  ;;  %v5229_v24 = vsel %vm3261_vm5, %v5194_v1, %v10575_v38  ;;  %6813 = vrcp.f32 %v3744_v31  ;;  %v12107_v1 = vld [vmem:[#allocation203_spill] sm:$0xff] }
 0xfc4   : > { %4920 = vadd.xlane.f32.xlu2 %v4919_v28  ;;  %4989 = vadd.xlane.f32.xlu0 %v4988_v58  ;;  %v4928_v31 = vsel %vm1178_vm2, %v12107_v1, 0.0  ;;  %v12108_v28 = vld [vmem:[#allocation199_spill] sm:$0xff] }
 0xfc5   : > { %v3773_v11 = vpack.c.b16 %v3772_v49, %v3771_v40  ;;  %v4943_v10 = vsel %vm1178_vm2, %v12108_v28, 0.0 }
 0xfc7   : > { %v4816_v21 = vpop.xlane.xlu2 %4815  ;;  %6494 = vmatmul.msk.bf16.vlgmr.msra.gmra.mxu1 %vm1178_vm2, %v3773_v11  ;;  %v3741_v25 = vpop.xlane.xlu0 %3740 }
 0xfc8   : > { %v5217_v36 = vperm.slane %v4816_v21, %v9903_v3  ;;  %5494 = vmatpush.bf16.xpose.msra.mxu1 %v5485_v27  ;;  %6815 = vrcp.f32 %v3741_v25 }
 0xfc9   : > { %v6814_v0 = vpop.eup %6813  ;;  %6817 = vrcp.f32 %v10655_v29 }
 0xfca   : > { %v5218_v38 = vsel %vm3206_vm13, %v5217_v36, %v5216_v60  ;;  %v3760_v39 = vmul.f32 %v6814_v0, %v10605_v50  ;;  %v5322_v50 = vperm.slane %v10681_v43, %v9903_v3 }
 0xfcb   : > { %v5236_v40 = vsel %vm3261_vm5, %v5218_v38, %v10584_v54  ;;  %v5220_v54 = vperm.slane %v10710_v30, %v9903_v3  ;;  %v12110_v30 = vld [vmem:[#allocation74_spill] sm:$0xff] }
 0xfcc   : > { %4929 = vadd.xlane.f32.xlu2 %v4928_v31  ;;  %4944 = vadd.xlane.f32.xlu0 %v4943_v10  ;;  %v3768_v58 = vpack.c.bf16 %v3760_v39, %v3760_v39  ;;  %v4994_v1 = vsel %vm1178_vm2, %v12110_v30, 0.0 }
 0xfce   : > { %v6816_v44 = vpop.eup %6815  ;;  %v3847_v38 = vunpack.c.l.b16 %v3768_v58 }
 0xfcf   : > { %v3759_v49 = vmul.f32 %v6816_v44, %v10611_v5  ;;  %v4819_v11 = vpop.xlane.xlu2 %4818  ;;  %v4879_v33 = vpop.xlane.xlu0 %4878  ;;  %v12109_v5 = vld [vmem:[#allocation71_spill] sm:$0xff] }
 0xfd0   : > { %v5219_v27 = vperm.slane %v4819_v11, %v9896_v2  ;;  %v5321_v21 = vperm.slane %v4879_v33, %v9896_v2  ;;  %v4973_v0 = vsel %vm1178_vm2, %v12109_v5, 0.0  ;;  %v6818_v10 = vpop.eup %6817  ;;  %v12112_v11 = vld [vmem:[#allocation77_spill] sm:$0xff]  ;;  %v10794_v33 = vsel %vm3263_vm6, %v10702_v45, %v5229_v24 }
 0xfd1   : > { %v3767_v25 = vpack.c.bf16 %v3759_v49, %v3759_v49  ;;  %v3757_v44 = vmul.f32 %v6818_v10, %v10526_v12  ;;  %v12111_v49 = vld [vmem:[#allocation18_spill] sm:$0xff]  ;;  %v5328_v12 = vperm.slane %v10699_v35, %v9903_v3  ;;  %v4985_v45 = vsel %vm1178_vm2, %v10140_v19, 0.0  ;;  %v12113_v24 = vld [vmem:[#allocation209_spill] sm:$0xff] }
 0xfd2   : > { %v5221_v60 = vsel %vm3206_vm13, %v5220_v54, %v5219_v27  ;;  %v10777_v36 = vsel %vm3206_vm13, %v5322_v50, %v5321_v21  ;;  %v4982_v58 = vsel %vm1178_vm2, %v12111_v49, 0.0  ;;  %v5298_v19 = vperm.slane %v10742_v18, %v9903_v3  ;;  %v12115_v49 = vld [vmem:[#allocation101_spill] sm:$0xff] }
 0xfd3   : > { %v3846_v43 = vunpack.c.l.b16 %v3767_v25  ;;  %v5237_v39 = vsel %vm3263_vm6, %v5221_v60, %v5236_v40  ;;  %v4997_v40 = vsel %vm1178_vm2, %v12112_v11, 0.0  ;;  %v3765_v54 = vpack.c.bf16 %v3757_v44, %v3757_v44 }
 0xfd4   : > { %4974 = vadd.xlane.f32.xlu2 %v4973_v0  ;;  %4995 = vadd.xlane.f32.xlu0 %v4994_v1  ;;  %v10811_v30 = vsel %vm3265_vm7, %v10726_v42, %v5237_v39  ;;  %v4991_v42 = vsel %vm1178_vm2, %v12115_v49, 0.0  ;;  %v12116_v39 = vld [vmem:[#allocation212_spill] sm:$0xff]  ;;  %v5061_v11 = vperm.slane %v10281_v26, %v9903_v3  ;;  %v5069_v49 = vperm.slane %v10380_v17, %v9896_v2 }
 0xfd5   : > { %v3848_v31 = vpack.c.b16 %v3847_v38, %v3846_v43  ;;  %v3821_v38 = vunpack.c.l.b16 %v3765_v54  ;;  %v12118_v54 = vld [vmem:[#allocation205_spill] sm:$0xff] }
 0xfd7   : > { %v3738_v28 = vpop.xlane.xlu2 %3737  ;;  %6497 = vmatmul.msk.bf16.vlgmr.msrb.gmra.mxu1 %vm1178_vm2, %v3848_v31  ;;  %v10785_v29 = vpop.xlane.xlu0 %4887  ;;  %v12114_v31 = vld [vmem:[#allocation84_spill] sm:$0xff] }
 0xfd8   : > { %6819 = vrcp.f32 %v3738_v28 }
 0xfdc   : > { %4983 = vadd.xlane.f32.xlu2 %v4982_v58  ;;  %4998 = vadd.xlane.f32.xlu0 %v4997_v40  ;;  %v4961_v58 = vsel %vm1178_vm2, %v12116_v39, 0.0 }
 0xfde   : > { %v6820_v50 = vpop.eup %6819 }
 0xfdf   : > { %v3758_v27 = vmul.f32 %v6820_v50, %v10628_v41  ;;  %v10797_v21 = vpop.xlane.xlu2 %4779  ;;  %v4891_v25 = vpop.xlane.xlu0 %4890  ;;  %v4958_v41 = vsel %vm1178_vm2, %v12113_v24, 0.0  ;;  %v12117_v50 = vld [vmem:[#allocation202_spill] sm:$0xff]  ;;  %v5310_v24 = vperm.slane %v10723_v14, %v9903_v3  ;;  %v5067_v14 = vperm.slane %v10326_v59, %v9903_v3 }
 0xfe0   : > { %v5327_v60 = vperm.slane %v4891_v25, %v9896_v2  ;;  %v4952_v18 = vsel %vm1178_vm2, %v12117_v50, 0.0  ;;  %v5060_v25 = vperm.slane %v10184_v22, %v9896_v2 }
 0xfe1   : > { %v3766_v5 = vpack.c.bf16 %v3758_v27, %v3758_v27  ;;  %v10834_v27 = vsel %vm1178_vm2, %v12118_v54, 0.0 }
 0xfe2   : > { %v10803_v0 = vsel %vm3206_vm13, %v5328_v12, %v5327_v60  ;;  %v5057_v12 = vperm.slane %v10269_v51, %v9896_v2  ;;  %v5063_v60 = vperm.slane %v10291_v15, %v9896_v2  ;;  %v12120_v15 = vld [vmem:[#allocation94_spill] sm:$0xff] }
 0xfe3   : > { %v3822_v43 = vunpack.c.l.b16 %v3766_v5 }
 0xfe4   : > { %4986 = vadd.xlane.f32.xlu2 %v4985_v45  ;;  %4959 = vadd.xlane.f32.xlu0 %v4958_v41  ;;  %v5300_v45 = vperm.slane %v10671_v20, %v9896_v2  ;;  %v10848_v41 = vpop.xlane.xlu1 %4911  ;;  %v5064_v20 = vperm.slane %v10194_v32, %v9903_v3  ;;  %v5072_v32 = vperm.slane %v10425_v8, %v9896_v2 }
 0xfe5   : > { %v3823_v35 = vpack.c.b16 %v3822_v43, %v3821_v38  ;;  %v12119_v38 = vld [vmem:[#allocation78_spill] sm:$0xff]  ;;  %v5081_v8 = vperm.slane %v10171_v52, %v9896_v2  ;;  %v5079_v52 = vperm.slane %v10460_v13, %v9903_v3 }
 0xfe6   : > { %v5012_v43 = vsel %vm1178_vm2, %v12119_v38, 0.0  ;;  %v5065_v54 = vsel %vm3206_vm13, %v5064_v20, %v5063_v60  ;;  %v5075_v60 = vperm.slane %v10136_v55, %v9896_v2  ;;  %v5198_v38 = vperm.slane %v10647_v46, %v9896_v2 }
 0xfe7   : > { %v4831_v1 = vpop.xlane.xlu2 %4830  ;;  %6496 = vmatmul.msk.bf16.vlgmr.msrb.gmra.mxu0 %vm1178_vm2, %v3823_v35  ;;  %6501 = vmatmul.msk.bf16.vlgmr.msra.gmra.mxu1 %vm1178_vm2, %v12114_v31  ;;  %v10816_v28 = vpop.xlane.xlu0 %4851  ;;  %v12121_v31 = vld [vmem:[#allocation50_spill] sm:$0xff] }
 0xfe8   : > { %v5297_v10 = vperm.slane %v4831_v1, %v9896_v2  ;;  %v10852_v35 = vpop.f32.mrf.mxu3  ;;  %v5058_v1 = vperm.slane %v12120_v15, %v9903_v3  ;;  %v5325_v15 = vperm.slane %v10785_v29, %v9903_v3  ;;  %v5088_v29 = vperm.slane %v10486_v62, %v9903_v3 }
 0xfea   : > { %v5299_v44 = vsel %vm3206_vm13, %v5298_v19, %v5297_v10  ;;  %v5066_v19 = vperm.slane %v12121_v31, %v9896_v2  ;;  %v5062_v10 = vsel %vm3206_vm13, %v5061_v11, %v5060_v25  ;;  %v5070_v11 = vperm.slane %v10200_v34, %v9903_v3 }
 0xfeb   : > { %v5059_v17 = vsel %vm3206_vm13, %v5058_v1, %v5057_v12  ;;  %v5199_v25 = vperm.slane %v10797_v21, %v9903_v3  ;;  %v5076_v12 = vperm.slane %v10206_v4, %v9903_v3  ;;  %v5078_v31 = vperm.slane %v10224_v23, %v9896_v2 }
 0xfec   : > { %4992 = vadd.xlane.f32.xlu2 %v4991_v42  ;;  %4962 = vadd.xlane.f32.xlu0 %v4961_v58  ;;  %v12122_v58 = vld [vmem:[#allocation100_spill] sm:$0xff]  ;;  %v5068_v34 = vsel %vm3206_vm13, %v5067_v14, %v5066_v19  ;;  %v5082_v19 = vperm.slane %v10255_v56, %v9903_v3  ;;  %v5087_v14 = vperm.slane %v10196_v6, %v9896_v2 }
 0xfed   : > { %v5073_v50 = vperm.slane %v12122_v58, %v9903_v3  ;;  %v5200_v1 = vsel %vm3206_vm13, %v5199_v25, %v5198_v38  ;;  %v5080_v58 = vsel %vm3206_vm13, %v5079_v52, %v5078_v31  ;;  %v5077_v62 = vsel %vm3206_vm13, %v5076_v12, %v5075_v60  ;;  %v12127_v31 = vld [vmem:[#allocation72_spill] sm:$0xff] }
 0xfee   : > { %v10828_v40 = vpop.f32.mrf.mxu2  ;;  %v10935_v6 = vsel %vm3265_vm7, %v5200_v1, %v10794_v33  ;;  %v5083_v33 = vsel %vm3206_vm13, %v5082_v19, %v5081_v8  ;;  %v5099_v60 = vperm.slane %v10508_v47, %v9896_v2  ;;  %v5337_v12 = vperm.slane %v10848_v41, %v9903_v3 }
 0xfef   : > { %v4840_v5 = vpop.xlane.xlu2 %4839  ;;  %v4855_v26 = vpop.xlane.xlu0 %4854  ;;  %v5074_v55 = vsel %vm3206_vm13, %v5073_v50, %v5072_v32  ;;  %v12125_v50 = vld [vmem:[#allocation14_spill] sm:$0xff]  ;;  %v5096_v47 = vperm.slane %v10283_v9, %v9896_v2  ;;  %v5103_v19 = vperm.slane %v12127_v31, %v9903_v3 }
 0xff0   : > { %v5301_v22 = vperm.slane %v4840_v5, %v9903_v3  ;;  %v5309_v51 = vperm.slane %v4855_v26, %v9896_v2  ;;  %v12123_v5 = vld [vmem:[#allocation80_spill] sm:$0xff] }
 0xff1   : > { %v5015_v26 = vsel %vm1178_vm2, %v12123_v5, 0.0  ;;  %v5089_v5 = vsel %vm3206_vm13, %v5088_v29, %v5087_v14  ;;  %v12128_v14 = vld [vmem:[#allocation124_spill] sm:$0xff] }
 0xff2   : > { %v5302_v42 = vsel %vm3206_vm13, %v5301_v22, %v5300_v45  ;;  %v10867_v39 = vsel %vm3206_vm13, %v5310_v24, %v5309_v51  ;;  %v5084_v45 = vperm.slane %v10479_v57, %v9896_v2  ;;  %v12124_v22 = vld [vmem:[#allocation186_spill] sm:$0xff]  ;;  %v5085_v57 = vperm.slane %v10186_v7, %v9903_v3 }
 0xff3   : > { %v10875_v59 = vsel %vm3253_vm14, %v5302_v42, %v5299_v44  ;;  %v5105_v44 = vsel %vm3253_vm14, %v5062_v10, %v5059_v17  ;;  %v10925_v10 = vpop.xlane.xlu1 %4914  ;;  %v5258_v42 = vpop.f32.mrf.mxu3  ;;  %v5102_v29 = vperm.slane %v12128_v14, %v9896_v2 }
 0xff4   : > { %4953 = vadd.xlane.f32.xlu2 %v4952_v18  ;;  %5013 = vadd.xlane.f32.xlu0 %v5012_v43  ;;  %v5106_v21 = vsel %vm3255_vm1, %v5065_v54, %v5105_v44  ;;  %v5071_v18 = vsel %vm3206_vm13, %v5070_v11, %v5069_v49  ;;  %v5086_v23 = vsel %vm3206_vm13, %v5085_v57, %v5084_v45  ;;  %v5006_v54 = vsel %vm1178_vm2, %v12125_v50, 0.0 }
 0xff5   : > { %v5107_v46 = vsel %vm3257_vm3, %v5068_v34, %v5106_v21  ;;  %v5259_v32 = vadd.f32 %v5258_v42, %v10811_v30  ;;  %v5112_v25 = vsel %vm3253_vm14, %v5086_v23, %v5083_v33  ;;  %v5094_v30 = vperm.slane %v10494_v48, %v9903_v3 }
 0xff6   : > { %v10896_v43 = vpop.f32.mrf.mxu2  ;;  %v5108_v20 = vsel %vm3259_vm4, %v5071_v18, %v5107_v46  ;;  %v5307_v23 = vperm.slane %v10816_v28, %v9903_v3 }
 0xff7   : > { %v5711_v4 = vpack.c.bf16 %v10896_v43, %v10828_v40  ;;  %v4885_v24 = vpop.xlane.xlu2 %4884  ;;  %6500 = vmatmul.msk.bf16.vlgmr.msra.gmra.mxu0 %vm1178_vm2, %v12124_v22  ;;  %v10907_v51 = vpop.xlane.xlu0 %4905  ;;  %v5109_v7 = vsel %vm3261_vm5, %v5074_v55, %v5108_v20  ;;  %v10967_v18 = vmul.f32 0.25, %v5259_v32  ;;  %v12126_v55 = vld [vmem:[#allocation86_spill] sm:$0xff]  ;;  %v12129_v32 = vld [vmem:[#allocation113_spill] sm:$0xff] }
 0xff8   : > { %v5324_v13 = vperm.slane %v4885_v24, %v9896_v2  ;;  %v5110_v17 = vsel %vm3263_vm6, %v5077_v62, %v5109_v7  ;;  %v5100_v52 = vperm.slane %v12126_v55, %v9903_v3  ;;  %v5104_v62 = vsel %vm3206_vm13, %v5103_v19, %v5102_v29  ;;  %v12132_v55 = vld [vmem:[#allocation216_spill] sm:$0xff] }
 0xff9   : > { %v5518_v1 = vsel %vm1178_vm2, %v10967_v18, -inf }
 0xffa   : > { %v5326_v49 = vsel %vm3206_vm13, %v5325_v15, %v5324_v13  ;;  %v5101_v13 = vsel %vm3206_vm13, %v5100_v52, %v5099_v60  ;;  %v5257_v52 = vadd.f32 %v10852_v35, %v10935_v6 }
 0xffb   : > { %v5352_v56 = vsel %vm3253_vm14, %v5326_v49, %v10777_v36  ;;  %v5093_v36 = vperm.slane %v10208_v16, %v9896_v2  ;;  %v5097_v16 = vperm.slane %v10504_v61, %v9903_v3  ;;  %v5091_v61 = vperm.slane %v10202_v53, %v9903_v3  ;;  %v10989_v15 = vpop.xlane.xlu1 %4875 }
 0xffc   : > { %4956 = vadd.xlane.f32.xlu2 %v10834_v27  ;;  %5016 = vadd.xlane.f32.xlu0 %v5015_v26  ;;  %v10944_v11 = vsel %vm3255_vm1, %v10803_v0, %v5352_v56  ;;  %v5090_v27 = vperm.slane %v10273_v37, %v9896_v2  ;;  %v5111_v0 = vsel %vm3265_vm7, %v5080_v58, %v5110_v17  ;;  %v12130_v17 = vld [vmem:[#allocation52_spill] sm:$0xff] }
 0xffd   : > { %v5303_v37 = vperm.slane %v10689_v63, %v9896_v2  ;;  %v5113_v63 = vsel %vm3255_vm1, %v5089_v5, %v5112_v25  ;;  %v5095_v41 = vsel %vm3206_vm13, %v5094_v30, %v5093_v36  ;;  %v5098_v53 = vsel %vm3206_vm13, %v5097_v16, %v5096_v47 }
 0xffe   : > { %v5136_v26 = vpop.f32.mrf.mxu2  ;;  %v5092_v22 = vsel %vm3206_vm13, %v5091_v61, %v5090_v27  ;;  %v5018_v36 = vsel %vm1178_vm2, %v12129_v32, 0.0  ;;  %v5009_v25 = vsel %vm1178_vm2, %v12130_v17, 0.0  ;;  %v5319_v14 = vperm.slane %v10989_v15, %v9903_v3 }
 0xfff   : > { %v5137_v8 = vadd.f32 %v5136_v26, %v5111_v0  ;;  %v4846_v44 = vpop.xlane.xlu2 %4845  ;;  %v4909_v34 = vpop.xlane.xlu0 %4908  ;;  %v5114_v57 = vsel %vm3257_vm3, %v5092_v22, %v5113_v63  ;;  %v12131_v26 = vld [vmem:[#allocation89_spill] sm:$0xff]  ;;  %v11036_v22 = vmul.f32 0.25, %v5257_v52 }
0x1000   : > { %v5304_v48 = vperm.slane %v4846_v44, %v9903_v3  ;;  %v5336_v21 = vperm.slane %v4909_v34, %v9896_v2  ;;  %v5330_v16 = vperm.slane %v12131_v26, %v9896_v2 }
0x1001   : > { %v10974_v38 = vmul.f32 0.25, %v5137_v8  ;;  %v5515_v35 = vsel %vm1178_vm2, %v11036_v22, -inf }
0x1002   : > { %v5305_v45 = vsel %vm3206_vm13, %v5304_v48, %v5303_v37  ;;  %v10981_v24 = vsel %vm3206_vm13, %v5337_v12, %v5336_v21  ;;  %v5334_v48 = vperm.slane %v10907_v51, %v9903_v3  ;;  %v12133_v51 = vld [vmem:[#allocation97_spill] sm:$0xff] }
0x1003   : > { %v5346_v9 = vsel %vm3255_vm1, %v5305_v45, %v10875_v59  ;;  %v5509_v46 = vsel %vm1178_vm2, %v10974_v38, -inf  ;;  %v5115_v59 = vsel %vm3259_vm4, %v5095_v41, %v5114_v57  ;;  %v11013_v28 = vpop.xlane.xlu1 %4926 }
0x1004   : > { %5510 = vmax.xlane.f32.xlu1 %v5509_v46  ;;  %5007 = vadd.xlane.f32.xlu2 %v5006_v54  ;;  %v5116_v20 = vsel %vm3261_vm5, %v5098_v53, %v5115_v59  ;;  %v5312_v53 = vperm.slane %v12133_v51, %v9896_v2 }
0x1005   : > { %5519 = vmax.xlane.f32.xlu0 %v5518_v1  ;;  %v5117_v49 = vsel %vm3263_vm6, %v5101_v13, %v5116_v20 }
0x1006   : > { %v5138_v56 = vpop.f32.mrf.mxu2  ;;  %v5118_v50 = vsel %vm3265_vm7, %v5104_v62, %v5117_v49 }
0x1007   : > { %v4849_v7 = vpop.xlane.xlu2 %4848  ;;  %v4870_v42 = vpop.xlane.xlu0 %4869  ;;  %v5139_v33 = vadd.f32 %v5138_v56, %v5118_v50 }
0x1008   : > { %v5306_v58 = vperm.slane %v4849_v7, %v9896_v2  ;;  %v5316_v29 = vperm.slane %v4870_v42, %v9903_v3 }
0x1009   : > { %v11015_v5 = vmul.f32 0.25, %v5139_v33 }
0x100a   : > { %v5308_v54 = vsel %vm3206_vm13, %v5307_v23, %v5306_v58 }
0x100b   : > { %v5347_v27 = vsel %vm3257_vm3, %v5308_v54, %v5346_v9  ;;  %v5512_v44 = vsel %vm1178_vm2, %v11015_v5, -inf  ;;  %v4936_v61 = vpop.xlane.xlu1 %4935 }
0x100c   : > { %5019 = vadd.xlane.f32.xlu1 %v5018_v36  ;;  %5010 = vadd.xlane.f32.xlu2 %v5009_v25  ;;  %v5421_v9 = vperm.slane %v4936_v61, %v9903_v3  ;;  %v5348_v6 = vsel %vm3259_vm4, %v10867_v39, %v5347_v27  ;;  %v5339_v39 = vperm.slane %v10925_v10, %v9896_v2 }
0x100f   : > { %v4900_v30 = vpop.xlane.xlu2 %4899  ;;  %v4873_v0 = vpop.xlane.xlu0 %4872 }
0x1010   : > { %v5331_v60 = vperm.slane %v4900_v30, %v9903_v3  ;;  %v5318_v19 = vperm.slane %v4873_v0, %v9896_v2  ;;  %v5417_v0 = vperm.slane %v11013_v28, %v9896_v2 }
0x1012   : > { %v5332_v37 = vsel %vm3206_vm13, %v5331_v60, %v5330_v16  ;;  %v5320_v23 = vsel %vm3206_vm13, %v5319_v14, %v5318_v19 }
0x1013   : > { %v5354_v8 = vsel %vm3257_vm3, %v5332_v37, %v10944_v11  ;;  %v4970_v11 = vsel %vm1178_vm2, %v12132_v55, 0.0  ;;  %v4981_v31 = vpop.xlane.xlu1 %4980 }
0x1014   : > { %5513 = vmax.xlane.f32.xlu2 %v5512_v44 }
0x1017   : > { %v4903_v34 = vpop.xlane.xlu2 %4902  ;;  %v11025_v12 = vpop.xlane.xlu0 %4923 }
0x1018   : > { %v5333_v21 = vperm.slane %v4903_v34, %v9896_v2 }
0x101a   : > { %v5335_v47 = vsel %vm3206_vm13, %v5334_v48, %v5333_v21 }
0x101b   : > { %v5355_v63 = vsel %vm3259_vm4, %v5335_v47, %v5354_v8  ;;  %v4942_v56 = vpop.xlane.xlu1 %4941 }
0x101c   : > { %4971 = vadd.xlane.f32.xlu2 %v4970_v11  ;;  %v5424_v50 = vperm.slane %v4942_v56, %v9903_v3  ;;  %v5356_v36 = vsel %vm3261_vm5, %v10981_v24, %v5355_v63 }
0x101f   : > { %v4864_v41 = vpop.xlane.xlu2 %4863  ;;  %v4933_v45 = vpop.xlane.xlu0 %4932 }
0x1020   : > { %v5313_v46 = vperm.slane %v4864_v41, %v9903_v3  ;;  %v5420_v1 = vperm.slane %v4933_v45, %v9896_v2 }
0x1022   : > { %v5314_v13 = vsel %vm3206_vm13, %v5313_v46, %v5312_v53  ;;  %v5422_v57 = vsel %vm3206_vm13, %v5421_v9, %v5420_v1  ;;  %v5444_v9 = vperm.slane %v4981_v31, %v9896_v2  ;;  %v5343_v46 = vperm.slane %v11025_v12, %v9903_v3 }
0x1023   : > { %v5349_v17 = vsel %vm3261_vm5, %v5314_v13, %v5348_v6  ;;  %v4948_v25 = vpop.xlane.xlu1 %4947 }
0x1024   : > { %5516 = vmax.xlane.f32.xlu2 %v5515_v35  ;;  %v5427_v60 = vperm.slane %v4948_v25, %v9903_v3 }
0x1027   : > { %v4867_v59 = vpop.xlane.xlu2 %4866  ;;  %v4978_v20 = vpop.xlane.xlu0 %4977 }
0x1028   : > { %v5315_v49 = vperm.slane %v4867_v59, %v9896_v2  ;;  %v5442_v1 = vperm.slane %v4978_v20, %v9903_v3 }
0x102a   : > { %v5317_v7 = vsel %vm3206_vm13, %v5316_v29, %v5315_v49 }
0x102b   : > { %v5350_v8 = vsel %vm3263_vm6, %v5317_v7, %v5349_v17  ;;  %v11084_v61 = vpop.xlane.xlu1 %4950 }
0x102c   : > { %v5351_v28 = vsel %vm3265_vm7, %v5320_v23, %v5350_v8 }
0x102f   : > { %v4918_v58 = vpop.xlane.xlu2 %4917  ;;  %v4939_v62 = vpop.xlane.xlu0 %4938 }
0x1030   : > { %v5340_v54 = vperm.slane %v4918_v58, %v9903_v3  ;;  %v5423_v15 = vperm.slane %v4939_v62, %v9896_v2 }
0x1032   : > { %v5341_v42 = vsel %vm3206_vm13, %v5340_v54, %v5339_v39  ;;  %v5425_v32 = vsel %vm3206_vm13, %v5424_v50, %v5423_v15 }
0x1033   : > { %v5357_v55 = vsel %vm3263_vm6, %v5341_v42, %v5356_v36 }
0x1037   : > { %v4921_v33 = vpop.xlane.xlu2 %4920  ;;  %v11065_v27 = vpop.xlane.xlu0 %4989 }
0x1038   : > { %v5342_v41 = vperm.slane %v4921_v33, %v9896_v2 }
0x103a   : > { %v5344_v19 = vsel %vm3206_vm13, %v5343_v46, %v5342_v41 }
0x103b   : > { %v5358_v14 = vsel %vm3265_vm7, %v5344_v19, %v5357_v55 }
0x103f   : > { %v4930_v10 = vpop.xlane.xlu2 %4929  ;;  %v4945_v30 = vpop.xlane.xlu0 %4944 }
0x1040   : > { %v5418_v26 = vperm.slane %v4930_v10, %v9903_v3  ;;  %v5426_v16 = vperm.slane %v4945_v30, %v9896_v2 }
0x1042   : > { %v5419_v37 = vsel %vm3206_vm13, %v5418_v26, %v5417_v0  ;;  %v5428_v34 = vsel %vm3206_vm13, %v5427_v60, %v5426_v16  ;;  %v5448_v16 = vperm.slane %v11065_v27, %v9903_v3 }
0x1043   : > { %v5465_v24 = vsel %vm3253_vm14, %v5422_v57, %v5419_v37  ;;  %v5002_v57 = vpop.xlane.xlu1 %5001 }
0x1044   : > { %v5466_v44 = vsel %vm3255_vm1, %v5425_v32, %v5465_v24  ;;  %v11078_v48 = vpop.f32.mrf.mxu1 }
0x1045   : > { %v11082_v21 = vsel %vm3257_vm3, %v5428_v34, %v5466_v44 }
0x1047   : > { %v4975_v47 = vpop.xlane.xlu2 %4974  ;;  %v4996_v63 = vpop.xlane.xlu0 %4995 }
0x1048   : > { %v5441_v45 = vperm.slane %v4975_v47, %v9896_v2  ;;  %v5451_v37 = vperm.slane %v4996_v63, %v9903_v3 }
0x104a   : > { %v5443_v35 = vsel %vm3206_vm13, %v5442_v1, %v5441_v45  ;;  %v5454_v45 = vperm.slane %v5002_v57, %v9903_v3 }
0x104b   : > { %v5005_v12 = vpop.xlane.xlu1 %5004 }
0x104c   : > { %v11087_v11 = vpop.f32.mrf.mxu1 }
0x104d   : > { %v5710_v52 = vpack.c.bf16 %v11087_v11, %v11078_v48 }
0x104f   : > { %v4984_v51 = vpop.xlane.xlu2 %4983  ;;  %v4999_v53 = vpop.xlane.xlu0 %4998 }
0x1050   : > { %v5445_v13 = vperm.slane %v4984_v51, %v9903_v3  ;;  %v5453_v55 = vperm.slane %v4999_v53, %v9896_v2 }
0x1052   : > { %v5446_v6 = vsel %vm3206_vm13, %v5445_v13, %v5444_v9  ;;  %v5455_v53 = vsel %vm3206_vm13, %v5454_v45, %v5453_v55 }
0x1053   : > { %v5472_v59 = vsel %vm3253_vm14, %v5446_v6, %v5443_v35  ;;  %v11115_v62 = vpop.xlane.xlu1 %4965 }
0x1054   : > { %v11103_v29 = vpop.f32.mrf.mxu1 }
0x1057   : > { %v4987_v31 = vpop.xlane.xlu2 %4986  ;;  %v11105_v49 = vpop.xlane.xlu0 %4959 }
0x1058   : > { %v5447_v25 = vperm.slane %v4987_v31, %v9896_v2 }
0x105a   : > { %v5449_v8 = vsel %vm3206_vm13, %v5448_v16, %v5447_v25 }
0x105b   : > { %v11123_v42 = vpop.xlane.xlu1 %4968  ;;  %v5473_v63 = vsel %vm3255_vm1, %v5449_v8, %v5472_v59  ;;  %v5429_v8 = vperm.slane %v11084_v61, %v9896_v2  ;;  %v5436_v61 = vperm.slane %v11115_v62, %v9903_v3 }
0x105c   : > { %v11107_v20 = vpop.f32.mrf.mxu1 }
0x105d   : > { %v5713_v7 = vpack.c.bf16 %v11107_v20, %v11103_v29 }
0x105f   : > { %v4993_v23 = vpop.xlane.xlu2 %4992  ;;  %v11111_v56 = vpop.xlane.xlu0 %4962 }
0x1060   : > { %v5450_v10 = vperm.slane %v4993_v23, %v9896_v2 }
0x1064   : > { %v11113_v58 = vpop.f32.mrf.mxu0  ;;  %v11138_v44 = vpop.f32.mrf.mxu1 }
0x1067   : > { %v11117_v39 = vpop.xlane.xlu2 %4953  ;;  %v5014_v50 = vpop.xlane.xlu0 %5013 }
0x1068   : > { %v5460_v6 = vperm.slane %v5014_v50, %v9903_v3 }
0x106c   : > { %v11119_v54 = vpop.f32.mrf.mxu0 }
0x106d   : > { %v5712_v15 = vpack.c.bf16 %v11119_v54, %v11113_v58 }
0x106f   : > { %v11125_v32 = vpop.xlane.xlu2 %4956  ;;  %v5017_v36 = vpop.xlane.xlu0 %5016 }
0x1074   : > { %v5376_v33 = vpop.f32.mrf.mxu0 }
0x1075   : > { %v5377_v17 = vadd.f32 %v5376_v33, %v5351_v28  ;;  %v5452_v28 = vsel %vm3206_vm13, %v5451_v37, %v5450_v10  ;;  %v5498_v10 = vpop.f32.mrf.mxu1 }
0x1076   : > { %v5474_v51 = vsel %vm3257_vm3, %v5452_v28, %v5473_v63  ;;  %v5433_v28 = vperm.slane %v11105_v49, %v9903_v3  ;;  %v5438_v49 = vperm.slane %v11123_v42, %v9896_v2 }
0x1077   : > { %v11129_v30 = vmul.f32 0.25, %v5377_v17  ;;  %v5511_v0 = vpop.xlane.xlu1 %5510  ;;  %v5008_v26 = vpop.xlane.xlu2 %5007  ;;  %v5475_v57 = vsel %vm3259_vm4, %v5455_v53, %v5474_v51 }
0x1078   : > { %v5533_v60 = vsub.f32 %v10974_v38, %v5511_v0  ;;  %v5457_v47 = vperm.slane %v5008_v26, %v9903_v3  ;;  %v5456_v38 = vperm.slane %v5005_v12, %v9896_v2  ;;  %v5520_v9 = vpop.xlane.xlu0 %5519 }
0x1079   : > { %v5521_v24 = vsel %vm1178_vm2, %v11129_v30, -inf  ;;  %v5536_v33 = vsub.f32 %v10967_v18, %v5520_v9 }
0x107a   : > { %v5541_v34 = vmul.f32 1.442695, %v5533_v60  ;;  %5522 = vmax.xlane.f32.xlu1 %v5521_v24  ;;  %v5458_v46 = vsel %vm3206_vm13, %v5457_v47, %v5456_v38  ;;  %v5430_v60 = vperm.slane %v11117_v39, %v9903_v3  ;;  %v5432_v24 = vperm.slane %v11125_v32, %v9896_v2 }
0x107b   : > { %v5476_v23 = vsel %vm3261_vm5, %v5458_v46, %v5475_v57  ;;  %v5547_v16 = vmul.f32 1.442695, %v5536_v33  ;;  %v5435_v39 = vperm.slane %v11111_v56, %v9896_v2  ;;  %v12136_v57 = vld [vmem:[#allocation36_spill] sm:$0xff] }
0x107c   : > { %6821 = vpow2.f32 %v5541_v34  ;;  %v5378_v27 = vpop.f32.mrf.mxu0  ;;  %v5431_v47 = vsel %vm3206_vm13, %v5430_v60, %v5429_v8  ;;  %v5434_v55 = vsel %vm3206_vm13, %v5433_v28, %v5432_v24 }
0x107d   : > { %v5379_v41 = vadd.f32 %v5378_v27, %v5358_v14  ;;  %v5462_v14 = vperm.slane %v5017_v36, %v9896_v2  ;;  %6823 = vpow2.f32 %v5547_v16  ;;  %v5468_v32 = vsel %vm3259_vm4, %v5431_v47, %v11082_v21  ;;  %v12134_v21 = vld [vmem:[#allocation37_spill] sm:$0xff] }
0x107e   : > { %v5469_v27 = vsel %vm3261_vm5, %v5434_v55, %v5468_v32  ;;  %v5437_v45 = vsel %vm3206_vm13, %v5436_v61, %v5435_v39 }
0x107f   : > { %v11148_v1 = vmul.f32 0.25, %v5379_v41  ;;  %v5020_v13 = vpop.xlane.xlu1 %5019  ;;  %v5011_v35 = vpop.xlane.xlu2 %5010  ;;  %v5470_v51 = vsel %vm3263_vm6, %v5437_v45, %v5469_v27 }
0x1080   : > { %v5463_v19 = vperm.slane %v5020_v13, %v9903_v3  ;;  %v5459_v59 = vperm.slane %v5011_v35, %v9896_v2 }
0x1081   : > { %v5524_v31 = vsel %vm1178_vm2, %v11148_v1, -inf }
0x1082   : > { %v11158_v12 = vpop.eup %6821  ;;  %v5461_v17 = vsel %vm3206_vm13, %v5460_v6, %v5459_v59  ;;  %5525 = vmax.xlane.f32.xlu2 %v5524_v31  ;;  %v5464_v50 = vsel %vm3206_vm13, %v5463_v19, %v5462_v14  ;;  %v12137_v31 = vld [vmem:[#allocation140_spill] sm:$0xff] }
0x1083   : > { %v5477_v25 = vsel %vm3263_vm6, %v5461_v17, %v5476_v23  ;;  %v5557_v36 = vsel %vm1178_vm2, %v11158_v12, 0.0  ;;  %v11186_v63 = vpop.eup %6823 }
0x1084   : > { %5558 = vadd.xlane.f32.xlu0 %v5557_v36  ;;  %v5478_v0 = vsel %vm3265_vm7, %v5464_v50, %v5477_v25  ;;  %v5566_v62 = vsel %vm1178_vm2, %v11186_v63, 0.0 }
0x1085   : > { %v5499_v26 = vadd.f32 %v5498_v10, %v5478_v0 }
0x1087   : > { %v5514_v18 = vpop.xlane.xlu2 %5513  ;;  %v5508_v37 = vmul.f32 0.25, %v5499_v26 }
0x1088   : > { %v5534_v19 = vsub.f32 %v11015_v5, %v5514_v18 }
0x1089   : > { %v5530_v34 = vsel %vm1178_vm2, %v5508_v37, -inf }
0x108a   : > { %v5543_v59 = vmul.f32 1.442695, %v5534_v19 }
0x108c   : > { %5531 = vmax.xlane.f32.xlu0 %v5530_v34 }
0x108f   : > { %v4972_v38 = vpop.xlane.xlu2 %4971 }
0x1090   : > { %v5439_v41 = vperm.slane %v4972_v38, %v9903_v3 }
0x1092   : > { %v5440_v56 = vsel %vm3206_vm13, %v5439_v41, %v5438_v49  ;;  %v6586_v49 = vld [vmem:[%s11504_s17] sm:$0xff] }
0x1093   : > { %5610 = vrot.lane.b32.xlu1 %v12134_v21, %s7028_s4  ;;  %v5471_v9 = vsel %vm3265_vm7, %v5440_v56, %v5470_v51 }
0x1094   : > { %5567 = vadd.xlane.f32.xlu0 %v5566_v62  ;;  %v5497_v46 = vadd.f32 %v11138_v44, %v5471_v9  ;;  %v12135_v44 = vld [vmem:[#allocation98_spill] sm:$0xff] }
0x1096   : > { %v5507_v2 = vmul.f32 0.25, %v5497_v46 }
0x1097   : > { %v5517_v42 = vpop.xlane.xlu2 %5516 }
0x1098   : > { %v5535_v3 = vsub.f32 %v11036_v22, %v5517_v42  ;;  %v5527_v13 = vsel %vm1178_vm2, %v5507_v2, -inf }
0x1099   : > { %5528 = vmax.xlane.f32.xlu2 %v5527_v13 }
0x109a   : > { %v5545_v35 = vmul.f32 1.442695, %v5535_v3 }
0x109c   : > { %6825 = vpow2.f32 %v5545_v35 }
0x109d   : > { %6827 = vpow2.f32 %v5543_v59 }
0x10a2   : > { %v6826_v53 = vpop.eup %6825 }
0x10a3   : > { %v5563_v6 = vsel %vm1178_vm2, %v6826_v53, 0.0  ;;  %v11203_v14 = vpop.eup %6827 }
0x10a4   : > { %5564 = vadd.xlane.f32.xlu2 %v5563_v6  ;;  %v5560_v22 = vsel %vm1178_vm2, %v11203_v14, 0.0 }
0x10bc   : > { %5635 = vrot.lane.b32.xlu2 %v12135_v44, %s7028_s4 }
0x10bd   : > { %5561 = vadd.xlane.f32.xlu1 %v5560_v22 }
0x10c4   : > { %5685 = vrot.lane.b32.xlu2 %v12136_v57, %s7028_s4 }
0x10d6   : > { %5660 = vrot.lane.b32.xlu1 %v12137_v31, %s7028_s4  ;;  %s6280_s4 = sshll.u32 %s6277_s27, 4  ;;  %s6281_s4 = int_to_ptr.hbm [resolvable:$true] %s6280_s4 }
0x10d7   : > { %s6972_s30 = sshra.s32 %s6281_s4, 4  ;;  %s6973_s30 = int_to_ptr.hbm [resolvable:$true] %s6972_s30 }
0x10d8   : > { %s6974_s2 = scalar_lea.hbm %s6973_s30, 64  ;;  %p6979_p0 = scmp.lt.s32.totalorder %s6973_s30, %s11511_s24 }
0x10d9   : > { %p6975_p11 = scmp.ne.s32.totalorder %s6973_s30, %s6974_s2  ;;  %p6980_p1 = scmp.lt.s32.totalorder %s6978_s5, %s6974_s2 }
0x10db   : > { %p6976_p12 = pnand %p6975_p11, %p7194_p5  ;;  %p6981_p2 = por %p6980_p1, %p6979_p0 }
0x10dd   : > { %p6977_p13 = pneg %p6976_p12 }
0x10df   : > { %p6982_p3 = pnand %p6981_p2, %p6977_p13 }
0x10ed   : > { %v5523_v23 = vpop.xlane.xlu1 %5522 }
0x10ee   : > { %v5537_v33 = vsub.f32 %v11129_v30, %v5523_v23 }
0x10f0   : > { %v5549_v17 = vmul.f32 1.442695, %v5537_v33 }
0x10f2   : > { %6829 = vpow2.f32 %v5549_v17 }
0x10f5   : > { %v5526_v5 = vpop.xlane.xlu2 %5525 }
0x10f6   : > { %v5538_v50 = vsub.f32 %v11148_v1, %v5526_v5 }
0x10f7   : > { %v5559_v25 = vpop.xlane.xlu0 %5558 }
0x10f8   : > { %v11212_v36 = vpop.eup %6829  ;;  %v5551_v10 = vmul.f32 1.442695, %v5538_v50 }
0x10f9   : > { %v5569_v0 = vsel %vm1178_vm2, %v11212_v36, 0.0 }
0x10fa   : > { %6831 = vpow2.f32 %v5551_v10  ;;  %5570 = vadd.xlane.f32.xlu0 %v5569_v0 }
0x10ff   : > { %v5532_v26 = vpop.xlane.xlu0 %5531 }
0x1100   : > { %v11216_v16 = vpop.eup %6831  ;;  %v5540_v60 = vsub.f32 %v5508_v37, %v5532_v26 }
0x1101   : > { %v5572_v30 = vsel %vm1178_vm2, %v11216_v16, 0.0 }
0x1102   : > { %v5555_v18 = vmul.f32 1.442695, %v5540_v60  ;;  %5573 = vadd.xlane.f32.xlu0 %v5572_v30 }
0x1104   : > { %6833 = vpow2.f32 %v5555_v18 }
0x1105   : > { %v5611_v1 = vpop.permute.xlu1 %5610 }
0x1106   : > { %5623 = vmatpush.bf16.msra.mxu2 %v5611_v1 }
0x1107   : > { %v5568_v47 = vpop.xlane.xlu0 %5567 }
0x110a   : > { %v11220_v24 = vpop.eup %6833 }
0x110b   : > { %v5578_v8 = vsel %vm1178_vm2, %v11220_v24, 0.0 }
0x110c   : > { %5579 = vadd.xlane.f32.xlu1 %v5578_v8  ;;  %v5529_v34 = vpop.xlane.xlu2 %5528 }
0x110d   : > { %v5539_v28 = vsub.f32 %v5507_v2, %v5529_v34 }
0x110f   : > { %v5553_v55 = vmul.f32 1.442695, %v5539_v28 }
0x1111   : > { %6835 = vpow2.f32 %v5553_v55 }
0x1112   : > { %6837 = vrcp.f32 %v5568_v47  ;;  %v6652_v47 = vld [vmem:[%s11505_s18] ss:$0 sm:$0xff] }
0x1117   : > { %v6836_v37 = vpop.eup %6835  ;;  %v5565_v39 = vpop.xlane.xlu2 %5564 }
0x1118   : > { %v6838_v32 = vpop.eup %6837  ;;  %6839 = vrcp.f32 %v5565_v39  ;;  %v5575_v61 = vsel %vm1178_vm2, %v6836_v37, 0.0 }
0x1119   : > { %5576 = vadd.xlane.f32.xlu0 %v5575_v61  ;;  %v5592_v27 = vmul.f32 %v6838_v32, %v11186_v63  ;;  %6841 = vrcp.f32 %v5559_v25  ;;  %v6587_v25 = vld [vmem:[%s11504_s17 + $0x8] sm:$0xff] }
0x111a   : > { %5743 = vmatpush.bf16.msrb.mxu2 %v6587_v25  ;;  %v12138_v61 = vld [vmem:[#allocation24_spill] sm:$0xff] }
0x111b   : > { %v5600_v41 = vpack.c.bf16 %v5592_v27, %v5592_v27 }
0x111d   : > { %v5633_v21 = vunpack.c.l.b16 %v5600_v41 }
0x111e   : > { %v6840_v38 = vpop.eup %6839 }
0x111f   : > { %v5591_v45 = vmul.f32 %v6840_v38, %v6826_v53  ;;  %v5636_v56 = vpop.permute.xlu2 %5635  ;;  %v6842_v2 = vpop.eup %6841 }
0x1120   : > { %5648 = vmatpush.bf16.msra.mxu3 %v5636_v56  ;;  %v5589_v42 = vmul.f32 %v6842_v2, %v11158_v12  ;;  %v12139_v56 = vld [vmem:[#allocation25_spill] sm:$0xff]  ;;  %v12140_v2 = vld [vmem:[#allocation26_spill] sm:$0xff] }
0x1121   : > { %v5599_v51 = vpack.c.bf16 %v5591_v45, %v5591_v45 }
0x1122   : > { %v5597_v13 = vpack.c.bf16 %v5589_v42, %v5589_v42 }
0x1123   : > { %v5632_v62 = vunpack.c.l.b16 %v5599_v51 }
0x1124   : > { %5790 = vmatpush.bf16.msrb.mxu3 %v6586_v49  ;;  %v5607_v6 = vunpack.c.l.b16 %v5597_v13 }
0x1125   : > { %v5634_v9 = vpack.c.b16 %v5633_v21, %v5632_v62 }
0x1127   : > { %v5686_v46 = vpop.permute.xlu2 %5685  ;;  %6503 = vmatmul.msk.bf16.vlgmr.msra.gmra.mxu3 %vm1178_vm2, %v5634_v9 }
0x1128   : > { %5698 = vmatpush.bf16.msrb.mxu1 %v5686_v46 }
0x1130   : > { %v5562_v63 = vpop.xlane.xlu1 %5561 }
0x1131   : > { %6843 = vrcp.f32 %v5562_v63 }
0x1137   : > { %v6844_v3 = vpop.eup %6843  ;;  %6518 = vmatmul.msk.bf16.vlgmr.msrb.gmra.mxu3 %vm1178_vm2, %v5710_v52 }
0x1138   : > { %v5590_v35 = vmul.f32 %v6844_v3, %v11203_v14 }
0x113a   : > { %v5598_v53 = vpack.c.bf16 %v5590_v35, %v5590_v35 }
0x113c   : > { %v5608_v19 = vunpack.c.l.b16 %v5598_v53 }
0x113e   : > { %v5609_v59 = vpack.c.b16 %v5608_v19, %v5607_v6  ;;  %v12141_v19 = vld [vmem:[#allocation27_spill] sm:$0xff] }
0x1140   : > { %6502 = vmatmul.msk.bf16.vlgmr.msra.gmra.mxu2 %vm1178_vm2, %v5609_v59 }
0x1147   : > { %6519 = vmatmul.msk.bf16.gmra.mxu3 %vm1178_vm2, %v5711_v4 }
0x1148   : > { %v5661_v12 = vpop.permute.xlu1 %5660 }
0x1149   : > { %5673 = vmatpush.bf16.msrb.mxu0 %v5661_v12 }
0x1157   : > { %6520 = vmatmul.msk.bf16.gmra.mxu3 %vm1178_vm2, %v5712_v15 }
0x1167   : > { %6521 = vmatmul.msk.bf16.gmra.mxu3 %vm1178_vm2, %v5713_v7 }
0x116d   : > { %v5571_v48 = vpop.xlane.xlu0 %5570 }
0x116e   : > { %6845 = vrcp.f32 %v5571_v48 }
0x1174   : > { %v6846_v52 = vpop.eup %6845 }
0x1175   : > { %v5574_v11 = vpop.xlane.xlu0 %5573  ;;  %v5593_v40 = vmul.f32 %v6846_v52, %v11212_v36 }
0x1176   : > { %6847 = vrcp.f32 %v5574_v11 }
0x1177   : > { %v5601_v4 = vpack.c.bf16 %v5593_v40, %v5593_v40 }
0x1179   : > { %v5657_v58 = vunpack.c.l.b16 %v5601_v4 }
0x117c   : > { %v6848_v43 = vpop.eup %6847 }
0x117d   : > { %v5594_v14 = vmul.f32 %v6848_v43, %v11216_v16  ;;  %v12142_v43 = vld [vmem:[#allocation28_spill] sm:$0xff] }
0x117f   : > { %v5602_v44 = vpack.c.bf16 %v5594_v14, %v5594_v14  ;;  %v5580_v22 = vpop.xlane.xlu1 %5579 }
0x1180   : > { %6849 = vrcp.f32 %v5580_v22  ;;  %v12143_v22 = vld [vmem:[#allocation29_spill] sm:$0xff] }
0x1181   : > { %v5658_v54 = vunpack.c.l.b16 %v5602_v44 }
0x1183   : > { %v5659_v15 = vpack.c.b16 %v5658_v54, %v5657_v58 }
0x1185   : > { %6504 = vmatmul.msk.bf16.vlgmr.msrb.gmra.mxu0 %vm1178_vm2, %v5659_v15 }
0x1186   : > { %v6850_v20 = vpop.eup %6849 }
0x1187   : > { %v5596_v7 = vmul.f32 %v6850_v20, %v11220_v24 }
0x1189   : > { %v5604_v31 = vpack.c.bf16 %v5596_v7, %v5596_v7 }
0x118b   : > { %v5683_v17 = vunpack.c.l.b16 %v5604_v31 }
0x118c   : > { %v5577_v29 = vpop.xlane.xlu0 %5576 }
0x118d   : > { %6851 = vrcp.f32 %v5577_v29 }
0x1193   : > { %v6852_v57 = vpop.eup %6851 }
0x1194   : > { %v5595_v23 = vmul.f32 %v6852_v57, %v6836_v37 }
0x1196   : > { %v5603_v33 = vpack.c.bf16 %v5595_v23, %v5595_v23 }
0x1198   : > { %v5682_v5 = vunpack.c.l.b16 %v5603_v33 }
0x119a   : > { %v5684_v50 = vpack.c.b16 %v5683_v17, %v5682_v5  ;;  %v12144_v5 = vld [vmem:[#allocation31_spill] sm:$0xff] }
0x119c   : > { %6505 = vmatmul.msk.bf16.vlgmr.msrb.gmra.mxu1 %vm1178_vm2, %v5684_v50 }
0x11aa   : > { %v5650_v26 = vpop.f32.mrf.mxu3 }
0x11b2   : > { %v5652_v16 = vpop.f32.mrf.mxu3 }
0x11b3   : > { %v5715_v60 = vpack.c.bf16 %v5652_v16, %v5650_v26 }
0x11ba   : > { %v5792_v28 = vpop.f32.mrf.mxu3 }
0x11c2   : > { %v5794_v32 = vpop.f32.mrf.mxu3 }
0x11c3   : > { %v5625_v36 = vpop.f32.mrf.mxu2 }
0x11ca   : > { %v5797_v21 = vpop.f32.mrf.mxu3 }
0x11cb   : > { %v5627_v10 = vpop.f32.mrf.mxu2 }
0x11cc   : > { %v5714_v0 = vpack.c.bf16 %v5627_v10, %v5625_v36  ;;  %v12145_v10 = vld [vmem:[#allocation11_spill] sm:$0xff] }
0x11ce   : > { %6510 = vmatmul.msk.bf16.vlgmr.msrb.gmra.mxu2 %vm1178_vm2, %v5714_v0 }
0x11d2   : > { %v5799_v13 = vpop.f32.mrf.mxu3 }
0x11da   : > { %v5802_v48 = vpop.f32.mrf.mxu3 }
0x11de   : > { %6511 = vmatmul.msk.bf16.gmra.mxu2 %vm1178_vm2, %v5715_v60 }
0x11e2   : > { %v5804_v44 = vpop.f32.mrf.mxu3 }
0x11ea   : > { %v5807_v7 = vpop.f32.mrf.mxu3 }
0x11f2   : > { %v5809_v31 = vpop.f32.mrf.mxu3 }
0x1202   : > { %v5675_v30 = vpop.f32.mrf.mxu0 }
0x120a   : > { %v5677_v18 = vpop.f32.mrf.mxu0 }
0x120b   : > { %v5716_v1 = vpack.c.bf16 %v5677_v18, %v5675_v30 }
0x120d   : > { %6512 = vmatmul.msk.bf16.gmra.mxu2 %vm1178_vm2, %v5716_v1 }
0x1219   : > { %v5700_v24 = vpop.f32.mrf.mxu1 }
0x1221   : > { %v5702_v8 = vpop.f32.mrf.mxu1 }
0x1222   : > { %v5717_v34 = vpack.c.bf16 %v5702_v8, %v5700_v24  ;;  %v12146_v8 = vld [vmem:[#allocation30_spill] sm:$0xff] }
0x1224   : > { %6513 = vmatmul.msk.bf16.gmra.mxu2 %vm1178_vm2, %v5717_v34 }
0x1251   : > { %v5745_v55 = vpop.f32.mrf.mxu2 }
0x1252   : > { %v5793_v37 = vadd.f32 %v5792_v28, %v5745_v55 }
0x1254   : > { %v5815_v39 = vadd.f32 %v6652_v47, %v5793_v37 }
0x1256   : > { %v11265_v27 = vadd.f32 %v5815_v39, %v12138_v61 }
0x1258   : > { %v5849_v38 = vsel %vm781_vm0, %v11265_v27, 0.0 }
0x1259   : > { %v5747_v49 = vpop.f32.mrf.mxu2  ;;  %5850 = vadd.xlane.f32.xlu0 %v5849_v38 }
0x125a   : > { %v5795_v41 = vadd.f32 %v5794_v32, %v5747_v49 }
0x125c   : > { %v5816_v45 = vadd.f32 %v6652_v47, %v5795_v41 }
0x125e   : > { %v11270_v51 = vadd.f32 %v5816_v45, %v12139_v56 }
0x1260   : > { %v5852_v62 = vsel %vm781_vm0, %v11270_v51, 0.0 }
0x1261   : > { %5853 = vadd.xlane.f32.xlu2 %v5852_v62  ;;  %v5750_v9 = vpop.f32.mrf.mxu2 }
0x1262   : > { %v5798_v46 = vadd.f32 %v5797_v21, %v5750_v9 }
0x1264   : > { %v5817_v63 = vadd.f32 %v6652_v47, %v5798_v46 }
0x1266   : > { %v11275_v42 = vadd.f32 %v5817_v63, %v12140_v2 }
0x1268   : > { %v5855_v3 = vsel %vm781_vm0, %v11275_v42, 0.0 }
0x1269   : > { %5856 = vadd.xlane.f32.xlu0 %v5855_v3  ;;  %v5752_v35 = vpop.f32.mrf.mxu2 }
0x126a   : > { %v5800_v53 = vadd.f32 %v5799_v13, %v5752_v35 }
0x126c   : > { %v5818_v6 = vadd.f32 %v6652_v47, %v5800_v53 }
0x126e   : > { %v11280_v59 = vadd.f32 %v5818_v6, %v12141_v19 }
0x1270   : > { %v5858_v12 = vsel %vm781_vm0, %v11280_v59, 0.0 }
0x1271   : > { %5859 = vadd.xlane.f32.xlu0 %v5858_v12 }
0x1290   : > { %v5755_v11 = vpop.f32.mrf.mxu2 }
0x1291   : > { %v5803_v52 = vadd.f32 %v5802_v48, %v5755_v11 }
0x1293   : > { %v5819_v40 = vadd.f32 %v6652_v47, %v5803_v52 }
0x1295   : > { %v11285_v4 = vadd.f32 %v5819_v40, %v12142_v43 }
0x1297   : > { %v5861_v14 = vsel %vm781_vm0, %v11285_v4, 0.0 }
0x1298   : > { %5862 = vadd.xlane.f32.xlu0 %v5861_v14  ;;  %v5757_v58 = vpop.f32.mrf.mxu2 }
0x1299   : > { %v5805_v54 = vadd.f32 %v5804_v44, %v5757_v58 }
0x129b   : > { %v5820_v15 = vadd.f32 %v6652_v47, %v5805_v54 }
0x129d   : > { %v11290_v29 = vadd.f32 %v5820_v15, %v12143_v22 }
0x129f   : > { %v5864_v20 = vsel %vm781_vm0, %v11290_v29, 0.0 }
0x12a0   : > { %5865 = vadd.xlane.f32.xlu0 %v5864_v20 }
0x12a7   : > { %v5760_v57 = vpop.f32.mrf.mxu2 }
0x12a8   : > { %v5808_v26 = vadd.f32 %v5807_v7, %v5760_v57 }
0x12aa   : > { %v5821_v30 = vadd.f32 %v6652_v47, %v5808_v26 }
0x12ac   : > { %v11308_v34 = vadd.f32 %v5821_v30, %v12146_v8 }
0x12af   : > { %v5762_v23 = vpop.f32.mrf.mxu2 }
0x12b0   : > { %v5810_v33 = vadd.f32 %v5809_v31, %v5762_v23 }
0x12b2   : > { %v5822_v17 = vadd.f32 %v6652_v47, %v5810_v33  ;;  %v5867_v47 = vsel %vm781_vm0, %v11308_v34, 0.0 }
0x12b4   : > { %v11295_v50 = vadd.f32 %v5822_v17, %v12144_v5  ;;  %v6589_v17 = vld [vmem:[%s11506_s19 + $0x8] sm:$0xff] }
0x12b5   : > { %6062 = vmatpush.bf16.msra.mxu0 %v6589_v17 }
0x12b6   : > { %v5870_v25 = vsel %vm781_vm0, %v11295_v50, 0.0 }
0x12b7   : > { %5871 = vadd.xlane.f32.xlu2 %v5870_v25 }
0x12cc   : > { %v5851_v36 = vpop.xlane.xlu0 %5850 }
0x12cd   : > { %v5873_v0 = vmul.f32 %v5851_v36, %v12145_v10 }
0x12cf   : > { %v11301_v16 = vsub.f32 %v11265_v27, %v5873_v0  ;;  %v6588_v0 = vld [vmem:[%s11506_s19] sm:$0xff] }
0x12d0   : > { %6063 = vmatpush.bf16.msra.mxu0 %v6588_v0 }
0x12d1   : > { %v5889_v60 = vmul.f32 %v11301_v16, %v11301_v16 }
0x12d3   : > { %v5897_v18 = vsel %vm781_vm0, %v5889_v60, 0.0 }
0x12d4   : > { %v5854_v1 = vpop.xlane.xlu2 %5853  ;;  %5898 = vadd.xlane.f32.xlu1 %v5897_v18 }
0x12d5   : > { %v5874_v24 = vmul.f32 %v5854_v1, %v12145_v10 }
0x12d7   : > { %v11311_v28 = vsub.f32 %v11270_v51, %v5874_v24 }
0x12d9   : > { %v5890_v55 = vmul.f32 %v11311_v28, %v11311_v28 }
0x12db   : > { %v5900_v37 = vsel %vm781_vm0, %v5890_v55, 0.0 }
0x12dc   : > { %5901 = vadd.xlane.f32.xlu0 %v5900_v37  ;;  %5868 = vadd.xlane.f32.xlu1 %v5867_v47  ;;  %v5857_v39 = vpop.xlane.xlu0 %5856 }
0x12dd   : > { %v5875_v32 = vmul.f32 %v5857_v39, %v12145_v10 }
0x12df   : > { %v11320_v61 = vsub.f32 %v11275_v42, %v5875_v32 }
0x12e1   : > { %v5891_v38 = vmul.f32 %v11320_v61, %v11320_v61 }
0x12e3   : > { %v5903_v49 = vsel %vm781_vm0, %v5891_v38, 0.0 }
0x12e4   : > { %5904 = vadd.xlane.f32.xlu0 %v5903_v49  ;;  %v5860_v41 = vpop.xlane.xlu0 %5859 }
0x12e5   : > { %v5876_v45 = vmul.f32 %v5860_v41, %v12145_v10 }
0x12e7   : > { %v11327_v56 = vsub.f32 %v11280_v59, %v5876_v45 }
0x12e9   : > { %v5892_v21 = vmul.f32 %v11327_v56, %v11327_v56 }
0x12eb   : > { %v5906_v62 = vsel %vm781_vm0, %v5892_v21, 0.0 }
0x12ec   : > { %5907 = vadd.xlane.f32.xlu1 %v5906_v62 }
0x130b   : > { %v5863_v9 = vpop.xlane.xlu0 %5862 }
0x130c   : > { %v5877_v46 = vmul.f32 %v5863_v9, %v12145_v10 }
0x130e   : > { %v11334_v63 = vsub.f32 %v11285_v4, %v5877_v46 }
0x1310   : > { %v5893_v2 = vmul.f32 %v11334_v63, %v11334_v63 }
0x1312   : > { %v5909_v3 = vsel %vm781_vm0, %v5893_v2, 0.0 }
0x1313   : > { %5910 = vadd.xlane.f32.xlu2 %v5909_v3  ;;  %v5866_v13 = vpop.xlane.xlu0 %5865 }
0x1314   : > { %v5878_v35 = vmul.f32 %v5866_v13, %v12145_v10 }
0x1316   : > { %v11341_v53 = vsub.f32 %v11290_v29, %v5878_v35 }
0x1318   : > { %v5894_v6 = vmul.f32 %v11341_v53, %v11341_v53 }
0x131a   : > { %v5912_v19 = vsel %vm781_vm0, %v5894_v6, 0.0 }
0x131b   : > { %5913 = vadd.xlane.f32.xlu0 %v5912_v19 }
0x132a   : > { %v5872_v12 = vpop.xlane.xlu2 %5871 }
0x132b   : > { %v5880_v48 = vmul.f32 %v5872_v12, %v12145_v10 }
0x132d   : > { %v11348_v11 = vsub.f32 %v11295_v50, %v5880_v48 }
0x132f   : > { %v5896_v52 = vmul.f32 %v11348_v11, %v11348_v11 }
0x1331   : > { %v5918_v40 = vsel %vm781_vm0, %v5896_v52, 0.0 }
0x1332   : > { %5919 = vadd.xlane.f32.xlu2 %v5918_v40 }
0x1347   : > { %v5899_v43 = vpop.xlane.xlu1 %5898 }
0x1348   : > { %v5921_v14 = vmul.f32 %v5899_v43, %v12145_v10 }
0x134a   : > { %v5929_v44 = vadd.f32 1e-05, %v5921_v14 }
0x134c   : > { %6853 = vrsqrt.f32 %v5929_v44  ;;  %vm5943_vm8 = vweird.f32 %v5929_v44 }
0x134f   : > { %v5869_v58 = vpop.xlane.xlu1 %5868  ;;  %v5902_v54 = vpop.xlane.xlu0 %5901 }
0x1350   : > { %v5879_v15 = vmul.f32 %v5869_v58, %v12145_v10  ;;  %v5922_v22 = vmul.f32 %v5902_v54, %v12145_v10 }
0x1352   : > { %v6854_v20 = vpop.eup %6853  ;;  %v11357_v7 = vsub.f32 %v11308_v34, %v5879_v15  ;;  %v5930_v57 = vadd.f32 1e-05, %v5922_v22 }
0x1353   : > { %v5938_v31 = vmul.f32 %v6854_v20, %v5929_v44  ;;  %vm5944_vm2 = vweird.f32 %v6854_v20 }
0x1354   : > { %6855 = vrsqrt.f32 %v5930_v57  ;;  %v5895_v23 = vmul.f32 %v11357_v7, %v11357_v7  ;;  %vm5945_vm10 = vmor %vm5943_vm8, %vm5944_vm2  ;;  %vm5953_vm11 = vweird.f32 %v5930_v57 }
0x1355   : > { %v5939_v33 = vmul.f32 %v6854_v20, %v5938_v31 }
0x1356   : > { %v5915_v5 = vsel %vm781_vm0, %v5895_v23, 0.0 }
0x1357   : > { %v5940_v25 = vmul.f32 0.5, %v5939_v33  ;;  %5916 = vadd.xlane.f32.xlu1 %v5915_v5  ;;  %v5905_v36 = vpop.xlane.xlu0 %5904 }
0x1358   : > { %v5923_v26 = vmul.f32 %v5905_v36, %v12145_v10 }
0x1359   : > { %v5941_v18 = vsub.f32 1.5, %v5940_v25 }
0x135a   : > { %v6856_v60 = vpop.eup %6855  ;;  %v5931_v30 = vadd.f32 1e-05, %v5923_v26 }
0x135b   : > { %v5948_v1 = vmul.f32 %v6856_v60, %v5930_v57  ;;  %v5942_v8 = vmul.f32 %v6854_v20, %v5941_v18  ;;  %vm5954_vm9 = vweird.f32 %v6856_v60 }
0x135c   : > { %6857 = vrsqrt.f32 %v5931_v30  ;;  %vm5955_vm12 = vmor %vm5953_vm11, %vm5954_vm9  ;;  %vm5963_vm14 = vweird.f32 %v5931_v30 }
0x135d   : > { %v5949_v24 = vmul.f32 %v6856_v60, %v5948_v1  ;;  %v5946_v49 = vsel %vm5945_vm10, %v6854_v20, %v5942_v8 }
0x135e   : > { %v6017_v9 = vmul.f32 %v5946_v49, %v11301_v16 }
0x135f   : > { %v5950_v55 = vmul.f32 0.5, %v5949_v24  ;;  %v5908_v37 = vpop.xlane.xlu1 %5907 }
0x1360   : > { %v5924_v47 = vmul.f32 %v5908_v37, %v12145_v10 }
0x1361   : > { %v5951_v39 = vsub.f32 1.5, %v5950_v55 }
0x1362   : > { %v6858_v32 = vpop.eup %6857  ;;  %v5932_v38 = vadd.f32 1e-05, %v5924_v47 }
0x1363   : > { %v5952_v41 = vmul.f32 %v6856_v60, %v5951_v39  ;;  %v5958_v45 = vmul.f32 %v6858_v32, %v5931_v30  ;;  %vm5964_vm13 = vweird.f32 %v6858_v32 }
0x1364   : > { %6859 = vrsqrt.f32 %v5932_v38  ;;  %vm5965_vm3 = vmor %vm5963_vm14, %vm5964_vm13  ;;  %vm5973_vm4 = vweird.f32 %v5932_v38 }
0x1365   : > { %v5956_v21 = vsel %vm5955_vm12, %v6856_v60, %v5952_v41  ;;  %v5959_v62 = vmul.f32 %v6858_v32, %v5958_v45 }
0x1366   : > { %v6018_v46 = vmul.f32 %v5956_v21, %v11311_v28 }
0x1367   : > { %v5960_v2 = vmul.f32 0.5, %v5959_v62 }
0x1368   : > { %v6025_v3 = vpack.c.bf16 %v6018_v46, %v6017_v9 }
0x1369   : > { %v5961_v35 = vsub.f32 1.5, %v5960_v2 }
0x136a   : > { %v6860_v13 = vpop.eup %6859  ;;  %6530 = vmatmul.msk.bf16.vlgmr.msra.gmra.mxu0 %vm781_vm0, %v6025_v3 }
0x136b   : > { %v5968_v6 = vmul.f32 %v6860_v13, %v5932_v38  ;;  %v5962_v12 = vmul.f32 %v6858_v32, %v5961_v35  ;;  %vm5974_vm1 = vweird.f32 %v6860_v13 }
0x136c   : > { %vm5975_vm5 = vmor %vm5973_vm4, %vm5974_vm1 }
0x136d   : > { %v5969_v19 = vmul.f32 %v6860_v13, %v5968_v6  ;;  %v5966_v40 = vsel %vm5965_vm3, %v6858_v32, %v5962_v12 }
0x136e   : > { %v6019_v28 = vmul.f32 %v5966_v40, %v11320_v61 }
0x136f   : > { %v5970_v48 = vmul.f32 0.5, %v5969_v19 }
0x1371   : > { %v5971_v52 = vsub.f32 1.5, %v5970_v48  ;;  %v11388_v48 = vld [vmem:[%s11507_s20] ss:$0 sm:$0xff] }
0x1373   : > { %v5972_v43 = vmul.f32 %v6860_v13, %v5971_v52 }
0x1375   : > { %v5976_v16 = vsel %vm5975_vm5, %v6860_v13, %v5972_v43  ;;  %v6595_v43 = vld [vmem:[%s11508_s21 + $0x28] sm:$0xff] }
0x1376   : > { %v6020_v14 = vmul.f32 %v5976_v16, %v11327_v56  ;;  %6211 = vmatpush.bf16.msra.mxu1 %v6595_v43 }
0x1378   : > { %v6026_v44 = vpack.c.bf16 %v6020_v14, %v6019_v28  ;;  %v6594_v14 = vld [vmem:[%s11508_s21 + $0x20] sm:$0xff] }
0x137a   : > { %6531 = vmatmul.msk.bf16.gmra.mxu0 %vm781_vm0, %v6026_v44  ;;  %6212 = vmatpush.bf16.msra.mxu1 %v6594_v14 }
0x1386   : > { %v5911_v58 = vpop.xlane.xlu2 %5910 }
0x1387   : > { %v5925_v54 = vmul.f32 %v5911_v58, %v12145_v10 }
0x1389   : > { %v5933_v15 = vadd.f32 1e-05, %v5925_v54  ;;  %v6593_v54 = vld [vmem:[%s11508_s21 + $0x18] sm:$0xff] }
0x138a   : > { %6213 = vmatpush.bf16.msra.mxu1 %v6593_v54 }
0x138b   : > { %6861 = vrsqrt.f32 %v5933_v15  ;;  %vm5983_vm7 = vweird.f32 %v5933_v15 }
0x138e   : > { %v5914_v22 = vpop.xlane.xlu0 %5913 }
0x138f   : > { %v5926_v20 = vmul.f32 %v5914_v22, %v12145_v10 }
0x1391   : > { %v6862_v57 = vpop.eup %6861  ;;  %v5934_v31 = vadd.f32 1e-05, %v5926_v20 }
0x1392   : > { %v5978_v23 = vmul.f32 %v6862_v57, %v5933_v15  ;;  %vm5984_vm6 = vweird.f32 %v6862_v57 }
0x1393   : > { %6863 = vrsqrt.f32 %v5934_v31  ;;  %vm5985_vm8 = vmor %vm5983_vm7, %vm5984_vm6  ;;  %vm5993_vm9 = vweird.f32 %v5934_v31 }
0x1394   : > { %v5979_v33 = vmul.f32 %v6862_v57, %v5978_v23  ;;  %v6592_v23 = vld [vmem:[%s11508_s21 + $0x10] sm:$0xff] }
0x1395   : > { %6214 = vmatpush.bf16.msra.mxu1 %v6592_v23 }
0x1396   : > { %v5980_v17 = vmul.f32 0.5, %v5979_v33 }
0x1398   : > { %v5981_v5 = vsub.f32 1.5, %v5980_v17 }
0x1399   : > { %v6864_v61 = vpop.eup %6863 }
0x139a   : > { %v5988_v56 = vmul.f32 %v6864_v61, %v5934_v31  ;;  %v5982_v36 = vmul.f32 %v6862_v57, %v5981_v5  ;;  %vm5994_vm2 = vweird.f32 %v6864_v61 }
0x139b   : > { %vm5995_vm10 = vmor %vm5993_vm9, %vm5994_vm2 }
0x139c   : > { %v5989_v25 = vmul.f32 %v6864_v61, %v5988_v56  ;;  %v5986_v60 = vsel %vm5985_vm8, %v6862_v57, %v5982_v36 }
0x139d   : > { %v6021_v1 = vmul.f32 %v5986_v60, %v11334_v63 }
0x139e   : > { %v5990_v0 = vmul.f32 0.5, %v5989_v25 }
0x13a0   : > { %v5991_v26 = vsub.f32 1.5, %v5990_v0  ;;  %v6590_v0 = vld [vmem:[%s11508_s21] sm:$0xff] }
0x13a2   : > { %v5992_v30 = vmul.f32 %v6864_v61, %v5991_v26 }
0x13a4   : > { %v5996_v18 = vsel %vm5995_vm10, %v6864_v61, %v5992_v30  ;;  %v6591_v61 = vld [vmem:[%s11508_s21 + $0x8] sm:$0xff] }
0x13a5   : > { %v6022_v24 = vmul.f32 %v5996_v18, %v11341_v53  ;;  %v5920_v55 = vpop.xlane.xlu2 %5919  ;;  %6215 = vmatpush.bf16.msra.mxu1 %v6591_v61 }
0x13a6   : > { %v5928_v37 = vmul.f32 %v5920_v55, %v12145_v10 }
0x13a7   : > { %v6027_v8 = vpack.c.bf16 %v6022_v24, %v6021_v1 }
0x13a8   : > { %v5936_v47 = vadd.f32 1e-05, %v5928_v37 }
0x13a9   : > { %6532 = vmatmul.msk.bf16.gmra.mxu0 %vm781_vm0, %v6027_v8  ;;  %6216 = vmatpush.bf16.msra.mxu1 %v6590_v0 }
0x13aa   : > { %6865 = vrsqrt.f32 %v5936_v47  ;;  %vm6013_vm12 = vweird.f32 %v5936_v47 }
0x13b0   : > { %v6866_v39 = vpop.eup %6865 }
0x13b1   : > { %v6008_v32 = vmul.f32 %v6866_v39, %v5936_v47  ;;  %vm6014_vm11 = vweird.f32 %v6866_v39 }
0x13b2   : > { %vm6015_vm14 = vmor %vm6013_vm12, %vm6014_vm11 }
0x13b3   : > { %v6009_v45 = vmul.f32 %v6866_v39, %v6008_v32 }
0x13b5   : > { %v6010_v21 = vmul.f32 0.5, %v6009_v45 }
0x13b7   : > { %v6011_v62 = vsub.f32 1.5, %v6010_v21 }
0x13b9   : > { %v6012_v46 = vmul.f32 %v6866_v39, %v6011_v62 }
0x13bb   : > { %v6016_v13 = vsel %vm6015_vm14, %v6866_v39, %v6012_v46 }
0x13bc   : > { %v6024_v19 = vmul.f32 %v6016_v13, %v11348_v11 }
0x13ca   : > { %v5917_v38 = vpop.xlane.xlu1 %5916 }
0x13cb   : > { %v5927_v49 = vmul.f32 %v5917_v38, %v12145_v10 }
0x13cd   : > { %v5935_v41 = vadd.f32 1e-05, %v5927_v49 }
0x13cf   : > { %6867 = vrsqrt.f32 %v5935_v41  ;;  %vm6003_vm1 = vweird.f32 %v5935_v41 }
0x13d5   : > { %v6868_v63 = vpop.eup %6867 }
0x13d6   : > { %v5998_v53 = vmul.f32 %v6868_v63, %v5935_v41  ;;  %vm6004_vm13 = vweird.f32 %v6868_v63 }
0x13d7   : > { %vm6005_vm3 = vmor %vm6003_vm1, %vm6004_vm13 }
0x13d8   : > { %v5999_v9 = vmul.f32 %v6868_v63, %v5998_v53 }
0x13da   : > { %v6000_v2 = vmul.f32 0.5, %v5999_v9 }
0x13dc   : > { %v6001_v3 = vsub.f32 1.5, %v6000_v2 }
0x13de   : > { %v6002_v35 = vmul.f32 %v6868_v63, %v6001_v3 }
0x13e0   : > { %v6006_v10 = vsel %vm6005_vm3, %v6868_v63, %v6002_v35 }
0x13e1   : > { %v6023_v6 = vmul.f32 %v6006_v10, %v11357_v7 }
0x13e3   : > { %v6028_v12 = vpack.c.bf16 %v6024_v19, %v6023_v6 }
0x13e5   : > { %6533 = vmatmul.msk.bf16.gmra.mxu0 %vm781_vm0, %v6028_v12 }
0x13e7   : > { %v6065_v52 = vpop.f32.mrf.mxu0 }
0x13e8   : > { %v6066_v40 = vadd.f32 %v11388_v48, %v6065_v52 }
0x13ea   : > { %v6085_v16 = vmul.f32 %v6066_v40, %v6066_v40 }
0x13ec   : > { %v6093_v7 = vmul.f32 %v6085_v16, %v6066_v40 }
0x13ee   : > { %v6101_v28 = vmul.f32 0.044715, %v6093_v7 }
0x13ef   : > { %v6067_v11 = vpop.f32.mrf.mxu0 }
0x13f0   : > { %v6109_v44 = vadd.f32 %v6101_v28, %v6066_v40  ;;  %v6068_v58 = vadd.f32 %v11388_v48, %v6067_v11 }
0x13f2   : > { %v6117_v15 = vmul.f32 0.7978846, %v6109_v44  ;;  %v6086_v22 = vmul.f32 %v6068_v58, %v6068_v58 }
0x13f4   : > { %v6094_v20 = vmul.f32 %v6086_v22, %v6068_v58  ;;  %6869 = vtanh.f32 %v6117_v15 }
0x13f6   : > { %v6102_v57 = vmul.f32 0.044715, %v6094_v20 }
0x13f7   : > { %v6070_v31 = vpop.f32.mrf.mxu0 }
0x13f8   : > { %v6110_v33 = vadd.f32 %v6102_v57, %v6068_v58  ;;  %v6071_v17 = vadd.f32 %v11388_v48, %v6070_v31 }
0x13fa   : > { %v6118_v5 = vmul.f32 0.7978846, %v6110_v33  ;;  %v6087_v56 = vmul.f32 %v6071_v17, %v6071_v17  ;;  %v6870_v25 = vpop.eup %6869 }
0x13fb   : > { %v6133_v60 = vadd.f32 1.0, %v6870_v25 }
0x13fc   : > { %6871 = vtanh.f32 %v6118_v5  ;;  %v6095_v36 = vmul.f32 %v6087_v56, %v6071_v17 }
0x13fd   : > { %v6141_v37 = vmul.f32 0.5, %v6133_v60 }
0x13fe   : > { %v6103_v26 = vmul.f32 0.044715, %v6095_v36 }
0x13ff   : > { %v6072_v30 = vpop.f32.mrf.mxu0  ;;  %v6149_v49 = vmul.f32 %v6141_v37, %v6066_v40 }
0x1400   : > { %v6111_v18 = vadd.f32 %v6103_v26, %v6071_v17  ;;  %v6073_v1 = vadd.f32 %v11388_v48, %v6072_v30 }
0x1402   : > { %v6872_v24 = vpop.eup %6871  ;;  %v6119_v8 = vmul.f32 0.7978846, %v6111_v18  ;;  %v6088_v55 = vmul.f32 %v6073_v1, %v6073_v1 }
0x1403   : > { %v6134_v47 = vadd.f32 1.0, %v6872_v24 }
0x1404   : > { %v6096_v39 = vmul.f32 %v6088_v55, %v6073_v1  ;;  %6873 = vtanh.f32 %v6119_v8 }
0x1405   : > { %v6142_v32 = vmul.f32 0.5, %v6134_v47 }
0x1406   : > { %v6104_v38 = vmul.f32 0.044715, %v6096_v39 }
0x1407   : > { %v6150_v41 = vmul.f32 %v6142_v32, %v6068_v58 }
0x1408   : > { %v6112_v45 = vadd.f32 %v6104_v38, %v6073_v1 }
0x1409   : > { %v6157_v21 = vpack.c.bf16 %v6150_v41, %v6149_v49 }
0x140a   : > { %v6120_v63 = vmul.f32 0.7978846, %v6112_v45  ;;  %v6874_v62 = vpop.eup %6873 }
0x140b   : > { %6558 = vmatmul.msk.bf16.vlgmr.msra.gmra.mxu1 %vm2116_vm15, %v6157_v21  ;;  %v6135_v53 = vadd.f32 1.0, %v6874_v62 }
0x140c   : > { %6875 = vtanh.f32 %v6120_v63 }
0x140d   : > { %v6143_v46 = vmul.f32 0.5, %v6135_v53 }
0x140f   : > { %v6151_v13 = vmul.f32 %v6143_v46, %v6071_v17 }
0x1412   : > { %v6876_v9 = vpop.eup %6875 }
0x1413   : > { %v6136_v2 = vadd.f32 1.0, %v6876_v9 }
0x1415   : > { %v6144_v3 = vmul.f32 0.5, %v6136_v2 }
0x1417   : > { %v6152_v35 = vmul.f32 %v6144_v3, %v6073_v1 }
0x1419   : > { %v6158_v10 = vpack.c.bf16 %v6152_v35, %v6151_v13 }
0x141b   : > { %6559 = vmatmul.msk.bf16.gmra.mxu1 %vm2116_vm15, %v6158_v10 }
0x1426   : > { %v6075_v6 = vpop.f32.mrf.mxu0 }
0x1427   : > { %v6076_v19 = vadd.f32 %v11388_v48, %v6075_v6 }
0x1429   : > { %v6089_v12 = vmul.f32 %v6076_v19, %v6076_v19 }
0x142b   : > { %v6097_v52 = vmul.f32 %v6089_v12, %v6076_v19 }
0x142d   : > { %v6105_v40 = vmul.f32 0.044715, %v6097_v52 }
0x142e   : > { %v6077_v43 = vpop.f32.mrf.mxu0 }
0x142f   : > { %v6113_v16 = vadd.f32 %v6105_v40, %v6076_v19  ;;  %v6078_v7 = vadd.f32 %v11388_v48, %v6077_v43 }
0x1431   : > { %v6121_v28 = vmul.f32 0.7978846, %v6113_v16  ;;  %v6090_v11 = vmul.f32 %v6078_v7, %v6078_v7 }
0x1433   : > { %v6098_v14 = vmul.f32 %v6090_v11, %v6078_v7  ;;  %6877 = vtanh.f32 %v6121_v28 }
0x1435   : > { %v6106_v44 = vmul.f32 0.044715, %v6098_v14 }
0x1437   : > { %v6114_v58 = vadd.f32 %v6106_v44, %v6078_v7 }
0x1439   : > { %v6122_v54 = vmul.f32 0.7978846, %v6114_v58  ;;  %v6878_v15 = vpop.eup %6877 }
0x143a   : > { %v6137_v22 = vadd.f32 1.0, %v6878_v15 }
0x143b   : > { %6879 = vtanh.f32 %v6122_v54 }
0x143c   : > { %v6145_v57 = vmul.f32 0.5, %v6137_v22 }
0x143e   : > { %v6153_v33 = vmul.f32 %v6145_v57, %v6076_v19 }
0x1441   : > { %v6880_v20 = vpop.eup %6879 }
0x1442   : > { %v6138_v31 = vadd.f32 1.0, %v6880_v20 }
0x1444   : > { %v6146_v23 = vmul.f32 0.5, %v6138_v31 }
0x1446   : > { %v6154_v17 = vmul.f32 %v6146_v23, %v6078_v7 }
0x1448   : > { %v6159_v61 = vpack.c.bf16 %v6154_v17, %v6153_v33 }
0x144a   : > { %6560 = vmatmul.msk.bf16.gmra.mxu1 %vm2116_vm15, %v6159_v61 }
0x1462   : > { %v6080_v5 = vpop.f32.mrf.mxu0 }
0x1463   : > { %v6081_v56 = vadd.f32 %v11388_v48, %v6080_v5 }
0x1465   : > { %v6091_v25 = vmul.f32 %v6081_v56, %v6081_v56 }
0x1467   : > { %v6099_v36 = vmul.f32 %v6091_v25, %v6081_v56 }
0x1469   : > { %v6107_v0 = vmul.f32 0.044715, %v6099_v36 }
0x146a   : > { %v6082_v26 = vpop.f32.mrf.mxu0 }
0x146b   : > { %v6115_v60 = vadd.f32 %v6107_v0, %v6081_v56  ;;  %v6083_v30 = vadd.f32 %v11388_v48, %v6082_v26  ;;  %v6654_v48 = vld [vmem:[%s11509_s22] ss:$0 sm:$0xff] }
0x146d   : > { %v6123_v18 = vmul.f32 0.7978846, %v6115_v60  ;;  %v6092_v1 = vmul.f32 %v6083_v30, %v6083_v30 }
0x146f   : > { %v6100_v24 = vmul.f32 %v6092_v1, %v6083_v30  ;;  %6881 = vtanh.f32 %v6123_v18 }
0x1471   : > { %v6108_v8 = vmul.f32 0.044715, %v6100_v24 }
0x1473   : > { %v6116_v55 = vadd.f32 %v6108_v8, %v6083_v30 }
0x1475   : > { %v6124_v37 = vmul.f32 0.7978846, %v6116_v55  ;;  %v6882_v47 = vpop.eup %6881 }
0x1476   : > { %v6139_v39 = vadd.f32 1.0, %v6882_v47 }
0x1477   : > { %6883 = vtanh.f32 %v6124_v37 }
0x1478   : > { %v6147_v38 = vmul.f32 0.5, %v6139_v39 }
0x147a   : > { %v6155_v45 = vmul.f32 %v6147_v38, %v6081_v56 }
0x147d   : > { %v6884_v32 = vpop.eup %6883 }
0x147e   : > { %v6140_v49 = vadd.f32 1.0, %v6884_v32 }
0x1480   : > { %v6148_v41 = vmul.f32 0.5, %v6140_v49 }
0x1482   : > { %v6156_v21 = vmul.f32 %v6148_v41, %v6083_v30 }
0x1484   : > { %v6160_v63 = vpack.c.bf16 %v6156_v21, %v6155_v45 }
0x1486   : > { %6561 = vmatmul.msk.bf16.gmra.mxu1 %vm2116_vm15, %v6160_v63 }
0x1488   : > { %v6218_v62 = vpop.f32.mrf.mxu1 }
0x1489   : > { %v6238_v53 = vadd.f32 %v6218_v62, %v11265_v27 }
0x148b   : > { %v6249_v9 = vadd.f32 %v6654_v48, %v6238_v53 }
0x148d   : > { %6257 = vst.msk [vmem:[%s11428_s28] sm:$0xff] %vm781_vm0, %v6249_v9 }
0x1490   : > { %v6220_v46 = vpop.f32.mrf.mxu1 }
0x1491   : > { %v6239_v2 = vadd.f32 %v6220_v46, %v11270_v51 }
0x1493   : > { %v6250_v3 = vadd.f32 %v6654_v48, %v6239_v2 }
0x1495   : > { %6258 = vst.msk [vmem:[%s11428_s28 + $0x8] sm:$0xff] %vm781_vm0, %v6250_v3 }
0x1498   : > { %v6223_v13 = vpop.f32.mrf.mxu1 }
0x1499   : > { %v6240_v27 = vadd.f32 %v6223_v13, %v11275_v42 }
0x149b   : > { %v6251_v35 = vadd.f32 %v6654_v48, %v6240_v27 }
0x149d   : > { %6259 = vst.msk [vmem:[%s11428_s28 + $0x10] sm:$0xff] %vm781_vm0, %v6251_v35 }
0x14a0   : > { %v6225_v10 = vpop.f32.mrf.mxu1 }
0x14a1   : > { %v6241_v6 = vadd.f32 %v6225_v10, %v11280_v59 }
0x14a3   : > { %v6252_v19 = vadd.f32 %v6654_v48, %v6241_v6 }
0x14a5   : > { %6260 = vst.msk [vmem:[%s11428_s28 + $0x18] sm:$0xff] %vm781_vm0, %v6252_v19 }
0x14c7   : > { %v6228_v51 = vpop.f32.mrf.mxu1 }
0x14c8   : > { %v6242_v12 = vadd.f32 %v6228_v51, %v11285_v4 }
0x14ca   : > { %v6253_v52 = vadd.f32 %v6654_v48, %v6242_v12 }
0x14cc   : > { %6261 = vst.msk [vmem:[%s11428_s28 + $0x20] sm:$0xff] %vm781_vm0, %v6253_v52 }
0x14cf   : > { %v6230_v40 = vpop.f32.mrf.mxu1 }
0x14d0   : > { %v6243_v42 = vadd.f32 %v6230_v40, %v11290_v29 }
0x14d2   : > { %v6254_v43 = vadd.f32 %v6654_v48, %v6243_v42 }
0x14d4   : > { %6262 = vst.msk [vmem:[%s11428_s28 + $0x28] sm:$0xff] %vm781_vm0, %v6254_v43 }
0x1503   : > { %v6233_v16 = vpop.f32.mrf.mxu1 }
0x1504   : > { %v6244_v59 = vadd.f32 %v6233_v16, %v11308_v34 }
0x1506   : > { %v6255_v7 = vadd.f32 %v6654_v48, %v6244_v59 }
0x1508   : > { %6263 = vst.msk [vmem:[%s11428_s28 + $0x30] sm:$0xff] %vm781_vm0, %v6255_v7 }
0x150b   : > { %v6235_v4 = vpop.f32.mrf.mxu1 }
0x150c   : > { %v6245_v29 = vadd.f32 %v6235_v4, %v11295_v50 }
0x150e   : > { %v6256_v28 = vadd.f32 %v6654_v48, %v6245_v29 }
0x1510   : > { %6264 = vst.msk [vmem:[%s11428_s28 + $0x38] sm:$0xff] %vm781_vm0, %v6256_v28 }
0x1511   : > { %6985 = shalt.err (!%p6982_p3)
}
0x1512   : > { %s7029_s1 = smov 128   ;;  %s7030_s28 = smov 8  }
0x1513   : > { %6597 = dma.vmem_to_hbm [thread:$0]  (%p7194_p5), %s6279_s25, 1024, %s6281_s4, %s6266_s6, %s7029_s1, %s7029_s1, %s7030_s28  }
0x1514 PF: > { %s12147_s9 = sld [smem:[#allocation7_spill]] }
0x1515   : > { %s12148_s10 = sld [smem:[#allocation5_spill]] }
0x151a   : > { %p6603_p4 = scmp.ge.s32.totalorder %s12147_s9, 2 }
0x151b   : > { %s6295_s0 = sand.u32 1, %s12148_s10  }
0x151c   : > { %p6600_p7 = pnand %p6603_p4, %p7198_p6  ;;  %s6296_s7 = scalar_lea.sflag [#allocation3], %s6295_s0 }
0x151e   : > { %p6601_p8 = pneg %p6600_p7 }
0x1520   : > { %7003 = dma.done.wait (%p6601_p8), %s6296_s7, 1024  }
0x1521   : > { %7005 = vsyncadd (%p6601_p8), %s6296_s7, 4294966272  ;;  %s12150_s28 = sld [smem:[#allocation8_spill]]  ;;  %s12153_s5 = smov %s7012_s26 }
0x1522   : > { %s12151_s2 = sld [smem:[#allocation6_spill]] }
0x1523   : > { %s12152_s27 = sld [smem:[#allocation9_spill]] }
0x1527   : > { %p34_p9 = scmp.ge.s32.totalorder %s12150_s28, 4  }
0x1528   : > { %s12154_s26 = smov %s12151_s2 }
0x1529   :  { %36 = sbr.rel (!%p34_p9) target bundleno = 16 (0x10), region = 157 }
0x152e   :  { %6302 = vsyncpa [#allocation3], 1 }
0x152f   :  { %6304 = vsyncpa [#allocation3 + $0x1], 1 }

</bundles_post_ra>
